<compile_context>
chip_gen: v6e
topology: v6e:2x2x1
jax: 0.10.0
libtpu: 0.0.40
codegen_flags: <defaults>
</compile_context>

<pallas_src>
import functools
import math

import jax
import jax.numpy as jnp
import numpy as np
from jax.experimental import pallas as pl
from jax.experimental.pallas import tpu as pltpu


# ---------------------------------------------------------------------------
# Kernel
# ---------------------------------------------------------------------------
def token_embedding_kernel(tok_ref, tab_ref, out_ref, *, scale):
    # tok_ref : (1, 1, TILE) int32  -- token ids, lane-major
    # tab_ref : (V, E)       f32    -- embedding table (VMEM-resident, constant block)
    # out_ref : (TILE, E)    f32    -- lane-dense output slab
    ids = tok_ref[0]                                   # (1, TILE) int32
    V = tab_ref.shape[0]
    tile = ids.shape[1]

    # One-hot selector built transposed (V, TILE): token ids stay on the lane
    # axis, so no transpose/relayout of the ids is needed.
    vocab_iota = jax.lax.broadcasted_iota(jnp.int32, (V, tile), 0)
    onehot_t = jnp.where(vocab_iota == ids,
                         jnp.float32(1.0), jnp.float32(0.0))        # (V, TILE)

    # out[t, e] = sum_v onehot_t[v, t] * table[v, e]   (MXU: M=TILE, N=E, K=V)
    # HIGHEST precision keeps the selected f32 rows exact (0/1 selector).
    gathered = jax.lax.dot_general(
        onehot_t, tab_ref[...],
        dimension_numbers=(((0,), (0,)), ((), ())),
        preferred_element_type=jnp.float32,
        precision=jax.lax.Precision.HIGHEST,
    )                                                   # (TILE, E)

    # Cheap VPU scale, fully hidden under the MXU work; matches the reference's
    # f32 post-multiply bit-for-bit.
    out_ref[...] = gathered * scale


# ---------------------------------------------------------------------------
# Wrapper
# ---------------------------------------------------------------------------
def token_embedding_pallas(tokens, table, *, tile=128):
    """tokens: (B, S) int, table: (V, E) f32 -> (B, S, E) = table[tokens] * sqrt(E)."""
    B, S = tokens.shape
    V, E = table.shape
    scale = math.sqrt(E)

    n = B * S
    num_tiles = pl.cdiv(n, tile)
    n_pad = num_tiles * tile

    flat = tokens.astype(jnp.int32).reshape(n)
    if n_pad != n:
        flat = jnp.pad(flat, (0, n_pad - n))            # pad with token 0, sliced off below
    tok3d = flat.reshape(num_tiles, 1, tile)            # ids lane-major, `tile` per slab

    out = pl.pallas_call(
        functools.partial(token_embedding_kernel, scale=scale),
        out_shape=jax.ShapeDtypeStruct((n_pad, E), jnp.float32),
        grid_spec=pltpu.PrefetchScalarGridSpec(
            num_scalar_prefetch=0,
            grid=(num_tiles,),
            in_specs=[
                pl.BlockSpec((1, 1, tile), lambda t: (t, 0, 0)),  # token slab
                pl.BlockSpec((V, E), lambda t: (0, 0)),           # table: constant block,
                                                                  # stays VMEM-resident
            ],
            out_specs=pl.BlockSpec((tile, E), lambda t: (t, 0)),
        ),
        compiler_params=pltpu.CompilerParams(
            dimension_semantics=("parallel",)),
    )(tok3d, table)

    return out[:n].reshape(B, S, E)


# ---------------------------------------------------------------------------
# Pure-JAX reference (mirrors the PyTorch forward exactly)
# ---------------------------------------------------------------------------
def token_embedding_ref(tokens, table):
    E = table.shape[1]
    return jnp.take(table, tokens.astype(jnp.int32), axis=0) * math.sqrt(E)


# ---------------------------------------------------------------------------
# Main
# ---------------------------------------------------------------------------
if __name__ == "__main__":
    VOCAB = 1024
    EMB = 128          # lane-dense embedding dim
    B, S = 4, 64       # 256 tokens -> 2 grid steps of 128 (both v7x TCs get work)

    key = jax.random.PRNGKey(0)
    k_tab, k_tok = jax.random.split(key)
    table = jax.random.normal(k_tab, (VOCAB, EMB), jnp.float32)
    tokens = jax.random.randint(k_tok, (B, S), 0, VOCAB, dtype=jnp.int32)

    out = token_embedding_pallas(tokens, table)
    out = jax.block_until_ready(out)

    ref = jax.block_until_ready(token_embedding_ref(tokens, table))

    np.testing.assert_allclose(np.asarray(out), np.asarray(ref), rtol=1e-5, atol=1e-5)
    assert out.shape == (B, S, EMB)

    print("KERNEL_OK")
</pallas_src>

<mosaic_0001>
module attributes {stable_mosaic.version = 11 : i64} {
  func.func @token_embedding_kernel(%arg0: i32, %arg1: memref<1x1x128xi32, #tpu.memory_space<vmem>>, %arg2: memref<1024x128xf32, #tpu.memory_space<vmem>>, %arg3: memref<128x128xf32, #tpu.memory_space<vmem>>) attributes {dimension_semantics = [#tpu.dimension_semantics<parallel>], iteration_bounds = array<i64: 2>, scalar_prefetch = 0 : i64, scratch_operands = 0 : i64, tpu.core_type = #tpu.core_type<tc>, window_params = [{transform_indices = @transform_0, window_bounds = array<i64: 1, 1, 128>}, {pipeline_mode = #tpu.pipeline_mode<synchronous>, transform_indices = @transform_1, window_bounds = array<i64: 1024, 128>}, {transform_indices = @transform_2, window_bounds = array<i64: 128, 128>}]} {
    %c0 = arith.constant 0 : index
    %c0_0 = arith.constant 0 : index
    %c0_1 = arith.constant 0 : index
    %0 = vector.load %arg1[%c0, %c0_0, %c0_1] : memref<1x1x128xi32, #tpu.memory_space<vmem>>, vector<1x1x128xi32>
    %1 = vector.shape_cast %0 : vector<1x1x128xi32> to vector<1x128xi32>
    %2 = tpu.iota {dimensions = array<i32: 0>} : vector<1024x128xi32>
    %3 = vector.broadcast %1 : vector<1x128xi32> to vector<1024x128xi32>
    %4 = arith.cmpi eq, %2, %3 : vector<1024x128xi32>
    %cst = arith.constant 1.000000e+00 : f32
    %cst_2 = arith.constant 0.000000e+00 : f32
    %5 = vector.broadcast %cst : f32 to vector<1024x128xf32>
    %6 = vector.broadcast %cst_2 : f32 to vector<1024x128xf32>
    %7 = arith.select %4, %5, %6 : vector<1024x128xi1>, vector<1024x128xf32>
    %c0_3 = arith.constant 0 : index
    %c0_4 = arith.constant 0 : index
    %8 = vector.load %arg2[%c0_3, %c0_4] : memref<1024x128xf32, #tpu.memory_space<vmem>>, vector<1024x128xf32>
    %cst_5 = arith.constant dense<0.000000e+00> : vector<128x128xf32>
    %9 = tpu.matmul %7, %8, %cst_5 {dimension_numbers = #tpu.dot_dimension_numbers<[0], [0], [1], [1], [0, 1, 1, 1], [], []>, precision = #tpu.contract_precision<fp32>} : vector<1024x128xf32>, vector<1024x128xf32>, vector<128x128xf32> -> vector<128x128xf32>
    %cst_6 = arith.constant 11.3137083 : f32
    %10 = vector.broadcast %cst_6 : f32 to vector<128x128xf32>
    %11 = arith.mulf %9, %10 : vector<128x128xf32>
    %c0_7 = arith.constant 0 : index
    %c0_8 = arith.constant 0 : index
    %12 = vector.load %arg3[%c0_7, %c0_8] : memref<128x128xf32, #tpu.memory_space<vmem>>, vector<128x128xf32>
    tpu.vector_store %arg3[%c0_7, %c0_8], %11 {strides = array<i32>} : memref<128x128xf32, #tpu.memory_space<vmem>>, vector<128x128xf32>,
    return
  }
  func.func @transform_0(%arg0: i32) -> (i32, i32, i32) {
    %c0_i32 = arith.constant 0 : i32
    %c0_i32_0 = arith.constant 0 : i32
    %c0_i32_1 = arith.constant 0 : i32
    return %arg0, %c0_i32, %c0_i32_0 : i32, i32, i32
  }
  func.func @transform_1(%arg0: i32) -> (i32, i32) {
    %c0_i32 = arith.constant 0 : i32
    %c0_i32_0 = arith.constant 0 : i32
    %c0_i32_1 = arith.constant 0 : i32
    return %c0_i32, %c0_i32_0 : i32, i32
  }
  func.func @transform_2(%arg0: i32) -> (i32, i32) {
    %c0_i32 = arith.constant 0 : i32
    %c0_i32_0 = arith.constant 0 : i32
    return %arg0, %c0_i32 : i32, i32
  }
}

</mosaic_0001>

<bundles_post_ra>
// kernel: tpu_custom_call.1
= control target key start
LH: loop header
LB: loop body
LE: loop exit
PB: predicated region body
PF: predicated region fallthrough
CT: control target
= control target key end

     0   :  { %7 = vsyncpa [#allocation3], 0  ;;  %s16714_s0 = inlined_call_operand.hbm [shape: s32[2,1,128], index: 0, kind: input, shape index: {}]   ;;  %s16715_s1 = inlined_call_operand.hbm [shape: f32[1024,128], index: 1, kind: input, shape index: {}]   ;;  %s16716_s2 = inlined_call_operand.hbm [shape: f32[256,128], index: 2, kind: output, shape index: {}]  }
   0x1   :  { %9 = vsyncpa [#allocation3 + $0x1], 0 }
   0x2   :  { %10 = vsyncpa [#allocation6], 0 }
   0x3   :  { %11 = vsyncpa [#allocation4], 0 }
   0x4   :  { %13 = vsyncpa [#allocation4 + $0x1], 0  ;;  %s10475_s9 = smov 0   ;;  %s10477_s10 = smov 0  }
   0x5   :  { %s10479_s11 = smov 0   ;;  %s10481_s12 = smov 0  }
   0x6 LB: > { %s10496_s13 = sadd.s32 4294967295, %s10450_s12   ;;  %s7880_s14 = sadd.s32 4294967294, %s10450_s12   ;;  %s10450_s12 = sphi %s10481_s12, %s19228_s12   ;;  %s10446_s11 = sphi %s10479_s11, %s19227_s11   ;;  %s10442_s10 = sphi %s10477_s10, %s19226_s10   ;;  %s10438_s9 = sphi %s10475_s9, %s19225_s9  }
   0x7   : > { %p39_p0 = scmp.ne.s32.totalorder %s10442_s10, %s10438_s9  ;;  %p16717_p1 = scmp.eq.s32.totalorder %s10496_s13, 0 }
   0x8   : > { %p90_p3 = scmp.eq.s32.totalorder %s7880_s14, 1  ;;  %p7881_p5 = scmp.ge.s32.totalorder %s10450_s12, 1 }
   0x9   : > { %p10505_p4 = por %p16717_p1, %p39_p0  ;;  %p97_p7 = scmp.lt.s32.totalorder %s10450_s12, 3 }
   0xa   : > { %p10510_p6 = por %p90_p3, %p39_p0  ;;  %s10452_s18 = smov [#allocation5]  }
   0xb   : > { %s17592_s15 = scalar_select %p10505_p4, 1, 0 }
   0xc   : > { %s17593_s16 = scalar_select %p10510_p6, 1, 0 }
   0xd   : > { %p10515_p8 = pnand %p7881_p5, %p97_p7  ;;  %s109_s19 = sshll.u32 %s10452_s18, 4  ;;  %s110_s19 = int_to_ptr.vmem [resolvable:$true] %s109_s19 }
   0xe   : > { %s10529_s21 = sadd.s32 1, %s10450_s12   ;;  %s26_s22 = sadd.s32 1, %s10446_s11 }
   0xf   : > { %s17594_s17 = scalar_select %p10515_p8, 1, 0 }
  0x10   : > { %p9823_p9 = pneg %p10515_p8  ;;  %s23_s23 = ssub.s32 %s10450_s12, %s10529_s21 }
  0x11   : > { %s10339_s24 = scalar_lea.vmem %s110_s19, 16384  ;;  %p10347_p5 = scmp.lt.s32.totalorder %s110_s19, %s110_s19 }
  0x12   : > { %p10524_p11 = pnand %p9823_p9, %p16717_p1  ;;  %p10340_p13 = scmp.ne.s32.totalorder %s110_s19, %s10339_s24 }
  0x13   : > { %p10348_p7 = scmp.lt.s32.totalorder %s10339_s24, %s10339_s24 }
  0x14   : > { %p10330_p12 = pneg %p10524_p11 }
  0x15   : > { %p10349_p10 = por %p10348_p7, %p10347_p5 }
  0x16   : > { %p10342_p0 = pnand %p10340_p13, %p10330_p12 }
  0x18   : > { %p10343_p3 = pneg %p10342_p0 }
  0x1a   : > { %p10350_p2 = pnand %p10349_p10, %p10343_p3 }
  0x1c   : > { %10353 = shalt.err (!%p10350_p2)
}
  0x1d   : > { %s10453_s25 = smov 128   ;;  %s10454_s26 = smov 8  }
  0x1e   : > { %9826 = dma.hbm_to_vmem [thread:$0]  (!%p10524_p11), %s16715_s1, 16384, %s110_s19, [#allocation6], %s10453_s25, %s10453_s25, %s10454_s26  }
  0x1f   : > { %p24_p9 = scmp.eq.s32.totalorder %s23_s23, 0  ;;  %p33_p12 = scmp.ne.s32.totalorder %s10446_s11, %s10442_s10 }
  0x20   : > { %p34_p10 = scmp.eq.s32.totalorder %s10450_s12, 0  ;;  %p9836_p2 = scmp.lt.s32.totalorder %s10450_s12, 2 }
  0x21   : > { %s10546_s29 = scalar_select %p24_p9, %s10446_s11, %s26_s22  }
  0x22   : > { %p35_p13 = por %p34_p10, %p33_p12  ;;  %p17596_p0 = scmp.eq.s32.totalorder %s10496_s13, 1 }
  0x23   : > { %s123_s3 = sand.u32 1, %s10446_s11   ;;  %s7884_s4 = sshll.u32 %s10450_s12, 4 }
  0x24   : > { %p10550_p3 = por %p17596_p0, %p33_p12  ;;  %s10559_s7 = scalar_lea.hbm %s16714_s0, %s7884_s4 }
  0x25   : > { %s126_s8 = scalar_lea.vmem [#allocation2], %s123_s3  ;;  %p10561_p11 = pnand %p9836_p2, %p35_p13 }
  0x26   : > { %s17597_s30 = scalar_select %p10550_p3, 1, 0 }
  0x27   : > { %s133_s14 = sshll.u32 %s126_s8, 4  ;;  %s124_s19 = scalar_lea.sflag [#allocation3], %s123_s3  ;;  %s134_s14 = int_to_ptr.vmem [resolvable:$true] %s133_s14 }
  0x28   : > { %s10354_s20 = scalar_lea.hbm %s10559_s7, 16  ;;  %p10356_p7 = pneg %p10561_p11 }
  0x29   : > { %p10355_p5 = scmp.ne.s32.totalorder %s10559_s7, %s10354_s20  ;;  %s10359_s24 = scalar_lea.hbm %s16714_s0, 32 }
  0x2a   : > { %p10360_p10 = scmp.lt.s32.totalorder %s10559_s7, %s16714_s0  ;;  %p10361_p2 = scmp.lt.s32.totalorder %s10359_s24, %s10354_s20 }
  0x2b   : > { %p10357_p9 = pnand %p10356_p7, %p10355_p5 }
  0x2c   : > { %p10362_p13 = por %p10361_p2, %p10360_p10 }
  0x2d   : > { %p10358_p12 = pneg %p10357_p9 }
  0x2f   : > { %p10363_p0 = pnand %p10362_p13, %p10358_p12 }
  0x31   : > { %10366 = shalt.err (!%p10363_p0)
}
  0x32   : > { %s10367_s27 = scalar_lea.vmem %s134_s14, 16  ;;  %s10455_s28 = smov [#allocation2]  }
  0x33   : > { %p10368_p1 = scmp.ne.s32.totalorder %s134_s14, %s10367_s27  ;;  %s10372_s3 = sshll.u32 %s10455_s28, 4  ;;  %s10373_s3 = int_to_ptr.vmem [resolvable:$false] %s10372_s3 }
  0x34   : > { %s10374_s4 = scalar_lea.vmem %s10373_s3, 32  ;;  %p10375_p5 = scmp.lt.s32.totalorder %s134_s14, %s10373_s3 }
  0x35   : > { %p10370_p6 = pnand %p10368_p1, %p10356_p7  ;;  %p10376_p9 = scmp.lt.s32.totalorder %s10374_s4, %s10367_s27 }
  0x37   : > { %p10371_p3 = pneg %p10370_p6  ;;  %p10377_p4 = por %p10376_p9, %p10375_p5 }
  0x39   : > { %p10378_p8 = pnand %p10377_p4, %p10371_p3 }
  0x3b   : > { %10381 = shalt.err (!%p10378_p8)
}
  0x3c   : > { %9830 = dma.hbm_to_vmem [thread:$0]  (!%p10561_p11), %s10559_s7, 16, %s134_s14, %s124_s19  }
  0x3d   : > { %p17599_p12 = scmp.ne.s32.totalorder %s17594_s17, 0 }
  0x3f   : > { %142 = sbr.rel (%p17599_p12) target bundleno = 1253 (0x4e5), region = 28 }
  0x44   : > { %s10582_s5 = sand.u32 1, %s10442_s10   ;;  %p17600_p1 = scmp.ne.s32.totalorder %s17592_s15, 0 }
  0x45   : > { %s145_s6 = scalar_lea.sflag [#allocation3], %s10582_s5  ;;  %s10586_s8 = scalar_lea.vmem [#allocation2], %s10582_s5 }
  0x46   : > { %10425 = dma.done.wait (%p17600_p1), %s145_s6, 16  }
  0x47   : > { %10427 = vsyncadd (%p17600_p1), %s145_s6, 4294967280  ;;  %p17601_p4 = scmp.eq.s32.totalorder %s10496_s13, 0 }
  0x49   : > { %10429 = dma.done.wait (%p17601_p4), [#allocation6], 16384   ;;  %p17602_p6 = pmov %p17601_p4 }
  0x4a   : > { %v173_v0 = vlaneseq  ;;  %v10611_v14 = vld [vmem:[%s10586_s8] ss:$0 sm:$0xff]  ;;  %v16727_v19 = vmov 0.0   ;;  %v583_v61 = vld [vmem:[#allocation5 + $0xa8] sm:$0xff]  ;;  %s7887_s15 = sshll.u32 %s10582_s5, 7  ;;  %s7894_s7 = sshll.u32 %s10496_s13, 11 }
  0x4b   : > { %10431 = vsyncadd (%p17602_p6), [#allocation6], 4294950912  ;;  %s16586_s17 = scalar_lea.vmem [#allocation7], %s7887_s15  ;;  %s16668_s20 = scalar_lea.hbm %s16716_s2, %s7894_s7 }
  0x4c   : > { %v10596_v1 = vshrl.u32 %v173_v0, 7  ;;  %s7800_s14 = sshll.u32 %s16586_s17, 4  ;;  %s7787_s22 = scalar_lea.sflag [#allocation4], %s10582_s5  ;;  %s16670_s14 = int_to_ptr.vmem [resolvable:$true] %s7800_s14 }
  0x4d   : > { %s10382_s23 = scalar_lea.vmem %s16670_s14, 2048  ;;  %p19222_p3 = scmp.ne.s32.totalorder %s17597_s30, 0 }
  0x4e   : > { %17603 = vst [vmem:[#allocation11_spill] sm:$0xff] %v10596_v1  ;;  %v190_v2 = vadd.s32 128, %v10596_v1  ;;  %v175_v3 = vadd.s32 8, %v10596_v1  ;;  %v191_v4 = vadd.s32 136, %v10596_v1  ;;  %v176_v5 = vadd.s32 16, %v10596_v1  ;;  %p10383_p8 = scmp.ne.s32.totalorder %s16670_s14, %s10382_s23  ;;  %s10457_s13 = smov [#allocation7]  }
  0x4f   : > { %v192_v6 = vadd.s32 144, %v10596_v1  ;;  %v177_v7 = vadd.s32 24, %v10596_v1  ;;  %v193_v8 = vadd.s32 152, %v10596_v1  ;;  %v178_v9 = vadd.s32 32, %v10596_v1  ;;  %s10386_s24 = sshll.u32 %s10457_s13, 4  ;;  %s10387_s24 = int_to_ptr.vmem [resolvable:$false] %s10386_s24 }
  0x50   : > { %v194_v10 = vadd.s32 160, %v10596_v1  ;;  %v179_v11 = vadd.s32 40, %v10596_v1  ;;  %v195_v12 = vadd.s32 168, %v10596_v1  ;;  %v180_v13 = vadd.s32 48, %v10596_v1  ;;  %p10384_p11 = pnand %p10383_p8, %p19222_p3  ;;  %s10388_s25 = scalar_lea.vmem %s10387_s24, 4096 }
  0x51   : > { %v196_v15 = vadd.s32 176, %v10596_v1  ;;  %v181_v16 = vadd.s32 56, %v10596_v1  ;;  %v197_v17 = vadd.s32 184, %v10596_v1  ;;  %v182_v18 = vadd.s32 64, %v10596_v1  ;;  %p10389_p10 = scmp.lt.s32.totalorder %s16670_s14, %s10387_s24  ;;  %p10390_p2 = scmp.lt.s32.totalorder %s10388_s25, %s10382_s23 }
  0x52   : > { %vm306_vm0 = vcmp.eq.s32.totalorder %v10596_v1, %v10611_v14  ;;  %vm322_vm1 = vcmp.eq.s32.totalorder %v190_v2, %v10611_v14  ;;  %vm307_vm2 = vcmp.eq.s32.totalorder %v175_v3, %v10611_v14  ;;  %vm323_vm3 = vcmp.eq.s32.totalorder %v191_v4, %v10611_v14  ;;  %v568_v3 = vld [vmem:[#allocation5 + $0x30] sm:$0xff]  ;;  %p10385_p7 = pneg %p10384_p11 }
  0x53   : > { %v434_v20 = vsel %vm306_vm0, 1.0, %v16727_v19  ;;  %v450_v21 = vsel %vm322_vm1, 1.0, %v16727_v19  ;;  %v435_v22 = vsel %vm307_vm2, 1.0, %v16727_v19  ;;  %v451_v23 = vsel %vm323_vm3, 1.0, %v16727_v19  ;;  %p10391_p13 = por %p10390_p2, %p10389_p10 }
  0x54   : > { %v9877_v24 = vpack.i.bf16 %v434_v20, %v450_v21  ;;  %v9879_v25 = vpack.i.bf16 %v435_v22, %v451_v23  ;;  %vm308_vm4 = vcmp.eq.s32.totalorder %v176_v5, %v10611_v14  ;;  %vm324_vm5 = vcmp.eq.s32.totalorder %v192_v6, %v10611_v14  ;;  %v593_v6 = vld [vmem:[#allocation5 + $0xf8] sm:$0xff]  ;;  %v592_v20 = vld [vmem:[#allocation5 + $0xf0] sm:$0xff]  ;;  %v591_v23 = vld [vmem:[#allocation5 + $0xe8] sm:$0xff] }
  0x55   : > { %v436_v26 = vsel %vm308_vm4, 1.0, %v16727_v19  ;;  %v452_v27 = vsel %vm324_vm5, 1.0, %v16727_v19  ;;  %vm309_vm6 = vcmp.eq.s32.totalorder %v177_v7, %v10611_v14  ;;  %vm325_vm7 = vcmp.eq.s32.totalorder %v193_v8, %v10611_v14  ;;  %v577_v7 = vld [vmem:[#allocation5 + $0x78] sm:$0xff]  ;;  %v576_v22 = vld [vmem:[#allocation5 + $0x70] sm:$0xff]  ;;  %p10392_p0 = pnand %p10391_p13, %p10385_p7 }
  0x56   : > { %9878 = vxpose.xlu0.b32.start [1/16] %v9877_v24, 128  ;;  %v9881_v28 = vpack.i.bf16 %v436_v26, %v452_v27  ;;  %v437_v29 = vsel %vm309_vm6, 1.0, %v16727_v19  ;;  %v453_v30 = vsel %vm325_vm7, 1.0, %v16727_v19  ;;  %vm310_vm8 = vcmp.eq.s32.totalorder %v178_v9, %v10611_v14  ;;  %v575_v24 = vld [vmem:[#allocation5 + $0x68] sm:$0xff] }
  0x57   : > { %v9883_v31 = vpack.i.bf16 %v437_v29, %v453_v30  ;;  %vm326_vm9 = vcmp.eq.s32.totalorder %v194_v10, %v10611_v14  ;;  %v10637_v32 = vsel %vm310_vm8, 1.0, %v16727_v19  ;;  %vm311_vm10 = vcmp.eq.s32.totalorder %v179_v11, %v10611_v14  ;;  %v590_v29 = vld [vmem:[#allocation5 + $0xe0] sm:$0xff] }
  0x58   : > { %v454_v33 = vsel %vm326_vm9, 1.0, %v16727_v19  ;;  %vm327_vm11 = vcmp.eq.s32.totalorder %v195_v12, %v10611_v14  ;;  %v10643_v34 = vsel %vm311_vm10, 1.0, %v16727_v19  ;;  %vm312_vm12 = vcmp.eq.s32.totalorder %v180_v13, %v10611_v14  ;;  %v574_v30 = vld [vmem:[#allocation5 + $0x60] sm:$0xff] }
  0x59   : > { %v9885_v35 = vpack.i.bf16 %v10637_v32, %v454_v33  ;;  %v10648_v36 = vsel %vm327_vm11, 1.0, %v16727_v19  ;;  %vm328_vm13 = vcmp.eq.s32.totalorder %v196_v15, %v10611_v14  ;;  %v10652_v37 = vsel %vm312_vm12, 1.0, %v16727_v19 }
  0x5a   : > { %9880 = vxpose.xlu0.b32.cont [2/16] %v9879_v25, 128  ;;  %v9887_v38 = vpack.i.bf16 %v10643_v34, %v10648_v36  ;;  %v10657_v39 = vsel %vm328_vm13, 1.0, %v16727_v19  ;;  %vm313_vm14 = vcmp.eq.s32.totalorder %v181_v16, %v10611_v14  ;;  %vm329_vm15 = vcmp.eq.s32.totalorder %v197_v17, %v10611_v14 }
  0x5b   : > { %v9889_v40 = vpack.i.bf16 %v10652_v37, %v10657_v39  ;;  %v10664_v41 = vsel %vm313_vm14, 1.0, %v16727_v19  ;;  %v10667_v42 = vsel %vm329_vm15, 1.0, %v16727_v19  ;;  %v198_v43 = vadd.s32 192, %v10596_v1 }
  0x5c   : > { %v9891_v44 = vpack.i.bf16 %v10664_v41, %v10667_v42  ;;  %vm314_vm0 = vcmp.eq.s32.totalorder %v182_v18, %v10611_v14  ;;  %v183_v45 = vadd.s32 72, %v10596_v1  ;;  %v199_v46 = vadd.s32 200, %v10596_v1  ;;  %v586_v42 = vld [vmem:[#allocation5 + $0xc0] sm:$0xff] }
  0x5d   : > { %vm330_vm1 = vcmp.eq.s32.totalorder %v198_v43, %v10611_v14  ;;  %v10677_v47 = vsel %vm314_vm0, 1.0, %v16727_v19  ;;  %v184_v48 = vadd.s32 80, %v10596_v1  ;;  %v200_v49 = vadd.s32 208, %v10596_v1 }
  0x5e   : > { %9882 = vxpose.xlu0.b32.cont [3/16] %v9881_v28, 128  ;;  %v10682_v50 = vsel %vm330_vm1, 1.0, %v16727_v19  ;;  %vm315_vm2 = vcmp.eq.s32.totalorder %v183_v45, %v10611_v14  ;;  %vm331_vm3 = vcmp.eq.s32.totalorder %v199_v46, %v10611_v14  ;;  %v185_v51 = vadd.s32 88, %v10596_v1 }
  0x5f   : > { %v9893_v52 = vpack.i.bf16 %v10677_v47, %v10682_v50  ;;  %v10690_v53 = vsel %vm315_vm2, 1.0, %v16727_v19  ;;  %v10693_v54 = vsel %vm331_vm3, 1.0, %v16727_v19  ;;  %vm316_vm4 = vcmp.eq.s32.totalorder %v184_v48, %v10611_v14 }
  0x60   : > { %v9895_v55 = vpack.i.bf16 %v10690_v53, %v10693_v54  ;;  %vm332_vm5 = vcmp.eq.s32.totalorder %v200_v49, %v10611_v14  ;;  %v10700_v56 = vsel %vm316_vm4, 1.0, %v16727_v19  ;;  %v201_v57 = vadd.s32 216, %v10596_v1 }
  0x61   : > { %v10704_v58 = vsel %vm332_vm5, 1.0, %v16727_v19  ;;  %vm317_vm6 = vcmp.eq.s32.totalorder %v185_v51, %v10611_v14  ;;  %v186_v59 = vadd.s32 96, %v10596_v1  ;;  %v202_v60 = vadd.s32 224, %v10596_v1 }
  0x62   : > { %9884 = vxpose.xlu0.b32.cont [4/16] %v9883_v31, 128  ;;  %vm333_vm7 = vcmp.eq.s32.totalorder %v201_v57, %v10611_v14  ;;  %v10713_v62 = vsel %vm317_vm6, 1.0, %v16727_v19  ;;  %v187_v63 = vadd.s32 104, %v10596_v1  ;;  %v203_v2 = vadd.s32 232, %v10596_v1 }
  0x63   : > { %v10717_v0 = vsel %vm333_vm7, 1.0, %v16727_v19  ;;  %vm318_vm8 = vcmp.eq.s32.totalorder %v186_v59, %v10611_v14  ;;  %vm334_vm9 = vcmp.eq.s32.totalorder %v202_v60, %v10611_v14  ;;  %v188_v10 = vadd.s32 112, %v10596_v1 }
  0x64   : > { %v10725_v4 = vsel %vm318_vm8, 1.0, %v16727_v19  ;;  %v10728_v5 = vsel %vm334_vm9, 1.0, %v16727_v19  ;;  %vm319_vm10 = vcmp.eq.s32.totalorder %v187_v63, %v10611_v14  ;;  %vm335_vm11 = vcmp.eq.s32.totalorder %v203_v2, %v10611_v14 }
  0x65   : > { %v10735_v9 = vsel %vm319_vm10, 1.0, %v16727_v19  ;;  %v10739_v11 = vsel %vm335_vm11, 1.0, %v16727_v19  ;;  %v204_v12 = vadd.s32 240, %v10596_v1  ;;  %v189_v13 = vadd.s32 120, %v10596_v1 }
  0x66   : > { %9886 = vxpose.xlu0.b32.cont [5/16] %v9885_v35, 128  ;;  %v205_v15 = vadd.s32 248, %v10596_v1  ;;  %vm320_vm12 = vcmp.eq.s32.totalorder %v188_v10, %v10611_v14  ;;  %v10747_v17 = vand.u32 4294901760, %v593_v6  ;;  %v10749_v18 = vand.u32 4294901760, %v577_v7  ;;  %v589_v10 = vld [vmem:[#allocation5 + $0xd8] sm:$0xff] }
  0x67   : > { %vm336_vm13 = vcmp.eq.s32.totalorder %v204_v12, %v10611_v14  ;;  %v10753_v21 = vsel %vm320_vm12, 1.0, %v16727_v19  ;;  %vm321_vm14 = vcmp.eq.s32.totalorder %v189_v13, %v10611_v14  ;;  %v10780_v35 = vand.u32 4294901760, %v592_v20 }
  0x68   : > { %vm337_vm15 = vcmp.eq.s32.totalorder %v205_v15, %v10611_v14  ;;  %v10758_v25 = vsel %vm336_vm13, 1.0, %v16727_v19  ;;  %v10761_v26 = vsel %vm321_vm14, 1.0, %v16727_v19  ;;  %v10767_v28 = vsub.f32 %v593_v6, %v10747_v17  ;;  %7895 = vmatprep.subr.mxu0 %v10747_v17 }
  0x69   : > { %v10764_v27 = vsel %vm337_vm15, 1.0, %v16727_v19  ;;  %v10778_v33 = vsub.f32 %v577_v7, %v10749_v18  ;;  %7896 = vmatpush3.msra.mxu0 %v10749_v18  ;;  %v10784_v45 = vand.u32 4294901760, %v576_v22  ;;  %v10786_v46 = vand.u32 4294901760, %v591_v23 }
  0x6a   : > { %9888 = vxpose.xlu0.b32.cont [6/16] %v9887_v38, 128  ;;  %v16726_v43 = vand.u32 4294901760, %v10767_v28  ;;  %v10788_v34 = vand.u32 4294901760, %v575_v24  ;;  %v10792_v38 = vsub.f32 %v592_v20, %v10780_v35  ;;  %v10794_v48 = vand.u32 4294901760, %v590_v29  ;;  %7897 = vmatprep.subr.mxu0 %v10780_v35 }
  0x6b   : > { %v16725_v36 = vand.u32 4294901760, %v10778_v33  ;;  %v10796_v49 = vand.u32 4294901760, %v574_v30  ;;  %v10803_v57 = vsub.f32 %v576_v22, %v10784_v45  ;;  %v10806_v59 = vsub.f32 %v591_v23, %v10786_v46  ;;  %7898 = vmatpush3.msra.mxu0 %v10784_v45 }
  0x6c   : > { %17604 = vst [vmem:[#allocation12_spill] sm:$0xff] %v10794_v48  ;;  %v1399_v51 = vsub.f32 %v10767_v28, %v16726_v43  ;;  %v10809_v60 = vsub.f32 %v575_v24, %v10788_v34  ;;  %v16724_v2 = vand.u32 4294901760, %v10792_v38  ;;  %v10820_v6 = vsub.f32 %v590_v29, %v10794_v48  ;;  %7899 = vmatprep.subr.mxu0 %v10786_v46  ;;  %v571_v43 = vld [vmem:[#allocation5 + $0x48] sm:$0xff] }
  0x6d   : > { %17605 = vst [vmem:[#allocation13_spill] sm:$0xff] %v10796_v49  ;;  %v1287_v63 = vsub.f32 %v10778_v33, %v16725_v36  ;;  %v10823_v7 = vsub.f32 %v574_v30, %v10796_v49  ;;  %v16721_v13 = vand.u32 4294901760, %v10803_v57  ;;  %v16722_v37 = vand.u32 4294901760, %v10806_v59  ;;  %7900 = vmatpush3.msra.mxu0 %v10788_v34  ;;  %v587_v36 = vld [vmem:[#allocation5 + $0xc8] sm:$0xff] }
  0x6e   : > { %9890 = vxpose.xlu0.b32.cont [7/16] %v9889_v40, 128  ;;  %v1400_v12 = vand.u32 4294901760, %v1399_v51  ;;  %v16723_v39 = vand.u32 4294901760, %v10809_v60  ;;  %v573_v40 = vld [vmem:[#allocation5 + $0x58] sm:$0xff]  ;;  %v1406_v20 = vsub.f32 %v10792_v38, %v16724_v2  ;;  %v16730_v22 = vand.u32 4294901760, %v10820_v6  ;;  %7901 = vmatprep.subr.mxu0 %v10794_v48  ;;  %v572_v2 = vld [vmem:[#allocation5 + $0x50] sm:$0xff] }
  0x6f   : > { %v1288_v15 = vand.u32 4294901760, %v1287_v63  ;;  %v16729_v23 = vand.u32 4294901760, %v10823_v7  ;;  %v1294_v24 = vsub.f32 %v10803_v57, %v16721_v13  ;;  %v1413_v29 = vsub.f32 %v10806_v59, %v16722_v37  ;;  %v588_v63 = vld [vmem:[#allocation5 + $0xd0] sm:$0xff]  ;;  %7902 = vmatpush3.msra.mxu0 %v10796_v49 }
  0x70   : > { %7975 = vmatprep.subr.mxu1 %v1400_v12  ;;  %v1301_v30 = vsub.f32 %v10809_v60, %v16723_v39  ;;  %v10845_v51 = vand.u32 4294901760, %v589_v10  ;;  %v1407_v12 = vand.u32 4294901760, %v1406_v20  ;;  %v1420_v13 = vsub.f32 %v10820_v6, %v16730_v22 }
  0x71   : > { %7976 = vmatpush3.msra.mxu1 %v1288_v15  ;;  %v1308_v37 = vsub.f32 %v10823_v7, %v16729_v23  ;;  %v10857_v39 = vand.u32 4294901760, %v573_v40  ;;  %v1295_v19 = vand.u32 4294901760, %v1294_v24  ;;  %v1414_v32 = vand.u32 4294901760, %v1413_v29 }
  0x72   : > { %17606 = vst [vmem:[#allocation14_spill] sm:$0xff] %v10845_v51  ;;  %9892 = vxpose.xlu0.b32.cont [8/16] %v9891_v44, 128  ;;  %v1302_v31 = vand.u32 4294901760, %v1301_v30  ;;  %v10860_v41 = vsub.f32 %v589_v10, %v10845_v51  ;;  %7903 = vmatprep.subr.mxu0 %v10845_v51  ;;  %v570_v44 = vld [vmem:[#allocation5 + $0x40] sm:$0xff]  ;;  %v1421_v15 = vand.u32 4294901760, %v1420_v13  ;;  %v10866_v22 = vand.u32 4294901760, %v588_v63 }
  0x73   : > { %17607 = vst [vmem:[#allocation15_spill] sm:$0xff] %v10857_v39  ;;  %7977 = vmatprep.subr.mxu1 %v1407_v12  ;;  %v1309_v20 = vand.u32 4294901760, %v1308_v37  ;;  %v10864_v23 = vsub.f32 %v573_v40, %v10857_v39  ;;  %7904 = vmatpush3.msra.mxu0 %v10857_v39  ;;  %v10870_v29 = vand.u32 4294901760, %v572_v2  ;;  %v10872_v10 = vand.u32 4294901760, %v587_v36 }
  0x74   : > { %17608 = vst [vmem:[#allocation16_spill] sm:$0xff] %v10860_v41  ;;  %17610 = vst [vmem:[#allocation18_spill] sm:$0xff] %v10866_v22  ;;  %7978 = vmatpush3.msra.mxu1 %v1295_v19  ;;  %v16731_v24 = vand.u32 4294901760, %v10860_v41  ;;  %v10874_v30 = vand.u32 4294901760, %v571_v43  ;;  %v10881_v37 = vsub.f32 %v588_v63, %v10866_v22  ;;  %v10883_v40 = vand.u32 4294901760, %v586_v42  ;;  %7905 = vmatprep.subr.mxu0 %v10866_v22 }
  0x75   : > { %17609 = vst [vmem:[#allocation17_spill] sm:$0xff] %v10864_v23  ;;  %17611 = vst [vmem:[#allocation19_spill] sm:$0xff] %v10870_v29  ;;  %7979 = vmatprep.subr.mxu1 %v1414_v32  ;;  %v16732_v13 = vand.u32 4294901760, %v10864_v23  ;;  %v10885_v19 = vand.u32 4294901760, %v570_v44  ;;  %v10891_v16 = vsub.f32 %v572_v2, %v10870_v29  ;;  %v10894_v47 = vsub.f32 %v587_v36, %v10872_v10  ;;  %v585_v2 = vld [vmem:[#allocation5 + $0xb8] sm:$0xff] }
  0x76   : > { %17612 = vst [vmem:[#allocation20_spill] sm:$0xff] %v10872_v10  ;;  %17613 = vst [vmem:[#allocation21_spill] sm:$0xff] %v10874_v30  ;;  %9894 = vxpose.xlu0.b32.cont [9/16] %v9893_v52, 128  ;;  %7980 = vmatpush3.msra.mxu1 %v1302_v31  ;;  %v1427_v12 = vsub.f32 %v10860_v41, %v16731_v24  ;;  %v10897_v50 = vsub.f32 %v571_v43, %v10874_v30  ;;  %v16733_v31 = vand.u32 4294901760, %v10881_v37 }
  0x77   : > { %17614 = vst [vmem:[#allocation22_spill] sm:$0xff] %v10881_v37  ;;  %17615 = vst [vmem:[#allocation23_spill] sm:$0xff] %v10883_v40  ;;  %7981 = vmatprep.subr.mxu1 %v1421_v15  ;;  %v1315_v52 = vsub.f32 %v10864_v23, %v16732_v13  ;;  %v10904_v32 = vsub.f32 %v586_v42, %v10883_v40  ;;  %v10907_v63 = vsub.f32 %v570_v44, %v10885_v19  ;;  %v569_v13 = vld [vmem:[#allocation5 + $0x38] sm:$0xff] }
  0x78   : > { %17616 = vst [vmem:[#allocation24_spill] sm:$0xff] %v10885_v19  ;;  %17617 = vst [vmem:[#allocation25_spill] sm:$0xff] %v10891_v16  ;;  %7982 = vmatpush3.msra.mxu1 %v1309_v20  ;;  %v1428_v36 = vand.u32 4294901760, %v1427_v12  ;;  %v16734_v43 = vand.u32 4294901760, %v10891_v16  ;;  %v16735_v15 = vand.u32 4294901760, %v10894_v47  ;;  %v16736_v24 = vand.u32 4294901760, %v10897_v50  ;;  %7906 = vmatpush3.msra.mxu0 %v10870_v29 }
  0x79   : > { %17618 = vst [vmem:[#allocation26_spill] sm:$0xff] %v10894_v47  ;;  %17619 = vst [vmem:[#allocation27_spill] sm:$0xff] %v10897_v50  ;;  %v1316_v42 = vand.u32 4294901760, %v1315_v52  ;;  %v1434_v44 = vsub.f32 %v10881_v37, %v16733_v31  ;;  %v16743_v20 = vand.u32 4294901760, %v10904_v32  ;;  %v16744_v12 = vand.u32 4294901760, %v10907_v63  ;;  %7907 = vmatprep.subr.mxu0 %v10872_v10  ;;  %v584_v52 = vld [vmem:[#allocation5 + $0xb0] sm:$0xff] }
  0x7a   : > { %17620 = vst [vmem:[#allocation28_spill] sm:$0xff] %v10904_v32  ;;  %17621 = vst [vmem:[#allocation29_spill] sm:$0xff] %v10907_v63  ;;  %9896 = vxpose.xlu0.b32.cont [10/16] %v9895_v55, 128  ;;  %7983 = vmatprep.subr.mxu1 %v1428_v36  ;;  %v1322_v8 = vsub.f32 %v10891_v16, %v16734_v43  ;;  %v1441_v53 = vsub.f32 %v10894_v47, %v16735_v15  ;;  %v10932_v55 = vand.u32 4294901760, %v585_v2 }
  0x7b   : > { %v1329_v54 = vsub.f32 %v10897_v50, %v16736_v24  ;;  %7908 = vmatpush3.msra.mxu0 %v10874_v30  ;;  %7984 = vmatpush3.msra.mxu1 %v1316_v42  ;;  %v1435_v31 = vand.u32 4294901760, %v1434_v44  ;;  %v1448_v36 = vsub.f32 %v10904_v32, %v16743_v20  ;;  %v1336_v43 = vsub.f32 %v10907_v63, %v16744_v12  ;;  %v567_v24 = vld [vmem:[#allocation5 + $0x28] sm:$0xff]  ;;  %v582_v44 = vld [vmem:[#allocation5 + $0xa0] sm:$0xff] }
  0x7c   : > { %17622 = vst [vmem:[#allocation30_spill] sm:$0xff] %v10932_v55  ;;  %v10941_v15 = vand.u32 4294901760, %v569_v13  ;;  %7909 = vmatprep.subr.mxu0 %v10883_v40  ;;  %v1323_v50 = vand.u32 4294901760, %v1322_v8  ;;  %v1442_v47 = vand.u32 4294901760, %v1441_v53  ;;  %v10945_v42 = vsub.f32 %v585_v2, %v10932_v55  ;;  %v566_v20 = vld [vmem:[#allocation5 + $0x20] sm:$0xff] }
  0x7d   : > { %v1330_v16 = vand.u32 4294901760, %v1329_v54  ;;  %7910 = vmatpush3.msra.mxu0 %v10885_v19  ;;  %v17625_v12 = vpack.i.bf16 %v10700_v56, %v10704_v58  ;;  %7985 = vmatprep.subr.mxu1 %v1435_v31  ;;  %v1449_v63 = vand.u32 4294901760, %v1448_v36  ;;  %v1337_v32 = vand.u32 4294901760, %v1336_v43 }
  0x7e   : > { %17623 = vst [vmem:[#allocation31_spill] sm:$0xff] %v10941_v15  ;;  %17624 = vst [vmem:[#allocation32_spill] sm:$0xff] %v10945_v42  ;;  %v10952_v40 = vsub.f32 %v569_v13, %v10941_v15  ;;  %v10954_v8 = vand.u32 4294901760, %v584_v52  ;;  %7986 = vmatpush3.msra.mxu1 %v1323_v50  ;;  %v16753_v2 = vand.u32 4294901760, %v10945_v42  ;;  %v10957_v53 = vand.u32 4294901760, %v568_v3  ;;  %7911 = vmatprep.subr.mxu0 %v10932_v55 }
  0x7f   : > { %9898 = vxpose.xlu0.b32.cont [11/16] %v17625_v12, 128  ;;  %v10959_v54 = vand.u32 4294901760, %v583_v61  ;;  %v10961_v19 = vand.u32 4294901760, %v567_v24  ;;  %7987 = vmatprep.subr.mxu1 %v1442_v47  ;;  %v10968_v13 = vand.u32 4294901760, %v582_v44  ;;  %v10970_v31 = vand.u32 4294901760, %v566_v20 }
  0x80   : > { %17626 = vst [vmem:[#allocation33_spill] sm:$0xff] %v10952_v40  ;;  %17627 = vst [vmem:[#allocation34_spill] sm:$0xff] %v10954_v8  ;;  %v16756_v56 = vand.u32 4294901760, %v10952_v40  ;;  %v10966_v58 = vsub.f32 %v584_v52, %v10954_v8  ;;  %7912 = vmatpush3.msra.mxu0 %v10941_v15  ;;  %7988 = vmatpush3.msra.mxu1 %v1330_v16  ;;  %v1455_v50 = vsub.f32 %v10945_v42, %v16753_v2  ;;  %v581_v2 = vld [vmem:[#allocation5 + $0x98] sm:$0xff] }
  0x81   : > { %17628 = vst [vmem:[#allocation35_spill] sm:$0xff] %v10957_v53  ;;  %17629 = vst [vmem:[#allocation36_spill] sm:$0xff] %v10959_v54  ;;  %v10977_v43 = vsub.f32 %v568_v3, %v10957_v53  ;;  %v10980_v47 = vsub.f32 %v583_v61, %v10959_v54  ;;  %v10983_v12 = vsub.f32 %v567_v24, %v10961_v19  ;;  %7989 = vmatprep.subr.mxu1 %v1449_v63  ;;  %v565_v63 = vld [vmem:[#allocation5 + $0x18] sm:$0xff] }
  0x82   : > { %17630 = vst [vmem:[#allocation37_spill] sm:$0xff] %v10961_v19  ;;  %17631 = vst [vmem:[#allocation38_spill] sm:$0xff] %v10966_v58  ;;  %v17637_v52 = vpack.i.bf16 %v10713_v62, %v10717_v0  ;;  %v1343_v16 = vsub.f32 %v10952_v40, %v16756_v56  ;;  %v16757_v36 = vand.u32 4294901760, %v10966_v58  ;;  %v10993_v3 = vsub.f32 %v582_v44, %v10968_v13  ;;  %v563_v40 = vld [vmem:[#allocation5 + $0x8] sm:$0xff] }
  0x83   : > { %17632 = vst [vmem:[#allocation39_spill] sm:$0xff] %v10968_v13  ;;  %17633 = vst [vmem:[#allocation40_spill] sm:$0xff] %v10970_v31  ;;  %v10996_v61 = vsub.f32 %v566_v20, %v10970_v31  ;;  %7990 = vmatpush3.msra.mxu1 %v1337_v32  ;;  %v1456_v24 = vand.u32 4294901760, %v1455_v50  ;;  %v16758_v42 = vand.u32 4294901760, %v10977_v43  ;;  %v16761_v62 = vand.u32 4294901760, %v10980_v47  ;;  %7913 = vmatprep.subr.mxu0 %v10954_v8  ;;  %v580_v20 = vld [vmem:[#allocation5 + $0x90] sm:$0xff] }
  0x84   : > { %17634 = vst [vmem:[#allocation41_spill] sm:$0xff] %v10977_v43  ;;  %17635 = vst [vmem:[#allocation42_spill] sm:$0xff] %v10980_v47  ;;  %9900 = vxpose.xlu0.b32.cont [12/16] %v17637_v52, 128  ;;  %v16764_v0 = vand.u32 4294901760, %v10983_v12  ;;  %v1344_v52 = vand.u32 4294901760, %v1343_v16  ;;  %v1462_v44 = vsub.f32 %v10966_v58, %v16757_v36  ;;  %7914 = vmatpush3.msra.mxu0 %v10957_v53  ;;  %v11017_v36 = vand.u32 4294901760, %v581_v2  ;;  %v579_v58 = vld [vmem:[#allocation5 + $0x88] sm:$0xff] }
  0x85   : > { %17636 = vst [vmem:[#allocation43_spill] sm:$0xff] %v10983_v12  ;;  %17638 = vst [vmem:[#allocation44_spill] sm:$0xff] %v10993_v3  ;;  %7991 = vmatprep.subr.mxu1 %v1456_v24  ;;  %v1350_v32 = vsub.f32 %v10977_v43, %v16758_v42  ;;  %v1469_v50 = vsub.f32 %v10980_v47, %v16761_v62  ;;  %7915 = vmatprep.subr.mxu0 %v10959_v54  ;;  %v17642_v42 = vand.u32 4294901760, %v10993_v3 }
  0x86   : > { %17639 = vst [vmem:[#allocation45_spill] sm:$0xff] %v10996_v61  ;;  %v1357_v16 = vsub.f32 %v10983_v12, %v16764_v0  ;;  %17640 = vst [vmem:[#allocation46_spill] sm:$0xff] %v11017_v36  ;;  %v17641_v24 = vpack.i.bf16 %v10725_v4, %v10728_v5  ;;  %7992 = vmatpush3.msra.mxu1 %v1344_v52  ;;  %v1463_v56 = vand.u32 4294901760, %v1462_v44  ;;  %v17643_v62 = vand.u32 4294901760, %v10996_v61  ;;  %v564_v12 = vld [vmem:[#allocation5 + $0x10] sm:$0xff]  ;;  %v578_v5 = vld [vmem:[#allocation5 + $0x80] sm:$0xff] }
  0x87   : > { %v1476_v43 = vsub.f32 %v10993_v3, %v17642_v42  ;;  %v11029_v0 = vand.u32 4294901760, %v565_v63  ;;  %v1351_v54 = vand.u32 4294901760, %v1350_v32  ;;  %v1470_v53 = vand.u32 4294901760, %v1469_v50  ;;  %7916 = vmatpush3.msra.mxu0 %v10961_v19  ;;  %v562_v52 = vld [vmem:[#allocation5] sm:$0xff] }
  0x88   : > { %9902 = vxpose.xlu0.b32.cont [13/16] %v17641_v24, 128  ;;  %v1364_v47 = vsub.f32 %v10996_v61, %v17643_v62  ;;  %v1358_v8 = vand.u32 4294901760, %v1357_v16  ;;  %v11032_v4 = vsub.f32 %v581_v2, %v11017_v36  ;;  %7993 = vmatprep.subr.mxu1 %v1463_v56  ;;  %v11038_v24 = vand.u32 4294901760, %v580_v20 }
  0x89   : > { %17644 = vst [vmem:[#allocation47_spill] sm:$0xff] %v11029_v0  ;;  %v1477_v42 = vand.u32 4294901760, %v1476_v43  ;;  %v11036_v62 = vsub.f32 %v565_v63, %v11029_v0  ;;  %7917 = vmatprep.subr.mxu0 %v10968_v13  ;;  %7994 = vmatpush3.msra.mxu1 %v1351_v54  ;;  %v11042_v50 = vand.u32 4294901760, %v564_v12  ;;  %v11044_v2 = vand.u32 4294901760, %v579_v58 }
  0x8a   : > { %v1365_v44 = vand.u32 4294901760, %v1364_v47  ;;  %17645 = vst [vmem:[#allocation48_spill] sm:$0xff] %v11038_v24  ;;  %v16782_v32 = vand.u32 4294901760, %v11032_v4  ;;  %v11046_v16 = vand.u32 4294901760, %v563_v40  ;;  %7918 = vmatpush3.msra.mxu0 %v10970_v31  ;;  %v17649_v56 = vpack.i.bf16 %v10735_v9, %v10739_v11  ;;  %7995 = vmatprep.subr.mxu1 %v1470_v53 }
  0x8b   : > { %17646 = vst [vmem:[#allocation49_spill] sm:$0xff] %v11042_v50  ;;  %17647 = vst [vmem:[#allocation50_spill] sm:$0xff] %v11044_v2  ;;  %v16781_v43 = vand.u32 4294901760, %v11036_v62  ;;  %v11054_v47 = vsub.f32 %v580_v20, %v11038_v24  ;;  %v11056_v54 = vand.u32 4294901760, %v578_v5  ;;  %v11058_v63 = vand.u32 4294901760, %v562_v52  ;;  %7996 = vmatpush3.msra.mxu1 %v1358_v8  ;;  %7919 = vmatprep.subr.mxu0 %v11017_v36 }
  0x8c   : > { %17648 = vst [vmem:[#allocation51_spill] sm:$0xff] %v11046_v16  ;;  %9904 = vxpose.xlu0.b32.cont [14/16] %v17649_v56, 128  ;;  %v1483_v61 = vsub.f32 %v11032_v4, %v16782_v32  ;;  %v11064_v3 = vsub.f32 %v564_v12, %v11042_v50  ;;  %v11067_v9 = vsub.f32 %v579_v58, %v11044_v2 }
  0x8d   : > { %v11070_v11 = vsub.f32 %v563_v40, %v11046_v16  ;;  %7997 = vmatprep.subr.mxu1 %v1477_v42  ;;  %v1371_v53 = vsub.f32 %v11036_v62, %v16781_v43  ;;  %v16785_v8 = vand.u32 4294901760, %v11054_v47  ;;  %v11077_v20 = vsub.f32 %v578_v5, %v11056_v54  ;;  %7920 = vmatpush3.msra.mxu0 %v11029_v0 }
  0x8e   : > { %v11081_v12 = vsub.f32 %v562_v52, %v11058_v63  ;;  %7998 = vmatpush3.msra.mxu1 %v1365_v44  ;;  %v1484_v58 = vand.u32 4294901760, %v1483_v61  ;;  %v16783_v40 = vand.u32 4294901760, %v11064_v3  ;;  %v16784_v42 = vand.u32 4294901760, %v11067_v9  ;;  %7921 = vmatprep.subr.mxu0 %v11038_v24 }
  0x8f   : > { %17650 = vst [vmem:[#allocation52_spill] sm:$0xff] %v11070_v11  ;;  %v16786_v56 = vand.u32 4294901760, %v11070_v11  ;;  %v17652_v43 = vpack.i.bf16 %v10753_v21, %v10758_v25  ;;  %v1372_v5 = vand.u32 4294901760, %v1371_v53  ;;  %v1490_v52 = vsub.f32 %v11054_v47, %v16785_v8  ;;  %7922 = vmatpush3.msra.mxu0 %v11042_v50 }
  0x90   : > { %17651 = vst [vmem:[#allocation53_spill] sm:$0xff] %v11081_v12  ;;  %v16790_v44 = vand.u32 4294901760, %v11077_v20  ;;  %v16789_v61 = vand.u32 4294901760, %v11081_v12  ;;  %7999 = vmatprep.subr.mxu1 %v1484_v58  ;;  %v1378_v32 = vsub.f32 %v11064_v3, %v16783_v40  ;;  %v1497_v21 = vsub.f32 %v11067_v9, %v16784_v42  ;;  %7923 = vmatprep.subr.mxu0 %v11044_v2 }
  0x91   : > { %9906 = vxpose.xlu0.b32.cont [15/16] %v17652_v43, 128  ;;  %v1385_v25 = vsub.f32 %v11070_v11, %v16786_v56  ;;  %v206_v43 = vadd.s32 256, %v10596_v1  ;;  %8000 = vmatpush3.msra.mxu1 %v1372_v5  ;;  %v1491_v53 = vand.u32 4294901760, %v1490_v52  ;;  %v222_v42 = vadd.s32 384, %v10596_v1 }
  0x92   : > { %v1504_v58 = vsub.f32 %v11077_v20, %v16790_v44  ;;  %v1392_v40 = vsub.f32 %v11081_v12, %v16789_v61  ;;  %v1379_v8 = vand.u32 4294901760, %v1378_v32  ;;  %v1498_v56 = vand.u32 4294901760, %v1497_v21  ;;  %7924 = vmatpush3.msra.mxu0 %v11046_v16 }
  0x93   : > { %v1386_v11 = vand.u32 4294901760, %v1385_v25  ;;  %vm338_vm0 = vcmp.eq.s32.totalorder %v206_v43, %v10611_v14  ;;  %v17653_v5 = vpack.i.bf16 %v10761_v26, %v10764_v27  ;;  %8001 = vmatprep.subr.mxu1 %v1491_v53  ;;  %vm354_vm1 = vcmp.eq.s32.totalorder %v222_v42, %v10611_v14  ;;  %7925 = vmatprep.subr.mxu0 %v11056_v54 }
  0x94   : > { %v1505_v52 = vand.u32 4294901760, %v1504_v58  ;;  %v17654_v61 = vmov 0.0   ;;  %8002 = vmatpush3.msra.mxu1 %v1379_v8  ;;  %v1393_v12 = vand.u32 4294901760, %v1392_v40  ;;  %v207_v21 = vadd.s32 264, %v10596_v1  ;;  %7926 = vmatpush3.msra.mxu0 %v11058_v63 }
  0x95   : > { %9908 = vxpose.xlu0.b32.end [16/16] %v17653_v5, 128  ;;  %v466_v44 = vsel %vm338_vm0, 1.0, %v17654_v61  ;;  %v482_v32 = vsel %vm354_vm1, 1.0, %v17654_v61  ;;  %v223_v25 = vadd.s32 392, %v10596_v1  ;;  %8003 = vmatprep.subr.mxu1 %v1498_v56  ;;  %v208_v42 = vadd.s32 272, %v10596_v1 }
  0x96   : > { %v9989_v26 = vpack.i.bf16 %v466_v44, %v482_v32  ;;  %8004 = vmatpush3.msra.mxu1 %v1386_v11  ;;  %8055 = vmatprep.subr.mxu0 %v10767_v28  ;;  %vm339_vm2 = vcmp.eq.s32.totalorder %v207_v21, %v10611_v14  ;;  %v224_v56 = vadd.s32 400, %v10596_v1  ;;  %v209_v53 = vadd.s32 280, %v10596_v1 }
  0x97   : > { %vm355_vm3 = vcmp.eq.s32.totalorder %v223_v25, %v10611_v14  ;;  %8005 = vmatprep.subr.mxu1 %v1505_v52  ;;  %v467_v27 = vsel %vm339_vm2, 1.0, %v17654_v61  ;;  %vm340_vm4 = vcmp.eq.s32.totalorder %v208_v42, %v10611_v14  ;;  %v210_v32 = vadd.s32 288, %v10596_v1 }
  0x98   : > { %9990 = vxpose.xlu1.b32.start [1/16] %v9989_v26, 128  ;;  %v483_v8 = vsel %vm355_vm3, 1.0, %v17654_v61  ;;  %8006 = vmatpush3.msra.mxu1 %v1393_v12  ;;  %vm356_vm5 = vcmp.eq.s32.totalorder %v224_v56, %v10611_v14  ;;  %v468_v11 = vsel %vm340_vm4, 1.0, %v17654_v61  ;;  %v225_v12 = vadd.s32 408, %v10596_v1 }
  0x99   : > { %v9991_v40 = vpack.i.bf16 %v467_v27, %v483_v8  ;;  %8135 = vmatprep.subr.mxu1 %v10747_v17  ;;  %v484_v44 = vsel %vm356_vm5, 1.0, %v17654_v61  ;;  %vm341_vm6 = vcmp.eq.s32.totalorder %v209_v53, %v10611_v14  ;;  %v226_v21 = vadd.s32 416, %v10596_v1 }
  0x9a   : > { %v9993_v43 = vpack.i.bf16 %v468_v11, %v484_v44  ;;  %vm357_vm7 = vcmp.eq.s32.totalorder %v225_v12, %v10611_v14  ;;  %v469_v58 = vsel %vm341_vm6, 1.0, %v17654_v61  ;;  %vm342_vm8 = vcmp.eq.s32.totalorder %v210_v32, %v10611_v14 }
  0x9b   : > { %v485_v5 = vsel %vm357_vm7, 1.0, %v17654_v61  ;;  %vm358_vm9 = vcmp.eq.s32.totalorder %v226_v21, %v10611_v14  ;;  %v470_v25 = vsel %vm342_vm8, 1.0, %v17654_v61  ;;  %v211_v8 = vadd.s32 296, %v10596_v1 }
  0x9c   : > { %9992 = vxpose.xlu1.b32.cont [2/16] %v9991_v40, 128  ;;  %v9995_v52 = vpack.i.bf16 %v469_v58, %v485_v5  ;;  %v486_v26 = vsel %vm358_vm9, 1.0, %v17654_v61  ;;  %v227_v40 = vadd.s32 424, %v10596_v1  ;;  %v212_v44 = vadd.s32 304, %v10596_v1 }
  0x9d   : > { %v9997_v27 = vpack.i.bf16 %v470_v25, %v486_v26  ;;  %vm343_vm10 = vcmp.eq.s32.totalorder %v211_v8, %v10611_v14  ;;  %v213_v5 = vadd.s32 312, %v10596_v1  ;;  %v214_v26 = vadd.s32 320, %v10596_v1 }
  0x9e   : > { %vm359_vm11 = vcmp.eq.s32.totalorder %v227_v40, %v10611_v14  ;;  %v471_v42 = vsel %vm343_vm10, 1.0, %v17654_v61  ;;  %vm344_vm12 = vcmp.eq.s32.totalorder %v212_v44, %v10611_v14 }
  0x9f   : > { %v487_v56 = vsel %vm359_vm11, 1.0, %v17654_v61  ;;  %v472_v53 = vsel %vm344_vm12, 1.0, %v17654_v61  ;;  %vm345_vm14 = vcmp.eq.s32.totalorder %v213_v5, %v10611_v14  ;;  %vm346_vm0 = vcmp.eq.s32.totalorder %v214_v26, %v10611_v14 }
  0xa0   : > { %9994 = vxpose.xlu1.b32.cont [3/16] %v9993_v43, 128  ;;  %v9999_v11 = vpack.i.bf16 %v471_v42, %v487_v56  ;;  %v228_v43 = vadd.s32 432, %v10596_v1  ;;  %v473_v32 = vsel %vm345_vm14, 1.0, %v17654_v61  ;;  %v474_v8 = vsel %vm346_vm0, 1.0, %v17654_v61 }
  0xa1   : > { %v215_v56 = vadd.s32 328, %v10596_v1 }
  0xa2   : > { %vm360_vm13 = vcmp.eq.s32.totalorder %v228_v43, %v10611_v14 }
  0xa3   : > { %v488_v12 = vsel %vm360_vm13, 1.0, %v17654_v61  ;;  %vm347_vm2 = vcmp.eq.s32.totalorder %v215_v56, %v10611_v14 }
  0xa4   : > { %9996 = vxpose.xlu1.b32.cont [4/16] %v9995_v52, 128  ;;  %v10001_v58 = vpack.i.bf16 %v472_v53, %v488_v12  ;;  %v229_v52 = vadd.s32 440, %v10596_v1  ;;  %v475_v44 = vsel %vm347_vm2, 1.0, %v17654_v61  ;;  %v216_v12 = vadd.s32 336, %v10596_v1 }
  0xa6   : > { %vm361_vm15 = vcmp.eq.s32.totalorder %v229_v52, %v10611_v14  ;;  %vm348_vm4 = vcmp.eq.s32.totalorder %v216_v12, %v10611_v14 }
  0xa7   : > { %v489_v21 = vsel %vm361_vm15, 1.0, %v17654_v61  ;;  %v476_v5 = vsel %vm348_vm4, 1.0, %v17654_v61 }
  0xa8   : > { %9998 = vxpose.xlu1.b32.cont [5/16] %v9997_v27, 128  ;;  %v10003_v25 = vpack.i.bf16 %v473_v32, %v489_v21  ;;  %v230_v27 = vadd.s32 448, %v10596_v1  ;;  %v217_v21 = vadd.s32 344, %v10596_v1 }
  0xaa   : > { %vm362_vm1 = vcmp.eq.s32.totalorder %v230_v27, %v10611_v14  ;;  %vm349_vm6 = vcmp.eq.s32.totalorder %v217_v21, %v10611_v14 }
  0xab   : > { %v490_v40 = vsel %vm362_vm1, 1.0, %v17654_v61  ;;  %v477_v26 = vsel %vm349_vm6, 1.0, %v17654_v61 }
  0xac   : > { %10000 = vxpose.xlu1.b32.cont [6/16] %v9999_v11, 128  ;;  %v10005_v42 = vpack.i.bf16 %v474_v8, %v490_v40  ;;  %v231_v11 = vadd.s32 456, %v10596_v1  ;;  %v218_v40 = vadd.s32 352, %v10596_v1 }
  0xae   : > { %vm363_vm3 = vcmp.eq.s32.totalorder %v231_v11, %v10611_v14  ;;  %vm350_vm8 = vcmp.eq.s32.totalorder %v218_v40, %v10611_v14 }
  0xaf   : > { %v491_v43 = vsel %vm363_vm3, 1.0, %v17654_v61  ;;  %v478_v56 = vsel %vm350_vm8, 1.0, %v17654_v61 }
  0xb0   : > { %10002 = vxpose.xlu1.b32.cont [7/16] %v10001_v58, 128  ;;  %v10007_v53 = vpack.i.bf16 %v475_v44, %v491_v43  ;;  %v232_v58 = vadd.s32 464, %v10596_v1  ;;  %v219_v43 = vadd.s32 360, %v10596_v1 }
  0xb2   : > { %vm364_vm5 = vcmp.eq.s32.totalorder %v232_v58, %v10611_v14  ;;  %vm351_vm10 = vcmp.eq.s32.totalorder %v219_v43, %v10611_v14 }
  0xb3   : > { %v492_v52 = vsel %vm364_vm5, 1.0, %v17654_v61  ;;  %v479_v12 = vsel %vm351_vm10, 1.0, %v17654_v61 }
  0xb4   : > { %10004 = vxpose.xlu1.b32.cont [8/16] %v10003_v25, 128  ;;  %v10009_v32 = vpack.i.bf16 %v476_v5, %v492_v52  ;;  %v233_v25 = vadd.s32 472, %v10596_v1  ;;  %v220_v52 = vadd.s32 368, %v10596_v1 }
  0xb6   : > { %vm365_vm7 = vcmp.eq.s32.totalorder %v233_v25, %v10611_v14  ;;  %vm352_vm12 = vcmp.eq.s32.totalorder %v220_v52, %v10611_v14 }
  0xb7   : > { %v493_v27 = vsel %vm365_vm7, 1.0, %v17654_v61  ;;  %v480_v21 = vsel %vm352_vm12, 1.0, %v17654_v61 }
  0xb8   : > { %10006 = vxpose.xlu1.b32.cont [9/16] %v10005_v42, 128  ;;  %v10011_v8 = vpack.i.bf16 %v477_v26, %v493_v27  ;;  %v234_v42 = vadd.s32 480, %v10596_v1  ;;  %v221_v27 = vadd.s32 376, %v10596_v1 }
  0xba   : > { %vm366_vm9 = vcmp.eq.s32.totalorder %v234_v42, %v10611_v14  ;;  %vm353_vm14 = vcmp.eq.s32.totalorder %v221_v27, %v10611_v14 }
  0xbb   : > { %v494_v11 = vsel %vm366_vm9, 1.0, %v17654_v61  ;;  %v481_v40 = vsel %vm353_vm14, 1.0, %v17654_v61 }
  0xbc   : > { %10008 = vxpose.xlu1.b32.cont [10/16] %v10007_v53, 128  ;;  %v10013_v44 = vpack.i.bf16 %v478_v56, %v494_v11  ;;  %v235_v53 = vadd.s32 488, %v10596_v1 }
  0xbe   : > { %vm367_vm11 = vcmp.eq.s32.totalorder %v235_v53, %v10611_v14 }
  0xbf   : > { %v495_v58 = vsel %vm367_vm11, 1.0, %v17654_v61 }
  0xc0   : > { %10010 = vxpose.xlu1.b32.cont [11/16] %v10009_v32, 128  ;;  %v10015_v5 = vpack.i.bf16 %v479_v12, %v495_v58  ;;  %v236_v32 = vadd.s32 496, %v10596_v1 }
  0xc2   : > { %vm368_vm13 = vcmp.eq.s32.totalorder %v236_v32, %v10611_v14 }
  0xc3   : > { %v496_v25 = vsel %vm368_vm13, 1.0, %v17654_v61 }
  0xc4   : > { %10012 = vxpose.xlu1.b32.cont [12/16] %v10011_v8, 128  ;;  %v10017_v26 = vpack.i.bf16 %v480_v21, %v496_v25  ;;  %v237_v8 = vadd.s32 504, %v10596_v1 }
  0xc6   : > { %vm369_vm15 = vcmp.eq.s32.totalorder %v237_v8, %v10611_v14 }
  0xc7   : > { %v497_v42 = vsel %vm369_vm15, 1.0, %v17654_v61 }
  0xc8   : > { %10014 = vxpose.xlu1.b32.cont [13/16] %v10013_v44, 128  ;;  %v10019_v56 = vpack.i.bf16 %v481_v40, %v497_v42 }
  0xcc   : > { %10016 = vxpose.xlu1.b32.cont [14/16] %v10015_v5, 128 }
  0xd0   : > { %10018 = vxpose.xlu1.b32.cont [15/16] %v10017_v26, 128 }
  0xd4   : > { %10020 = vxpose.xlu1.b32.end [16/16] %v10019_v56, 128 }
  0xd5   : > { %v9909_v11 = vpop.trf.xlu0 }
  0xd6   : > { %v9913_v44 = vunpack.i.h.bf16 %v9909_v11  ;;  %v9910_v43 = vunpack.i.l.bf16 %v9909_v11 }
  0xd8   : > { %v11217_v53 = vand.u32 4294901760, %v9910_v43  ;;  %v11219_v12 = vand.u32 4294901760, %v9913_v44 }
  0xd9   : > { %v9914_v58 = vpop.trf.xlu0 }
  0xda   : > { %17655 = vst [vmem:[#allocation54_spill] sm:$0xff] %v11217_v53  ;;  %17656 = vst [vmem:[#allocation55_spill] sm:$0xff] %v11219_v12  ;;  %v9918_v5 = vunpack.i.h.bf16 %v9914_v58  ;;  %v9915_v52 = vunpack.i.l.bf16 %v9914_v58  ;;  %1508 = vmatprep.mubr.f32.mxu1 %v11217_v53  ;;  %v11224_v14 = vsub.f32 %v9910_v43, %v11217_v53  ;;  %v11227_v32 = vsub.f32 %v9913_v44, %v11219_v12 }
  0xdb   : > { %1510 = vmatmul.mubr.f32.vlgmr.msra.gmra.mxu1 %v11219_v12 }
  0xdc   : > { %v11229_v21 = vand.u32 4294901760, %v9915_v52  ;;  %v11231_v25 = vand.u32 4294901760, %v9918_v5  ;;  %8136 = vmatpush3.msra.mxu1 %v10749_v18  ;;  %v16798_v27 = vand.u32 4294901760, %v11224_v14  ;;  %v16801_v8 = vand.u32 4294901760, %v11227_v32 }
  0xdd   : > { %v9919_v26 = vpop.trf.xlu0  ;;  %8137 = vmatprep.subr.mxu1 %v10780_v35 }
  0xde   : > { %17657 = vst [vmem:[#allocation56_spill] sm:$0xff] %v11229_v21  ;;  %17658 = vst [vmem:[#allocation57_spill] sm:$0xff] %v11231_v25  ;;  %v9923_v40 = vunpack.i.h.bf16 %v9919_v26  ;;  %v9920_v42 = vunpack.i.l.bf16 %v9919_v26  ;;  %1515 = vmatprep.mubr.f32.mxu1 %v11229_v21  ;;  %8138 = vmatpush3.msra.mxu1 %v10784_v45  ;;  %v1045_v56 = vsub.f32 %v11224_v14, %v16798_v27 }
  0xdf   : > { %1517 = vmatmul.mubr.f32.gmra.mxu1 %v11231_v25  ;;  %v1051_v11 = vsub.f32 %v11227_v32, %v16801_v8  ;;  %v11247_v44 = vsub.f32 %v9915_v52, %v11229_v21  ;;  %v11250_v43 = vsub.f32 %v9918_v5, %v11231_v25  ;;  %8139 = vmatprep.subr.mxu1 %v10786_v46 }
  0xe0   : > { %v11252_v58 = vand.u32 4294901760, %v9920_v42  ;;  %v11254_v26 = vand.u32 4294901760, %v9923_v40  ;;  %v1046_v1 = vand.u32 4294901760, %v1045_v56  ;;  %8140 = vmatpush3.msra.mxu1 %v10788_v34 }
  0xe1   : > { %v9924_v61 = vpop.trf.xlu0  ;;  %v1052_v12 = vand.u32 4294901760, %v1051_v11  ;;  %v16804_v27 = vand.u32 4294901760, %v11247_v44  ;;  %v16808_v53 = vand.u32 4294901760, %v11250_v43  ;;  %8141 = vmatprep.subr.mxu1 %v10794_v48 }
  0xe2   : > { %17659 = vst [vmem:[#allocation58_spill] sm:$0xff] %v11252_v58  ;;  %17660 = vst [vmem:[#allocation59_spill] sm:$0xff] %v11254_v26  ;;  %v9928_v52 = vunpack.i.h.bf16 %v9924_v61  ;;  %v9925_v8 = vunpack.i.l.bf16 %v9924_v61  ;;  %1522 = vmatprep.mubr.f32.mxu1 %v11252_v58  ;;  %1047 = vmatprep.mubr.f32.mxu0 %v1046_v1  ;;  %v11270_v11 = vsub.f32 %v9920_v42, %v11252_v58 }
  0xe3   : > { %1524 = vmatmul.mubr.f32.gmra.mxu1 %v11254_v26  ;;  %v1060_v5 = vsub.f32 %v11247_v44, %v16804_v27  ;;  %v1066_v56 = vsub.f32 %v11250_v43, %v16808_v53  ;;  %1053 = vmatmul.mubr.f32.vlgmr.msra.gmra.mxu0 %v1052_v12  ;;  %v11277_v1 = vsub.f32 %v9923_v40, %v11254_v26 }
  0xe4   : > { %v11272_v61 = vand.u32 4294901760, %v9925_v8  ;;  %v11274_v25 = vand.u32 4294901760, %v9928_v52  ;;  %8142 = vmatpush3.msra.mxu1 %v10796_v49  ;;  %8056 = vmatpush3.msra.mxu0 %v10778_v33  ;;  %v16814_v53 = vand.u32 4294901760, %v11270_v11 }
  0xe5   : > { %v9929_v27 = vpop.trf.xlu0  ;;  %v1061_v21 = vand.u32 4294901760, %v1060_v5  ;;  %v1067_v48 = vand.u32 4294901760, %v1066_v56  ;;  %8143 = vmatprep.subr.mxu1 %v10845_v51  ;;  %8057 = vmatprep.subr.mxu0 %v10792_v38  ;;  %v16819_v5 = vand.u32 4294901760, %v11277_v1 }
  0xe6   : > { %17661 = vst [vmem:[#allocation60_spill] sm:$0xff] %v11272_v61  ;;  %17662 = vst [vmem:[#allocation61_spill] sm:$0xff] %v11274_v25  ;;  %v9933_v42 = vunpack.i.h.bf16 %v9929_v27  ;;  %v9930_v12 = vunpack.i.l.bf16 %v9929_v27  ;;  %1529 = vmatprep.mubr.f32.mxu1 %v11272_v61  ;;  %v1075_v40 = vsub.f32 %v11270_v11, %v16814_v53  ;;  %v11291_v56 = vsub.f32 %v9925_v8, %v11272_v61 }
  0xe7   : > { %1062 = vmatprep.mubr.f32.mxu0 %v1061_v21  ;;  %1531 = vmatmul.mubr.f32.gmra.mxu1 %v11274_v25  ;;  %v11294_v26 = vsub.f32 %v9928_v52, %v11274_v25  ;;  %v1081_v53 = vsub.f32 %v11277_v1, %v16819_v5 }
  0xe8   : > { %1068 = vmatmul.mubr.f32.gmra.mxu0 %v1067_v48  ;;  %v11296_v27 = vand.u32 4294901760, %v9930_v12  ;;  %v11298_v58 = vand.u32 4294901760, %v9933_v42  ;;  %8144 = vmatpush3.msra.mxu1 %v10857_v39  ;;  %v1076_v51 = vand.u32 4294901760, %v1075_v40  ;;  %v16822_v8 = vand.u32 4294901760, %v11291_v56 }
  0xe9   : > { %8058 = vmatpush3.msra.mxu0 %v10803_v57  ;;  %v9934_v21 = vpop.trf.xlu0  ;;  %v16823_v52 = vand.u32 4294901760, %v11294_v26  ;;  %8145 = vmatprep.subr.mxu1 %v10866_v22  ;;  %v1082_v61 = vand.u32 4294901760, %v1081_v53 }
  0xea   : > { %17663 = vst [vmem:[#allocation62_spill] sm:$0xff] %v11296_v27  ;;  %17664 = vst [vmem:[#allocation63_spill] sm:$0xff] %v11298_v58  ;;  %v9938_v48 = vunpack.i.h.bf16 %v9934_v21  ;;  %v9935_v25 = vunpack.i.l.bf16 %v9934_v21  ;;  %1536 = vmatprep.mubr.f32.mxu1 %v11296_v27  ;;  %8059 = vmatprep.subr.mxu0 %v10806_v59  ;;  %v1090_v40 = vsub.f32 %v11291_v56, %v16822_v8 }
  0xeb   : > { %1077 = vmatprep.mubr.f32.mxu0 %v1076_v51  ;;  %1538 = vmatmul.mubr.f32.gmra.mxu1 %v11298_v58  ;;  %v1096_v5 = vsub.f32 %v11294_v26, %v16823_v52  ;;  %v11318_v22 = vsub.f32 %v9930_v12, %v11296_v27  ;;  %v11326_v51 = vsub.f32 %v9933_v42, %v11298_v58 }
  0xec   : > { %8060 = vmatpush3.msra.mxu0 %v10809_v60  ;;  %v11321_v21 = vand.u32 4294901760, %v9935_v25  ;;  %v11323_v39 = vand.u32 4294901760, %v9938_v48  ;;  %8146 = vmatpush3.msra.mxu1 %v10870_v29  ;;  %v1091_v8 = vand.u32 4294901760, %v1090_v40 }
  0xed   : > { %1083 = vmatmul.mubr.f32.gmra.mxu0 %v1082_v61  ;;  %v9939_v53 = vpop.trf.xlu0  ;;  %8061 = vmatprep.subr.mxu0 %v10820_v6  ;;  %v1097_v52 = vand.u32 4294901760, %v1096_v5  ;;  %v16830_v12 = vand.u32 4294901760, %v11318_v22  ;;  %v16835_v42 = vand.u32 4294901760, %v11326_v51 }
  0xee   : > { %17665 = vst [vmem:[#allocation64_spill] sm:$0xff] %v11321_v21  ;;  %17666 = vst [vmem:[#allocation65_spill] sm:$0xff] %v11323_v39  ;;  %v9943_v27 = vunpack.i.h.bf16 %v9939_v53  ;;  %v9940_v49 = vunpack.i.l.bf16 %v9939_v53  ;;  %1543 = vmatprep.mubr.f32.mxu1 %v11321_v21  ;;  %8062 = vmatpush3.msra.mxu0 %v10823_v7  ;;  %v11339_v40 = vsub.f32 %v9935_v25, %v11321_v21 }
  0xef   : > { %1092 = vmatprep.mubr.f32.mxu0 %v1091_v8  ;;  %1545 = vmatmul.mubr.f32.gmra.mxu1 %v11323_v39  ;;  %v1105_v61 = vsub.f32 %v11318_v22, %v16830_v12  ;;  %v11342_v5 = vsub.f32 %v9938_v48, %v11323_v39  ;;  %v1111_v12 = vsub.f32 %v11326_v51, %v16835_v42 }
  0xf0   : > { %v11344_v53 = vand.u32 4294901760, %v9940_v49  ;;  %8063 = vmatprep.subr.mxu0 %v10860_v41  ;;  %v11347_v58 = vand.u32 4294901760, %v9943_v27  ;;  %8147 = vmatprep.subr.mxu1 %v10872_v10  ;;  %v16838_v25 = vand.u32 4294901760, %v11339_v40 }
  0xf1   : > { %17667 = vst [vmem:[#allocation66_spill] sm:$0xff] %v11342_v5  ;;  %1098 = vmatmul.mubr.f32.gmra.mxu0 %v1097_v52  ;;  %v9944_v8 = vpop.trf.xlu0  ;;  %v1106_v29 = vand.u32 4294901760, %v1105_v61  ;;  %v16841_v48 = vand.u32 4294901760, %v11342_v5  ;;  %8148 = vmatpush3.msra.mxu1 %v10874_v30  ;;  %v1112_v52 = vand.u32 4294901760, %v1111_v12  ;;  %v17672_v12 = vld [vmem:[#allocation23_spill] sm:$0xff] }
  0xf2   : > { %17668 = vst [vmem:[#allocation67_spill] sm:$0xff] %v11344_v53  ;;  %17669 = vst [vmem:[#allocation68_spill] sm:$0xff] %v11347_v58  ;;  %v9948_v39 = vunpack.i.h.bf16 %v9944_v8  ;;  %v9945_v21 = vunpack.i.l.bf16 %v9944_v8  ;;  %1550 = vmatprep.mubr.f32.mxu1 %v11344_v53  ;;  %8064 = vmatpush3.msra.mxu0 %v10864_v23  ;;  %v1120_v61 = vsub.f32 %v11339_v40, %v16838_v25 }
  0xf3   : > { %1107 = vmatprep.mubr.f32.mxu0 %v1106_v29  ;;  %1552 = vmatmul.mubr.f32.gmra.mxu1 %v11347_v58  ;;  %v1126_v42 = vsub.f32 %v11342_v5, %v16841_v48  ;;  %v11366_v30 = vsub.f32 %v9940_v49, %v11344_v53  ;;  %v11374_v29 = vsub.f32 %v9943_v27, %v11347_v58  ;;  %v17673_v5 = vld [vmem:[#allocation24_spill] sm:$0xff]  ;;  %v17678_v58 = vld [vmem:[#allocation26_spill] sm:$0xff] }
  0xf4   : > { %v11368_v8 = vand.u32 4294901760, %v9945_v21  ;;  %8065 = vmatprep.subr.mxu0 %v10881_v37  ;;  %v11371_v10 = vand.u32 4294901760, %v9948_v39  ;;  %8149 = vmatprep.subr.mxu1 %v17672_v12  ;;  %v1121_v23 = vand.u32 4294901760, %v1120_v61  ;;  %v17674_v37 = vld [vmem:[#allocation25_spill] sm:$0xff] }
  0xf5   : > { %1113 = vmatmul.mubr.f32.gmra.mxu0 %v1112_v52  ;;  %v9949_v25 = vpop.trf.xlu0  ;;  %v1127_v41 = vand.u32 4294901760, %v1126_v42  ;;  %v16849_v48 = vand.u32 4294901760, %v11366_v30  ;;  %8150 = vmatpush3.msra.mxu1 %v17673_v5  ;;  %v16854_v52 = vand.u32 4294901760, %v11374_v29 }
  0xf6   : > { %17670 = vst [vmem:[#allocation69_spill] sm:$0xff] %v11368_v8  ;;  %17671 = vst [vmem:[#allocation70_spill] sm:$0xff] %v11371_v10  ;;  %v9953_v49 = vunpack.i.h.bf16 %v9949_v25  ;;  %v9950_v53 = vunpack.i.l.bf16 %v9949_v25  ;;  %1557 = vmatprep.mubr.f32.mxu1 %v11368_v8  ;;  %8066 = vmatpush3.msra.mxu0 %v17674_v37  ;;  %v11387_v42 = vsub.f32 %v9945_v21, %v11368_v8 }
  0xf7   : > { %1122 = vmatprep.mubr.f32.mxu0 %v1121_v23  ;;  %1559 = vmatmul.mubr.f32.gmra.mxu1 %v11371_v10  ;;  %v1135_v27 = vsub.f32 %v11366_v30, %v16849_v48  ;;  %v11390_v61 = vsub.f32 %v9948_v39, %v11371_v10  ;;  %v1141_v48 = vsub.f32 %v11374_v29, %v16854_v52 }
  0xf8   : > { %17675 = vst [vmem:[#allocation71_spill] sm:$0xff] %v11387_v42  ;;  %v11392_v25 = vand.u32 4294901760, %v9950_v53  ;;  %8067 = vmatprep.subr.mxu0 %v17678_v58  ;;  %v11395_v5 = vand.u32 4294901760, %v9953_v49  ;;  %8151 = vmatprep.subr.mxu1 %v10932_v55  ;;  %v16857_v21 = vand.u32 4294901760, %v11387_v42  ;;  %v17680_v58 = vld [vmem:[#allocation27_spill] sm:$0xff]  ;;  %v17682_v55 = vld [vmem:[#allocation28_spill] sm:$0xff] }
  0xf9   : > { %17676 = vst [vmem:[#allocation72_spill] sm:$0xff] %v11390_v61  ;;  %1128 = vmatmul.mubr.f32.gmra.mxu0 %v1127_v41  ;;  %v9954_v23 = vpop.trf.xlu0  ;;  %v1136_v12 = vand.u32 4294901760, %v1135_v27  ;;  %v16860_v39 = vand.u32 4294901760, %v11390_v61  ;;  %8152 = vmatpush3.msra.mxu1 %v10941_v15  ;;  %v1142_v41 = vand.u32 4294901760, %v1141_v48 }
  0xfa   : > { %17677 = vst [vmem:[#allocation73_spill] sm:$0xff] %v11392_v25  ;;  %17679 = vst [vmem:[#allocation74_spill] sm:$0xff] %v11395_v5  ;;  %v9958_v10 = vunpack.i.h.bf16 %v9954_v23  ;;  %v9955_v8 = vunpack.i.l.bf16 %v9954_v23  ;;  %1564 = vmatprep.mubr.f32.mxu1 %v11392_v25  ;;  %8068 = vmatpush3.msra.mxu0 %v17680_v58  ;;  %v1150_v27 = vsub.f32 %v11387_v42, %v16857_v21 }
  0xfb   : > { %1137 = vmatprep.mubr.f32.mxu0 %v1136_v12  ;;  %1566 = vmatmul.mubr.f32.gmra.mxu1 %v11395_v5  ;;  %v1156_v52 = vsub.f32 %v11390_v61, %v16860_v39  ;;  %v11414_v15 = vsub.f32 %v9950_v53, %v11392_v25  ;;  %v11422_v48 = vsub.f32 %v9953_v49, %v11395_v5  ;;  %v17684_v12 = vld [vmem:[#allocation34_spill] sm:$0xff]  ;;  %v17685_v61 = vld [vmem:[#allocation35_spill] sm:$0xff]  ;;  %v17689_v5 = vld [vmem:[#allocation32_spill] sm:$0xff] }
  0xfc   : > { %v11416_v23 = vand.u32 4294901760, %v9955_v8  ;;  %8069 = vmatprep.subr.mxu0 %v17682_v55  ;;  %v11419_v58 = vand.u32 4294901760, %v9958_v10  ;;  %8153 = vmatprep.subr.mxu1 %v17684_v12  ;;  %v1151_v42 = vand.u32 4294901760, %v1150_v27  ;;  %v17686_v55 = vld [vmem:[#allocation29_spill] sm:$0xff] }
  0xfd   : > { %1143 = vmatmul.mubr.f32.gmra.mxu0 %v1142_v41  ;;  %v9959_v21 = vpop.trf.xlu0  ;;  %v1157_v37 = vand.u32 4294901760, %v1156_v52  ;;  %v16867_v39 = vand.u32 4294901760, %v11414_v15  ;;  %8154 = vmatpush3.msra.mxu1 %v17685_v61  ;;  %v16872_v41 = vand.u32 4294901760, %v11422_v48 }
  0xfe   : > { %17681 = vst [vmem:[#allocation75_spill] sm:$0xff] %v11416_v23  ;;  %17683 = vst [vmem:[#allocation76_spill] sm:$0xff] %v11419_v58  ;;  %v9963_v53 = vunpack.i.h.bf16 %v9959_v21  ;;  %v9960_v25 = vunpack.i.l.bf16 %v9959_v21  ;;  %1571 = vmatprep.mubr.f32.mxu1 %v11416_v23  ;;  %8070 = vmatpush3.msra.mxu0 %v17686_v55  ;;  %v11435_v52 = vsub.f32 %v9955_v8, %v11416_v23 }
  0xff   : > { %1152 = vmatprep.mubr.f32.mxu0 %v1151_v42  ;;  %1573 = vmatmul.mubr.f32.gmra.mxu1 %v11419_v58  ;;  %v1165_v49 = vsub.f32 %v11414_v15, %v16867_v39  ;;  %v11438_v27 = vsub.f32 %v9958_v10, %v11419_v58  ;;  %v17691_v42 = vld [vmem:[#allocation36_spill] sm:$0xff]  ;;  %v1171_v39 = vsub.f32 %v11422_v48, %v16872_v41 }
 0x100   : > { %17687 = vst [vmem:[#allocation77_spill] sm:$0xff] %v11435_v52  ;;  %v11440_v21 = vand.u32 4294901760, %v9960_v25  ;;  %8071 = vmatprep.subr.mxu0 %v17689_v5  ;;  %v11443_v61 = vand.u32 4294901760, %v9963_v53  ;;  %8155 = vmatprep.subr.mxu1 %v17691_v42  ;;  %v16874_v8 = vand.u32 4294901760, %v11435_v52  ;;  %v17692_v5 = vld [vmem:[#allocation33_spill] sm:$0xff]  ;;  %v17694_v42 = vld [vmem:[#allocation38_spill] sm:$0xff] }
 0x101   : > { %1158 = vmatmul.mubr.f32.gmra.mxu0 %v1157_v37  ;;  %v9964_v12 = vpop.trf.xlu0  ;;  %v1166_v55 = vand.u32 4294901760, %v1165_v49  ;;  %v16877_v10 = vand.u32 4294901760, %v11438_v27  ;;  %8156 = vmatpush3.msra.mxu1 %v10961_v19  ;;  %v1172_v37 = vand.u32 4294901760, %v1171_v39 }
 0x102   : > { %17688 = vst [vmem:[#allocation78_spill] sm:$0xff] %v11440_v21  ;;  %17690 = vst [vmem:[#allocation79_spill] sm:$0xff] %v11443_v61  ;;  %v9968_v58 = vunpack.i.h.bf16 %v9964_v12  ;;  %v9965_v23 = vunpack.i.l.bf16 %v9964_v12  ;;  %1578 = vmatprep.mubr.f32.mxu1 %v11440_v21  ;;  %8072 = vmatpush3.msra.mxu0 %v17692_v5  ;;  %v1180_v49 = vsub.f32 %v11435_v52, %v16874_v8 }
 0x103   : > { %1167 = vmatprep.mubr.f32.mxu0 %v1166_v55  ;;  %1580 = vmatmul.mubr.f32.gmra.mxu1 %v11443_v61  ;;  %v1186_v41 = vsub.f32 %v11438_v27, %v16877_v10  ;;  %v11462_v19 = vsub.f32 %v9960_v25, %v11440_v21  ;;  %v11470_v55 = vsub.f32 %v9963_v53, %v11443_v61  ;;  %v17699_v61 = vld [vmem:[#allocation42_spill] sm:$0xff] }
 0x104   : > { %v11464_v12 = vand.u32 4294901760, %v9965_v23  ;;  %8073 = vmatprep.subr.mxu0 %v17694_v42  ;;  %v11467_v5 = vand.u32 4294901760, %v9968_v58  ;;  %8157 = vmatprep.subr.mxu1 %v10968_v13  ;;  %v1181_v8 = vand.u32 4294901760, %v1180_v49  ;;  %v17696_v42 = vld [vmem:[#allocation41_spill] sm:$0xff] }
 0x105   : > { %1173 = vmatmul.mubr.f32.gmra.mxu0 %v1172_v37  ;;  %v9969_v39 = vpop.trf.xlu0  ;;  %v1187_v52 = vand.u32 4294901760, %v1186_v41  ;;  %v16884_v10 = vand.u32 4294901760, %v11462_v19  ;;  %8158 = vmatpush3.msra.mxu1 %v10970_v31  ;;  %v16889_v37 = vand.u32 4294901760, %v11470_v55 }
 0x106   : > { %17693 = vst [vmem:[#allocation80_spill] sm:$0xff] %v11464_v12  ;;  %17695 = vst [vmem:[#allocation81_spill] sm:$0xff] %v11467_v5  ;;  %v9973_v25 = vunpack.i.h.bf16 %v9969_v39  ;;  %v9970_v21 = vunpack.i.l.bf16 %v9969_v39  ;;  %1585 = vmatprep.mubr.f32.mxu1 %v11464_v12  ;;  %8074 = vmatpush3.msra.mxu0 %v17696_v42  ;;  %v11483_v41 = vsub.f32 %v9965_v23, %v11464_v12 }
 0x107   : > { %1182 = vmatprep.mubr.f32.mxu0 %v1181_v8  ;;  %1587 = vmatmul.mubr.f32.gmra.mxu1 %v11467_v5  ;;  %v1195_v53 = vsub.f32 %v11462_v19, %v16884_v10  ;;  %v11486_v49 = vsub.f32 %v9968_v58, %v11467_v5  ;;  %v1201_v10 = vsub.f32 %v11470_v55, %v16889_v37 }
 0x108   : > { %17697 = vst [vmem:[#allocation41_spill] sm:$0xff] %v11483_v41  ;;  %v11488_v39 = vand.u32 4294901760, %v9970_v21  ;;  %8075 = vmatprep.subr.mxu0 %v17699_v61  ;;  %v11491_v31 = vand.u32 4294901760, %v9973_v25  ;;  %8159 = vmatprep.subr.mxu1 %v11017_v36  ;;  %v16892_v23 = vand.u32 4294901760, %v11483_v41  ;;  %v17701_v61 = vld [vmem:[#allocation43_spill] sm:$0xff]  ;;  %v17703_v36 = vld [vmem:[#allocation44_spill] sm:$0xff] }
 0x109   : > { %1188 = vmatmul.mubr.f32.gmra.mxu0 %v1187_v52  ;;  %v9974_v8 = vpop.trf.xlu0  ;;  %v1196_v13 = vand.u32 4294901760, %v1195_v53  ;;  %v16895_v58 = vand.u32 4294901760, %v11486_v49  ;;  %8160 = vmatpush3.msra.mxu1 %v11029_v0  ;;  %v1202_v52 = vand.u32 4294901760, %v1201_v10 }
 0x10a   : > { %17698 = vst [vmem:[#allocation82_spill] sm:$0xff] %v11488_v39  ;;  %17700 = vst [vmem:[#allocation83_spill] sm:$0xff] %v11491_v31  ;;  %v9978_v5 = vunpack.i.h.bf16 %v9974_v8  ;;  %v9975_v12 = vunpack.i.l.bf16 %v9974_v8  ;;  %1592 = vmatprep.mubr.f32.mxu1 %v11488_v39  ;;  %8076 = vmatpush3.msra.mxu0 %v17701_v61  ;;  %v1210_v53 = vsub.f32 %v11483_v41, %v16892_v23 }
 0x10b   : > { %1197 = vmatprep.mubr.f32.mxu0 %v1196_v13  ;;  %1594 = vmatmul.mubr.f32.gmra.mxu1 %v11491_v31  ;;  %v1216_v37 = vsub.f32 %v11486_v49, %v16895_v58  ;;  %v11510_v0 = vsub.f32 %v9970_v21, %v11488_v39  ;;  %v11518_v13 = vsub.f32 %v9973_v25, %v11491_v31 }
 0x10c   : > { %v11512_v8 = vand.u32 4294901760, %v9975_v12  ;;  %8077 = vmatprep.subr.mxu0 %v17703_v36  ;;  %v11515_v61 = vand.u32 4294901760, %v9978_v5  ;;  %8161 = vmatprep.subr.mxu1 %v11038_v24  ;;  %v1211_v23 = vand.u32 4294901760, %v1210_v53  ;;  %v17705_v36 = vld [vmem:[#allocation45_spill] sm:$0xff] }
 0x10d   : > { %1203 = vmatmul.mubr.f32.gmra.mxu0 %v1202_v52  ;;  %v9979_v10 = vpop.trf.xlu0  ;;  %v1217_v41 = vand.u32 4294901760, %v1216_v37  ;;  %v16901_v58 = vand.u32 4294901760, %v11510_v0  ;;  %8162 = vmatpush3.msra.mxu1 %v11042_v50  ;;  %v16906_v52 = vand.u32 4294901760, %v11518_v13 }
 0x10e   : > { %17702 = vst [vmem:[#allocation84_spill] sm:$0xff] %v11512_v8  ;;  %17704 = vst [vmem:[#allocation85_spill] sm:$0xff] %v11515_v61  ;;  %v9983_v21 = vunpack.i.h.bf16 %v9979_v10  ;;  %v9980_v39 = vunpack.i.l.bf16 %v9979_v10  ;;  %1599 = vmatprep.mubr.f32.mxu1 %v11512_v8  ;;  %8078 = vmatpush3.msra.mxu0 %v17705_v36  ;;  %v11531_v37 = vsub.f32 %v9975_v12, %v11512_v8 }
 0x10f   : > { %1212 = vmatprep.mubr.f32.mxu0 %v1211_v23  ;;  %1601 = vmatmul.mubr.f32.gmra.mxu1 %v11515_v61  ;;  %v1225_v25 = vsub.f32 %v11510_v0, %v16901_v58  ;;  %v11534_v53 = vsub.f32 %v9978_v5, %v11515_v61  ;;  %v1231_v58 = vsub.f32 %v11518_v13, %v16906_v52 }
 0x110   : > { %v11536_v10 = vand.u32 4294901760, %v9980_v39  ;;  %8079 = vmatprep.subr.mxu0 %v11032_v4  ;;  %v11539_v31 = vand.u32 4294901760, %v9983_v21  ;;  %8163 = vmatprep.subr.mxu1 %v11044_v2  ;;  %v16909_v12 = vand.u32 4294901760, %v11531_v37 }
 0x111   : > { %1218 = vmatmul.mubr.f32.gmra.mxu0 %v1217_v41  ;;  %v9984_v23 = vpop.trf.xlu0  ;;  %v1226_v50 = vand.u32 4294901760, %v1225_v25  ;;  %v16911_v5 = vand.u32 4294901760, %v11534_v53  ;;  %8164 = vmatpush3.msra.mxu1 %v11046_v16  ;;  %v1232_v41 = vand.u32 4294901760, %v1231_v58 }
 0x112   : > { %17706 = vst [vmem:[#allocation45_spill] sm:$0xff] %v11536_v10  ;;  %17707 = vst [vmem:[#allocation86_spill] sm:$0xff] %v11539_v31  ;;  %v9988_v61 = vunpack.i.h.bf16 %v9984_v23  ;;  %v9985_v8 = vunpack.i.l.bf16 %v9984_v23  ;;  %1606 = vmatprep.mubr.f32.mxu1 %v11536_v10  ;;  %8080 = vmatpush3.msra.mxu0 %v11036_v62  ;;  %v1240_v25 = vsub.f32 %v11531_v37, %v16909_v12 }
 0x113   : > { %1227 = vmatprep.mubr.f32.mxu0 %v1226_v50  ;;  %1608 = vmatmul.mubr.f32.gmra.mxu1 %v11539_v31  ;;  %v1246_v52 = vsub.f32 %v11534_v53, %v16911_v5  ;;  %v11558_v16 = vsub.f32 %v9980_v39, %v11536_v10  ;;  %v11567_v50 = vsub.f32 %v9983_v21, %v11539_v31  ;;  %v17712_v31 = vand.u32 4294901760, %v11227_v32 }
 0x114   : > { %v11560_v23 = vand.u32 4294901760, %v9985_v8  ;;  %8081 = vmatprep.subr.mxu0 %v11054_v47  ;;  %v11563_v2 = vand.u32 4294901760, %v9988_v61  ;;  %8165 = vmatprep.subr.mxu1 %v11056_v54  ;;  %v1241_v58 = vand.u32 4294901760, %v1240_v25  ;;  %v11571_v39 = vpop.trf.xlu1 }
 0x115   : > { %1233 = vmatmul.mubr.f32.gmra.mxu0 %v1232_v41  ;;  %v1247_v12 = vand.u32 4294901760, %v1246_v52  ;;  %v16916_v24 = vand.u32 4294901760, %v11558_v16  ;;  %8166 = vmatpush3.msra.mxu1 %v11058_v63  ;;  %v16919_v5 = vand.u32 4294901760, %v11567_v50  ;;  %v17710_v41 = vand.u32 4294901760, %v11224_v14 }
 0x116   : > { %17708 = vst [vmem:[#allocation87_spill] sm:$0xff] %v11560_v23  ;;  %17709 = vst [vmem:[#allocation88_spill] sm:$0xff] %v11563_v2  ;;  %1613 = vmatprep.mubr.f32.mxu1 %v11560_v23  ;;  %8082 = vmatpush3.msra.mxu0 %v11064_v3  ;;  %v11577_v10 = vsub.f32 %v9985_v8, %v11560_v23  ;;  %v11580_v21 = vsub.f32 %v9988_v61, %v11563_v2  ;;  %v17711_v23 = vld [vmem:[#allocation52_spill] sm:$0xff] }
 0x117   : > { %1242 = vmatprep.mubr.f32.mxu0 %v1241_v58  ;;  %1615 = vmatmul.mubr.f32.gmra.mxu1 %v11563_v2  ;;  %v1255_v52 = vsub.f32 %v11558_v16, %v16916_v24  ;;  %v1261_v8 = vsub.f32 %v11567_v50, %v16919_v5 }
 0x118   : > { %1992 = vmatprep.mubr.f32.mxu1 %v17710_v41  ;;  %8083 = vmatprep.subr.mxu0 %v11067_v9  ;;  %v16922_v25 = vand.u32 4294901760, %v11577_v10  ;;  %v1275_v61 = vand.u32 4294901760, %v11580_v21  ;;  %v11595_v2 = vpop.trf.xlu1 }
 0x119   : > { %1248 = vmatmul.mubr.f32.gmra.mxu0 %v1247_v12  ;;  %v1256_v58 = vand.u32 4294901760, %v1255_v52  ;;  %8295 = vmatprep.subr.mxu1 %v10747_v17  ;;  %v1262_v24 = vand.u32 4294901760, %v1261_v8  ;;  %v17713_v12 = vand.u32 4294901760, %v11247_v44 }
 0x11a   : > { %8084 = vmatpush3.msra.mxu0 %v17711_v23  ;;  %v1270_v41 = vsub.f32 %v11577_v10, %v16922_v25  ;;  %v1276_v5 = vsub.f32 %v11580_v21, %v1275_v61  ;;  %v17714_v25 = vld [vmem:[#allocation53_spill] sm:$0xff] }
 0x11b   : > { %1257 = vmatprep.mubr.f32.mxu0 %v1256_v58  ;;  %1996 = vmatmul.mubr.f32.vlgmr.msra.gmra.mxu1 %v17712_v31  ;;  %v17715_v58 = vand.u32 4294901760, %v11250_v43  ;;  %v17716_v31 = vand.u32 4294901760, %v10767_v28  ;;  %v17719_v28 = vand.u32 4294901760, %v11291_v56 }
 0x11c   : > { %2003 = vmatprep.mubr.f32.mxu1 %v17713_v12  ;;  %v1271_v17 = vand.u32 4294901760, %v1270_v41  ;;  %8085 = vmatprep.subr.mxu0 %v11077_v20  ;;  %v1277_v52 = vand.u32 4294901760, %v1276_v5  ;;  %v11610_v8 = vpop.trf.xlu1  ;;  %v17717_v12 = vand.u32 4294901760, %v11270_v11  ;;  %v17724_v41 = vand.u32 4294901760, %v10803_v57 }
 0x11d   : > { %1263 = vmatmul.mubr.f32.gmra.mxu0 %v1262_v24  ;;  %8296 = vmatpush3.msra.mxu1 %v10749_v18  ;;  %v17718_v24 = vand.u32 4294901760, %v11277_v1  ;;  %v17729_v57 = vand.u32 4294901760, %v10820_v6 }
 0x11e   : > { %1272 = vmatprep.mubr.f32.mxu0 %v1271_v17  ;;  %8086 = vmatpush3.msra.mxu0 %v17714_v25  ;;  %v17730_v17 = vand.u32 4294901760, %v11339_v40 }
 0x11f   : > { %2007 = vmatmul.mubr.f32.gmra.mxu1 %v17715_v58  ;;  %8215 = vmatprep.subr.mxu0 %v17716_v31  ;;  %v17735_v58 = vld [vmem:[#allocation66_spill] sm:$0xff]  ;;  %v17737_v31 = vld [vmem:[#allocation17_spill] sm:$0xff] }
 0x120   : > { %2014 = vmatprep.mubr.f32.mxu1 %v17717_v12  ;;  %8297 = vmatprep.subr.mxu1 %v10780_v35  ;;  %v11621_v18 = vpop.trf.xlu1  ;;  %v17720_v35 = vld [vmem:[#allocation12_spill] sm:$0xff]  ;;  %v17736_v6 = vand.u32 4294901760, %v17735_v58  ;;  %v17738_v12 = vand.u32 4294901760, %v17737_v31  ;;  %v17762_v31 = vand.u32 4294901760, %v11422_v48 }
 0x121   : > { %1278 = vmatmul.mubr.f32.gmra.mxu0 %v1277_v52  ;;  %8298 = vmatpush3.msra.mxu1 %v10784_v45  ;;  %v17721_v45 = vand.u32 4294901760, %v10778_v33 }
 0x122   : > { %1750 = vmatprep.mubr.f32.mxu0 %v11224_v14  ;;  %8299 = vmatprep.subr.mxu1 %v10786_v46  ;;  %v17722_v46 = vand.u32 4294901760, %v10792_v38  ;;  %v17723_v14 = vand.u32 4294901760, %v11294_v26  ;;  %v17727_v38 = vand.u32 4294901760, %v10809_v60  ;;  %v17733_v60 = vld [vmem:[#allocation16_spill] sm:$0xff] }
 0x123   : > { %2018 = vmatmul.mubr.f32.gmra.mxu1 %v17718_v24  ;;  %v17740_v24 = vld [vmem:[#allocation14_spill] sm:$0xff] }
 0x124   : > { %2025 = vmatprep.mubr.f32.mxu1 %v17719_v28  ;;  %8300 = vmatpush3.msra.mxu1 %v10788_v34  ;;  %v11632_v5 = vpop.trf.xlu1  ;;  %v17725_v34 = vand.u32 4294901760, %v11318_v22 }
 0x125   : > { %1753 = vmatmul.mubr.f32.vlgmr.msra.gmra.mxu0 %v11227_v32  ;;  %8301 = vmatprep.subr.mxu1 %v17720_v35  ;;  %v17726_v32 = vand.u32 4294901760, %v10806_v59  ;;  %v17732_v59 = vld [vmem:[#allocation13_spill] sm:$0xff]  ;;  %v17744_v35 = vand.u32 4294901760, %v11374_v29 }
 0x126   : > { %8216 = vmatpush3.msra.mxu0 %v17721_v45  ;;  %1759 = vmatprep.mubr.f32.mxu0 %v11247_v44  ;;  %v17728_v44 = vand.u32 4294901760, %v11326_v51  ;;  %v17745_v45 = vld [vmem:[#allocation25_spill] sm:$0xff] }
 0x127   : > { %8217 = vmatprep.subr.mxu0 %v17722_v46  ;;  %2029 = vmatmul.mubr.f32.gmra.mxu1 %v17723_v14  ;;  %v17746_v46 = vand.u32 4294901760, %v17745_v45  ;;  %v17747_v14 = vld [vmem:[#allocation71_spill] sm:$0xff]  ;;  %v17772_v45 = vld [vmem:[#allocation33_spill] sm:$0xff] }
 0x128   : > { %8218 = vmatpush3.msra.mxu0 %v17724_v41  ;;  %2036 = vmatprep.mubr.f32.mxu1 %v17725_v34  ;;  %v11648_v33 = vpop.trf.xlu1  ;;  %v17748_v41 = vand.u32 4294901760, %v17747_v14  ;;  %v17749_v34 = vld [vmem:[#allocation18_spill] sm:$0xff] }
 0x129   : > { %1762 = vmatmul.mubr.f32.gmra.mxu0 %v11250_v43  ;;  %8219 = vmatprep.subr.mxu0 %v17726_v32  ;;  %v17731_v43 = vand.u32 4294901760, %v10823_v7  ;;  %v17739_v7 = vand.u32 4294901760, %v11366_v30 }
 0x12a   : > { %1768 = vmatprep.mubr.f32.mxu0 %v11270_v11  ;;  %8220 = vmatpush3.msra.mxu0 %v17727_v38  ;;  %v17734_v11 = vand.u32 4294901760, %v17733_v60  ;;  %v17758_v60 = vld [vmem:[#allocation20_spill] sm:$0xff] }
 0x12b   : > { %2040 = vmatmul.mubr.f32.gmra.mxu1 %v17728_v44  ;;  %8221 = vmatprep.subr.mxu0 %v17729_v57  ;;  %v17753_v44 = vld [vmem:[#allocation72_spill] sm:$0xff] }
 0x12c   : > { %2047 = vmatprep.mubr.f32.mxu1 %v17730_v17  ;;  %8222 = vmatpush3.msra.mxu0 %v17731_v43  ;;  %v11666_v52 = vpop.trf.xlu1  ;;  %v17754_v57 = vand.u32 4294901760, %v17753_v44  ;;  %v17755_v17 = vld [vmem:[#allocation27_spill] sm:$0xff] }
 0x12d   : > { %1771 = vmatmul.mubr.f32.gmra.mxu0 %v11277_v1  ;;  %8302 = vmatpush3.msra.mxu1 %v17732_v59  ;;  %v17741_v1 = vld [vmem:[#allocation15_spill] sm:$0xff]  ;;  %v17756_v43 = vand.u32 4294901760, %v17755_v17  ;;  %v17757_v59 = vand.u32 4294901760, %v11414_v15  ;;  %v17781_v17 = vld [vmem:[#allocation41_spill] sm:$0xff] }
 0x12e   : > { %1777 = vmatprep.mubr.f32.mxu0 %v11291_v56  ;;  %8223 = vmatprep.subr.mxu0 %v17734_v11  ;;  %v17742_v56 = vld [vmem:[#allocation22_spill] sm:$0xff] }
 0x12f   : > { %2051 = vmatmul.mubr.f32.gmra.mxu1 %v17736_v6  ;;  %8224 = vmatpush3.msra.mxu0 %v17738_v12  ;;  %v17743_v28 = vand.u32 4294901760, %v17742_v56  ;;  %v17763_v12 = vld [vmem:[#allocation29_spill] sm:$0xff]  ;;  %v17767_v56 = vld [vmem:[#allocation23_spill] sm:$0xff] }
 0x130   : > { %2058 = vmatprep.mubr.f32.mxu1 %v17739_v7  ;;  %8303 = vmatprep.subr.mxu1 %v17740_v24  ;;  %v11687_v32 = vpop.trf.xlu1  ;;  %v17764_v7 = vand.u32 4294901760, %v17763_v12  ;;  %v17765_v24 = vld [vmem:[#allocation77_spill] sm:$0xff]  ;;  %v17791_v12 = vand.u32 4294901760, %v11510_v0 }
 0x131   : > { %1780 = vmatmul.mubr.f32.gmra.mxu0 %v11294_v26  ;;  %8304 = vmatpush3.msra.mxu1 %v17741_v1  ;;  %v17750_v26 = vld [vmem:[#allocation19_spill] sm:$0xff]  ;;  %v17766_v1 = vand.u32 4294901760, %v17765_v24 }
 0x132   : > { %1786 = vmatprep.mubr.f32.mxu0 %v11318_v22  ;;  %8225 = vmatprep.subr.mxu0 %v17743_v28  ;;  %v17751_v22 = vld [vmem:[#allocation26_spill] sm:$0xff] }
 0x133   : > { %2062 = vmatmul.mubr.f32.gmra.mxu1 %v17744_v35  ;;  %8226 = vmatpush3.msra.mxu0 %v17746_v46  ;;  %v17752_v38 = vand.u32 4294901760, %v17751_v22  ;;  %v17771_v35 = vand.u32 4294901760, %v11438_v27  ;;  %v17773_v46 = vand.u32 4294901760, %v17772_v45  ;;  %v608_v45 = vld [vmem:[#allocation5 + $0x170] sm:$0xff] }
 0x134   : > { %2069 = vmatprep.mubr.f32.mxu1 %v17748_v41  ;;  %8305 = vmatprep.subr.mxu1 %v17749_v34  ;;  %v11706_v6 = vpop.trf.xlu1  ;;  %v17774_v41 = vand.u32 4294901760, %v11462_v19  ;;  %v17775_v34 = vld [vmem:[#allocation30_spill] sm:$0xff] }
 0x135   : > { %1789 = vmatmul.mubr.f32.gmra.mxu0 %v11326_v51  ;;  %8306 = vmatpush3.msra.mxu1 %v17750_v26  ;;  %v17759_v51 = vld [vmem:[#allocation21_spill] sm:$0xff] }
 0x136   : > { %1795 = vmatprep.mubr.f32.mxu0 %v11339_v40  ;;  %8227 = vmatprep.subr.mxu0 %v17752_v38  ;;  %v17760_v40 = vld [vmem:[#allocation28_spill] sm:$0xff]  ;;  %v17779_v38 = vand.u32 4294901760, %v11470_v55 }
 0x137   : > { %2073 = vmatmul.mubr.f32.gmra.mxu1 %v17754_v57  ;;  %8228 = vmatpush3.msra.mxu0 %v17756_v43  ;;  %v17761_v11 = vand.u32 4294901760, %v17760_v40  ;;  %v17780_v57 = vand.u32 4294901760, %v17696_v42  ;;  %v17782_v43 = vand.u32 4294901760, %v17781_v17  ;;  %v17788_v42 = vand.u32 4294901760, %v11486_v49 }
 0x138   : > { %2080 = vmatprep.mubr.f32.mxu1 %v17757_v59  ;;  %8307 = vmatprep.subr.mxu1 %v17758_v60  ;;  %v11727_v26 = vpop.trf.xlu1  ;;  %v17783_v59 = vld [vmem:[#allocation34_spill] sm:$0xff] }
 0x139   : > { %1798 = vmatmul.mubr.f32.gmra.mxu0 %v17735_v58  ;;  %8308 = vmatpush3.msra.mxu1 %v17759_v51  ;;  %v17768_v58 = vld [vmem:[#allocation24_spill] sm:$0xff]  ;;  %v625_v51 = vld [vmem:[#allocation5 + $0x1f8] sm:$0xff] }
 0x13a   : > { %1804 = vmatprep.mubr.f32.mxu0 %v11366_v30  ;;  %8229 = vmatprep.subr.mxu0 %v17761_v11  ;;  %v17769_v30 = vld [vmem:[#allocation32_spill] sm:$0xff]  ;;  %v17789_v11 = vld [vmem:[#allocation43_spill] sm:$0xff] }
 0x13b   : > { %2084 = vmatmul.mubr.f32.gmra.mxu1 %v17762_v31  ;;  %8230 = vmatpush3.msra.mxu0 %v17764_v7  ;;  %v17770_v28 = vand.u32 4294901760, %v17769_v30  ;;  %v17790_v31 = vand.u32 4294901760, %v17789_v11  ;;  %v17793_v7 = vld [vmem:[#allocation37_spill] sm:$0xff] }
 0x13c   : > { %2091 = vmatprep.mubr.f32.mxu1 %v17766_v1  ;;  %8309 = vmatprep.subr.mxu1 %v17767_v56  ;;  %v11746_v40 = vpop.trf.xlu1  ;;  %v609_v1 = vld [vmem:[#allocation5 + $0x178] sm:$0xff]  ;;  %v17794_v56 = vld [vmem:[#allocation44_spill] sm:$0xff]  ;;  %v624_v30 = vld [vmem:[#allocation5 + $0x1f0] sm:$0xff] }
 0x13d   : > { %1807 = vmatmul.mubr.f32.gmra.mxu0 %v11374_v29  ;;  %8310 = vmatpush3.msra.mxu1 %v17768_v58  ;;  %v17776_v29 = vld [vmem:[#allocation31_spill] sm:$0xff]  ;;  %17787 = vst [vmem:[#allocation52_spill] sm:$0xff] %v11746_v40  ;;  %v17795_v58 = vand.u32 4294901760, %v17794_v56  ;;  %v17819_v56 = vand.u32 4294901760, %v11577_v10  ;;  %v615_v40 = vld [vmem:[#allocation5 + $0x1a8] sm:$0xff] }
 0x13e   : > { %1813 = vmatprep.mubr.f32.mxu0 %v17747_v14  ;;  %8231 = vmatprep.subr.mxu0 %v17770_v28  ;;  %v17777_v14 = vld [vmem:[#allocation38_spill] sm:$0xff]  ;;  %v17796_v28 = vand.u32 4294901760, %v11518_v13 }
 0x13f   : > { %2095 = vmatmul.mubr.f32.gmra.mxu1 %v17771_v35  ;;  %8232 = vmatpush3.msra.mxu0 %v17773_v46  ;;  %v17778_v22 = vand.u32 4294901760, %v17777_v14  ;;  %v17797_v35 = vand.u32 4294901760, %v17705_v36  ;;  %v17799_v46 = vld [vmem:[#allocation39_spill] sm:$0xff]  ;;  %v11778_v36 = vand.u32 4294901760, %v624_v30 }
 0x140   : > { %2102 = vmatprep.mubr.f32.mxu1 %v17774_v41  ;;  %8311 = vmatprep.subr.mxu1 %v17775_v34  ;;  %v11769_v41 = vand.u32 4294901760, %v609_v1  ;;  %v623_v34 = vld [vmem:[#allocation5 + $0x1e8] sm:$0xff] }
 0x141   : > { %1816 = vmatmul.mubr.f32.gmra.mxu0 %v17753_v44  ;;  %8312 = vmatpush3.msra.mxu1 %v17776_v29  ;;  %v17784_v44 = vld [vmem:[#allocation35_spill] sm:$0xff]  ;;  %v17802_v29 = vld [vmem:[#allocation40_spill] sm:$0xff] }
 0x142   : > { %1822 = vmatprep.mubr.f32.mxu0 %v11414_v15  ;;  %8233 = vmatprep.subr.mxu0 %v17778_v22  ;;  %v17785_v15 = vld [vmem:[#allocation42_spill] sm:$0xff]  ;;  %17800 = vst [vmem:[#allocation53_spill] sm:$0xff] %v11769_v41  ;;  %v607_v22 = vld [vmem:[#allocation5 + $0x168] sm:$0xff] }
 0x143   : > { %2106 = vmatmul.mubr.f32.gmra.mxu1 %v17779_v38  ;;  %8234 = vmatpush3.msra.mxu0 %v17780_v57  ;;  %v17786_v60 = vand.u32 4294901760, %v17785_v15  ;;  %v17803_v38 = vand.u32 4294901760, %v11032_v4  ;;  %v11783_v57 = vand.u32 4294901760, %v608_v45  ;;  %v17808_v15 = vand.u32 4294901760, %v11558_v16 }
 0x144   : > { %2113 = vmatprep.mubr.f32.mxu1 %v17782_v43  ;;  %8313 = vmatprep.subr.mxu1 %v17783_v59  ;;  %v622_v43 = vld [vmem:[#allocation5 + $0x1e0] sm:$0xff]  ;;  %v17805_v59 = vand.u32 4294901760, %v11534_v53  ;;  %v11797_v4 = vand.u32 4294901760, %v607_v22 }
 0x145   : > { %1825 = vmatmul.mubr.f32.gmra.mxu0 %v11422_v48  ;;  %8314 = vmatpush3.msra.mxu1 %v17784_v44  ;;  %v17792_v48 = vld [vmem:[#allocation36_spill] sm:$0xff]  ;;  %17804 = vst [vmem:[#allocation13_spill] sm:$0xff] %v11783_v57  ;;  %v11789_v44 = vand.u32 4294901760, %v623_v34  ;;  %v11805_v11 = vand.u32 4294901760, %v622_v43 }
 0x146   : > { %1831 = vmatprep.mubr.f32.mxu0 %v17765_v24  ;;  %8235 = vmatprep.subr.mxu0 %v17786_v60  ;;  %v11757_v24 = vand.u32 4294901760, %v625_v51  ;;  %v17809_v60 = vld [vmem:[#allocation46_spill] sm:$0xff]  ;;  %17810 = vst [vmem:[#allocation66_spill] sm:$0xff] %v11797_v4 }
 0x147   : > { %2117 = vmatmul.mubr.f32.gmra.mxu1 %v17788_v42  ;;  %8236 = vmatpush3.msra.mxu0 %v17790_v31  ;;  %17807 = vst [vmem:[#allocation16_spill] sm:$0xff] %v11789_v44  ;;  %17812 = vst [vmem:[#allocation17_spill] sm:$0xff] %v11805_v11  ;;  %v17813_v31 = vld [vmem:[#allocation48_spill] sm:$0xff] }
 0x148   : > { %2124 = vmatprep.mubr.f32.mxu1 %v17791_v12  ;;  %8315 = vmatprep.subr.mxu1 %v17792_v48  ;;  %v11776_v14 = vsub.f32 %v625_v51, %v11757_v24  ;;  %v17811_v51 = vld [vmem:[#allocation47_spill] sm:$0xff]  ;;  %v11810_v12 = vsub.f32 %v608_v45, %v11783_v57  ;;  %v11835_v45 = vsub.f32 %v622_v43, %v11805_v11 }
 0x149   : > { %1834 = vmatmul.mubr.f32.gmra.mxu0 %v11438_v27  ;;  %8316 = vmatpush3.msra.mxu1 %v17793_v7  ;;  %v17798_v27 = vand.u32 4294901760, %v11531_v37  ;;  %v17817_v7 = vand.u32 4294901760, %v11054_v47 }
 0x14a   : > { %1840 = vmatprep.mubr.f32.mxu0 %v11462_v19  ;;  %8237 = vmatprep.subr.mxu0 %v17795_v58  ;;  %v11771_v19 = vpop.trf.xlu1  ;;  %v16930_v42 = vand.u32 4294901760, %v11776_v14  ;;  %17814 = vst [vmem:[#allocation14_spill] sm:$0xff] %v11810_v12  ;;  %17823 = vst [vmem:[#allocation71_spill] sm:$0xff] %v11835_v45 }
 0x14b   : > { %2128 = vmatmul.mubr.f32.gmra.mxu1 %v17796_v28  ;;  %8238 = vmatpush3.msra.mxu0 %v17797_v35  ;;  %17801 = vst [vmem:[#allocation12_spill] sm:$0xff] %v11771_v19  ;;  %v17822_v28 = vld [vmem:[#allocation50_spill] sm:$0xff] }
 0x14c   : > { %2135 = vmatprep.mubr.f32.mxu1 %v17798_v27  ;;  %8317 = vmatprep.subr.mxu1 %v17799_v46  ;;  %v3101_v47 = vsub.f32 %v11776_v14, %v16930_v42  ;;  %v17824_v27 = vand.u32 4294901760, %v11064_v3  ;;  %v16927_v46 = vand.u32 4294901760, %v11810_v12  ;;  %v617_v42 = vld [vmem:[#allocation5 + $0x1b8] sm:$0xff] }
 0x14d   : > { %1843 = vmatmul.mubr.f32.gmra.mxu0 %v11470_v55  ;;  %8318 = vmatpush3.msra.mxu1 %v17802_v29  ;;  %v17806_v55 = vand.u32 4294901760, %v11036_v62  ;;  %v11803_v62 = vsub.f32 %v624_v30, %v11778_v36  ;;  %v11826_v30 = vsub.f32 %v607_v22, %v11797_v4  ;;  %v17826_v22 = vld [vmem:[#allocation51_spill] sm:$0xff] }
 0x14e   : > { %1849 = vmatprep.mubr.f32.mxu0 %v17781_v17  ;;  %8239 = vmatprep.subr.mxu0 %v17803_v38  ;;  %v11795_v17 = vsub.f32 %v609_v1, %v11769_v41  ;;  %v11812_v48 = vpop.trf.xlu1  ;;  %v11819_v1 = vsub.f32 %v623_v34, %v11789_v44  ;;  %v606_v34 = vld [vmem:[#allocation5 + $0x160] sm:$0xff]  ;;  %v17827_v38 = vld [vmem:[#allocation54_spill] sm:$0xff] }
 0x14f   : > { %2139 = vmatmul.mubr.f32.gmra.mxu1 %v17805_v59  ;;  %8240 = vmatpush3.msra.mxu0 %v17806_v55  ;;  %17815 = vst [vmem:[#allocation15_spill] sm:$0xff] %v11812_v48  ;;  %17821 = vst [vmem:[#allocation25_spill] sm:$0xff] %v11826_v30  ;;  %v16928_v35 = vand.u32 4294901760, %v11803_v62  ;;  %v11859_v59 = vand.u32 4294901760, %v606_v34  ;;  %v16923_v55 = vand.u32 4294901760, %v11835_v45 }
 0x150   : > { %2146 = vmatprep.mubr.f32.mxu1 %v17808_v15  ;;  %8319 = vmatprep.subr.mxu1 %v17809_v60  ;;  %17818 = vst [vmem:[#allocation22_spill] sm:$0xff] %v11819_v1  ;;  %v16929_v58 = vand.u32 4294901760, %v11795_v17  ;;  %v16926_v29 = vand.u32 4294901760, %v11819_v1  ;;  %v621_v15 = vld [vmem:[#allocation5 + $0x1d8] sm:$0xff] }
 0x151   : > { %1852 = vmatmul.mubr.f32.gmra.mxu0 %v11486_v49  ;;  %8320 = vmatpush3.msra.mxu1 %v17811_v51  ;;  %v17816_v49 = vand.u32 4294901760, %v11567_v50  ;;  %17829 = vst [vmem:[#allocation19_spill] sm:$0xff] %v11859_v59  ;;  %v605_v60 = vld [vmem:[#allocation5 + $0x158] sm:$0xff]  ;;  %v17831_v51 = vld [vmem:[#allocation55_spill] sm:$0xff] }
 0x152   : > { %1858 = vmatprep.mubr.f32.mxu0 %v11510_v0  ;;  %8321 = vmatprep.subr.mxu1 %v17813_v31  ;;  %v17820_v0 = vld [vmem:[#allocation49_spill] sm:$0xff]  ;;  %v2989_v3 = vsub.f32 %v11795_v17, %v16929_v58  ;;  %v11852_v43 = vpop.trf.xlu1  ;;  %v3115_v31 = vsub.f32 %v11819_v1, %v16926_v29 }
 0x153   : > { %2150 = vmatmul.mubr.f32.gmra.mxu1 %v17816_v49  ;;  %8241 = vmatprep.subr.mxu0 %v17817_v7  ;;  %17828 = vst [vmem:[#allocation18_spill] sm:$0xff] %v11852_v43  ;;  %v17832_v49 = vld [vmem:[#allocation56_spill] sm:$0xff]  ;;  %v11973_v43 = vand.u32 4294901760, %v617_v42 }
 0x154   : > { %2157 = vmatprep.mubr.f32.mxu1 %v17819_v56  ;;  %8322 = vmatpush3.msra.mxu1 %v17820_v0  ;;  %v11879_v56 = vand.u32 4294901760, %v621_v15 }
 0x155   : > { %1861 = vmatmul.mubr.f32.gmra.mxu0 %v11518_v13  ;;  %8323 = vmatprep.subr.mxu1 %v17822_v28  ;;  %v17825_v13 = vand.u32 4294901760, %v11067_v9  ;;  %v3102_v9 = vand.u32 4294901760, %v3101_v47  ;;  %v11883_v28 = vsub.f32 %v606_v34, %v11859_v59  ;;  %v11888_v47 = vand.u32 4294901760, %v605_v60  ;;  %17862 = vst [vmem:[#allocation42_spill] sm:$0xff] %v11973_v43 }
 0x156   : > { %1867 = vmatprep.mubr.f32.mxu0 %v11531_v37  ;;  %8242 = vmatpush3.msra.mxu0 %v17824_v27  ;;  %v16925_v37 = vand.u32 4294901760, %v11826_v30  ;;  %17834 = vst [vmem:[#allocation26_spill] sm:$0xff] %v11879_v56  ;;  %v604_v27 = vld [vmem:[#allocation5 + $0x150] sm:$0xff]  ;;  %v3116_v34 = vand.u32 4294901760, %v3115_v31 }
 0x157   : > { %2161 = vmatmul.mubr.f32.gmra.mxu1 %v1275_v61  ;;  %8243 = vmatprep.subr.mxu0 %v17825_v13  ;;  %v3108_v61 = vsub.f32 %v11803_v62, %v16928_v35  ;;  %17835 = vst [vmem:[#allocation72_spill] sm:$0xff] %v11883_v28  ;;  %17836 = vst [vmem:[#allocation27_spill] sm:$0xff] %v11888_v47  ;;  %v17837_v13 = vand.u32 4294901760, %v17714_v25  ;;  %v619_v25 = vld [vmem:[#allocation5 + $0x1c8] sm:$0xff]  ;;  %v11908_v31 = vsub.f32 %v605_v60, %v11888_v47 }
 0x158   : > { %8324 = vmatpush3.msra.mxu1 %v17826_v22  ;;  %2536 = vmatprep.mubr.f32.mxu1 %v17827_v38  ;;  %v3003_v7 = vsub.f32 %v11826_v30, %v16925_v37 }
 0x159   : > { %1870 = vmatmul.mubr.f32.gmra.mxu0 %v11534_v53  ;;  %8325 = vmatprep.subr.mxu1 %v11056_v54  ;;  %v2996_v53 = vsub.f32 %v11810_v12, %v16927_v46  ;;  %v17830_v54 = vand.u32 4294901760, %v17711_v23  ;;  %v620_v23 = vld [vmem:[#allocation5 + $0x1d0] sm:$0xff]  ;;  %v3109_v0 = vand.u32 4294901760, %v3108_v61  ;;  %v17841_v61 = vld [vmem:[#allocation58_spill] sm:$0xff]  ;;  %17844 = vst [vmem:[#allocation77_spill] sm:$0xff] %v11908_v31 }
 0x15a   : > { %1876 = vmatprep.mubr.f32.mxu0 %v11558_v16  ;;  %8326 = vmatpush3.msra.mxu1 %v11058_v63  ;;  %v17833_v16 = vand.u32 4294901760, %v11077_v20  ;;  %v2990_v63 = vand.u32 4294901760, %v2989_v3  ;;  %v3122_v20 = vsub.f32 %v11835_v45, %v16923_v55  ;;  %v11893_v3 = vpop.trf.xlu1  ;;  %v11915_v55 = vand.u32 4294901760, %v619_v25 }
 0x15b   : > { %8244 = vmatpush3.msra.mxu0 %v17830_v54  ;;  %2538 = vmatmul.mubr.f32.vlgmr.msra.gmra.mxu1 %v17831_v51  ;;  %v2997_v22 = vand.u32 4294901760, %v2996_v53  ;;  %17838 = vst [vmem:[#allocation20_spill] sm:$0xff] %v11893_v3  ;;  %v3004_v54 = vand.u32 4294901760, %v3003_v7  ;;  %v17845_v7 = vld [vmem:[#allocation59_spill] sm:$0xff] }
 0x15c   : > { %2543 = vmatprep.mubr.f32.mxu1 %v17832_v49  ;;  %8245 = vmatprep.subr.mxu0 %v17833_v16  ;;  %v11901_v16 = vsub.f32 %v621_v15, %v11879_v56  ;;  %v3123_v53 = vand.u32 4294901760, %v3122_v20  ;;  %17847 = vst [vmem:[#allocation24_spill] sm:$0xff] %v11915_v55 }
 0x15d   : > { %1879 = vmatmul.mubr.f32.gmra.mxu0 %v11567_v50  ;;  %8455 = vmatprep.subr.mxu1 %v3102_v9  ;;  %v17839_v50 = vld [vmem:[#allocation57_spill] sm:$0xff]  ;;  %v11897_v9 = vand.u32 4294901760, %v620_v23 }
 0x15e   : > { %1885 = vmatprep.mubr.f32.mxu0 %v11577_v10  ;;  %8246 = vmatpush3.msra.mxu0 %v17837_v13  ;;  %17842 = vst [vmem:[#allocation28_spill] sm:$0xff] %v11901_v16  ;;  %v11903_v10 = vand.u32 4294901760, %v604_v27  ;;  %v16924_v13 = vand.u32 4294901760, %v11883_v28  ;;  %v11922_v20 = vpop.trf.xlu1 }
 0x15f   : > { %2545 = vmatmul.mubr.f32.gmra.mxu1 %v17839_v50  ;;  %8375 = vmatprep.subr.mxu0 %v11757_v24  ;;  %17840 = vst [vmem:[#allocation21_spill] sm:$0xff] %v11897_v9  ;;  %v11913_v15 = vsub.f32 %v620_v23, %v11897_v9  ;;  %17850 = vst [vmem:[#allocation33_spill] sm:$0xff] %v11922_v20  ;;  %v16932_v23 = vand.u32 4294901760, %v11908_v31 }
 0x160   : > { %2550 = vmatprep.mubr.f32.mxu1 %v17841_v61  ;;  %8456 = vmatpush3.msra.mxu1 %v2990_v63  ;;  %17843 = vst [vmem:[#allocation29_spill] sm:$0xff] %v11903_v10  ;;  %v603_v63 = vld [vmem:[#allocation5 + $0x148] sm:$0xff]  ;;  %v11920_v60 = vsub.f32 %v604_v27, %v11903_v10  ;;  %v602_v27 = vld [vmem:[#allocation5 + $0x140] sm:$0xff] }
 0x161   : > { %1888 = vmatmul.mubr.f32.gmra.mxu0 %v11580_v21  ;;  %8457 = vmatprep.subr.mxu1 %v3109_v0  ;;  %17846 = vst [vmem:[#allocation23_spill] sm:$0xff] %v11913_v15  ;;  %v17848_v21 = vld [vmem:[#allocation60_spill] sm:$0xff]  ;;  %v16931_v0 = vand.u32 4294901760, %v11901_v16  ;;  %v11955_v58 = vand.u32 4294901760, %v602_v27 }
 0x162   : > { %2327 = vmatprep.mubr.f32.mxu0 %v17827_v38  ;;  %8458 = vmatpush3.msra.mxu1 %v2997_v22  ;;  %17849 = vst [vmem:[#allocation32_spill] sm:$0xff] %v11920_v60  ;;  %v3010_v38 = vsub.f32 %v11883_v28, %v16924_v13  ;;  %v11929_v22 = vand.u32 4294901760, %v603_v63  ;;  %v17854_v13 = vld [vmem:[#allocation62_spill] sm:$0xff] }
 0x163   : > { %2552 = vmatmul.mubr.f32.gmra.mxu1 %v17845_v7  ;;  %8459 = vmatprep.subr.mxu1 %v3116_v34  ;;  %v618_v34 = vld [vmem:[#allocation5 + $0x1c0] sm:$0xff]  ;;  %v3129_v37 = vsub.f32 %v11901_v16, %v16931_v0  ;;  %17857 = vst [vmem:[#allocation34_spill] sm:$0xff] %v11955_v58  ;;  %v601_v0 = vld [vmem:[#allocation5 + $0x138] sm:$0xff]  ;;  %v11978_v48 = vsub.f32 %v602_v27, %v11955_v58 }
 0x164   : > { %2557 = vmatprep.mubr.f32.mxu1 %v17848_v21  ;;  %8460 = vmatpush3.msra.mxu1 %v3004_v54  ;;  %17851 = vst [vmem:[#allocation30_spill] sm:$0xff] %v11929_v22  ;;  %v17852_v54 = vld [vmem:[#allocation61_spill] sm:$0xff]  ;;  %v11945_v29 = vand.u32 4294901760, %v618_v34  ;;  %v3011_v46 = vand.u32 4294901760, %v3010_v38  ;;  %v11953_v35 = vsub.f32 %v603_v63, %v11929_v22  ;;  %v17859_v63 = vld [vmem:[#allocation64_spill] sm:$0xff]  ;;  %v11980_v19 = vand.u32 4294901760, %v601_v0 }
 0x165   : > { %2329 = vmatmul.mubr.f32.vlgmr.msra.gmra.mxu0 %v17831_v51  ;;  %8461 = vmatprep.subr.mxu1 %v3123_v53  ;;  %v16936_v51 = vand.u32 4294901760, %v11913_v15  ;;  %v11937_v53 = vsub.f32 %v619_v25, %v11915_v55  ;;  %v3017_v25 = vsub.f32 %v11908_v31, %v16932_v23  ;;  %v3130_v23 = vand.u32 4294901760, %v3129_v37  ;;  %17863 = vst [vmem:[#allocation43_spill] sm:$0xff] %v11978_v48  ;;  %v616_v37 = vld [vmem:[#allocation5 + $0x1b0] sm:$0xff]  ;;  %v17867_v38 = vld [vmem:[#allocation67_spill] sm:$0xff] }
 0x166   : > { %8376 = vmatpush3.msra.mxu0 %v11769_v41  ;;  %2334 = vmatprep.mubr.f32.mxu0 %v17832_v49  ;;  %17855 = vst [vmem:[#allocation38_spill] sm:$0xff] %v11945_v29  ;;  %17856 = vst [vmem:[#allocation41_spill] sm:$0xff] %v11953_v35  ;;  %v17858_v49 = vld [vmem:[#allocation63_spill] sm:$0xff]  ;;  %v11971_v3 = vsub.f32 %v618_v34, %v11945_v29  ;;  %v600_v34 = vld [vmem:[#allocation5 + $0x130] sm:$0xff] }
 0x167   : > { %8377 = vmatprep.subr.mxu0 %v11778_v36  ;;  %2559 = vmatmul.mubr.f32.gmra.mxu1 %v17852_v54  ;;  %17853 = vst [vmem:[#allocation31_spill] sm:$0xff] %v11937_v53  ;;  %17864 = vst [vmem:[#allocation36_spill] sm:$0xff] %v11980_v19  ;;  %v614_v31 = vld [vmem:[#allocation5 + $0x1a0] sm:$0xff] }
 0x168   : > { %8378 = vmatpush3.msra.mxu0 %v11783_v57  ;;  %2564 = vmatprep.mubr.f32.mxu1 %v17854_v13  ;;  %17861 = vst [vmem:[#allocation35_spill] sm:$0xff] %v11971_v3 }
 0x169   : > { %2336 = vmatmul.mubr.f32.gmra.mxu0 %v17839_v50  ;;  %8379 = vmatprep.subr.mxu0 %v11789_v44  ;;  %v3136_v50 = vsub.f32 %v11913_v15, %v16936_v51  ;;  %v3018_v51 = vand.u32 4294901760, %v3017_v25  ;;  %v11994_v15 = vand.u32 4294901760, %v616_v37 }
 0x16a   : > { %2341 = vmatprep.mubr.f32.mxu0 %v17841_v61  ;;  %8380 = vmatpush3.msra.mxu0 %v11797_v4  ;;  %v17860_v61 = vand.u32 4294901760, %v11920_v60 }
 0x16b   : > { %2566 = vmatmul.mubr.f32.gmra.mxu1 %v17858_v49  ;;  %8381 = vmatprep.subr.mxu0 %v11805_v11  ;;  %17869 = vst [vmem:[#allocation44_spill] sm:$0xff] %v11994_v15 }
 0x16c   : > { %2571 = vmatprep.mubr.f32.mxu1 %v17859_v63  ;;  %8382 = vmatpush3.msra.mxu0 %v11859_v59  ;;  %v3024_v20 = vsub.f32 %v11920_v60, %v17860_v61  ;;  %v17865_v61 = vld [vmem:[#allocation65_spill] sm:$0xff]  ;;  %v16958_v60 = vand.u32 4294901760, %v11971_v3 }
 0x16d   : > { %2343 = vmatmul.mubr.f32.gmra.mxu0 %v17845_v7  ;;  %8462 = vmatpush3.msra.mxu1 %v3011_v46  ;;  %v3137_v7 = vand.u32 4294901760, %v3136_v50  ;;  %v17866_v46 = vand.u32 4294901760, %v11937_v53  ;;  %v17870_v50 = vand.u32 4294901760, %v11953_v35 }
 0x16e   : > { %2348 = vmatprep.mubr.f32.mxu0 %v17848_v21  ;;  %8383 = vmatprep.subr.mxu0 %v11879_v56  ;;  %v3025_v27 = vand.u32 4294901760, %v3024_v20  ;;  %v11992_v21 = vsub.f32 %v617_v42, %v11973_v43  ;;  %v599_v56 = vld [vmem:[#allocation5 + $0x128] sm:$0xff]  ;;  %v12002_v20 = vsub.f32 %v601_v0, %v11980_v19  ;;  %v3150_v0 = vsub.f32 %v11971_v3, %v16958_v60  ;;  %v17880_v60 = vld [vmem:[#allocation70_spill] sm:$0xff] }
 0x16f   : > { %2573 = vmatmul.mubr.f32.gmra.mxu1 %v17865_v61  ;;  %8384 = vmatpush3.msra.mxu0 %v11888_v47  ;;  %v3143_v25 = vsub.f32 %v11937_v53, %v17866_v46  ;;  %v3031_v46 = vsub.f32 %v11953_v35, %v17870_v50  ;;  %v17873_v42 = vld [vmem:[#allocation68_spill] sm:$0xff]  ;;  %v17876_v50 = vld [vmem:[#allocation69_spill] sm:$0xff]  ;;  %v12020_v35 = vsub.f32 %v616_v37, %v11994_v15  ;;  %v598_v37 = vld [vmem:[#allocation5 + $0x120] sm:$0xff] }
 0x170   : > { %2578 = vmatprep.mubr.f32.mxu1 %v17867_v38  ;;  %8463 = vmatprep.subr.mxu1 %v3130_v23  ;;  %17868 = vst [vmem:[#allocation37_spill] sm:$0xff] %v11992_v21  ;;  %17871 = vst [vmem:[#allocation39_spill] sm:$0xff] %v12002_v20  ;;  %v12004_v23 = vand.u32 4294901760, %v600_v34 }
 0x171   : > { %2350 = vmatmul.mubr.f32.gmra.mxu0 %v17852_v54  ;;  %8464 = vmatpush3.msra.mxu1 %v3018_v51  ;;  %v12010_v54 = vand.u32 4294901760, %v615_v40  ;;  %v12012_v51 = vand.u32 4294901760, %v599_v56  ;;  %v3144_v53 = vand.u32 4294901760, %v3143_v25  ;;  %17877 = vst [vmem:[#allocation48_spill] sm:$0xff] %v12020_v35 }
 0x172   : > { %17872 = vst [vmem:[#allocation40_spill] sm:$0xff] %v12004_v23  ;;  %2355 = vmatprep.mubr.f32.mxu0 %v17854_v13  ;;  %8385 = vmatprep.subr.mxu0 %v11897_v9  ;;  %v16963_v13 = vand.u32 4294901760, %v11992_v21  ;;  %v17878_v9 = vand.u32 4294901760, %v11978_v48  ;;  %v12028_v25 = vsub.f32 %v600_v34, %v12004_v23  ;;  %v3151_v34 = vand.u32 4294901760, %v3150_v0  ;;  %v613_v0 = vld [vmem:[#allocation5 + $0x198] sm:$0xff] }
 0x173   : > { %2580 = vmatmul.mubr.f32.gmra.mxu1 %v17873_v42  ;;  %8386 = vmatpush3.msra.mxu0 %v11903_v10  ;;  %17874 = vst [vmem:[#allocation46_spill] sm:$0xff] %v12010_v54  ;;  %17875 = vst [vmem:[#allocation47_spill] sm:$0xff] %v12012_v51  ;;  %v3032_v10 = vand.u32 4294901760, %v3031_v46  ;;  %v17887_v46 = vld [vmem:[#allocation74_spill] sm:$0xff] }
 0x174   : > { %2585 = vmatprep.mubr.f32.mxu1 %v17876_v50  ;;  %8465 = vmatprep.subr.mxu1 %v3137_v7  ;;  %v3038_v47 = vsub.f32 %v11978_v48, %v17878_v9  ;;  %17879 = vst [vmem:[#allocation49_spill] sm:$0xff] %v12028_v25  ;;  %v12038_v9 = vsub.f32 %v615_v40, %v12010_v54  ;;  %v12045_v7 = vand.u32 4294901760, %v614_v31  ;;  %v17885_v48 = vand.u32 4294901760, %v12002_v20 }
 0x175   : > { %2357 = vmatmul.mubr.f32.gmra.mxu0 %v17858_v49  ;;  %8466 = vmatpush3.msra.mxu1 %v3025_v27  ;;  %v12035_v49 = vsub.f32 %v599_v56, %v12012_v51  ;;  %v17883_v27 = vld [vmem:[#allocation73_spill] sm:$0xff] }
 0x176   : > { %2362 = vmatprep.mubr.f32.mxu0 %v17859_v63  ;;  %8387 = vmatprep.subr.mxu0 %v11915_v55  ;;  %17882 = vst [vmem:[#allocation51_spill] sm:$0xff] %v12038_v9  ;;  %v3157_v63 = vsub.f32 %v11992_v21, %v16963_v13  ;;  %17884 = vst [vmem:[#allocation54_spill] sm:$0xff] %v12045_v7  ;;  %v3039_v56 = vand.u32 4294901760, %v3038_v47  ;;  %v3045_v40 = vsub.f32 %v12002_v20, %v17885_v48  ;;  %v597_v13 = vld [vmem:[#allocation5 + $0x118] sm:$0xff]  ;;  %v17888_v48 = vld [vmem:[#allocation75_spill] sm:$0xff] }
 0x177   : > { %2587 = vmatmul.mubr.f32.gmra.mxu1 %v17880_v60  ;;  %8388 = vmatpush3.msra.mxu0 %v11929_v22  ;;  %17881 = vst [vmem:[#allocation50_spill] sm:$0xff] %v12035_v49  ;;  %v17889_v20 = vand.u32 4294901760, %v12020_v35  ;;  %v12065_v21 = vsub.f32 %v614_v31, %v12045_v7  ;;  %v596_v22 = vld [vmem:[#allocation5 + $0x110] sm:$0xff] }
 0x178   : > { %2592 = vmatprep.mubr.f32.mxu1 %v17883_v27  ;;  %8467 = vmatprep.subr.mxu1 %v3144_v53  ;;  %v12052_v53 = vand.u32 4294901760, %v598_v37  ;;  %v3158_v3 = vand.u32 4294901760, %v3157_v63  ;;  %v3046_v47 = vand.u32 4294901760, %v3045_v40  ;;  %v12076_v63 = vand.u32 4294901760, %v597_v13 }
 0x179   : > { %2364 = vmatmul.mubr.f32.gmra.mxu0 %v17865_v61  ;;  %8468 = vmatpush3.msra.mxu1 %v3032_v10  ;;  %v612_v61 = vld [vmem:[#allocation5 + $0x190] sm:$0xff]  ;;  %17890 = vst [vmem:[#allocation56_spill] sm:$0xff] %v12065_v21  ;;  %v17891_v10 = vand.u32 4294901760, %v12028_v25  ;;  %v12095_v55 = vand.u32 4294901760, %v596_v22 }
 0x17a   : > { %17886 = vst [vmem:[#allocation55_spill] sm:$0xff] %v12052_v53  ;;  %2369 = vmatprep.mubr.f32.mxu0 %v17867_v38  ;;  %8389 = vmatprep.subr.mxu0 %v11945_v29  ;;  %v3164_v38 = vsub.f32 %v12020_v35, %v17889_v20  ;;  %v12067_v29 = vand.u32 4294901760, %v613_v0  ;;  %v12080_v31 = vand.u32 4294901760, %v612_v61  ;;  %v611_v20 = vld [vmem:[#allocation5 + $0x188] sm:$0xff]  ;;  %v17900_v35 = vld [vmem:[#allocation79_spill] sm:$0xff] }
 0x17b   : > { %2594 = vmatmul.mubr.f32.gmra.mxu1 %v17887_v46  ;;  %8390 = vmatpush3.msra.mxu0 %v11955_v58  ;;  %v3052_v58 = vsub.f32 %v12028_v25, %v17891_v10  ;;  %v17897_v25 = vld [vmem:[#allocation78_spill] sm:$0xff] }
 0x17c   : > { %2599 = vmatprep.mubr.f32.mxu1 %v17888_v48  ;;  %8469 = vmatprep.subr.mxu1 %v3151_v34  ;;  %v12074_v34 = vsub.f32 %v598_v37, %v12052_v53  ;;  %17893 = vst [vmem:[#allocation58_spill] sm:$0xff] %v12080_v31  ;;  %v17896_v37 = vand.u32 4294901760, %v12035_v49 }
 0x17d   : > { %2371 = vmatmul.mubr.f32.gmra.mxu0 %v17873_v42  ;;  %8470 = vmatpush3.msra.mxu1 %v3039_v56  ;;  %v17894_v42 = vld [vmem:[#allocation76_spill] sm:$0xff]  ;;  %v17895_v56 = vand.u32 4294901760, %v12038_v9 }
 0x17e   : > { %17892 = vst [vmem:[#allocation57_spill] sm:$0xff] %v12074_v34  ;;  %2376 = vmatprep.mubr.f32.mxu0 %v17876_v50  ;;  %8391 = vmatprep.subr.mxu0 %v11973_v43  ;;  %v3059_v10 = vsub.f32 %v12035_v49, %v17896_v37  ;;  %v3165_v50 = vand.u32 4294901760, %v3164_v38  ;;  %v12093_v43 = vsub.f32 %v613_v0, %v12067_v29  ;;  %v12102_v37 = vand.u32 4294901760, %v611_v20  ;;  %v610_v38 = vld [vmem:[#allocation5 + $0x180] sm:$0xff] }
 0x17f   : > { %2601 = vmatmul.mubr.f32.gmra.mxu1 %v17894_v42  ;;  %8392 = vmatpush3.msra.mxu0 %v11980_v19  ;;  %v3171_v40 = vsub.f32 %v12038_v9, %v17895_v56  ;;  %v3053_v19 = vand.u32 4294901760, %v3052_v58  ;;  %v12100_v9 = vsub.f32 %v597_v13, %v12076_v63  ;;  %v12107_v0 = vsub.f32 %v612_v61, %v12080_v31  ;;  %v17901_v13 = vld [vmem:[#allocation80_spill] sm:$0xff] }
 0x180   : > { %2606 = vmatprep.mubr.f32.mxu1 %v17897_v25  ;;  %8471 = vmatprep.subr.mxu1 %v3158_v3  ;;  %v595_v3 = vld [vmem:[#allocation5 + $0x108] sm:$0xff]  ;;  %v17902_v56 = vand.u32 4294901760, %v12065_v21  ;;  %v12117_v61 = vsub.f32 %v596_v22, %v12095_v55 }
 0x181   : > { %2378 = vmatmul.mubr.f32.gmra.mxu0 %v17880_v60  ;;  %8472 = vmatpush3.msra.mxu1 %v3046_v47  ;;  %17898 = vst [vmem:[#allocation59_spill] sm:$0xff] %v12100_v9  ;;  %17899 = vst [vmem:[#allocation60_spill] sm:$0xff] %v12107_v0  ;;  %v3172_v58 = vand.u32 4294901760, %v3171_v40  ;;  %v3060_v60 = vand.u32 4294901760, %v3059_v10  ;;  %v594_v47 = vld [vmem:[#allocation5 + $0x100] sm:$0xff]  ;;  %v17903_v40 = vand.u32 4294901760, %v12074_v34 }
 0x182   : > { %2383 = vmatprep.mubr.f32.mxu0 %v17883_v27  ;;  %8393 = vmatprep.subr.mxu0 %v11994_v15  ;;  %v3178_v27 = vsub.f32 %v12065_v21, %v17902_v56  ;;  %v12119_v15 = vand.u32 4294901760, %v595_v3  ;;  %v12129_v56 = vand.u32 4294901760, %v610_v38  ;;  %v12134_v49 = vand.u32 4294901760, %v594_v47 }
 0x183   : > { %2608 = vmatmul.mubr.f32.gmra.mxu1 %v17900_v35  ;;  %8394 = vmatpush3.msra.mxu0 %v12004_v23  ;;  %v3066_v10 = vsub.f32 %v12074_v34, %v17903_v40  ;;  %v12127_v23 = vsub.f32 %v611_v20, %v12102_v37  ;;  %v17908_v20 = vand.u32 4294901760, %v12093_v43  ;;  %v17910_v21 = vand.u32 4294901760, %v12100_v9 }
 0x184   : > { %2613 = vmatprep.mubr.f32.mxu1 %v17901_v13  ;;  %8473 = vmatprep.subr.mxu1 %v3165_v50  ;;  %17905 = vst [vmem:[#allocation62_spill] sm:$0xff] %v12134_v49  ;;  %v3179_v40 = vand.u32 4294901760, %v3178_v27  ;;  %v12144_v34 = vsub.f32 %v595_v3, %v12119_v15  ;;  %v12152_v27 = vsub.f32 %v610_v38, %v12129_v56  ;;  %v17911_v3 = vand.u32 4294901760, %v12107_v0 }
 0x185   : > { %2385 = vmatmul.mubr.f32.gmra.mxu0 %v17887_v46  ;;  %8474 = vmatpush3.msra.mxu1 %v3053_v19  ;;  %17904 = vst [vmem:[#allocation61_spill] sm:$0xff] %v12127_v23  ;;  %v17906_v19 = vld [vmem:[#allocation81_spill] sm:$0xff]  ;;  %v17907_v46 = vld [vmem:[#allocation82_spill] sm:$0xff]  ;;  %v3185_v50 = vsub.f32 %v12093_v43, %v17908_v20  ;;  %v3067_v22 = vand.u32 4294901760, %v3066_v10  ;;  %v10022_v38 = vunpack.i.l.bf16 %v11571_v39 }
 0x186   : > { %2390 = vmatprep.mubr.f32.mxu0 %v17888_v48  ;;  %8395 = vmatprep.subr.mxu0 %v12010_v54  ;;  %v17002_v48 = vand.u32 4294901760, %v12117_v61  ;;  %17909 = vst [vmem:[#allocation63_spill] sm:$0xff] %v12144_v34  ;;  %v3192_v20 = vsub.f32 %v12107_v0, %v17911_v3  ;;  %v17915_v0 = vand.u32 4294901760, %v12127_v23 }
 0x187   : > { %2615 = vmatmul.mubr.f32.gmra.mxu1 %v17906_v19  ;;  %8396 = vmatpush3.msra.mxu0 %v12012_v51  ;;  %v3073_v51 = vsub.f32 %v12100_v9, %v17910_v21  ;;  %v17914_v21 = vld [vmem:[#allocation84_spill] sm:$0xff]  ;;  %v3186_v10 = vand.u32 4294901760, %v3185_v50 }
 0x188   : > { %2620 = vmatprep.mubr.f32.mxu1 %v17907_v46  ;;  %8475 = vmatprep.subr.mxu1 %v3172_v58  ;;  %v3199_v9 = vsub.f32 %v12127_v23, %v17915_v0  ;;  %v3193_v50 = vand.u32 4294901760, %v3192_v20  ;;  %v17916_v58 = vld [vmem:[#allocation85_spill] sm:$0xff]  ;;  %v17918_v0 = vand.u32 4294901760, %v12144_v34 }
 0x189   : > { %2392 = vmatmul.mubr.f32.gmra.mxu0 %v17894_v42  ;;  %8476 = vmatpush3.msra.mxu1 %v3060_v60  ;;  %v12160_v42 = vsub.f32 %v594_v47, %v12134_v49  ;;  %v17913_v60 = vld [vmem:[#allocation83_spill] sm:$0xff]  ;;  %v10025_v47 = vunpack.i.h.bf16 %v11571_v39  ;;  %v3074_v3 = vand.u32 4294901760, %v3073_v51  ;;  %v17917_v39 = vld [vmem:[#allocation45_spill] sm:$0xff] }
 0x18a   : > { %2397 = vmatprep.mubr.f32.mxu0 %v17897_v25  ;;  %8397 = vmatprep.subr.mxu0 %v12045_v7  ;;  %v3080_v25 = vsub.f32 %v12117_v61, %v17002_v48  ;;  %v3200_v48 = vand.u32 4294901760, %v3199_v9 }
 0x18b   : > { %17912 = vst [vmem:[#allocation64_spill] sm:$0xff] %v12160_v42  ;;  %2622 = vmatmul.mubr.f32.gmra.mxu1 %v17913_v60  ;;  %8398 = vmatpush3.msra.mxu0 %v12052_v53  ;;  %v12189_v20 = vand.u32 4294901760, %v10025_v47 }
 0x18c   : > { %2627 = vmatprep.mubr.f32.mxu1 %v17914_v21  ;;  %8477 = vmatprep.subr.mxu1 %v3179_v40  ;;  %v17007_v40 = vand.u32 4294901760, %v12152_v27  ;;  %v3081_v51 = vand.u32 4294901760, %v3080_v25  ;;  %v17921_v25 = vand.u32 4294901760, %v12160_v42 }
 0x18d   : > { %2399 = vmatmul.mubr.f32.gmra.mxu0 %v17900_v35  ;;  %8478 = vmatpush3.msra.mxu1 %v3067_v22  ;;  %v10027_v35 = vunpack.i.l.bf16 %v11595_v2  ;;  %v3087_v22 = vsub.f32 %v12144_v34, %v17918_v0  ;;  %17920 = vst [vmem:[#allocation67_spill] sm:$0xff] %v12189_v20  ;;  %v17922_v34 = vld [vmem:[#allocation86_spill] sm:$0xff] }
 0x18e   : > { %2404 = vmatprep.mubr.f32.mxu0 %v17901_v13  ;;  %8399 = vmatprep.subr.mxu0 %v12067_v29  ;;  %v12186_v13 = vand.u32 4294901760, %v10022_v38  ;;  %v3206_v23 = vsub.f32 %v12152_v27, %v17007_v40  ;;  %v3094_v0 = vsub.f32 %v12160_v42, %v17921_v25  ;;  %v17926_v42 = vld [vmem:[#allocation88_spill] sm:$0xff] }
 0x18f   : > { %2629 = vmatmul.mubr.f32.gmra.mxu1 %v17916_v58  ;;  %8400 = vmatpush3.msra.mxu0 %v12076_v63  ;;  %v3088_v9 = vand.u32 4294901760, %v3087_v22  ;;  %v12203_v40 = vand.u32 4294901760, %v10027_v35 }
 0x190   : > { %2634 = vmatprep.mubr.f32.mxu1 %v17917_v39  ;;  %8479 = vmatprep.subr.mxu1 %v3186_v10  ;;  %17919 = vst [vmem:[#allocation65_spill] sm:$0xff] %v12186_v13  ;;  %v10030_v10 = vunpack.i.h.bf16 %v11595_v2  ;;  %v12209_v2 = vsub.f32 %v10025_v47, %v12189_v20  ;;  %v3095_v22 = vand.u32 4294901760, %v3094_v0 }
 0x191   : > { %2406 = vmatmul.mubr.f32.gmra.mxu0 %v17906_v19  ;;  %8480 = vmatpush3.msra.mxu1 %v3074_v3  ;;  %v17923_v19 = vld [vmem:[#allocation87_spill] sm:$0xff]  ;;  %v10032_v3 = vunpack.i.l.bf16 %v11610_v8  ;;  %17924 = vst [vmem:[#allocation68_spill] sm:$0xff] %v12203_v40 }
 0x192   : > { %2411 = vmatprep.mubr.f32.mxu0 %v17907_v46  ;;  %8481 = vmatprep.subr.mxu1 %v3193_v50  ;;  %v12206_v46 = vsub.f32 %v10022_v38, %v12186_v13  ;;  %v3207_v50 = vand.u32 4294901760, %v3206_v23  ;;  %v12215_v25 = vand.u32 4294901760, %v10030_v10  ;;  %v10040_v38 = vunpack.i.h.bf16 %v11621_v18 }
 0x193   : > { %2636 = vmatmul.mubr.f32.gmra.mxu1 %v17922_v34  ;;  %8401 = vmatprep.subr.mxu0 %v12080_v31 }
 0x194   : > { %2641 = vmatprep.mubr.f32.mxu1 %v17923_v19  ;;  %8482 = vmatpush3.msra.mxu1 %v3081_v51  ;;  %v10035_v51 = vunpack.i.h.bf16 %v11610_v8  ;;  %17925 = vst [vmem:[#allocation69_spill] sm:$0xff] %v12215_v25  ;;  %v17012_v23 = vand.u32 4294901760, %v12206_v46  ;;  %v17015_v8 = vand.u32 4294901760, %v12209_v2  ;;  %v12234_v0 = vsub.f32 %v10030_v10, %v12215_v25 }
 0x195   : > { %2413 = vmatmul.mubr.f32.gmra.mxu0 %v17913_v60  ;;  %8483 = vmatprep.subr.mxu1 %v3200_v48  ;;  %v10037_v60 = vunpack.i.l.bf16 %v11621_v18  ;;  %v12222_v48 = vand.u32 4294901760, %v10032_v3 }
 0x196   : > { %2418 = vmatprep.mubr.f32.mxu0 %v17914_v21  ;;  %8402 = vmatpush3.msra.mxu0 %v12095_v55  ;;  %v12225_v21 = vsub.f32 %v10027_v35, %v12203_v40  ;;  %v12231_v47 = vand.u32 4294901760, %v10035_v51  ;;  %v10042_v35 = vunpack.i.l.bf16 %v11632_v5  ;;  %v2747_v18 = vsub.f32 %v12206_v46, %v17012_v23 }
 0x197   : > { %2643 = vmatmul.mubr.f32.gmra.mxu1 %v17926_v42  ;;  %8403 = vmatprep.subr.mxu0 %v12102_v37  ;;  %17927 = vst [vmem:[#allocation70_spill] sm:$0xff] %v12222_v48  ;;  %v12248_v10 = vsub.f32 %v10032_v3, %v12222_v48 }
 0x198   : > { %8484 = vmatpush3.msra.mxu1 %v3088_v9  ;;  %3210 = vmatprep.mubr.f32.mxu1 %v12186_v13  ;;  %17928 = vst [vmem:[#allocation73_spill] sm:$0xff] %v12231_v47  ;;  %v12263_v3 = vsub.f32 %v10035_v51, %v12231_v47 }
 0x199   : > { %2420 = vmatmul.mubr.f32.gmra.mxu0 %v17916_v58  ;;  %8485 = vmatprep.subr.mxu1 %v3207_v50  ;;  %v2753_v50 = vsub.f32 %v12209_v2, %v17015_v8  ;;  %v12260_v58 = vand.u32 4294901760, %v10040_v38  ;;  %v17932_v8 = vand.u32 4294901760, %v12225_v21 }
 0x19a   : > { %2425 = vmatprep.mubr.f32.mxu0 %v17917_v39  ;;  %8486 = vmatpush3.msra.mxu1 %v3095_v22  ;;  %v12245_v39 = vand.u32 4294901760, %v10037_v60 }
 0x19b   : > { %v8007_v9 = vpop.f32.mrf.mxu1  ;;  %8404 = vmatpush3.msra.mxu0 %v12119_v15  ;;  %3212 = vmatmul.mubr.f32.vlgmr.msra.gmra.mxu1 %v12189_v20  ;;  %17930 = vst [vmem:[#allocation75_spill] sm:$0xff] %v12260_v58  ;;  %v2762_v23 = vsub.f32 %v12225_v21, %v17932_v8  ;;  %v2754_v13 = vand.u32 4294901760, %v2753_v50 }
 0x19c   : > { %8405 = vmatprep.subr.mxu0 %v12129_v56  ;;  %3217 = vmatprep.mubr.f32.mxu1 %v12203_v40  ;;  %17929 = vst [vmem:[#allocation74_spill] sm:$0xff] %v12245_v39 }
 0x19d   : > { %2427 = vmatmul.mubr.f32.gmra.mxu0 %v17922_v34  ;;  %v8008_v22 = vpop.f32.mrf.mxu1  ;;  %8615 = vmatprep.subr.mxu1 %v11757_v24  ;;  %v10045_v34 = vunpack.i.h.bf16 %v11632_v5 }
 0x19e   : > { %2432 = vmatprep.mubr.f32.mxu0 %v17923_v19  ;;  %v12256_v40 = vadd.f32 %v8008_v22, %v8007_v9  ;;  %8406 = vmatpush3.msra.mxu0 %v12134_v49  ;;  %v10047_v19 = vunpack.i.l.bf16 %v11648_v33  ;;  %v12269_v9 = vand.u32 4294901760, %v10042_v35  ;;  %v2748_v22 = vand.u32 4294901760, %v2747_v18 }
 0x19f   : > { %v8010_v20 = vpop.f32.mrf.mxu1  ;;  %3219 = vmatmul.mubr.f32.gmra.mxu1 %v12215_v25  ;;  %8535 = vmatprep.subr.mxu0 %v11776_v14  ;;  %v12278_v25 = vsub.f32 %v10037_v60, %v12245_v39  ;;  %v12290_v60 = vsub.f32 %v10040_v38, %v12260_v58  ;;  %v17936_v38 = vand.u32 4294901760, %v12248_v10 }
 0x1a0   : > { %17931 = vst [vmem:[#allocation76_spill] sm:$0xff] %v12269_v9  ;;  %3224 = vmatprep.mubr.f32.mxu1 %v12222_v48  ;;  %8616 = vmatpush3.msra.mxu1 %v11769_v41  ;;  %v17933_v48 = vand.u32 4294901760, %v12234_v0 }
 0x1a1   : > { %2434 = vmatmul.mubr.f32.gmra.mxu0 %v17926_v42  ;;  %v8011_v5 = vpop.f32.mrf.mxu1  ;;  %8617 = vmatprep.subr.mxu1 %v11778_v36  ;;  %v10050_v42 = vunpack.i.h.bf16 %v11648_v33  ;;  %v2777_v51 = vsub.f32 %v12248_v10, %v17936_v38  ;;  %v12307_v33 = vand.u32 4294901760, %v10047_v19 }
 0x1a2   : > { %2749 = vmatprep.mubr.f32.mxu0 %v2748_v22  ;;  %v12282_v18 = vadd.f32 %v8011_v5, %v8010_v20  ;;  %v2768_v8 = vsub.f32 %v12234_v0, %v17933_v48  ;;  %8618 = vmatpush3.msra.mxu1 %v11783_v57  ;;  %v12295_v20 = vand.u32 4294901760, %v10045_v34  ;;  %v12299_v48 = vsub.f32 %v10042_v35, %v12269_v9 }
 0x1a3   : > { %v8013_v41 = vpop.f32.mrf.mxu1  ;;  %3226 = vmatmul.mubr.f32.gmra.mxu1 %v12231_v47  ;;  %8619 = vmatprep.subr.mxu1 %v11789_v44  ;;  %v7927_v22 = vpop.f32.mrf.mxu0  ;;  %v2763_v5 = vand.u32 4294901760, %v2762_v23  ;;  %17937 = vst [vmem:[#allocation80_spill] sm:$0xff] %v12307_v33  ;;  %v17938_v47 = vand.u32 4294901760, %v12263_v3  ;;  %v12321_v35 = vand.u32 4294901760, %v10050_v42 }
 0x1a4   : > { %17934 = vst [vmem:[#allocation78_spill] sm:$0xff] %v12295_v20  ;;  %17935 = vst [vmem:[#allocation79_spill] sm:$0xff] %v12299_v48  ;;  %3231 = vmatprep.mubr.f32.mxu1 %v12245_v39  ;;  %8620 = vmatpush3.msra.mxu1 %v11797_v4  ;;  %v2769_v38 = vand.u32 4294901760, %v2768_v8 }
 0x1a5   : > { %2755 = vmatmul.mubr.f32.vlgmr.msra.gmra.mxu0 %v2754_v13  ;;  %v8014_v50 = vpop.f32.mrf.mxu1  ;;  %8621 = vmatprep.subr.mxu1 %v11805_v11  ;;  %v7928_v23 = vpop.f32.mrf.mxu0  ;;  %v2783_v4 = vsub.f32 %v12263_v3, %v17938_v47  ;;  %17939 = vst [vmem:[#allocation81_spill] sm:$0xff] %v12321_v35  ;;  %v17941_v47 = vand.u32 4294901760, %v12278_v25 }
 0x1a6   : > { %8536 = vmatpush3.msra.mxu0 %v11795_v17  ;;  %2764 = vmatprep.mubr.f32.mxu0 %v2763_v5  ;;  %v12313_v39 = vadd.f32 %v8014_v50, %v8013_v41  ;;  %v7929_v57 = vadd.f32 %v7928_v23, %v7927_v22  ;;  %v12325_v41 = vsub.f32 %v10045_v34, %v12295_v20  ;;  %v2778_v50 = vand.u32 4294901760, %v2777_v51 }
 0x1a7   : > { %8537 = vmatprep.subr.mxu0 %v11803_v62  ;;  %v8016_v44 = vpop.f32.mrf.mxu1  ;;  %3233 = vmatmul.mubr.f32.gmra.mxu1 %v12260_v58  ;;  %v2792_v22 = vsub.f32 %v12278_v25, %v17941_v47  ;;  %v17942_v23 = vunpack.i.l.bf16 %v11666_v52  ;;  %v12337_v58 = vsub.f32 %v10047_v19, %v12307_v33  ;;  %v10060_v51 = vunpack.i.h.bf16 %v11687_v32 }
 0x1a8   : > { %17940 = vst [vmem:[#allocation82_spill] sm:$0xff] %v12325_v41  ;;  %v7930_v8 = vpop.f32.mrf.mxu0  ;;  %8538 = vmatpush3.msra.mxu0 %v11810_v12  ;;  %3238 = vmatprep.mubr.f32.mxu1 %v12269_v9  ;;  %v12340_v34 = vadd.f32 %v12256_v40, %v7929_v57  ;;  %v10062_v47 = vunpack.i.l.bf16 %v11706_v6  ;;  %v2784_v12 = vand.u32 4294901760, %v2783_v4  ;;  %v17946_v57 = vand.u32 4294901760, %v12290_v60 }
 0x1a9   : > { %v12334_v13 = vand.u32 4294901760, %v17942_v23  ;;  %17944 = vst [vmem:[#allocation84_spill] sm:$0xff] %v12337_v58  ;;  %2770 = vmatmul.mubr.f32.gmra.mxu0 %v2769_v38  ;;  %v8017_v5 = vpop.f32.mrf.mxu1  ;;  %8539 = vmatprep.subr.mxu0 %v11819_v1  ;;  %v17947_v19 = vunpack.i.h.bf16 %v11666_v52  ;;  %v17953_v9 = vunpack.i.l.bf16 %v11666_v52 }
 0x1aa   : > { %17945 = vst [vmem:[#allocation85_spill] sm:$0xff] %v12340_v34  ;;  %2779 = vmatprep.mubr.f32.mxu0 %v2778_v50  ;;  %v7931_v11 = vpop.f32.mrf.mxu0  ;;  %v12346_v23 = vadd.f32 %v8017_v5, %v8016_v44  ;;  %8540 = vmatpush3.msra.mxu0 %v11826_v30  ;;  %v2798_v40 = vsub.f32 %v12290_v60, %v17946_v57  ;;  %v17949_v44 = vand.u32 4294901760, %v12299_v48  ;;  %v2793_v57 = vand.u32 4294901760, %v2792_v22  ;;  %v17968_v30 = vld [vmem:[#allocation27_spill] sm:$0xff] }
 0x1ab   : > { %17943 = vst [vmem:[#allocation83_spill] sm:$0xff] %v12334_v13  ;;  %v12354_v38 = vand.u32 4294901760, %v17947_v19  ;;  %v7932_v1 = vadd.f32 %v7931_v11, %v7930_v8  ;;  %v8019_v34 = vpop.f32.mrf.mxu1  ;;  %3240 = vmatmul.mubr.f32.gmra.mxu1 %v12295_v20  ;;  %8541 = vmatprep.subr.mxu0 %v11835_v45  ;;  %v12363_v50 = vsub.f32 %v10050_v42, %v12321_v35  ;;  %v17951_v8 = vunpack.i.l.bf16 %v11687_v32 }
 0x1ac   : > { %v2807_v4 = vsub.f32 %v12299_v48, %v17949_v44  ;;  %3245 = vmatprep.mubr.f32.mxu1 %v12307_v33  ;;  %8542 = vmatpush3.msra.mxu0 %v11883_v28  ;;  %v12375_v44 = vsub.f32 %v17953_v9, %v12334_v13  ;;  %v10067_v33 = vunpack.i.l.bf16 %v11727_v26  ;;  %v12382_v11 = vand.u32 4294901760, %v10060_v51  ;;  %v12623_v48 = vld [vmem:[%s10586_s8] ss:$0 sm:$0xff] }
 0x1ad   : > { %17948 = vst [vmem:[#allocation45_spill] sm:$0xff] %v12354_v38  ;;  %17950 = vst [vmem:[#allocation86_spill] sm:$0xff] %v12363_v50  ;;  %v12370_v19 = vand.u32 4294901760, %v17951_v8  ;;  %v12378_v5 = vadd.f32 %v12282_v18, %v7932_v1  ;;  %v7933_v42 = vpop.f32.mrf.mxu0  ;;  %2785 = vmatmul.mubr.f32.gmra.mxu0 %v2784_v12  ;;  %v8020_v22 = vpop.f32.mrf.mxu1  ;;  %8622 = vmatpush3.msra.mxu1 %v11859_v59  ;;  %v12384_v20 = vand.u32 4294901760, %v10062_v47  ;;  %v2799_v28 = vand.u32 4294901760, %v2798_v40 }
 0x1ae   : > { %17954 = vst [vmem:[#allocation88_spill] sm:$0xff] %v12375_v44  ;;  %17956 = vst [vmem:[#allocation90_spill] sm:$0xff] %v12382_v11  ;;  %2794 = vmatprep.mubr.f32.mxu0 %v2793_v57  ;;  %v12386_v8 = vadd.f32 %v8020_v22, %v8019_v34  ;;  %8543 = vmatprep.subr.mxu0 %v11901_v16  ;;  %v17958_v12 = vunpack.i.h.bf16 %v11666_v52  ;;  %v2808_v45 = vand.u32 4294901760, %v2807_v4  ;;  %v17961_v57 = vld [vmem:[#allocation77_spill] sm:$0xff]  ;;  %v17962_v22 = vunpack.i.h.bf16 %v11706_v6  ;;  %v17965_v4 = vld [vmem:[#allocation26_spill] sm:$0xff] }
 0x1af   : > { %17952 = vst [vmem:[#allocation87_spill] sm:$0xff] %v12370_v19  ;;  %17955 = vst [vmem:[#allocation89_spill] sm:$0xff] %v12378_v5  ;;  %v7934_v18 = vpop.f32.mrf.mxu0  ;;  %v8022_v59 = vpop.f32.mrf.mxu1  ;;  %3247 = vmatmul.mubr.f32.gmra.mxu1 %v12321_v35  ;;  %v17960_v5 = vand.u32 4294901760, %v12325_v41  ;;  %8544 = vmatpush3.msra.mxu0 %v17961_v57 }
 0x1b0   : > { %17957 = vst [vmem:[#allocation91_spill] sm:$0xff] %v12384_v20  ;;  %v12393_v9 = vsub.f32 %v17958_v12, %v12354_v38  ;;  %v12403_v1 = vand.u32 4294901760, %v17962_v22  ;;  %v7935_v52 = vadd.f32 %v7934_v18, %v7933_v42  ;;  %3252 = vmatprep.mubr.f32.mxu1 %v12334_v13  ;;  %v17964_v12 = vand.u32 4294901760, %v12337_v58  ;;  %8623 = vmatprep.subr.mxu1 %v17965_v4  ;;  %v17969_v42 = vld [vmem:[#allocation52_spill] sm:$0xff] }
 0x1b1   : > { %v2813_v34 = vsub.f32 %v12325_v41, %v17960_v5  ;;  %v17966_v5 = vunpack.i.l.bf16 %v11687_v32  ;;  %v7936_v40 = vpop.f32.mrf.mxu0  ;;  %2800 = vmatmul.mubr.f32.gmra.mxu0 %v2799_v28  ;;  %v8023_v22 = vpop.f32.mrf.mxu1  ;;  %8624 = vmatpush3.msra.mxu1 %v17968_v30  ;;  %v12418_v13 = vand.u32 4294901760, %v10067_v33  ;;  %v12424_v4 = vsub.f32 %v10062_v47, %v12384_v20  ;;  %v17974_v28 = vld [vmem:[#allocation23_spill] sm:$0xff] }
 0x1b2   : > { %17959 = vst [vmem:[#allocation92_spill] sm:$0xff] %v12393_v9  ;;  %17963 = vst [vmem:[#allocation93_spill] sm:$0xff] %v12403_v1  ;;  %v2822_v35 = vsub.f32 %v12337_v58, %v17964_v12  ;;  %v12421_v12 = vsub.f32 %v10060_v51, %v12382_v11  ;;  %v12427_v16 = vadd.f32 %v12313_v39, %v7935_v52  ;;  %2809 = vmatprep.mubr.f32.mxu0 %v2808_v45  ;;  %v17976_v39 = vld [vmem:[#allocation32_spill] sm:$0xff] }
 0x1b3   : > { %v12414_v57 = vsub.f32 %v17966_v5, %v12370_v19  ;;  %17970 = vst [vmem:[#allocation52_spill] sm:$0xff] %v12418_v13  ;;  %17972 = vst [vmem:[#allocation96_spill] sm:$0xff] %v12424_v4  ;;  %v12429_v32 = vadd.f32 %v8023_v22, %v8022_v59  ;;  %8545 = vmatprep.subr.mxu0 %v17974_v28  ;;  %v10072_v5 = vunpack.i.l.bf16 %v17969_v42  ;;  %v7937_v30 = vpop.f32.mrf.mxu0  ;;  %v8025_v58 = vpop.f32.mrf.mxu1  ;;  %v2814_v41 = vand.u32 4294901760, %v2813_v34 }
 0x1b4   : > { %17971 = vst [vmem:[#allocation95_spill] sm:$0xff] %v12421_v12  ;;  %17973 = vst [vmem:[#allocation97_spill] sm:$0xff] %v12427_v16  ;;  %3254 = vmatmul.mubr.f32.gmra.mxu1 %v12354_v38  ;;  %v17975_v51 = vand.u32 4294901760, %v12363_v50  ;;  %8546 = vmatpush3.msra.mxu0 %v17976_v39  ;;  %v17977_v45 = vunpack.i.h.bf16 %v11727_v26  ;;  %v17979_v52 = vunpack.i.h.bf16 %v11706_v6  ;;  %v7938_v18 = vadd.f32 %v7937_v30, %v7936_v40  ;;  %v17984_v6 = vld [vmem:[#allocation12_spill] sm:$0xff]  ;;  %v17987_v39 = vld [vmem:[#allocation31_spill] sm:$0xff] }
 0x1b5   : > { %17967 = vst [vmem:[#allocation94_spill] sm:$0xff] %v12414_v57  ;;  %v2823_v28 = vand.u32 4294901760, %v2822_v35  ;;  %3259 = vmatprep.mubr.f32.mxu1 %v12370_v19  ;;  %v17981_v34 = vand.u32 4294901760, %v12375_v44  ;;  %v7939_v16 = vpop.f32.mrf.mxu0  ;;  %2815 = vmatmul.mubr.f32.gmra.mxu0 %v2814_v41  ;;  %v12459_v40 = vsub.f32 %v10067_v33, %v12418_v13  ;;  %v17988_v41 = vand.u32 4294901760, %v12393_v9  ;;  %v17990_v33 = vld [vmem:[#allocation41_spill] sm:$0xff] }
 0x1b6   : > { %v2828_v47 = vsub.f32 %v12363_v50, %v17975_v51  ;;  %v12441_v59 = vand.u32 4294901760, %v17977_v45  ;;  %v12446_v22 = vsub.f32 %v17979_v52, %v12403_v1  ;;  %v17982_v51 = vld [vmem:[#allocation21_spill] sm:$0xff]  ;;  %v8026_v45 = vpop.f32.mrf.mxu1  ;;  %8547 = vmatprep.subr.mxu0 %v17987_v39  ;;  %v12470_v52 = vand.u32 4294901760, %v10072_v5 }
 0x1b7   : > { %v2837_v38 = vsub.f32 %v12375_v44, %v17981_v34  ;;  %8625 = vmatprep.subr.mxu1 %v17982_v51  ;;  %v17983_v50 = vld [vmem:[#allocation29_spill] sm:$0xff]  ;;  %17985 = vst [vmem:[#allocation12_spill] sm:$0xff] %v12459_v40  ;;  %v12462_v34 = vadd.f32 %v12346_v23, %v7938_v18  ;;  %2824 = vmatprep.mubr.f32.mxu0 %v2823_v28  ;;  %v7940_v30 = vpop.f32.mrf.mxu0  ;;  %v10077_v23 = vunpack.i.l.bf16 %v17984_v6  ;;  %v17991_v18 = vunpack.i.h.bf16 %v11727_v26  ;;  %v17996_v44 = vld [vmem:[#allocation30_spill] sm:$0xff] }
 0x1b8   : > { %17978 = vst [vmem:[#allocation98_spill] sm:$0xff] %v12441_v59  ;;  %17980 = vst [vmem:[#allocation99_spill] sm:$0xff] %v12446_v22  ;;  %8626 = vmatpush3.msra.mxu1 %v17983_v50  ;;  %v12464_v19 = vadd.f32 %v8026_v45, %v8025_v58  ;;  %v2843_v50 = vsub.f32 %v12393_v9, %v17988_v41  ;;  %v8028_v51 = vpop.f32.mrf.mxu1  ;;  %v2829_v35 = vand.u32 4294901760, %v2828_v47  ;;  %8548 = vmatpush3.msra.mxu0 %v17990_v33  ;;  %v17995_v33 = vld [vmem:[#allocation15_spill] sm:$0xff] }
 0x1b9   : > { %17986 = vst [vmem:[#allocation100_spill] sm:$0xff] %v12462_v34  ;;  %17989 = vst [vmem:[#allocation101_spill] sm:$0xff] %v12470_v52  ;;  %3261 = vmatmul.mubr.f32.gmra.mxu1 %v12382_v11  ;;  %v12479_v28 = vsub.f32 %v17991_v18, %v12441_v59  ;;  %v7941_v45 = vadd.f32 %v7940_v30, %v7939_v16  ;;  %v2838_v41 = vand.u32 4294901760, %v2837_v38  ;;  %v17993_v39 = vand.u32 4294901760, %v12414_v57  ;;  %v17994_v11 = vld [vmem:[#allocation24_spill] sm:$0xff]  ;;  %v7942_v9 = vpop.f32.mrf.mxu0 }
 0x1ba   : > { %3266 = vmatprep.mubr.f32.mxu1 %v12384_v20  ;;  %8627 = vmatprep.subr.mxu1 %v17994_v11  ;;  %v8029_v58 = vpop.f32.mrf.mxu1  ;;  %v17997_v26 = vand.u32 4294901760, %v12421_v12  ;;  %v17998_v38 = vand.u32 4294901760, %v12424_v4  ;;  %v17999_v18 = vunpack.i.h.bf16 %v17969_v42  ;;  %v18002_v11 = vld [vmem:[#allocation35_spill] sm:$0xff] }
 0x1bb   : > { %17992 = vst [vmem:[#allocation102_spill] sm:$0xff] %v12479_v28  ;;  %v2852_v47 = vsub.f32 %v12414_v57, %v17993_v39  ;;  %2830 = vmatmul.mubr.f32.gmra.mxu0 %v2829_v35  ;;  %8628 = vmatpush3.msra.mxu1 %v17996_v44  ;;  %v12500_v34 = vadd.f32 %v12386_v8, %v7941_v45  ;;  %v2844_v44 = vand.u32 4294901760, %v2843_v50  ;;  %v18005_v8 = vand.u32 4294901760, %v12446_v22  ;;  %v18034_v57 = vld [vmem:[#allocation49_spill] sm:$0xff] }
 0x1bc   : > { %v2858_v16 = vsub.f32 %v12421_v12, %v17997_v26  ;;  %v2867_v30 = vsub.f32 %v12424_v4, %v17998_v38  ;;  %v12496_v39 = vand.u32 4294901760, %v17999_v18  ;;  %2839 = vmatprep.mubr.f32.mxu0 %v2838_v41  ;;  %v12502_v35 = vadd.f32 %v8029_v58, %v8028_v51  ;;  %8549 = vmatprep.subr.mxu0 %v18002_v11  ;;  %v7943_v12 = vpop.f32.mrf.mxu0  ;;  %v8031_v38 = vpop.f32.mrf.mxu1  ;;  %v18004_v18 = vld [vmem:[#allocation43_spill] sm:$0xff]  ;;  %v18007_v41 = vld [vmem:[#allocation38_spill] sm:$0xff] }
 0x1bd   : > { %18001 = vst [vmem:[#allocation103_spill] sm:$0xff] %v12500_v34  ;;  %v12506_v26 = vsub.f32 %v10072_v5, %v12470_v52  ;;  %3268 = vmatmul.mubr.f32.gmra.mxu1 %v12403_v1  ;;  %8550 = vmatpush3.msra.mxu0 %v18004_v18  ;;  %v12514_v45 = vsub.f32 %v12446_v22, %v18005_v8  ;;  %v12516_v51 = vand.u32 4294901760, %v10077_v23  ;;  %v2853_v5 = vand.u32 4294901760, %v2852_v47  ;;  %v18008_v1 = vld [vmem:[#allocation18_spill] sm:$0xff] }
 0x1be   : > { %18000 = vst [vmem:[#allocation15_spill] sm:$0xff] %v12496_v39  ;;  %v7944_v58 = vadd.f32 %v7943_v12, %v7942_v9  ;;  %3273 = vmatprep.mubr.f32.mxu1 %v12418_v13  ;;  %8629 = vmatprep.subr.mxu1 %v18007_v41  ;;  %v18009_v18 = vunpack.i.h.bf16 %v17984_v6  ;;  %v7945_v4 = vpop.f32.mrf.mxu0  ;;  %v8032_v8 = vpop.f32.mrf.mxu1  ;;  %v2859_v22 = vand.u32 4294901760, %v2858_v16  ;;  %v18011_v34 = vld [vmem:[#allocation34_spill] sm:$0xff]  ;;  %v18012_v50 = vand.u32 4294901760, %v12459_v40  ;;  %v18016_v13 = vld [vmem:[#allocation37_spill] sm:$0xff] }
 0x1bf   : > { %18003 = vst [vmem:[#allocation104_spill] sm:$0xff] %v12506_v26  ;;  %18006 = vst [vmem:[#allocation105_spill] sm:$0xff] %v12516_v51  ;;  %2845 = vmatmul.mubr.f32.gmra.mxu0 %v2844_v44  ;;  %8630 = vmatpush3.msra.mxu1 %v18011_v34  ;;  %v10087_v12 = vunpack.i.l.bf16 %v18008_v1  ;;  %v18013_v47 = vunpack.i.h.bf16 %v17969_v42  ;;  %v12539_v44 = vadd.f32 %v8032_v8, %v8031_v38  ;;  %v2868_v16 = vand.u32 4294901760, %v2867_v30  ;;  %v18017_v42 = vld [vmem:[#allocation39_spill] sm:$0xff]  ;;  %v18019_v38 = vld [vmem:[#allocation20_spill] sm:$0xff] }
 0x1c0   : > { %v12524_v20 = vand.u32 4294901760, %v18009_v18  ;;  %v2882_v9 = vsub.f32 %v12459_v40, %v18012_v50  ;;  %v12537_v18 = vadd.f32 %v12429_v32, %v7944_v58  ;;  %2854 = vmatprep.mubr.f32.mxu0 %v2853_v5  ;;  %8551 = vmatprep.subr.mxu0 %v18016_v13  ;;  %v7946_v41 = vpop.f32.mrf.mxu0  ;;  %v8034_v50 = vpop.f32.mrf.mxu1  ;;  %v2874_v40 = vand.u32 4294901760, %v12514_v45  ;;  %v18021_v8 = vld [vmem:[#allocation42_spill] sm:$0xff] }
 0x1c1   : > { %v12534_v11 = vsub.f32 %v18013_v47, %v12496_v39  ;;  %3275 = vmatmul.mubr.f32.gmra.mxu1 %v12441_v59  ;;  %8552 = vmatpush3.msra.mxu0 %v18017_v42  ;;  %v18018_v47 = vand.u32 4294901760, %v12479_v28  ;;  %v12553_v30 = vsub.f32 %v10077_v23, %v12516_v51  ;;  %v7947_v5 = vadd.f32 %v7946_v41, %v7945_v4 }
 0x1c2   : > { %18010 = vst [vmem:[#allocation18_spill] sm:$0xff] %v12524_v20  ;;  %18015 = vst [vmem:[#allocation107_spill] sm:$0xff] %v12537_v18  ;;  %3280 = vmatprep.mubr.f32.mxu1 %v12470_v52  ;;  %8631 = vmatprep.subr.mxu1 %v18021_v8  ;;  %v18022_v34 = vunpack.i.l.bf16 %v17995_v33  ;;  %v18024_v59 = vunpack.i.h.bf16 %v17995_v33  ;;  %v7948_v23 = vpop.f32.mrf.mxu0  ;;  %v8035_v4 = vpop.f32.mrf.mxu1  ;;  %v2883_v41 = vand.u32 4294901760, %v2882_v9  ;;  %v18028_v52 = vld [vmem:[#allocation36_spill] sm:$0xff]  ;;  %v12573_v13 = vand.u32 4294901760, %v10087_v12 }
 0x1c3   : > { %18014 = vst [vmem:[#allocation106_spill] sm:$0xff] %v12534_v11  ;;  %v12549_v32 = vsub.f32 %v12479_v28, %v18018_v47  ;;  %18020 = vst [vmem:[#allocation20_spill] sm:$0xff] %v12553_v30  ;;  %v18026_v47 = vunpack.i.h.bf16 %v17984_v6  ;;  %2860 = vmatmul.mubr.f32.gmra.mxu0 %v2859_v22  ;;  %8632 = vmatpush3.msra.mxu1 %v18028_v52  ;;  %v12578_v28 = vadd.f32 %v8035_v4, %v8034_v50  ;;  %v18031_v6 = vld [vmem:[#allocation48_spill] sm:$0xff] }
 0x1c4   : > { %v12559_v45 = vand.u32 4294901760, %v18022_v34  ;;  %v12563_v42 = vand.u32 4294901760, %v18024_v59  ;;  %18029 = vst [vmem:[#allocation111_spill] sm:$0xff] %v12573_v13  ;;  %v12576_v59 = vadd.f32 %v12464_v19, %v7947_v5  ;;  %2869 = vmatprep.mubr.f32.mxu0 %v2868_v16  ;;  %8553 = vmatprep.subr.mxu0 %v18031_v6  ;;  %v18032_v22 = vand.u32 4294901760, %v12506_v26  ;;  %v7949_v18 = vpop.f32.mrf.mxu0  ;;  %v8037_v8 = vpop.f32.mrf.mxu1  ;;  %v18035_v16 = vld [vmem:[#allocation33_spill] sm:$0xff] }
 0x1c5   : > { %v12568_v58 = vsub.f32 %v18026_v47, %v12524_v20  ;;  %v18033_v47 = vld [vmem:[#allocation11_spill] sm:$0xff]  ;;  %3282 = vmatmul.mubr.f32.gmra.mxu1 %v12496_v39  ;;  %v2889_v34 = vand.u32 4294901760, %v12549_v32  ;;  %8554 = vmatpush3.msra.mxu0 %v18034_v57  ;;  %v7950_v4 = vadd.f32 %v7949_v18, %v7948_v23  ;;  %v18037_v39 = vunpack.i.l.bf16 %v17995_v33  ;;  %v18040_v23 = vld [vmem:[#allocation40_spill] sm:$0xff] }
 0x1c6   : > { %18023 = vst [vmem:[#allocation108_spill] sm:$0xff] %v12559_v45  ;;  %18025 = vst [vmem:[#allocation109_spill] sm:$0xff] %v12563_v42  ;;  %v2897_v9 = vsub.f32 %v12506_v26, %v18032_v22  ;;  %v238_v52 = vadd.s32 512, %v18033_v47  ;;  %v254_v5 = vadd.s32 640, %v18033_v47  ;;  %3287 = vmatprep.mubr.f32.mxu1 %v12516_v51  ;;  %v18036_v22 = vld [vmem:[#allocation44_spill] sm:$0xff]  ;;  %v18039_v19 = vunpack.i.h.bf16 %v17995_v33  ;;  %v7951_v50 = vpop.f32.mrf.mxu0  ;;  %v8038_v18 = vpop.f32.mrf.mxu1 }
 0x1c7   : > { %18027 = vst [vmem:[#allocation110_spill] sm:$0xff] %v12568_v58  ;;  %18030 = vst [vmem:[#allocation112_spill] sm:$0xff] %v12576_v59  ;;  %8633 = vmatprep.subr.mxu1 %v18036_v22  ;;  %v12597_v32 = vsub.f32 %v18037_v39, %v12559_v45  ;;  %2875 = vmatmul.mubr.f32.gmra.mxu0 %v2874_v40  ;;  %v18041_v51 = vand.u32 4294901760, %v12534_v11  ;;  %v18042_v26 = vunpack.i.h.bf16 %v18008_v1 }
 0x1c8   : > { %v12602_v57 = vsub.f32 %v18039_v19, %v12563_v42  ;;  %8634 = vmatpush3.msra.mxu1 %v18040_v23  ;;  %v12614_v59 = vsub.f32 %v10087_v12, %v12573_v13  ;;  %v12617_v33 = vadd.f32 %v12502_v35, %v7950_v4  ;;  %2884 = vmatprep.mubr.f32.mxu0 %v2883_v41  ;;  %v2898_v19 = vand.u32 4294901760, %v2897_v9  ;;  %v18044_v23 = vld [vmem:[#allocation51_spill] sm:$0xff]  ;;  %v8040_v22 = vpop.f32.mrf.mxu1 }
 0x1c9   : > { %18038 = vst [vmem:[#allocation11_spill] sm:$0xff] %v12597_v32  ;;  %v2903_v6 = vsub.f32 %v12534_v11, %v18041_v51  ;;  %v12611_v39 = vand.u32 4294901760, %v18042_v26  ;;  %v12619_v40 = vadd.f32 %v8038_v18, %v8037_v8  ;;  %8555 = vmatprep.subr.mxu0 %v18044_v23  ;;  %vm370_vm0 = vcmp.eq.s32.totalorder %v238_v52, %v12623_v48  ;;  %v7952_v51 = vpop.f32.mrf.mxu0  ;;  %v18045_v26 = vld [vmem:[#allocation50_spill] sm:$0xff]  ;;  %v18052_v11 = vld [vmem:[#allocation47_spill] sm:$0xff] }
 0x1ca   : > { %3289 = vmatmul.mubr.f32.gmra.mxu1 %v12524_v20  ;;  %8556 = vmatpush3.msra.mxu0 %v18045_v26  ;;  %v18046_v12 = vand.u32 4294901760, %v12553_v30  ;;  %v18047_v8 = vunpack.i.l.bf16 %v18019_v38  ;;  %v18049_v9 = vunpack.i.h.bf16 %v18019_v38  ;;  %vm386_vm1 = vcmp.eq.s32.totalorder %v254_v5, %v12623_v48 }
 0x1cb   : > { %18043 = vst [vmem:[#allocation33_spill] sm:$0xff] %v12611_v39  ;;  %v7953_v18 = vadd.f32 %v7952_v51, %v7951_v50  ;;  %3294 = vmatprep.mubr.f32.mxu1 %v12559_v45  ;;  %8635 = vmatprep.subr.mxu1 %v12010_v54  ;;  %v18051_v20 = vand.u32 4294901760, %v12568_v58  ;;  %v7954_v23 = vpop.f32.mrf.mxu0  ;;  %v18053_v51 = vmov 0.0   ;;  %v18054_v54 = vunpack.i.h.bf16 %v18008_v1  ;;  %v18056_v1 = vld [vmem:[#allocation57_spill] sm:$0xff] }
 0x1cc   : > { %v2912_v35 = vsub.f32 %v12553_v30, %v18046_v12  ;;  %v12633_v41 = vand.u32 4294901760, %v18047_v8  ;;  %v12637_v4 = vand.u32 4294901760, %v18049_v9  ;;  %2890 = vmatmul.mubr.f32.gmra.mxu0 %v2889_v34  ;;  %v8041_v30 = vpop.f32.mrf.mxu1  ;;  %v2904_v9 = vand.u32 4294901760, %v2903_v6  ;;  %8636 = vmatpush3.msra.mxu1 %v18052_v11  ;;  %v18055_v6 = vld [vmem:[#allocation56_spill] sm:$0xff] }
 0x1cd   : > { %v2918_v26 = vsub.f32 %v12568_v58, %v18051_v20  ;;  %v498_v45 = vsel %vm370_vm0, 1.0, %v18053_v51  ;;  %v12655_v20 = vsub.f32 %v18054_v54, %v12611_v39  ;;  %v12658_v12 = vadd.f32 %v12539_v44, %v7953_v18  ;;  %2899 = vmatprep.mubr.f32.mxu0 %v2898_v19  ;;  %8557 = vmatprep.subr.mxu0 %v18055_v6  ;;  %v7955_v8 = vpop.f32.mrf.mxu0 }
 0x1ce   : > { %18048 = vst [vmem:[#allocation113_spill] sm:$0xff] %v12633_v41  ;;  %18050 = vst [vmem:[#allocation114_spill] sm:$0xff] %v12637_v4  ;;  %v12660_v34 = vadd.f32 %v8041_v30, %v8040_v22  ;;  %v514_v50 = vsel %vm386_vm1, 1.0, %v18053_v51  ;;  %v239_v52 = vadd.s32 520, %v18033_v47  ;;  %v8043_v11 = vpop.f32.mrf.mxu1  ;;  %3296 = vmatmul.mubr.f32.gmra.mxu1 %v12563_v42  ;;  %v2913_v54 = vand.u32 4294901760, %v2912_v35  ;;  %8558 = vmatpush3.msra.mxu0 %v18056_v1 }
 0x1cf   : > { %v18057_v44 = vunpack.i.l.bf16 %v18035_v16  ;;  %v18059_v30 = vunpack.i.l.bf16 %v18019_v38  ;;  %v255_v5 = vadd.s32 648, %v18033_v47  ;;  %v7956_v18 = vadd.f32 %v7955_v8, %v7954_v23  ;;  %3301 = vmatprep.mubr.f32.mxu1 %v12573_v13  ;;  %8637 = vmatprep.subr.mxu1 %v12045_v7  ;;  %v7957_v58 = vpop.f32.mrf.mxu0 }
 0x1d0   : > { %v2919_v6 = vand.u32 4294901760, %v2918_v26  ;;  %v18060_v42 = vand.u32 4294901760, %v12597_v32  ;;  %2905 = vmatmul.mubr.f32.gmra.mxu0 %v2904_v9  ;;  %8638 = vmatpush3.msra.mxu1 %v12052_v53  ;;  %v18062_v23 = vand.u32 4294901760, %v12614_v59  ;;  %v10101_v26 = vpack.i.bf16 %v498_v45, %v514_v50 }
 0x1d1   : > { %v12671_v19 = vand.u32 4294901760, %v18057_v44  ;;  %v12676_v22 = vsub.f32 %v18059_v30, %v12633_v41  ;;  %v18061_v44 = vand.u32 4294901760, %v12602_v57  ;;  %v8044_v30 = vpop.f32.mrf.mxu1  ;;  %2914 = vmatprep.mubr.f32.mxu0 %v2913_v54  ;;  %8559 = vmatprep.subr.mxu0 %v12093_v43  ;;  %vm371_vm2 = vcmp.eq.s32.totalorder %v239_v52, %v12623_v48  ;;  %v7958_v45 = vpop.f32.mrf.mxu0 }
 0x1d2   : > { %v2927_v35 = vsub.f32 %v12597_v32, %v18060_v42  ;;  %v2942_v8 = vsub.f32 %v12614_v59, %v18062_v23  ;;  %v18063_v42 = vunpack.i.h.bf16 %v18019_v38  ;;  %v12698_v32 = vadd.f32 %v12578_v28, %v7956_v18  ;;  %3303 = vmatmul.mubr.f32.gmra.mxu1 %v12611_v39  ;;  %v18066_v38 = vld [vmem:[#allocation59_spill] sm:$0xff]  ;;  %8639 = vmatprep.subr.mxu1 %v12067_v29 }
 0x1d3   : > { %18058 = vst [vmem:[#allocation115_spill] sm:$0xff] %v12671_v19  ;;  %v2933_v1 = vsub.f32 %v12602_v57, %v18061_v44  ;;  %v12700_v9 = vadd.f32 %v8044_v30, %v8043_v11  ;;  %v18064_v44 = vunpack.i.h.bf16 %v18035_v16  ;;  %v8046_v50 = vpop.f32.mrf.mxu1  ;;  %8560 = vmatpush3.msra.mxu0 %v18066_v38  ;;  %vm387_vm3 = vcmp.eq.s32.totalorder %v255_v5, %v12623_v48 }
 0x1d4   : > { %v12695_v7 = vsub.f32 %v18063_v42, %v12637_v4  ;;  %v18067_v11 = vunpack.i.l.bf16 %v18035_v16  ;;  %v240_v18 = vadd.s32 528, %v18033_v47  ;;  %v7959_v30 = vadd.f32 %v7958_v45, %v7957_v58  ;;  %3308 = vmatprep.mubr.f32.mxu1 %v12633_v41  ;;  %2920 = vmatmul.mubr.f32.gmra.mxu0 %v2919_v6 }
 0x1d5   : > { %v12705_v53 = vand.u32 4294901760, %v18064_v44  ;;  %v2928_v23 = vand.u32 4294901760, %v2927_v35  ;;  %v256_v42 = vadd.s32 656, %v18033_v47  ;;  %v7960_v44 = vpop.f32.mrf.mxu0  ;;  %v8047_v28 = vpop.f32.mrf.mxu1  ;;  %v2934_v13 = vand.u32 4294901760, %v2933_v1  ;;  %8640 = vmatpush3.msra.mxu1 %v12076_v63  ;;  %10102 = vxpose.xlu0.b32.start [1/16] %v10101_v26, 128 }
 0x1d6   : > { %v12715_v54 = vsub.f32 %v18067_v11, %v12671_v19  ;;  %v2943_v39 = vand.u32 4294901760, %v2942_v8  ;;  %v18068_v11 = vand.u32 4294901760, %v12655_v20  ;;  %v499_v58 = vsel %vm371_vm2, 1.0, %v18053_v51  ;;  %3310 = vmatmul.mubr.f32.gmra.mxu1 %v12637_v4  ;;  %8641 = vmatprep.subr.mxu1 %v12080_v31 }
 0x1d7   : > { %18065 = vst [vmem:[#allocation116_spill] sm:$0xff] %v12705_v53  ;;  %v12729_v35 = vadd.f32 %v12619_v40, %v7959_v30  ;;  %2929 = vmatprep.mubr.f32.mxu0 %v2928_v23  ;;  %v12731_v45 = vadd.f32 %v8047_v28, %v8046_v50  ;;  %v515_v6 = vsel %vm387_vm3, 1.0, %v18053_v51  ;;  %v7961_v8 = vpop.f32.mrf.mxu0  ;;  %v8049_v41 = vpop.f32.mrf.mxu1  ;;  %v18069_v52 = vand.u32 4294901760, %v12676_v22  ;;  %3315 = vmatprep.mubr.f32.mxu1 %v12671_v19  ;;  %v18071_v30 = vld [vmem:[#allocation60_spill] sm:$0xff] }
 0x1d8   : > { %v2948_v38 = vsub.f32 %v12655_v20, %v18068_v11  ;;  %vm372_vm4 = vcmp.eq.s32.totalorder %v240_v18, %v12623_v48  ;;  %v18070_v5 = vunpack.i.h.bf16 %v18035_v16  ;;  %v7962_v28 = vadd.f32 %v7961_v8, %v7960_v44  ;;  %8561 = vmatprep.subr.mxu0 %v18071_v30  ;;  %2935 = vmatmul.mubr.f32.gmra.mxu0 %v2934_v13 }
 0x1d9   : > { %v2957_v40 = vsub.f32 %v12676_v22, %v18069_v52  ;;  %vm388_vm5 = vcmp.eq.s32.totalorder %v256_v42, %v12623_v48  ;;  %v241_v23 = vadd.s32 536, %v18033_v47  ;;  %v257_v11 = vadd.s32 664, %v18033_v47  ;;  %v7963_v52 = vpop.f32.mrf.mxu0  ;;  %v8050_v50 = vpop.f32.mrf.mxu1  ;;  %8642 = vmatpush3.msra.mxu1 %v12095_v55  ;;  %2944 = vmatprep.mubr.f32.mxu0 %v2943_v39 }
 0x1da   : > { %v12747_v26 = vsub.f32 %v18070_v5, %v12705_v53  ;;  %v10103_v1 = vpack.i.bf16 %v499_v58, %v515_v6  ;;  %v12756_v16 = vadd.f32 %v12660_v34, %v7962_v28  ;;  %v12758_v44 = vadd.f32 %v8050_v50, %v8049_v41  ;;  %8562 = vmatpush3.msra.mxu0 %v12117_v61 }
 0x1db   : > { %v2949_v8 = vand.u32 4294901760, %v2948_v38  ;;  %v18072_v5 = vand.u32 4294901760, %v12695_v7  ;;  %v7964_v4 = vpop.f32.mrf.mxu0  ;;  %v8052_v31 = vpop.f32.mrf.mxu1  ;;  %3317 = vmatmul.mubr.f32.gmra.mxu1 %v12705_v53  ;;  %8643 = vmatprep.subr.mxu1 %v12102_v37  ;;  %v18073_v13 = vand.u32 4294901760, %v12715_v54  ;;  %v500_v39 = vsel %vm372_vm4, 1.0, %v18053_v51 }
 0x1dc   : > { %v516_v41 = vsel %vm388_vm5, 1.0, %v18053_v51  ;;  %v17126_v38 = vand.u32 4294901760, %v12747_v26  ;;  %v7965_v58 = vadd.f32 %v7964_v4, %v7963_v52  ;;  %v2958_v6 = vand.u32 4294901760, %v2957_v40  ;;  %8644 = vmatpush3.msra.mxu1 %v12119_v15  ;;  %10104 = vxpose.xlu0.b32.cont [2/16] %v10103_v1, 128 }
 0x1dd   : > { %v2963_v19 = vsub.f32 %v12695_v7, %v18072_v5  ;;  %v2972_v34 = vsub.f32 %v12715_v54, %v18073_v13  ;;  %v18074_v50 = vand.u32 4294901760, %v12206_v46  ;;  %vm373_vm6 = vcmp.eq.s32.totalorder %v241_v23, %v12623_v48  ;;  %v7966_v28 = vpop.f32.mrf.mxu0  ;;  %2950 = vmatmul.mubr.f32.gmra.mxu0 %v2949_v8  ;;  %v8053_v18 = vpop.f32.mrf.mxu1  ;;  %8645 = vmatprep.subr.mxu1 %v12129_v56 }
 0x1de   : > { %vm389_vm7 = vcmp.eq.s32.totalorder %v257_v11, %v12623_v48  ;;  %v242_v42 = vadd.s32 544, %v18033_v47  ;;  %v258_v5 = vadd.s32 672, %v18033_v47  ;;  %v12784_v4 = vadd.f32 %v12700_v9, %v7965_v58  ;;  %2959 = vmatprep.mubr.f32.mxu0 %v2958_v6  ;;  %8646 = vmatpush3.msra.mxu1 %v12134_v49  ;;  %v18079_v49 = vld [vmem:[#allocation64_spill] sm:$0xff] }
 0x1df   : > { %3694 = vmatprep.mubr.f32.mxu1 %v18074_v50  ;;  %v12786_v40 = vadd.f32 %v8053_v18, %v8052_v31  ;;  %v10105_v52 = vpack.i.bf16 %v500_v39, %v516_v41  ;;  %v7967_v13 = vpop.f32.mrf.mxu0  ;;  %v18075_v50 = vld [vmem:[#allocation61_spill] sm:$0xff]  ;;  %v8167_v1 = vpop.f32.mrf.mxu1  ;;  %v2964_v8 = vand.u32 4294901760, %v2963_v19  ;;  %v2978_v53 = vsub.f32 %v12747_v26, %v17126_v38  ;;  %v18076_v41 = vld [vmem:[#allocation63_spill] sm:$0xff]  ;;  %8775 = vmatprep.subr.mxu1 %v11757_v24 }
 0x1e0   : > { %8563 = vmatprep.subr.mxu0 %v18075_v50  ;;  %v501_v9 = vsel %vm373_vm6, 1.0, %v18053_v51  ;;  %v517_v31 = vsel %vm389_vm7, 1.0, %v18053_v51  ;;  %v7968_v39 = vadd.f32 %v7967_v13, %v7966_v28  ;;  %v18077_v58 = vand.u32 4294901760, %v12209_v2 }
 0x1e1   : > { %8564 = vmatpush3.msra.mxu0 %v18076_v41  ;;  %v2973_v6 = vand.u32 4294901760, %v2972_v34  ;;  %v7969_v19 = vpop.f32.mrf.mxu0  ;;  %v18078_v18 = vand.u32 4294901760, %v12225_v21  ;;  %v8168_v38 = vpop.f32.mrf.mxu1  ;;  %vm374_vm8 = vcmp.eq.s32.totalorder %v242_v42, %v12623_v48  ;;  %vm390_vm9 = vcmp.eq.s32.totalorder %v258_v5, %v12623_v48  ;;  %10106 = vxpose.xlu0.b32.cont [3/16] %v10105_v52, 128 }
 0x1e2   : > { %3698 = vmatmul.mubr.f32.vlgmr.msra.gmra.mxu1 %v18077_v58  ;;  %2965 = vmatmul.mubr.f32.gmra.mxu0 %v2964_v8  ;;  %v243_v23 = vadd.s32 552, %v18033_v47  ;;  %v259_v11 = vadd.s32 680, %v18033_v47  ;;  %v12810_v28 = vadd.f32 %v12731_v45, %v7968_v39  ;;  %v12812_v34 = vadd.f32 %v8168_v38, %v8167_v1 }
 0x1e3   : > { %3705 = vmatprep.mubr.f32.mxu1 %v18078_v18  ;;  %2974 = vmatprep.mubr.f32.mxu0 %v2973_v6  ;;  %v10107_v13 = vpack.i.bf16 %v501_v9, %v517_v31  ;;  %v7970_v8 = vpop.f32.mrf.mxu0  ;;  %v8170_v58 = vpop.f32.mrf.mxu1  ;;  %v2979_v18 = vand.u32 4294901760, %v2978_v53  ;;  %v18080_v50 = vand.u32 4294901760, %v12234_v0  ;;  %v502_v45 = vsel %vm374_vm8, 1.0, %v18053_v51 }
 0x1e4   : > { %8565 = vmatprep.subr.mxu0 %v12152_v27  ;;  %v7971_v41 = vadd.f32 %v7970_v8, %v7969_v19  ;;  %v518_v38 = vsel %vm390_vm9, 1.0, %v18053_v51  ;;  %v18081_v53 = vand.u32 4294901760, %v12248_v10  ;;  %vm375_vm10 = vcmp.eq.s32.totalorder %v243_v23, %v12623_v48  ;;  %v18083_v19 = vld [vmem:[#allocation53_spill] sm:$0xff] }
 0x1e5   : > { %8566 = vmatpush3.msra.mxu0 %v18079_v49  ;;  %v7972_v52 = vpop.f32.mrf.mxu0  ;;  %v8171_v24 = vpop.f32.mrf.mxu1  ;;  %vm391_vm11 = vcmp.eq.s32.totalorder %v259_v11, %v12623_v48  ;;  %v260_v1 = vadd.s32 688, %v18033_v47  ;;  %10108 = vxpose.xlu0.b32.cont [4/16] %v10107_v13, 128  ;;  %v18082_v31 = vand.u32 4294901760, %v11776_v14  ;;  %v10109_v6 = vpack.i.bf16 %v502_v45, %v518_v38 }
 0x1e6   : > { %3709 = vmatmul.mubr.f32.gmra.mxu1 %v18080_v50  ;;  %2980 = vmatmul.mubr.f32.gmra.mxu0 %v2979_v18  ;;  %v244_v50 = vadd.s32 560, %v18033_v47  ;;  %v12832_v42 = vadd.f32 %v12758_v44, %v7971_v41  ;;  %v12835_v5 = vadd.f32 %v8171_v24, %v8170_v58  ;;  %v18084_v18 = vand.u32 4294901760, %v12263_v3 }
 0x1e7   : > { %3716 = vmatprep.mubr.f32.mxu1 %v18081_v53  ;;  %3452 = vmatprep.mubr.f32.mxu0 %v12206_v46  ;;  %v7973_v9 = vpop.f32.mrf.mxu0  ;;  %v8173_v39 = vpop.f32.mrf.mxu1  ;;  %v503_v46 = vsel %vm375_vm10, 1.0, %v18053_v51  ;;  %v519_v44 = vsel %vm391_vm11, 1.0, %v18053_v51  ;;  %v18085_v41 = vand.u32 4294901760, %v12278_v25  ;;  %vm392_vm13 = vcmp.eq.s32.totalorder %v260_v1, %v12623_v48  ;;  %v18094_v1 = vld [vmem:[#allocation13_spill] sm:$0xff] }
 0x1e8   : > { %8695 = vmatprep.subr.mxu0 %v18082_v31  ;;  %8776 = vmatpush3.msra.mxu1 %v18083_v19  ;;  %v7974_v8 = vadd.f32 %v7973_v9, %v7972_v52  ;;  %vm376_vm12 = vcmp.eq.s32.totalorder %v244_v50, %v12623_v48  ;;  %v261_v23 = vadd.s32 696, %v18033_v47  ;;  %v18086_v11 = vand.u32 4294901760, %v11795_v17 }
 0x1e9   : > { %8777 = vmatprep.subr.mxu1 %v11778_v36  ;;  %v8087_v14 = vpop.f32.mrf.mxu0  ;;  %v8174_v13 = vpop.f32.mrf.mxu1  ;;  %v245_v36 = vadd.s32 568, %v18033_v47  ;;  %10110 = vxpose.xlu0.b32.cont [5/16] %v10109_v6, 128  ;;  %v18087_v38 = vand.u32 4294901760, %v11803_v62  ;;  %v10111_v53 = vpack.i.bf16 %v503_v46, %v519_v44  ;;  %v18088_v9 = vand.u32 4294901760, %v12290_v60  ;;  %v18091_v62 = vld [vmem:[#allocation79_spill] sm:$0xff] }
 0x1ea   : > { %3720 = vmatmul.mubr.f32.gmra.mxu1 %v18084_v18  ;;  %3455 = vmatmul.mubr.f32.vlgmr.msra.gmra.mxu0 %v12209_v2  ;;  %v12857_v58 = vadd.f32 %v12786_v40, %v7974_v8  ;;  %v12862_v2 = vadd.f32 %v8174_v13, %v8173_v39  ;;  %v18089_v40 = vld [vmem:[#allocation14_spill] sm:$0xff]  ;;  %v504_v17 = vsel %vm376_vm12, 1.0, %v18053_v51  ;;  %v18092_v6 = vand.u32 4294901760, %v18091_v62  ;;  %v18093_v18 = vld [vmem:[#allocation85_spill] sm:$0xff] }
 0x1eb   : > { %3727 = vmatprep.mubr.f32.mxu1 %v18085_v41  ;;  %8696 = vmatpush3.msra.mxu0 %v18086_v11  ;;  %v8088_v45 = vpop.f32.mrf.mxu0  ;;  %v8176_v52 = vpop.f32.mrf.mxu1  ;;  %v18090_v31 = vand.u32 4294901760, %v18089_v40  ;;  %vm377_vm14 = vcmp.eq.s32.totalorder %v245_v36, %v12623_v48  ;;  %vm393_vm15 = vcmp.eq.s32.totalorder %v261_v23, %v12623_v48  ;;  %v246_v8 = vadd.s32 576, %v18033_v47  ;;  %v18103_v36 = vld [vmem:[#allocation89_spill] sm:$0xff]  ;;  %v18104_v23 = vld [vmem:[#allocation16_spill] sm:$0xff] }
 0x1ec   : > { %3461 = vmatprep.mubr.f32.mxu0 %v12225_v21  ;;  %8697 = vmatprep.subr.mxu0 %v18087_v38  ;;  %v8089_v24 = vadd.f32 %v8088_v45, %v8087_v14  ;;  %v520_v21 = vsel %vm392_vm13, 1.0, %v18053_v51  ;;  %v18095_v14 = vld [vmem:[#allocation22_spill] sm:$0xff] }
 0x1ed   : > { %8698 = vmatpush3.msra.mxu0 %v18090_v31  ;;  %v8090_v39 = vpop.f32.mrf.mxu0  ;;  %v8177_v19 = vpop.f32.mrf.mxu1  ;;  %8778 = vmatpush3.msra.mxu1 %v18094_v1  ;;  %v18096_v41 = vand.u32 4294901760, %v18095_v14  ;;  %v10113_v11 = vpack.i.bf16 %v504_v17, %v520_v21  ;;  %v18097_v38 = vld [vmem:[#allocation82_spill] sm:$0xff]  ;;  %v18101_v17 = vld [vmem:[#allocation84_spill] sm:$0xff]  ;;  %vm378_vm0 = vcmp.eq.s32.totalorder %v246_v8, %v12623_v48 }
 0x1ee   : > { %3731 = vmatmul.mubr.f32.gmra.mxu1 %v18088_v9  ;;  %3464 = vmatmul.mubr.f32.gmra.mxu0 %v12234_v0  ;;  %v1755_v50 = vadd.f32 %v8089_v24, %v18093_v18  ;;  %v12884_v46 = vadd.f32 %v8177_v19, %v8176_v52  ;;  %v262_v0 = vadd.s32 704, %v18033_v47  ;;  %v18098_v9 = vand.u32 4294901760, %v18097_v38  ;;  %v18099_v24 = vld [vmem:[#allocation25_spill] sm:$0xff] }
 0x1ef   : > { %3738 = vmatprep.mubr.f32.mxu1 %v18092_v6  ;;  %3470 = vmatprep.mubr.f32.mxu0 %v12248_v10  ;;  %v8091_v44 = vpop.f32.mrf.mxu0  ;;  %v8179_v13 = vpop.f32.mrf.mxu1  ;;  %v18100_v40 = vand.u32 4294901760, %v18099_v24  ;;  %v505_v10 = vsel %vm377_vm14, 1.0, %v18053_v51  ;;  %v521_v52 = vsel %vm393_vm15, 1.0, %v18053_v51  ;;  %v18102_v21 = vand.u32 4294901760, %v18101_v17 }
 0x1f0   : > { %10112 = vxpose.xlu0.b32.cont [6/16] %v10111_v53, 128  ;;  %8699 = vmatprep.subr.mxu0 %v18096_v41  ;;  %v8092_v45 = vadd.f32 %v8091_v44, %v8090_v39  ;;  %v12901_v53 = vadd.f32 %v12812_v34, %v1755_v50  ;;  %v247_v6 = vadd.s32 584, %v18033_v47  ;;  %vm394_vm1 = vcmp.eq.s32.totalorder %v262_v0, %v12623_v48  ;;  %v18105_v50 = vld [vmem:[#allocation66_spill] sm:$0xff]  ;;  %v18106_v41 = vld [vmem:[#allocation71_spill] sm:$0xff] }
 0x1f1   : > { %8700 = vmatpush3.msra.mxu0 %v18100_v40  ;;  %v8093_v31 = vpop.f32.mrf.mxu0  ;;  %v8180_v39 = vpop.f32.mrf.mxu1  ;;  %8779 = vmatprep.subr.mxu1 %v18104_v23  ;;  %v10115_v44 = vpack.i.bf16 %v505_v10, %v521_v52  ;;  %v18110_v40 = vld [vmem:[#allocation88_spill] sm:$0xff]  ;;  %v506_v10 = vsel %vm378_vm0, 1.0, %v18053_v51  ;;  %v522_v52 = vsel %vm394_vm1, 1.0, %v18053_v51  ;;  %v248_v0 = vadd.s32 592, %v18033_v47 }
 0x1f2   : > { %3742 = vmatmul.mubr.f32.gmra.mxu1 %v18098_v9  ;;  %3473 = vmatmul.mubr.f32.gmra.mxu0 %v12263_v3  ;;  %v1764_v19 = vadd.f32 %v8092_v45, %v18103_v36  ;;  %v12911_v18 = vadd.f32 %v8180_v39, %v8179_v13  ;;  %v263_v3 = vadd.s32 712, %v18033_v47  ;;  %v18107_v9 = vand.u32 4294901760, %v18106_v41  ;;  %v18108_v45 = vld [vmem:[#allocation86_spill] sm:$0xff]  ;;  %v18113_v39 = vld [vmem:[#allocation72_spill] sm:$0xff] }
 0x1f3   : > { %3749 = vmatprep.mubr.f32.mxu1 %v18102_v21  ;;  %3479 = vmatprep.mubr.f32.mxu0 %v12278_v25  ;;  %v8094_v34 = vpop.f32.mrf.mxu0  ;;  %v8182_v1 = vpop.f32.mrf.mxu1  ;;  %v18109_v25 = vand.u32 4294901760, %v18108_v45  ;;  %vm379_vm2 = vcmp.eq.s32.totalorder %v247_v6, %v12623_v48  ;;  %v18114_v36 = vand.u32 4294901760, %v18113_v39  ;;  %v18117_v41 = vld [vmem:[#allocation28_spill] sm:$0xff]  ;;  %vm380_vm4 = vcmp.eq.s32.totalorder %v248_v0, %v12623_v48 }
 0x1f4   : > { %10114 = vxpose.xlu0.b32.cont [7/16] %v10113_v11, 128  ;;  %8780 = vmatpush3.msra.mxu1 %v18105_v50  ;;  %v8095_v14 = vadd.f32 %v8094_v34, %v8093_v31  ;;  %v12921_v13 = vadd.f32 %v12835_v5, %v1764_v19  ;;  %v18111_v11 = vand.u32 4294901760, %v18110_v40  ;;  %v18112_v31 = vld [vmem:[#allocation97_spill] sm:$0xff]  ;;  %vm395_vm3 = vcmp.eq.s32.totalorder %v263_v3, %v12623_v48  ;;  %v18121_v39 = vld [vmem:[#allocation100_spill] sm:$0xff] }
 0x1f5   : > { %8701 = vmatprep.subr.mxu0 %v18107_v9  ;;  %v8096_v24 = vpop.f32.mrf.mxu0  ;;  %v8183_v21 = vpop.f32.mrf.mxu1  ;;  %v18115_v19 = vld [vmem:[#allocation17_spill] sm:$0xff]  ;;  %v264_v34 = vadd.s32 720, %v18033_v47  ;;  %v18118_v9 = vand.u32 4294901760, %v18117_v41  ;;  %v249_v3 = vadd.s32 600, %v18033_v47 }
 0x1f6   : > { %3753 = vmatmul.mubr.f32.gmra.mxu1 %v18109_v25  ;;  %3482 = vmatmul.mubr.f32.gmra.mxu0 %v12290_v60  ;;  %v1773_v5 = vadd.f32 %v8095_v14, %v18112_v31  ;;  %v12937_v60 = vadd.f32 %v8183_v21, %v8182_v1  ;;  %v18116_v14 = vld [vmem:[#allocation19_spill] sm:$0xff]  ;;  %v523_v31 = vsel %vm395_vm3, 1.0, %v18053_v51 }
 0x1f7   : > { %3760 = vmatprep.mubr.f32.mxu1 %v18111_v11  ;;  %8702 = vmatpush3.msra.mxu0 %v18114_v36  ;;  %v8097_v8 = vpop.f32.mrf.mxu0  ;;  %v8185_v23 = vpop.f32.mrf.mxu1  ;;  %vm396_vm5 = vcmp.eq.s32.totalorder %v264_v34, %v12623_v48  ;;  %vm381_vm6 = vcmp.eq.s32.totalorder %v249_v3, %v12623_v48  ;;  %v266_v34 = vadd.s32 736, %v18033_v47  ;;  %v18149_v3 = vld [vmem:[#allocation24_spill] sm:$0xff] }
 0x1f8   : > { %3488 = vmatprep.mubr.f32.mxu0 %v18091_v62  ;;  %8781 = vmatprep.subr.mxu1 %v18115_v19  ;;  %v8098_v50 = vadd.f32 %v8097_v8, %v8096_v24  ;;  %v10117_v62 = vpack.i.bf16 %v506_v10, %v522_v52  ;;  %v12947_v1 = vadd.f32 %v12862_v2, %v1773_v5  ;;  %v507_v24 = vsel %vm379_vm2, 1.0, %v18053_v51  ;;  %v18122_v52 = vld [vmem:[#allocation77_spill] sm:$0xff]  ;;  %v18124_v5 = vld [vmem:[#allocation94_spill] sm:$0xff] }
 0x1f9   : > { %10116 = vxpose.xlu0.b32.cont [8/16] %v10115_v44, 128  ;;  %8782 = vmatpush3.msra.mxu1 %v18116_v14  ;;  %v8099_v25 = vpop.f32.mrf.mxu0  ;;  %v18119_v44 = vld [vmem:[#allocation92_spill] sm:$0xff]  ;;  %v8186_v21 = vpop.f32.mrf.mxu1  ;;  %v18123_v2 = vand.u32 4294901760, %v18122_v52  ;;  %v18125_v36 = vand.u32 4294901760, %v18124_v5  ;;  %v18126_v19 = vld [vmem:[#allocation26_spill] sm:$0xff]  ;;  %v18130_v52 = vld [vmem:[#allocation103_spill] sm:$0xff]  ;;  %vm398_vm9 = vcmp.eq.s32.totalorder %v266_v34, %v12623_v48  ;;  %v252_v34 = vadd.s32 624, %v18033_v47 }
 0x1fa   : > { %8703 = vmatprep.subr.mxu0 %v18118_v9  ;;  %3491 = vmatmul.mubr.f32.gmra.mxu0 %v18097_v38  ;;  %v18120_v11 = vand.u32 4294901760, %v18119_v44  ;;  %v1782_v10 = vadd.f32 %v8098_v50, %v18121_v39  ;;  %v12962_v38 = vadd.f32 %v8186_v21, %v8185_v23  ;;  %v265_v50 = vadd.s32 728, %v18033_v47  ;;  %v18128_v9 = vld [vmem:[#allocation23_spill] sm:$0xff] }
 0x1fb   : > { %8704 = vmatpush3.msra.mxu0 %v18123_v2  ;;  %3497 = vmatprep.mubr.f32.mxu0 %v18101_v17  ;;  %v8100_v6 = vpop.f32.mrf.mxu0  ;;  %v8188_v8 = vpop.f32.mrf.mxu1  ;;  %v18127_v17 = vld [vmem:[#allocation27_spill] sm:$0xff]  ;;  %v10119_v23 = vpack.i.bf16 %v507_v24, %v523_v31  ;;  %v524_v24 = vsel %vm396_vm5, 1.0, %v18053_v51  ;;  %vm384_vm12 = vcmp.eq.s32.totalorder %v252_v34, %v12623_v48  ;;  %v18182_v34 = vld [vmem:[#allocation44_spill] sm:$0xff] }
 0x1fc   : > { %3764 = vmatmul.mubr.f32.gmra.mxu1 %v18120_v11  ;;  %8783 = vmatprep.subr.mxu1 %v18126_v19  ;;  %v8101_v14 = vadd.f32 %v8100_v6, %v8099_v25  ;;  %v12973_v41 = vadd.f32 %v12884_v46, %v1782_v10  ;;  %v18129_v11 = vand.u32 4294901760, %v18128_v9  ;;  %v508_v46 = vsel %vm380_vm4, 1.0, %v18053_v51 }
 0x1fd   : > { %3771 = vmatprep.mubr.f32.mxu1 %v18125_v36  ;;  %10118 = vxpose.xlu0.b32.cont [9/16] %v10117_v62, 128  ;;  %v8102_v21 = vpop.f32.mrf.mxu0  ;;  %v8189_v39 = vpop.f32.mrf.mxu1  ;;  %v18131_v36 = vld [vmem:[#allocation95_spill] sm:$0xff]  ;;  %v18133_v62 = vld [vmem:[#allocation32_spill] sm:$0xff]  ;;  %vm397_vm7 = vcmp.eq.s32.totalorder %v265_v50, %v12623_v48  ;;  %v267_v50 = vadd.s32 744, %v18033_v47 }
 0x1fe   : > { %8784 = vmatpush3.msra.mxu1 %v18127_v17  ;;  %8705 = vmatprep.subr.mxu0 %v18129_v11  ;;  %v1791_v2 = vadd.f32 %v8101_v14, %v18130_v52  ;;  %v18132_v19 = vand.u32 4294901760, %v18131_v36  ;;  %v18134_v25 = vand.u32 4294901760, %v18133_v62  ;;  %v12983_v6 = vadd.f32 %v8189_v39, %v8188_v8  ;;  %v18137_v17 = vld [vmem:[#allocation21_spill] sm:$0xff]  ;;  %v18140_v11 = vld [vmem:[#allocation31_spill] sm:$0xff] }
 0x1ff   : > { %3500 = vmatmul.mubr.f32.gmra.mxu0 %v18108_v45  ;;  %v18135_v45 = vld [vmem:[#allocation96_spill] sm:$0xff]  ;;  %v8103_v10 = vpop.f32.mrf.mxu0  ;;  %v8191_v14 = vpop.f32.mrf.mxu1  ;;  %v250_v8 = vadd.s32 608, %v18033_v47  ;;  %8785 = vmatprep.subr.mxu1 %v18137_v17  ;;  %v18141_v39 = vand.u32 4294901760, %v18140_v11  ;;  %v18143_v17 = vld [vmem:[#allocation99_spill] sm:$0xff]  ;;  %vm399_vm11 = vcmp.eq.s32.totalorder %v267_v50, %v12623_v48  ;;  %v253_v50 = vadd.s32 632, %v18033_v47 }
 0x200   : > { %3775 = vmatmul.mubr.f32.gmra.mxu1 %v18132_v19  ;;  %8706 = vmatpush3.msra.mxu0 %v18134_v25  ;;  %v18136_v31 = vand.u32 4294901760, %v18135_v45  ;;  %v8104_v0 = vadd.f32 %v8103_v10, %v8102_v21  ;;  %v13000_v9 = vadd.f32 %v12911_v18, %v1791_v2  ;;  %v10121_v19 = vpack.i.bf16 %v508_v46, %v524_v24  ;;  %v18142_v25 = vld [vmem:[#allocation107_spill] sm:$0xff]  ;;  %v18145_v10 = vld [vmem:[#allocation41_spill] sm:$0xff] }
 0x201   : > { %3506 = vmatprep.mubr.f32.mxu0 %v18110_v40  ;;  %10120 = vxpose.xlu0.b32.cont [10/16] %v10119_v23, 128  ;;  %v18139_v40 = vld [vmem:[#allocation29_spill] sm:$0xff]  ;;  %v8105_v52 = vpop.f32.mrf.mxu0  ;;  %v8192_v62 = vpop.f32.mrf.mxu1  ;;  %v18144_v23 = vand.u32 4294901760, %v18143_v17  ;;  %v509_v18 = vsel %vm381_vm6, 1.0, %v18053_v51  ;;  %v525_v2 = vsel %vm397_vm7, 1.0, %v18053_v51  ;;  %v18146_v46 = vand.u32 4294901760, %v18145_v10  ;;  %v18151_v10 = vld [vmem:[#allocation112_spill] sm:$0xff] }
 0x202   : > { %3782 = vmatprep.mubr.f32.mxu1 %v18136_v31  ;;  %18138 = vst [vmem:[#allocation60_spill] sm:$0xff] %v13000_v9  ;;  %8786 = vmatpush3.msra.mxu1 %v18139_v40  ;;  %v1800_v31 = vadd.f32 %v8104_v0, %v18142_v25  ;;  %v13009_v21 = vadd.f32 %v8192_v62, %v8191_v14  ;;  %v251_v14 = vadd.s32 616, %v18033_v47  ;;  %v18147_v0 = vld [vmem:[#allocation12_spill] sm:$0xff]  ;;  %v18152_v9 = vld [vmem:[#allocation35_spill] sm:$0xff] }
 0x203   : > { %8707 = vmatprep.subr.mxu0 %v18141_v39  ;;  %3509 = vmatmul.mubr.f32.gmra.mxu0 %v18119_v44  ;;  %v8106_v24 = vpop.f32.mrf.mxu0  ;;  %v8194_v44 = vpop.f32.mrf.mxu1  ;;  %vm382_vm8 = vcmp.eq.s32.totalorder %v250_v8, %v12623_v48  ;;  %v18148_v40 = vand.u32 4294901760, %v18147_v0  ;;  %v10123_v25 = vpack.i.bf16 %v509_v18, %v525_v2  ;;  %vm385_vm14 = vcmp.eq.s32.totalorder %v253_v50, %v12623_v48  ;;  %v18191_v50 = vld [vmem:[#allocation46_spill] sm:$0xff] }
 0x204   : > { %3786 = vmatmul.mubr.f32.gmra.mxu1 %v18144_v23  ;;  %8708 = vmatpush3.msra.mxu0 %v18146_v46  ;;  %v8107_v11 = vadd.f32 %v8106_v24, %v8105_v52  ;;  %v13028_v39 = vadd.f32 %v12937_v60, %v1800_v31  ;;  %v18154_v24 = vld [vmem:[#allocation102_spill] sm:$0xff]  ;;  %v18156_v60 = vld [vmem:[#allocation43_spill] sm:$0xff]  ;;  %v510_v18 = vsel %vm382_vm8, 1.0, %v18053_v51  ;;  %vm383_vm10 = vcmp.eq.s32.totalorder %v251_v14, %v12623_v48 }
 0x205   : > { %3515 = vmatprep.mubr.f32.mxu0 %v18124_v5  ;;  %3793 = vmatprep.mubr.f32.mxu1 %v18148_v40  ;;  %v18150_v5 = vld [vmem:[#allocation30_spill] sm:$0xff]  ;;  %v8108_v62 = vpop.f32.mrf.mxu0  ;;  %v8195_v23 = vpop.f32.mrf.mxu1  ;;  %v18153_v40 = vand.u32 4294901760, %v18152_v9  ;;  %v18157_v31 = vand.u32 4294901760, %v18156_v60  ;;  %v526_v9 = vsel %vm398_vm9, 1.0, %v18053_v51  ;;  %v18163_v60 = vld [vmem:[#allocation37_spill] sm:$0xff] }
 0x206   : > { %8787 = vmatprep.subr.mxu1 %v18149_v3  ;;  %10122 = vxpose.xlu0.b32.cont [11/16] %v10121_v19, 128  ;;  %v1809_v46 = vadd.f32 %v8107_v11, %v18151_v10  ;;  %v13035_v52 = vadd.f32 %v8195_v23, %v8194_v44  ;;  %v18155_v3 = vand.u32 4294901760, %v18154_v24  ;;  %v18161_v23 = vld [vmem:[#allocation38_spill] sm:$0xff] }
 0x207   : > { %8788 = vmatpush3.msra.mxu1 %v18150_v5  ;;  %8709 = vmatprep.subr.mxu0 %v18153_v40  ;;  %v8109_v19 = vpop.f32.mrf.mxu0  ;;  %v8197_v5 = vpop.f32.mrf.mxu1  ;;  %v268_v40 = vadd.s32 752, %v18033_v47 }
 0x208   : > { %3518 = vmatmul.mubr.f32.gmra.mxu0 %v18131_v36  ;;  %3797 = vmatmul.mubr.f32.gmra.mxu1 %v18155_v3  ;;  %v18158_v36 = vld [vmem:[#allocation104_spill] sm:$0xff]  ;;  %v8110_v44 = vadd.f32 %v8109_v19, %v8108_v62  ;;  %v13053_v11 = vadd.f32 %v12962_v38, %v1809_v46  ;;  %v18162_v3 = vld [vmem:[#allocation34_spill] sm:$0xff]  ;;  %v18164_v62 = vand.u32 4294901760, %v18163_v60 }
 0x209   : > { %8710 = vmatpush3.msra.mxu0 %v18157_v31  ;;  %3524 = vmatprep.mubr.f32.mxu0 %v18135_v45  ;;  %v18159_v2 = vand.u32 4294901760, %v18158_v36  ;;  %v8111_v8 = vpop.f32.mrf.mxu0  ;;  %v8198_v10 = vpop.f32.mrf.mxu1  ;;  %v10125_v31 = vpack.i.bf16 %v510_v18, %v526_v9  ;;  %v18165_v38 = vld [vmem:[#allocation106_spill] sm:$0xff]  ;;  %v18170_v18 = vld [vmem:[#allocation20_spill] sm:$0xff]  ;;  %vm400_vm13 = vcmp.eq.s32.totalorder %v268_v40, %v12623_v48 }
 0x20a   : > { %18160 = vst [vmem:[#allocation64_spill] sm:$0xff] %v13053_v11  ;;  %8789 = vmatprep.subr.mxu1 %v18161_v23  ;;  %10124 = vxpose.xlu0.b32.cont [12/16] %v10123_v25, 128  ;;  %v1818_v45 = vadd.f32 %v8110_v44, %v12617_v33  ;;  %v13062_v19 = vadd.f32 %v8198_v10, %v8197_v5  ;;  %v18166_v25 = vand.u32 4294901760, %v18165_v38  ;;  %v511_v23 = vsel %vm383_vm10, 1.0, %v18053_v51  ;;  %v18167_v44 = vld [vmem:[#allocation39_spill] sm:$0xff]  ;;  %v18172_v10 = vld [vmem:[#allocation42_spill] sm:$0xff] }
 0x20b   : > { %3804 = vmatprep.mubr.f32.mxu1 %v18159_v2  ;;  %8790 = vmatpush3.msra.mxu1 %v18162_v3  ;;  %v8112_v46 = vpop.f32.mrf.mxu0  ;;  %v8200_v2 = vpop.f32.mrf.mxu1  ;;  %v527_v33 = vsel %vm399_vm11, 1.0, %v18053_v51  ;;  %v18168_v3 = vand.u32 4294901760, %v18167_v44  ;;  %v18171_v9 = vand.u32 4294901760, %v18170_v18 }
 0x20c   : > { %8711 = vmatprep.subr.mxu0 %v18164_v62  ;;  %3527 = vmatmul.mubr.f32.gmra.mxu0 %v18143_v17  ;;  %v8113_v5 = vadd.f32 %v8112_v46, %v8111_v8  ;;  %v13077_v17 = vadd.f32 %v12983_v6, %v1818_v45  ;;  %v269_v62 = vadd.s32 760, %v18033_v47  ;;  %v18173_v6 = vld [vmem:[#allocation36_spill] sm:$0xff]  ;;  %v10127_v8 = vpack.i.bf16 %v511_v23, %v527_v33  ;;  %v657_v23 = vld [vmem:[#allocation5 + $0x2f8] sm:$0xff]  ;;  %v18180_v33 = vld [vmem:[#allocation11_spill] sm:$0xff] }
 0x20d   : > { %3808 = vmatmul.mubr.f32.gmra.mxu1 %v18166_v25  ;;  %8712 = vmatpush3.msra.mxu0 %v18168_v3  ;;  %v8114_v14 = vpop.f32.mrf.mxu0  ;;  %v8201_v60 = vpop.f32.mrf.mxu1  ;;  %v18174_v25 = vld [vmem:[#allocation48_spill] sm:$0xff] }
 0x20e   : > { %3533 = vmatprep.mubr.f32.mxu0 %v18147_v0  ;;  %18169 = vst [vmem:[#allocation53_spill] sm:$0xff] %v13077_v17  ;;  %3815 = vmatprep.mubr.f32.mxu1 %v18171_v9  ;;  %v1827_v0 = vadd.f32 %v8113_v5, %v12658_v12  ;;  %v13088_v45 = vadd.f32 %v8201_v60, %v8200_v2  ;;  %v18175_v46 = vand.u32 4294901760, %v18174_v25  ;;  %v18176_v9 = vld [vmem:[#allocation110_spill] sm:$0xff]  ;;  %v18178_v17 = vld [vmem:[#allocation49_spill] sm:$0xff]  ;;  %v512_v12 = vsel %vm384_vm12, 1.0, %v18053_v51  ;;  %v18184_v60 = vld [vmem:[#allocation51_spill] sm:$0xff] }
 0x20f   : > { %8791 = vmatprep.subr.mxu1 %v18172_v10  ;;  %10126 = vxpose.xlu0.b32.cont [13/16] %v10125_v31, 128  ;;  %v8115_v44 = vpop.f32.mrf.mxu0  ;;  %v8203_v3 = vpop.f32.mrf.mxu1  ;;  %v18177_v10 = vand.u32 4294901760, %v18176_v9  ;;  %v18179_v11 = vand.u32 4294901760, %v18178_v17  ;;  %v528_v2 = vsel %vm400_vm13, 1.0, %v18053_v51  ;;  %v18181_v5 = vand.u32 4294901760, %v18180_v33 }
 0x210   : > { %8792 = vmatpush3.msra.mxu1 %v18173_v6  ;;  %8713 = vmatprep.subr.mxu0 %v18175_v46  ;;  %v8116_v31 = vadd.f32 %v8115_v44, %v8114_v14  ;;  %vm401_vm15 = vcmp.eq.s32.totalorder %v269_v62, %v12623_v48  ;;  %v13118_v46 = vand.u32 4294901760, %v657_v23  ;;  %v641_v44 = vld [vmem:[#allocation5 + $0x278] sm:$0xff] }
 0x211   : > { %3536 = vmatmul.mubr.f32.gmra.mxu0 %v18154_v24  ;;  %3819 = vmatmul.mubr.f32.gmra.mxu1 %v18177_v10  ;;  %v13104_v24 = vadd.f32 %v13009_v21, %v1827_v0  ;;  %v8117_v17 = vpop.f32.mrf.mxu0  ;;  %v18183_v21 = vld [vmem:[#allocation40_spill] sm:$0xff]  ;;  %v10129_v0 = vpack.i.bf16 %v512_v12, %v528_v2  ;;  %v18187_v10 = vand.u32 4294901760, %v12602_v57  ;;  %v18188_v2 = vld [vmem:[#allocation50_spill] sm:$0xff]  ;;  %v13141_v62 = vand.u32 4294901760, %v641_v44 }
 0x212   : > { %8714 = vmatpush3.msra.mxu0 %v18179_v11  ;;  %3542 = vmatprep.mubr.f32.mxu0 %v18158_v36  ;;  %v8204_v11 = vpop.f32.mrf.mxu1  ;;  %v1836_v40 = vadd.f32 %v8116_v31, %v12698_v32  ;;  %v18185_v36 = vand.u32 4294901760, %v18184_v60  ;;  %18186 = vst [vmem:[#allocation14_spill] sm:$0xff] %v13118_v46  ;;  %v513_v32 = vsel %vm385_vm14, 1.0, %v18053_v51  ;;  %v656_v31 = vld [vmem:[#allocation5 + $0x2f0] sm:$0xff] }
 0x213   : > { %3826 = vmatprep.mubr.f32.mxu1 %v18181_v5  ;;  %8793 = vmatprep.subr.mxu1 %v18182_v34  ;;  %v13113_v14 = vadd.f32 %v8204_v11, %v8203_v3  ;;  %v8118_v6 = vpop.f32.mrf.mxu0  ;;  %v529_v3 = vsel %vm401_vm15, 1.0, %v18053_v51  ;;  %v18189_v5 = vand.u32 4294901760, %v18188_v2  ;;  %18192 = vst [vmem:[#allocation79_spill] sm:$0xff] %v13141_v62  ;;  %v18201_v2 = vand.u32 4294901760, %v12676_v22 }
 0x214   : > { %10128 = vxpose.xlu0.b32.cont [14/16] %v10127_v8, 128  ;;  %8794 = vmatpush3.msra.mxu1 %v18183_v21  ;;  %v8206_v25 = vpop.f32.mrf.mxu1  ;;  %v8119_v8 = vadd.f32 %v8118_v6, %v8117_v17  ;;  %v13130_v12 = vadd.f32 %v13035_v52, %v1836_v40  ;;  %v18190_v17 = vand.u32 4294901760, %v12614_v59  ;;  %v18193_v52 = vld [vmem:[#allocation47_spill] sm:$0xff]  ;;  %v10131_v40 = vpack.i.bf16 %v513_v32, %v529_v3  ;;  %v18196_v6 = vld [vmem:[#allocation56_spill] sm:$0xff] }
 0x215   : > { %8715 = vmatprep.subr.mxu0 %v18185_v36  ;;  %3545 = vmatmul.mubr.f32.gmra.mxu0 %v18165_v38  ;;  %v8120_v38 = vpop.f32.mrf.mxu0  ;;  %v13147_v36 = vand.u32 4294901760, %v656_v31 }
 0x216   : > { %3830 = vmatmul.mubr.f32.gmra.mxu1 %v18187_v10  ;;  %8716 = vmatpush3.msra.mxu0 %v18189_v5  ;;  %v8207_v11 = vpop.f32.mrf.mxu1  ;;  %v1845_v34 = vadd.f32 %v8119_v8, %v12729_v35  ;;  %v18197_v10 = vand.u32 4294901760, %v18196_v6  ;;  %v18199_v8 = vld [vmem:[#allocation57_spill] sm:$0xff] }
 0x217   : > { %3551 = vmatprep.mubr.f32.mxu0 %v18170_v18  ;;  %3837 = vmatprep.mubr.f32.mxu1 %v18190_v17  ;;  %v13139_v48 = vadd.f32 %v8207_v11, %v8206_v25  ;;  %v8121_v21 = vpop.f32.mrf.mxu0  ;;  %v13145_v18 = vsub.f32 %v657_v23, %v13118_v46  ;;  %18195 = vst [vmem:[#allocation13_spill] sm:$0xff] %v13147_v36  ;;  %v18200_v32 = vand.u32 4294901760, %v18199_v8  ;;  %v18203_v11 = vld [vmem:[#allocation54_spill] sm:$0xff] }
 0x218   : > { %8795 = vmatprep.subr.mxu1 %v18191_v50  ;;  %10130 = vxpose.xlu0.b32.cont [15/16] %v10129_v0, 128  ;;  %v8209_v60 = vpop.f32.mrf.mxu1  ;;  %v8122_v35 = vadd.f32 %v8121_v21, %v8120_v38  ;;  %v13153_v25 = vadd.f32 %v13062_v19, %v1845_v34  ;;  %v18198_v0 = vand.u32 4294901760, %v12655_v20  ;;  %v13166_v19 = vsub.f32 %v641_v44, %v13141_v62  ;;  %v640_v38 = vld [vmem:[#allocation5 + $0x270] sm:$0xff] }
 0x219   : > { %8796 = vmatpush3.msra.mxu1 %v18193_v52  ;;  %18194 = vst [vmem:[#allocation85_spill] sm:$0xff] %v13145_v18  ;;  %8717 = vmatprep.subr.mxu0 %v18197_v10  ;;  %v8123_v3 = vpop.f32.mrf.mxu0  ;;  %v17130_v34 = vand.u32 4294901760, %v13145_v18  ;;  %v18205_v52 = vld [vmem:[#allocation55_spill] sm:$0xff] }
 0x21a   : > { %3554 = vmatmul.mubr.f32.gmra.mxu0 %v18176_v9  ;;  %3841 = vmatmul.mubr.f32.gmra.mxu1 %v18198_v0  ;;  %v8210_v23 = vpop.f32.mrf.mxu1  ;;  %v1854_v5 = vadd.f32 %v8122_v35, %v12756_v16  ;;  %18202 = vst [vmem:[#allocation22_spill] sm:$0xff] %v13166_v19  ;;  %v18206_v16 = vand.u32 4294901760, %v12093_v43  ;;  %v13182_v35 = vand.u32 4294901760, %v640_v38 }
 0x21b   : > { %8718 = vmatpush3.msra.mxu0 %v18200_v32  ;;  %3560 = vmatprep.mubr.f32.mxu0 %v18180_v33  ;;  %v13163_v9 = vadd.f32 %v8210_v23, %v8209_v60  ;;  %v8124_v17 = vpop.f32.mrf.mxu0  ;;  %v13171_v33 = vsub.f32 %v656_v31, %v13147_v36  ;;  %v655_v60 = vld [vmem:[#allocation5 + $0x2e8] sm:$0xff]  ;;  %v18209_v31 = vld [vmem:[#allocation59_spill] sm:$0xff] }
 0x21c   : > { %3848 = vmatprep.mubr.f32.mxu1 %v18201_v2  ;;  %8797 = vmatprep.subr.mxu1 %v18203_v11  ;;  %v8212_v50 = vpop.f32.mrf.mxu1  ;;  %v8125_v21 = vadd.f32 %v8124_v17, %v8123_v3  ;;  %v13177_v44 = vadd.f32 %v13088_v45, %v1854_v5  ;;  %18208 = vst [vmem:[#allocation25_spill] sm:$0xff] %v13182_v35  ;;  %v18210_v0 = vand.u32 4294901760, %v18209_v31  ;;  %v17129_v45 = vand.u32 4294901760, %v13166_v19  ;;  %v639_v32 = vld [vmem:[#allocation5 + $0x268] sm:$0xff] }
 0x21d   : > { %10132 = vxpose.xlu0.b32.end [16/16] %v10131_v40, 128  ;;  %18204 = vst [vmem:[#allocation82_spill] sm:$0xff] %v13171_v33  ;;  %8798 = vmatpush3.msra.mxu1 %v18205_v52  ;;  %v18207_v40 = vand.u32 4294901760, %v12695_v7  ;;  %v8126_v6 = vpop.f32.mrf.mxu0  ;;  %v18211_v3 = vand.u32 4294901760, %v12715_v54  ;;  %v13197_v5 = vsub.f32 %v13145_v18, %v17130_v34  ;;  %v18213_v11 = vand.u32 4294901760, %v18071_v30 }
 0x21e   : > { %8719 = vmatprep.subr.mxu0 %v18206_v16  ;;  %3563 = vmatmul.mubr.f32.gmra.mxu0 %v12602_v57  ;;  %v8213_v10 = vpop.f32.mrf.mxu1  ;;  %v1863_v43 = vadd.f32 %v8125_v21, %v12784_v4  ;;  %v654_v57 = vld [vmem:[#allocation5 + $0x2e0] sm:$0xff]  ;;  %v13200_v4 = vand.u32 4294901760, %v655_v60  ;;  %v13211_v21 = vsub.f32 %v640_v38, %v13182_v35 }
 0x21f   : > { %3852 = vmatmul.mubr.f32.gmra.mxu1 %v18207_v40  ;;  %8720 = vmatpush3.msra.mxu0 %v18210_v0  ;;  %v13188_v8 = vadd.f32 %v8213_v10, %v8212_v50  ;;  %v8127_v23 = vpop.f32.mrf.mxu0  ;;  %v18214_v50 = vld [vmem:[#allocation58_spill] sm:$0xff]  ;;  %v13213_v40 = vand.u32 4294901760, %v639_v32  ;;  %v13215_v10 = vand.u32 4294901760, %v654_v57  ;;  %v638_v38 = vld [vmem:[#allocation5 + $0x260] sm:$0xff] }
 0x220   : > { %8799 = vmatprep.subr.mxu1 %v12067_v29  ;;  %3569 = vmatprep.mubr.f32.mxu0 %v12614_v59  ;;  %v8327_v2 = vpop.f32.mrf.mxu1  ;;  %v17128_v29 = vand.u32 4294901760, %v13171_v33  ;;  %18212 = vst [vmem:[#allocation84_spill] sm:$0xff] %v13200_v4  ;;  %v8128_v59 = vadd.f32 %v8127_v23, %v8126_v6  ;;  %v13206_v17 = vadd.f32 %v13113_v14, %v1863_v43  ;;  %18215 = vst [vmem:[#allocation89_spill] sm:$0xff] %v13211_v21 }
 0x221   : > { %3859 = vmatprep.mubr.f32.mxu1 %v18211_v3  ;;  %8800 = vmatpush3.msra.mxu1 %v12076_v63  ;;  %v8129_v52 = vpop.f32.mrf.mxu0  ;;  %18216 = vst [vmem:[#allocation16_spill] sm:$0xff] %v13213_v40  ;;  %18217 = vst [vmem:[#allocation66_spill] sm:$0xff] %v13215_v10  ;;  %v18218_v63 = vand.u32 4294901760, %v12117_v61  ;;  %v18219_v6 = vand.u32 4294901760, %v12747_v26  ;;  %v4804_v61 = vand.u32 4294901760, %v13197_v5  ;;  %v13238_v0 = vsub.f32 %v655_v60, %v13200_v4  ;;  %v653_v3 = vld [vmem:[#allocation5 + $0x2d8] sm:$0xff] }
 0x222   : > { %8721 = vmatprep.subr.mxu0 %v18213_v11  ;;  %8801 = vmatprep.subr.mxu1 %v18214_v50  ;;  %v8328_v16 = vpop.f32.mrf.mxu1  ;;  %v1872_v30 = vadd.f32 %v8128_v59, %v12810_v28  ;;  %v13235_v28 = vsub.f32 %v13171_v33, %v17128_v29  ;;  %v270_v23 = vadd.s32 768, %v18033_v47  ;;  %v18221_v5 = vld [vmem:[#allocation65_spill] sm:$0xff]  ;;  %v13253_v59 = vand.u32 4294901760, %v638_v38  ;;  %v18232_v29 = vld [vmem:[#allocation68_spill] sm:$0xff]  ;;  %v649_v33 = vld [vmem:[#allocation5 + $0x2b8] sm:$0xff] }
 0x223   : > { %3572 = vmatmul.mubr.f32.gmra.mxu0 %v12655_v20  ;;  %8802 = vmatpush3.msra.mxu1 %v12095_v55  ;;  %v13221_v14 = vadd.f32 %v8328_v16, %v8327_v2  ;;  %v13226_v20 = vsub.f32 %v13166_v19, %v17129_v45  ;;  %v8130_v31 = vpop.f32.mrf.mxu0  ;;  %18220 = vst [vmem:[#allocation71_spill] sm:$0xff] %v13238_v0  ;;  %v286_v2 = vadd.s32 896, %v18033_v47  ;;  %v18225_v50 = vld [vmem:[#allocation61_spill] sm:$0xff]  ;;  %v18227_v16 = vld [vmem:[#allocation62_spill] sm:$0xff] }
 0x224   : > { %8722 = vmatpush3.msra.mxu0 %v18218_v63  ;;  %3863 = vmatmul.mubr.f32.gmra.mxu1 %v18219_v6  ;;  %v8330_v55 = vpop.f32.mrf.mxu1  ;;  %v8131_v43 = vadd.f32 %v8130_v31, %v8129_v52  ;;  %18223 = vst [vmem:[#allocation88_spill] sm:$0xff] %v13253_v59  ;;  %v18226_v52 = vand.u32 4294901760, %v18225_v50  ;;  %v13266_v6 = vld [vmem:[%s10586_s8] ss:$0 sm:$0xff]  ;;  %v4811_v50 = vand.u32 4294901760, %v13235_v28 }
 0x225   : > { %8803 = vmatprep.subr.mxu1 %v12102_v37  ;;  %3578 = vmatprep.mubr.f32.mxu0 %v12676_v22  ;;  %v13243_v37 = vadd.f32 %v13139_v48, %v1872_v30  ;;  %v8132_v60 = vpop.f32.mrf.mxu0  ;;  %v17131_v22 = vand.u32 4294901760, %v13211_v21  ;;  %v13256_v48 = vsub.f32 %v654_v57, %v13215_v10  ;;  %v4692_v30 = vand.u32 4294901760, %v13226_v20  ;;  %v18230_v20 = vld [vmem:[#allocation63_spill] sm:$0xff]  ;;  %v633_v19 = vld [vmem:[#allocation5 + $0x238] sm:$0xff] }
 0x226   : > { %8804 = vmatpush3.msra.mxu1 %v12119_v15  ;;  %4238 = vmatprep.mubr.f32.mxu1 %v18221_v5  ;;  %v8331_v11 = vpop.f32.mrf.mxu1  ;;  %v13251_v15 = vsub.f32 %v639_v32, %v13213_v40  ;;  %v1881_v63 = vadd.f32 %v8131_v43, %v12832_v42  ;;  %vm402_vm0 = vcmp.eq.s32.totalorder %v270_v23, %v13266_v6  ;;  %v18228_v32 = vld [vmem:[#allocation67_spill] sm:$0xff]  ;;  %v652_v23 = vld [vmem:[#allocation5 + $0x2d0] sm:$0xff] }
 0x227   : > { %8805 = vmatprep.subr.mxu1 %v12129_v56  ;;  %18224 = vst [vmem:[#allocation97_spill] sm:$0xff] %v13256_v48  ;;  %8723 = vmatprep.subr.mxu0 %v18226_v52  ;;  %v13262_v56 = vadd.f32 %v8331_v11, %v8330_v55  ;;  %v8133_v57 = vpop.f32.mrf.mxu0  ;;  %v13272_v52 = vand.u32 4294901760, %v653_v3  ;;  %vm418_vm1 = vcmp.eq.s32.totalorder %v286_v2, %v13266_v6  ;;  %v530_v42 = vsel %vm402_vm0, 1.0, %v18053_v51 }
 0x228   : > { %18222 = vst [vmem:[#allocation86_spill] sm:$0xff] %v13251_v15  ;;  %8806 = vmatpush3.msra.mxu1 %v18227_v16  ;;  %3581 = vmatmul.mubr.f32.gmra.mxu0 %v12695_v7  ;;  %v8333_v31 = vpop.f32.mrf.mxu1  ;;  %v637_v16 = vld [vmem:[#allocation5 + $0x258] sm:$0xff]  ;;  %v18231_v55 = vand.u32 4294901760, %v18230_v20  ;;  %v8134_v43 = vadd.f32 %v8133_v57, %v8132_v60  ;;  %v13281_v11 = vadd.f32 %v13163_v9, %v1881_v63  ;;  %v546_v28 = vsel %vm418_vm1, 1.0, %v18053_v51 }
 0x229   : > { %4240 = vmatmul.mubr.f32.vlgmr.msra.gmra.mxu1 %v18228_v32  ;;  %18229 = vst [vmem:[#allocation72_spill] sm:$0xff] %v13272_v52  ;;  %3587 = vmatprep.mubr.f32.mxu0 %v12715_v54  ;;  %v18233_v2 = vand.u32 4294901760, %v12152_v27  ;;  %v8247_v45 = vpop.f32.mrf.mxu0  ;;  %v4698_v54 = vsub.f32 %v13211_v21, %v17131_v22  ;;  %v13292_v57 = vsub.f32 %v638_v38, %v13253_v59  ;;  %v18235_v63 = vand.u32 4294901760, %v18079_v49  ;;  %v18237_v22 = vld [vmem:[#allocation69_spill] sm:$0xff] }
 0x22a   : > { %8724 = vmatpush3.msra.mxu0 %v18231_v55  ;;  %4245 = vmatprep.mubr.f32.mxu1 %v18232_v29  ;;  %v8334_v34 = vpop.f32.mrf.mxu1  ;;  %v1890_v20 = vadd.f32 %v8134_v43, %v12857_v58  ;;  %v13300_v55 = vand.u32 4294901760, %v637_v16  ;;  %v10213_v7 = vpack.i.bf16 %v530_v42, %v546_v28  ;;  %v13305_v9 = vsub.f32 %v653_v3, %v13272_v52  ;;  %v18240_v58 = vld [vmem:[#allocation70_spill] sm:$0xff] }
 0x22b   : > { %8725 = vmatprep.subr.mxu0 %v18233_v2  ;;  %18234 = vst [vmem:[#allocation17_spill] sm:$0xff] %v13292_v57  ;;  %8935 = vmatprep.subr.mxu1 %v4804_v61  ;;  %v13298_v27 = vadd.f32 %v8334_v34, %v8333_v31  ;;  %v636_v2 = vld [vmem:[#allocation5 + $0x250] sm:$0xff]  ;;  %v8248_v38 = vpop.f32.mrf.mxu0  ;;  %v13307_v49 = vand.u32 4294901760, %v652_v23  ;;  %v18241_v61 = vand.u32 4294901760, %v13238_v0  ;;  %v18242_v28 = vand.u32 4294901760, %v13251_v15 }
 0x22c   : > { %8726 = vmatpush3.msra.mxu0 %v18235_v63  ;;  %18236 = vst [vmem:[#allocation19_spill] sm:$0xff] %v13300_v55  ;;  %v8336_v60 = vpop.f32.mrf.mxu1  ;;  %18238 = vst [vmem:[#allocation28_spill] sm:$0xff] %v13305_v9  ;;  %v8249_v34 = vadd.f32 %v8248_v38, %v8247_v45  ;;  %v13317_v42 = vadd.f32 %v13188_v8, %v1890_v20  ;;  %8936 = vmatpush3.msra.mxu1 %v4692_v30  ;;  %v18243_v45 = vand.u32 4294901760, %v13256_v48  ;;  %v635_v8 = vld [vmem:[#allocation5 + $0x248] sm:$0xff] }
 0x22d   : > { %3590 = vmatmul.mubr.f32.gmra.mxu0 %v12747_v26  ;;  %4247 = vmatmul.mubr.f32.gmra.mxu1 %v18237_v22  ;;  %18239 = vst [vmem:[#allocation92_spill] sm:$0xff] %v13307_v49  ;;  %v13314_v31 = vsub.f32 %v13238_v0, %v18241_v61  ;;  %v651_v26 = vld [vmem:[#allocation5 + $0x2c8] sm:$0xff]  ;;  %v8250_v3 = vpop.f32.mrf.mxu0  ;;  %v13331_v61 = vand.u32 4294901760, %v636_v2  ;;  %v4699_v0 = vand.u32 4294901760, %v4698_v54  ;;  %v13337_v21 = vsub.f32 %v637_v16, %v13300_v55  ;;  %v18251_v54 = vld [vmem:[#allocation74_spill] sm:$0xff] }
 0x22e   : > { %4029 = vmatprep.mubr.f32.mxu0 %v18221_v5  ;;  %4252 = vmatprep.mubr.f32.mxu1 %v18240_v58  ;;  %v8337_v43 = vpop.f32.mrf.mxu1  ;;  %v13323_v5 = vsub.f32 %v13251_v15, %v18242_v28  ;;  %v13328_v63 = vsub.f32 %v13256_v48, %v18243_v45  ;;  %v2331_v20 = vadd.f32 %v8249_v34, %v12901_v53  ;;  %v18246_v28 = vld [vmem:[#allocation73_spill] sm:$0xff]  ;;  %v13345_v53 = vand.u32 4294901760, %v651_v26 }
 0x22f   : > { %8855 = vmatprep.subr.mxu0 %v13118_v46  ;;  %18244 = vst [vmem:[#allocation100_spill] sm:$0xff] %v13331_v61  ;;  %8937 = vmatprep.subr.mxu1 %v4811_v50  ;;  %v13334_v30 = vadd.f32 %v8337_v43, %v8336_v60  ;;  %18245 = vst [vmem:[#allocation77_spill] sm:$0xff] %v13337_v21  ;;  %v8251_v45 = vpop.f32.mrf.mxu0  ;;  %v13343_v15 = vsub.f32 %v652_v23, %v13307_v49  ;;  %v13349_v16 = vand.u32 4294901760, %v635_v8 }
 0x230   : > { %10214 = vxpose.xlu1.b32.start [1/16] %v10213_v7, 128  ;;  %v8339_v48 = vpop.f32.mrf.mxu1  ;;  %18248 = vst [vmem:[#allocation26_spill] sm:$0xff] %v13345_v53  ;;  %v8252_v50 = vadd.f32 %v8251_v45, %v8250_v3  ;;  %v650_v7 = vld [vmem:[#allocation5 + $0x2c0] sm:$0xff]  ;;  %v4818_v23 = vand.u32 4294901760, %v13314_v31  ;;  %v4706_v43 = vand.u32 4294901760, %v13323_v5  ;;  %v18252_v38 = vand.u32 4294901760, %v13292_v57  ;;  %8938 = vmatpush3.msra.mxu1 %v4699_v0 }
 0x231   : > { %4031 = vmatmul.mubr.f32.vlgmr.msra.gmra.mxu0 %v18228_v32  ;;  %4254 = vmatmul.mubr.f32.gmra.mxu1 %v18246_v28  ;;  %18247 = vst [vmem:[#allocation94_spill] sm:$0xff] %v13343_v15  ;;  %18249 = vst [vmem:[#allocation27_spill] sm:$0xff] %v13349_v16  ;;  %v13352_v32 = vadd.f32 %v13221_v14, %v2331_v20  ;;  %v8253_v60 = vpop.f32.mrf.mxu0  ;;  %v13364_v3 = vsub.f32 %v636_v2, %v13331_v61  ;;  %v634_v14 = vld [vmem:[#allocation5 + $0x240] sm:$0xff]  ;;  %v4825_v31 = vand.u32 4294901760, %v13328_v63  ;;  %v648_v63 = vld [vmem:[#allocation5 + $0x2b0] sm:$0xff] }
 0x232   : > { %8856 = vmatpush3.msra.mxu0 %v13141_v62  ;;  %4036 = vmatprep.mubr.f32.mxu0 %v18232_v29  ;;  %v8340_v34 = vpop.f32.mrf.mxu1  ;;  %v13361_v29 = vsub.f32 %v13292_v57, %v18252_v38  ;;  %v2338_v20 = vadd.f32 %v8252_v50, %v12921_v13  ;;  %v18254_v38 = vld [vmem:[#allocation75_spill] sm:$0xff]  ;;  %v13381_v0 = vsub.f32 %v651_v26, %v13345_v53  ;;  %v13390_v5 = vand.u32 4294901760, %v634_v14 }
 0x233   : > { %18250 = vst [vmem:[#allocation23_spill] sm:$0xff] %v13352_v32  ;;  %4259 = vmatprep.mubr.f32.mxu1 %v18251_v54  ;;  %8857 = vmatprep.subr.mxu0 %v13147_v36  ;;  %18253 = vst [vmem:[#allocation103_spill] sm:$0xff] %v13364_v3  ;;  %v13368_v45 = vadd.f32 %v8340_v34, %v8339_v48  ;;  %v8254_v2 = vpop.f32.mrf.mxu0  ;;  %v18255_v36 = vand.u32 4294901760, %v13305_v9  ;;  %v13383_v48 = vand.u32 4294901760, %v650_v7  ;;  %v13398_v32 = vand.u32 4294901760, %v649_v33 }
 0x234   : > { %8858 = vmatpush3.msra.mxu0 %v13182_v35  ;;  %v8342_v57 = vpop.f32.mrf.mxu1  ;;  %18256 = vst [vmem:[#allocation95_spill] sm:$0xff] %v13381_v0  ;;  %v8255_v50 = vadd.f32 %v8254_v2, %v8253_v60  ;;  %v13388_v34 = vsub.f32 %v635_v8, %v13349_v16  ;;  %18260 = vst [vmem:[#allocation21_spill] sm:$0xff] %v13390_v5  ;;  %8939 = vmatprep.subr.mxu1 %v4818_v23  ;;  %v13400_v60 = vand.u32 4294901760, %v633_v19 }
 0x235   : > { %4038 = vmatmul.mubr.f32.gmra.mxu0 %v18237_v22  ;;  %4261 = vmatmul.mubr.f32.gmra.mxu1 %v18254_v38  ;;  %v13377_v35 = vsub.f32 %v13305_v9, %v18255_v36  ;;  %18257 = vst [vmem:[#allocation32_spill] sm:$0xff] %v13383_v48  ;;  %v18258_v22 = vld [vmem:[#allocation76_spill] sm:$0xff]  ;;  %v13393_v36 = vadd.f32 %v13262_v56, %v2338_v20  ;;  %v8256_v26 = vpop.f32.mrf.mxu0  ;;  %v4713_v9 = vand.u32 4294901760, %v13361_v29  ;;  %18262 = vst [vmem:[#allocation31_spill] sm:$0xff] %v13398_v32  ;;  %v632_v29 = vld [vmem:[#allocation5 + $0x230] sm:$0xff] }
 0x236   : > { %4043 = vmatprep.mubr.f32.mxu0 %v18240_v58  ;;  %4266 = vmatprep.mubr.f32.mxu1 %v18258_v22  ;;  %18259 = vst [vmem:[#allocation96_spill] sm:$0xff] %v13388_v34  ;;  %v8343_v13 = vpop.f32.mrf.mxu1  ;;  %18263 = vst [vmem:[#allocation107_spill] sm:$0xff] %v13400_v60  ;;  %v2345_v8 = vadd.f32 %v8255_v50, %v12947_v1  ;;  %v18264_v20 = vand.u32 4294901760, %v13337_v21  ;;  %v13409_v2 = vand.u32 4294901760, %v648_v63  ;;  %v18266_v58 = vld [vmem:[#allocation78_spill] sm:$0xff]  ;;  %v18267_v1 = vand.u32 4294901760, %v13343_v15 }
 0x237   : > { %18261 = vst [vmem:[#allocation29_spill] sm:$0xff] %v13393_v36  ;;  %8859 = vmatprep.subr.mxu0 %v13200_v4  ;;  %8940 = vmatpush3.msra.mxu1 %v4706_v43  ;;  %v13404_v56 = vadd.f32 %v8343_v13, %v8342_v57  ;;  %v8257_v4 = vpop.f32.mrf.mxu0  ;;  %v13421_v13 = vsub.f32 %v650_v7, %v13383_v48  ;;  %v18269_v50 = vld [vmem:[#allocation80_spill] sm:$0xff]  ;;  %v18272_v7 = vand.u32 4294901760, %v13364_v3 }
 0x238   : > { %8860 = vmatpush3.msra.mxu0 %v13213_v40  ;;  %v4719_v23 = vsub.f32 %v13337_v21, %v18264_v20  ;;  %18265 = vst [vmem:[#allocation99_spill] sm:$0xff] %v13409_v2  ;;  %v8345_v36 = vpop.f32.mrf.mxu1  ;;  %v4832_v40 = vand.u32 4294901760, %v13377_v35  ;;  %v13417_v57 = vsub.f32 %v13343_v15, %v18267_v1  ;;  %v13427_v21 = vsub.f32 %v634_v14, %v13390_v5 }
 0x239   : > { %4045 = vmatmul.mubr.f32.gmra.mxu0 %v18246_v28  ;;  %4268 = vmatmul.mubr.f32.gmra.mxu1 %v18266_v58  ;;  %18268 = vst [vmem:[#allocation41_spill] sm:$0xff] %v13421_v13  ;;  %v8258_v28 = vadd.f32 %v8257_v4, %v8256_v26  ;;  %v13430_v35 = vadd.f32 %v13298_v27, %v2345_v8  ;;  %v8259_v1 = vpop.f32.mrf.mxu0  ;;  %v13444_v14 = vand.u32 4294901760, %v632_v29 }
 0x23a   : > { %4050 = vmatprep.mubr.f32.mxu0 %v18251_v54  ;;  %4273 = vmatprep.mubr.f32.mxu1 %v18269_v50  ;;  %18270 = vst [vmem:[#allocation12_spill] sm:$0xff] %v13427_v21  ;;  %v8346_v43 = vpop.f32.mrf.mxu1  ;;  %v13436_v54 = vsub.f32 %v13364_v3, %v18272_v7  ;;  %v13439_v4 = vsub.f32 %v633_v19, %v13400_v60  ;;  %v4720_v8 = vand.u32 4294901760, %v4719_v23  ;;  %v631_v7 = vld [vmem:[#allocation5 + $0x228] sm:$0xff]  ;;  %v18277_v19 = vld [vmem:[#allocation81_spill] sm:$0xff]  ;;  %v4839_v15 = vand.u32 4294901760, %v13417_v57 }
 0x23b   : > { %18271 = vst [vmem:[#allocation24_spill] sm:$0xff] %v13430_v35  ;;  %8861 = vmatprep.subr.mxu0 %v13215_v10  ;;  %8941 = vmatprep.subr.mxu1 %v4825_v31  ;;  %v13442_v26 = vsub.f32 %v649_v33, %v13398_v32  ;;  %18275 = vst [vmem:[#allocation35_spill] sm:$0xff] %v13444_v14  ;;  %v2352_v27 = vadd.f32 %v8258_v28, %v12973_v41  ;;  %v8260_v33 = vpop.f32.mrf.mxu0  ;;  %v647_v57 = vld [vmem:[#allocation5 + $0x2a8] sm:$0xff]  ;;  %v642_v35 = vld [vmem:[#allocation5 + $0x280] sm:$0xff] }
 0x23c   : > { %18273 = vst [vmem:[#allocation30_spill] sm:$0xff] %v13439_v4  ;;  %8862 = vmatpush3.msra.mxu0 %v13253_v59  ;;  %8942 = vmatpush3.msra.mxu1 %v4713_v9  ;;  %v13448_v31 = vadd.f32 %v8346_v43, %v8345_v36  ;;  %v13451_v20 = vsub.f32 %v648_v63, %v13409_v2  ;;  %v8348_v3 = vpop.f32.mrf.mxu1  ;;  %v18278_v59 = vand.u32 4294901760, %v13381_v0  ;;  %v18279_v63 = vld [vmem:[#allocation83_spill] sm:$0xff]  ;;  %v18284_v43 = vld [vmem:[#allocation60_spill] sm:$0xff] }
 0x23d   : > { %18274 = vst [vmem:[#allocation112_spill] sm:$0xff] %v13442_v26  ;;  %4052 = vmatmul.mubr.f32.gmra.mxu0 %v18254_v38  ;;  %4275 = vmatmul.mubr.f32.gmra.mxu1 %v18277_v19  ;;  %v8261_v36 = vadd.f32 %v8260_v33, %v8259_v1  ;;  %v18280_v38 = vand.u32 4294901760, %v13388_v34  ;;  %v13471_v28 = vadd.f32 %v13334_v30, %v2352_v27  ;;  %v645_v27 = vld [vmem:[#allocation5 + $0x298] sm:$0xff] }
 0x23e   : > { %18276 = vst [vmem:[#allocation102_spill] sm:$0xff] %v13451_v20  ;;  %v13459_v41 = vsub.f32 %v13381_v0, %v18278_v59  ;;  %4057 = vmatprep.mubr.f32.mxu0 %v18258_v22  ;;  %4280 = vmatprep.mubr.f32.mxu1 %v18279_v63  ;;  %v8262_v59 = vpop.f32.mrf.mxu0  ;;  %v8349_v9 = vpop.f32.mrf.mxu1  ;;  %v13477_v33 = vsub.f32 %v632_v29, %v13444_v14  ;;  %v18285_v22 = vld [vmem:[#allocation45_spill] sm:$0xff] }
 0x23f   : > { %v13467_v23 = vsub.f32 %v13388_v34, %v18280_v38  ;;  %18281 = vst [vmem:[#allocation43_spill] sm:$0xff] %v13471_v28  ;;  %8863 = vmatprep.subr.mxu0 %v13272_v52  ;;  %8943 = vmatprep.subr.mxu1 %v4832_v40  ;;  %v13479_v38 = vand.u32 4294901760, %v631_v7  ;;  %v2359_v34 = vadd.f32 %v8261_v36, %v18284_v43  ;;  %v4727_v40 = vand.u32 4294901760, %v13436_v54  ;;  %v18288_v54 = vld [vmem:[#allocation87_spill] sm:$0xff] }
 0x240   : > { %18282 = vst [vmem:[#allocation104_spill] sm:$0xff] %v13477_v33  ;;  %8864 = vmatpush3.msra.mxu0 %v13300_v55  ;;  %8944 = vmatpush3.msra.mxu1 %v4720_v8  ;;  %v13483_v30 = vadd.f32 %v8349_v9, %v8348_v3  ;;  %v8263_v1 = vpop.f32.mrf.mxu0  ;;  %v8351_v29 = vpop.f32.mrf.mxu1  ;;  %v4846_v0 = vand.u32 4294901760, %v13459_v41  ;;  %v18286_v52 = vand.u32 4294901760, %v13421_v13  ;;  %v13495_v8 = vand.u32 4294901760, %v647_v57  ;;  %v646_v3 = vld [vmem:[#allocation5 + $0x2a0] sm:$0xff] }
 0x241   : > { %18283 = vst [vmem:[#allocation38_spill] sm:$0xff] %v13479_v38  ;;  %4059 = vmatmul.mubr.f32.gmra.mxu0 %v18266_v58  ;;  %4282 = vmatmul.mubr.f32.gmra.mxu1 %v18285_v22  ;;  %v8264_v9 = vadd.f32 %v8263_v1, %v8262_v59  ;;  %v4734_v58 = vand.u32 4294901760, %v13467_v23  ;;  %v18289_v36 = vand.u32 4294901760, %v13427_v21  ;;  %v630_v41 = vld [vmem:[#allocation5 + $0x220] sm:$0xff]  ;;  %v18291_v28 = vand.u32 4294901760, %v13442_v26 }
 0x242   : > { %v13493_v55 = vsub.f32 %v13421_v13, %v18286_v52  ;;  %18287 = vst [vmem:[#allocation34_spill] sm:$0xff] %v13495_v8  ;;  %4064 = vmatprep.mubr.f32.mxu0 %v18269_v50  ;;  %4287 = vmatprep.mubr.f32.mxu1 %v18288_v54  ;;  %v13506_v52 = vadd.f32 %v13368_v45, %v2359_v34  ;;  %v8265_v13 = vpop.f32.mrf.mxu0  ;;  %v8352_v50 = vpop.f32.mrf.mxu1  ;;  %v18292_v23 = vand.u32 4294901760, %v13439_v4  ;;  %v629_v34 = vld [vmem:[#allocation5 + $0x218] sm:$0xff]  ;;  %v18302_v10 = vand.u32 4294901760, %v13477_v33 }
 0x243   : > { %v13503_v43 = vsub.f32 %v13427_v21, %v18289_v36  ;;  %8865 = vmatprep.subr.mxu0 %v13307_v49  ;;  %8945 = vmatprep.subr.mxu1 %v4839_v15  ;;  %v13512_v59 = vsub.f32 %v13442_v26, %v18291_v28  ;;  %v13521_v45 = vsub.f32 %v631_v7, %v13479_v38  ;;  %v18294_v28 = vand.u32 4294901760, %v13451_v20  ;;  %v18296_v36 = vld [vmem:[#allocation90_spill] sm:$0xff] }
 0x244   : > { %18290 = vst [vmem:[#allocation37_spill] sm:$0xff] %v13506_v52  ;;  %v13517_v1 = vsub.f32 %v13439_v4, %v18292_v23  ;;  %8866 = vmatpush3.msra.mxu0 %v13331_v61  ;;  %v2366_v15 = vadd.f32 %v8264_v9, %v13028_v39  ;;  %8946 = vmatpush3.msra.mxu1 %v4727_v40  ;;  %v13532_v23 = vand.u32 4294901760, %v646_v3  ;;  %v8266_v7 = vpop.f32.mrf.mxu0  ;;  %v8354_v4 = vpop.f32.mrf.mxu1  ;;  %v4853_v61 = vand.u32 4294901760, %v13493_v55  ;;  %v18300_v9 = vld [vmem:[#allocation91_spill] sm:$0xff] }
 0x245   : > { %18293 = vst [vmem:[#allocation106_spill] sm:$0xff] %v13521_v45  ;;  %v13525_v21 = vadd.f32 %v8352_v50, %v8351_v29  ;;  %v13530_v26 = vsub.f32 %v13451_v20, %v18294_v28  ;;  %4066 = vmatmul.mubr.f32.gmra.mxu0 %v18277_v19  ;;  %4289 = vmatmul.mubr.f32.gmra.mxu1 %v18296_v36  ;;  %v13540_v40 = vand.u32 4294901760, %v630_v41  ;;  %v13542_v29 = vand.u32 4294901760, %v645_v27  ;;  %v644_v20 = vld [vmem:[#allocation5 + $0x290] sm:$0xff] }
 0x246   : > { %18295 = vst [vmem:[#allocation39_spill] sm:$0xff] %v13532_v23  ;;  %v13538_v39 = vsub.f32 %v647_v57, %v13495_v8  ;;  %4071 = vmatprep.mubr.f32.mxu0 %v18279_v63  ;;  %4294 = vmatprep.mubr.f32.mxu1 %v18300_v9  ;;  %v8267_v50 = vadd.f32 %v8266_v7, %v8265_v13  ;;  %v4741_v19 = vand.u32 4294901760, %v13503_v43  ;;  %v13547_v28 = vand.u32 4294901760, %v629_v34  ;;  %v8268_v55 = vpop.f32.mrf.mxu0  ;;  %v8355_v57 = vpop.f32.mrf.mxu1  ;;  %v628_v7 = vld [vmem:[#allocation5 + $0x210] sm:$0xff]  ;;  %v643_v63 = vld [vmem:[#allocation5 + $0x288] sm:$0xff] }
 0x247   : > { %18298 = vst [vmem:[#allocation42_spill] sm:$0xff] %v13540_v40  ;;  %18299 = vst [vmem:[#allocation36_spill] sm:$0xff] %v13542_v29  ;;  %v13550_v49 = vadd.f32 %v13404_v56, %v2366_v15  ;;  %8867 = vmatprep.subr.mxu0 %v13345_v53  ;;  %8947 = vmatprep.subr.mxu1 %v4846_v0  ;;  %v4860_v52 = vand.u32 4294901760, %v13512_v59  ;;  %v13558_v13 = vsub.f32 %v13477_v33, %v18302_v10  ;;  %v18303_v56 = vld [vmem:[#allocation64_spill] sm:$0xff]  ;;  %v18305_v10 = vld [vmem:[#allocation93_spill] sm:$0xff] }
 0x248   : > { %18297 = vst [vmem:[#allocation20_spill] sm:$0xff] %v13538_v39  ;;  %8868 = vmatpush3.msra.mxu0 %v13349_v16  ;;  %v2373_v15 = vadd.f32 %v8267_v50, %v18303_v56  ;;  %8948 = vmatpush3.msra.mxu1 %v4734_v58  ;;  %v13563_v0 = vadd.f32 %v8355_v57, %v8354_v4  ;;  %v8269_v43 = vpop.f32.mrf.mxu0  ;;  %v8357_v33 = vpop.f32.mrf.mxu1  ;;  %v13578_v50 = vand.u32 4294901760, %v644_v20  ;;  %v13585_v56 = vand.u32 4294901760, %v628_v7 }
 0x249   : > { %18301 = vst [vmem:[#allocation48_spill] sm:$0xff] %v13550_v49  ;;  %v13567_v59 = vsub.f32 %v646_v3, %v13532_v23  ;;  %v627_v49 = vld [vmem:[#allocation5 + $0x208] sm:$0xff]  ;;  %4073 = vmatmul.mubr.f32.gmra.mxu0 %v18285_v22  ;;  %4296 = vmatmul.mubr.f32.gmra.mxu1 %v18305_v10  ;;  %v13573_v58 = vsub.f32 %v630_v41, %v13540_v40  ;;  %v13592_v62 = vand.u32 4294901760, %v643_v63 }
 0x24a   : > { %v13576_v4 = vsub.f32 %v645_v27, %v13542_v29  ;;  %4078 = vmatprep.mubr.f32.mxu0 %v18288_v54  ;;  %v18308_v3 = vld [vmem:[#allocation52_spill] sm:$0xff]  ;;  %v8270_v57 = vadd.f32 %v8269_v43, %v8268_v55  ;;  %v13583_v22 = vsub.f32 %v629_v34, %v13547_v28  ;;  %18310 = vst [vmem:[#allocation40_spill] sm:$0xff] %v13585_v56  ;;  %v8271_v27 = vpop.f32.mrf.mxu0  ;;  %v8358_v41 = vpop.f32.mrf.mxu1  ;;  %v13594_v54 = vand.u32 4294901760, %v627_v49  ;;  %v18315_v34 = vld [vmem:[#allocation53_spill] sm:$0xff] }
 0x24b   : > { %18304 = vst [vmem:[#allocation110_spill] sm:$0xff] %v13567_v59  ;;  %18306 = vst [vmem:[#allocation49_spill] sm:$0xff] %v13573_v58  ;;  %4301 = vmatprep.mubr.f32.mxu1 %v18308_v3  ;;  %v13588_v53 = vadd.f32 %v13448_v31, %v2373_v15  ;;  %8869 = vmatprep.subr.mxu0 %v13383_v48  ;;  %v13596_v55 = vand.u32 4294901760, %v642_v35  ;;  %v13600_v31 = vadd.f32 %v8358_v41, %v8357_v33  ;;  %v626_v48 = vld [vmem:[#allocation5 + $0x200] sm:$0xff] }
 0x24c   : > { %18307 = vst [vmem:[#allocation11_spill] sm:$0xff] %v13576_v4  ;;  %18309 = vst [vmem:[#allocation44_spill] sm:$0xff] %v13583_v22  ;;  %8949 = vmatprep.subr.mxu1 %v4853_v61  ;;  %8870 = vmatpush3.msra.mxu0 %v13390_v5  ;;  %v2380_v43 = vadd.f32 %v8270_v57, %v18315_v34  ;;  %v18316_v15 = vand.u32 4294901760, %v13521_v45  ;;  %v8272_v46 = vpop.f32.mrf.mxu0  ;;  %v8360_v18 = vpop.f32.mrf.mxu1  ;;  %v18318_v5 = vand.u32 4294901760, %v13538_v39  ;;  %v18320_v34 = vld [vmem:[#allocation101_spill] sm:$0xff] }
 0x24d   : > { %18311 = vst [vmem:[#allocation51_spill] sm:$0xff] %v13588_v53  ;;  %18312 = vst [vmem:[#allocation50_spill] sm:$0xff] %v13592_v62  ;;  %8950 = vmatpush3.msra.mxu1 %v4741_v19  ;;  %4080 = vmatmul.mubr.f32.gmra.mxu0 %v18296_v36  ;;  %v18317_v53 = vld [vmem:[#allocation98_spill] sm:$0xff]  ;;  %v13618_v41 = vsub.f32 %v644_v20, %v13578_v50  ;;  %v8273_v36 = vadd.f32 %v8272_v46, %v8271_v27  ;;  %v13639_v27 = vand.u32 4294901760, %v626_v48 }
 0x24e   : > { %18313 = vst [vmem:[#allocation46_spill] sm:$0xff] %v13594_v54  ;;  %18314 = vst [vmem:[#allocation47_spill] sm:$0xff] %v13596_v55  ;;  %v13605_v61 = vsub.f32 %v13521_v45, %v18316_v15  ;;  %4303 = vmatmul.mubr.f32.gmra.mxu1 %v18317_v53  ;;  %v13613_v19 = vsub.f32 %v13538_v39, %v18318_v5  ;;  %4085 = vmatprep.mubr.f32.mxu0 %v18300_v9  ;;  %v8274_v57 = vpop.f32.mrf.mxu0  ;;  %v8361_v33 = vpop.f32.mrf.mxu1 }
 0x24f   : > { %18319 = vst [vmem:[#allocation56_spill] sm:$0xff] %v13618_v41  ;;  %4308 = vmatprep.mubr.f32.mxu1 %v18320_v34  ;;  %v13624_v16 = vsub.f32 %v628_v7, %v13585_v56  ;;  %v13627_v5 = vadd.f32 %v13483_v30, %v2380_v43  ;;  %8871 = vmatprep.subr.mxu0 %v13398_v32  ;;  %18325 = vst [vmem:[#allocation58_spill] sm:$0xff] %v13639_v27  ;;  %v18326_v7 = vand.u32 4294901760, %v13517_v1 }
 0x250   : > { %8951 = vmatprep.subr.mxu1 %v4860_v52  ;;  %v13631_v20 = vsub.f32 %v643_v63, %v13592_v62  ;;  %v13634_v9 = vsub.f32 %v627_v49, %v13594_v54  ;;  %v13637_v46 = vsub.f32 %v642_v35, %v13596_v55  ;;  %8872 = vmatpush3.msra.mxu0 %v13400_v60  ;;  %v4762_v63 = vand.u32 4294901760, %v13605_v61  ;;  %v18328_v35 = vld [vmem:[#allocation15_spill] sm:$0xff]  ;;  %v8275_v15 = vpop.f32.mrf.mxu0  ;;  %v8363_v45 = vpop.f32.mrf.mxu1 }
 0x251   : > { %18321 = vst [vmem:[#allocation57_spill] sm:$0xff] %v13624_v16  ;;  %v2387_v30 = vadd.f32 %v8273_v36, %v13104_v24  ;;  %8952 = vmatpush3.msra.mxu1 %v18326_v7  ;;  %v13645_v52 = vadd.f32 %v8361_v33, %v8360_v18  ;;  %v18327_v43 = vand.u32 4294901760, %v13567_v59  ;;  %4087 = vmatmul.mubr.f32.gmra.mxu0 %v18305_v10  ;;  %v4874_v24 = vand.u32 4294901760, %v13613_v19  ;;  %v18331_v10 = vld [vmem:[#allocation105_spill] sm:$0xff] }
 0x252   : > { %18322 = vst [vmem:[#allocation54_spill] sm:$0xff] %v13631_v20  ;;  %18323 = vst [vmem:[#allocation55_spill] sm:$0xff] %v13634_v9  ;;  %4310 = vmatmul.mubr.f32.gmra.mxu1 %v18328_v35  ;;  %v18329_v1 = vand.u32 4294901760, %v13573_v58  ;;  %v18330_v61 = vand.u32 4294901760, %v13576_v4  ;;  %4092 = vmatprep.mubr.f32.mxu0 %v18308_v3  ;;  %v8276_v7 = vadd.f32 %v8275_v15, %v8274_v57  ;;  %v8277_v36 = vpop.f32.mrf.mxu0  ;;  %v8364_v3 = vpop.f32.mrf.mxu1  ;;  %v18336_v57 = vld [vmem:[#allocation18_spill] sm:$0xff] }
 0x253   : > { %18324 = vst [vmem:[#allocation59_spill] sm:$0xff] %v13637_v46  ;;  %v13651_v49 = vsub.f32 %v13567_v59, %v18327_v43  ;;  %4315 = vmatprep.mubr.f32.mxu1 %v18331_v10  ;;  %v18332_v43 = vand.u32 4294901760, %v13583_v22  ;;  %8873 = vmatprep.subr.mxu0 %v13409_v2 }
 0x254   : > { %v13659_v18 = vsub.f32 %v13573_v58, %v18329_v1  ;;  %v13664_v33 = vsub.f32 %v13576_v4, %v18330_v61  ;;  %v13676_v58 = vadd.f32 %v13525_v21, %v2387_v30  ;;  %v18333_v61 = vand.u32 4294901760, %v13530_v26  ;;  %8874 = vmatpush3.msra.mxu0 %v13444_v14  ;;  %v8278_v15 = vpop.f32.mrf.mxu0 }
 0x255   : > { %v13672_v19 = vsub.f32 %v13583_v22, %v18332_v43  ;;  %v13685_v43 = vsub.f32 %v626_v48, %v13639_v27  ;;  %v2394_v21 = vadd.f32 %v8276_v7, %v13130_v12  ;;  %v18335_v30 = vand.u32 4294901760, %v13558_v13  ;;  %4094 = vmatmul.mubr.f32.gmra.mxu0 %v18317_v53  ;;  %v8366_v48 = vpop.f32.mrf.mxu1  ;;  %8875 = vmatprep.subr.mxu0 %v13495_v8 }
 0x256   : > { %8953 = vmatprep.subr.mxu1 %v18333_v61  ;;  %v13691_v26 = vadd.f32 %v8364_v3, %v8363_v45  ;;  %v4881_v61 = vand.u32 4294901760, %v13651_v49  ;;  %v271_v4 = vadd.s32 776, %v18033_v47  ;;  %4317 = vmatmul.mubr.f32.gmra.mxu1 %v18336_v57  ;;  %v4769_v1 = vand.u32 4294901760, %v13659_v18  ;;  %v18338_v49 = vld [vmem:[#allocation108_spill] sm:$0xff] }
 0x257   : > { %18334 = vst [vmem:[#allocation65_spill] sm:$0xff] %v13685_v43  ;;  %8954 = vmatpush3.msra.mxu1 %v18335_v30  ;;  %v18337_v12 = vand.u32 4294901760, %v13618_v41  ;;  %v287_v45 = vadd.s32 904, %v18033_v47  ;;  %4099 = vmatprep.mubr.f32.mxu0 %v18320_v34  ;;  %v8279_v53 = vadd.f32 %v8278_v15, %v8277_v36  ;;  %v18339_v3 = vand.u32 4294901760, %v13624_v16  ;;  %v8367_v22 = vpop.f32.mrf.mxu1 }
 0x258   : > { %4322 = vmatprep.mubr.f32.mxu1 %v18338_v49  ;;  %v13714_v30 = vadd.f32 %v13563_v0, %v2394_v21  ;;  %8955 = vmatprep.subr.mxu1 %v4874_v24  ;;  %v18340_v34 = vand.u32 4294901760, %v13631_v20  ;;  %v18341_v36 = vand.u32 4294901760, %v13634_v9  ;;  %v13735_v7 = vadd.f32 %v8367_v22, %v8366_v48  ;;  %v18344_v22 = vld [vmem:[#allocation111_spill] sm:$0xff] }
 0x259   : > { %v13702_v13 = vsub.f32 %v13618_v41, %v18337_v12  ;;  %v13711_v18 = vsub.f32 %v13624_v16, %v18339_v3  ;;  %v8280_v12 = vpop.f32.mrf.mxu0  ;;  %v18342_v3 = vand.u32 4294901760, %v13637_v46  ;;  %8876 = vmatpush3.msra.mxu0 %v13479_v38  ;;  %v2401_v24 = vadd.f32 %v8279_v53, %v13153_v25  ;;  %8956 = vmatpush3.msra.mxu1 %v4762_v63 }
 0x25a   : > { %v13720_v41 = vsub.f32 %v13631_v20, %v18340_v34  ;;  %v13725_v15 = vsub.f32 %v13634_v9, %v18341_v36  ;;  %vm403_vm2 = vcmp.eq.s32.totalorder %v271_v4, %v13266_v6  ;;  %v272_v34 = vadd.s32 784, %v18033_v47  ;;  %4101 = vmatmul.mubr.f32.gmra.mxu0 %v18328_v35  ;;  %v18343_v36 = vld [vmem:[#allocation109_spill] sm:$0xff]  ;;  %8877 = vmatprep.subr.mxu0 %v13532_v23 }
 0x25b   : > { %v13730_v0 = vsub.f32 %v13637_v46, %v18342_v3  ;;  %4324 = vmatmul.mubr.f32.gmra.mxu1 %v18343_v36  ;;  %v8281_v9 = vpop.f32.mrf.mxu0  ;;  %v8369_v3 = vpop.f32.mrf.mxu1  ;;  %vm419_vm3 = vcmp.eq.s32.totalorder %v287_v45, %v13266_v6  ;;  %v288_v21 = vadd.s32 912, %v18033_v47  ;;  %v273_v46 = vadd.s32 792, %v18033_v47  ;;  %4106 = vmatprep.mubr.f32.mxu0 %v18331_v10 }
 0x25c   : > { %v289_v25 = vadd.s32 920, %v18033_v47  ;;  %4329 = vmatprep.mubr.f32.mxu1 %v18344_v22  ;;  %v8282_v63 = vadd.f32 %v8281_v9, %v8280_v12  ;;  %v4895_v48 = vand.u32 4294901760, %v13702_v13  ;;  %v13750_v53 = vadd.f32 %v13600_v31, %v2401_v24  ;;  %8957 = vmatprep.subr.mxu1 %v4881_v61  ;;  %v18346_v24 = vld [vmem:[#allocation33_spill] sm:$0xff] }
 0x25d   : > { %v8283_v20 = vpop.f32.mrf.mxu0  ;;  %v8370_v16 = vpop.f32.mrf.mxu1  ;;  %v18345_v10 = vand.u32 4294901760, %v13685_v43  ;;  %v13763_v13 = vsel %vm403_vm2, 1.0, %v18053_v51  ;;  %8878 = vmatpush3.msra.mxu0 %v13540_v40  ;;  %8958 = vmatpush3.msra.mxu1 %v4769_v1  ;;  %v13772_v12 = vsel %vm419_vm3, 1.0, %v18053_v51  ;;  %vm404_vm4 = vcmp.eq.s32.totalorder %v272_v34, %v13266_v6 }
 0x25e   : > { %v2408_v31 = vadd.f32 %v8282_v63, %v13177_v44  ;;  %v13767_v61 = vadd.f32 %v8370_v16, %v8369_v3  ;;  %4108 = vmatmul.mubr.f32.gmra.mxu0 %v18336_v57  ;;  %v10133_v4 = vpop.trf.xlu0  ;;  %vm420_vm5 = vcmp.eq.s32.totalorder %v288_v21, %v13266_v6  ;;  %vm405_vm6 = vcmp.eq.s32.totalorder %v273_v46, %v13266_v6  ;;  %v18347_v44 = vld [vmem:[#allocation113_spill] sm:$0xff] }
 0x25f   : > { %v13758_v9 = vsub.f32 %v13685_v43, %v18345_v10  ;;  %4331 = vmatmul.mubr.f32.gmra.mxu1 %v18346_v24  ;;  %v8284_v10 = vpop.f32.mrf.mxu0  ;;  %vm421_vm7 = vcmp.eq.s32.totalorder %v289_v25, %v13266_v6  ;;  %4113 = vmatprep.mubr.f32.mxu0 %v18338_v49  ;;  %v10137_v16 = vunpack.i.h.bf16 %v10133_v4  ;;  %v10134_v1 = vunpack.i.l.bf16 %v10133_v4  ;;  %v8372_v45 = vpop.f32.mrf.mxu1  ;;  %v18359_v49 = vld [vmem:[#allocation115_spill] sm:$0xff] }
 0x260   : > { %4336 = vmatprep.mubr.f32.mxu1 %v18347_v44  ;;  %8879 = vmatprep.subr.mxu0 %v13542_v29  ;;  %v18348_v57 = vand.u32 4294901760, %v13664_v33  ;;  %v8285_v3 = vadd.f32 %v8284_v10, %v8283_v20  ;;  %v13788_v59 = vadd.f32 %v13645_v52, %v2408_v31  ;;  %v18350_v4 = vand.u32 4294901760, %v13672_v19  ;;  %v18354_v31 = vld [vmem:[#allocation114_spill] sm:$0xff] }
 0x261   : > { %v8286_v63 = vpop.f32.mrf.mxu0  ;;  %v13792_v35 = vand.u32 4294901760, %v10137_v16  ;;  %8880 = vmatpush3.msra.mxu0 %v13547_v28  ;;  %v8373_v43 = vpop.f32.mrf.mxu1  ;;  %v13797_v33 = vand.u32 4294901760, %v10134_v1  ;;  %v13802_v20 = vsel %vm404_vm4, 1.0, %v18053_v51  ;;  %v13807_v52 = vsel %vm420_vm5, 1.0, %v18053_v51 }
 0x262   : > { %8959 = vmatprep.subr.mxu1 %v18348_v57  ;;  %18352 = vst [vmem:[#allocation67_spill] sm:$0xff] %v13802_v20  ;;  %18353 = vst [vmem:[#allocation63_spill] sm:$0xff] %v13807_v52  ;;  %4115 = vmatmul.mubr.f32.gmra.mxu0 %v18343_v36  ;;  %v10138_v10 = vpop.trf.xlu0  ;;  %v2415_v19 = vadd.f32 %v8285_v3, %v13206_v17  ;;  %v13817_v34 = vsel %vm405_vm6, 1.0, %v18053_v51  ;;  %v13822_v21 = vsel %vm421_vm7, 1.0, %v18053_v51  ;;  %v18365_v20 = vand.u32 4294901760, %v13725_v15 }
 0x263   : > { %18349 = vst [vmem:[#allocation61_spill] sm:$0xff] %v13792_v35  ;;  %8960 = vmatpush3.msra.mxu1 %v18350_v4  ;;  %18351 = vst [vmem:[#allocation62_spill] sm:$0xff] %v13797_v33  ;;  %v8287_v57 = vpop.f32.mrf.mxu0  ;;  %v13812_v4 = vadd.f32 %v8373_v43, %v8372_v45  ;;  %v13825_v36 = vsub.f32 %v10137_v16, %v13792_v35  ;;  %4120 = vmatprep.mubr.f32.mxu0 %v18344_v22  ;;  %v10142_v17 = vunpack.i.h.bf16 %v10138_v10  ;;  %v8487_v43 = vpop.f32.mrf.mxu1 }
 0x264   : > { %4338 = vmatmul.mubr.f32.gmra.mxu1 %v18354_v31  ;;  %18356 = vst [vmem:[#allocation69_spill] sm:$0xff] %v13817_v34  ;;  %18357 = vst [vmem:[#allocation70_spill] sm:$0xff] %v13822_v21  ;;  %v10139_v45 = vunpack.i.l.bf16 %v10138_v10  ;;  %8961 = vmatprep.subr.mxu1 %v4895_v48  ;;  %v8288_v46 = vadd.f32 %v8287_v57, %v8286_v63  ;;  %v13831_v38 = vsub.f32 %v10134_v1, %v13797_v33  ;;  %v18389_v34 = vld [vmem:[#allocation13_spill] sm:$0xff] }
 0x265   : > { %18355 = vst [vmem:[#allocation68_spill] sm:$0xff] %v13812_v4  ;;  %18358 = vst [vmem:[#allocation73_spill] sm:$0xff] %v13825_v36  ;;  %4343 = vmatprep.mubr.f32.mxu1 %v18359_v49  ;;  %8881 = vmatprep.subr.mxu0 %v13578_v50  ;;  %v8289_v3 = vpop.f32.mrf.mxu0  ;;  %v13834_v6 = vadd.f32 %v13691_v26, %v2415_v19  ;;  %v18360_v22 = vand.u32 4294901760, %v13711_v18  ;;  %v8488_v16 = vpop.f32.mrf.mxu1  ;;  %v13840_v10 = vand.u32 4294901760, %v10142_v17  ;;  %v13845_v63 = vadd.s32 800, %v18033_v47  ;;  %v18362_v26 = vld [vmem:[#allocation116_spill] sm:$0xff] }
 0x266   : > { %8882 = vmatpush3.msra.mxu0 %v13585_v56  ;;  %v10143_v1 = vpop.trf.xlu0  ;;  %v2422_v19 = vadd.f32 %v8288_v46, %v13243_v37  ;;  %v13850_v57 = vadd.f32 %v8488_v16, %v8487_v43  ;;  %v17230_v25 = vand.u32 4294901760, %v13831_v38  ;;  %v18364_v4 = vand.u32 4294901760, %v13720_v41 }
 0x267   : > { %8962 = vmatpush3.msra.mxu1 %v18360_v22  ;;  %18361 = vst [vmem:[#allocation74_spill] sm:$0xff] %v13840_v10  ;;  %4122 = vmatmul.mubr.f32.gmra.mxu0 %v18346_v24  ;;  %v8290_v18 = vpop.f32.mrf.mxu0  ;;  %v13852_v22 = vand.u32 4294901760, %v10139_v45  ;;  %v10147_v48 = vunpack.i.h.bf16 %v10143_v1  ;;  %v8490_v52 = vpop.f32.mrf.mxu1  ;;  %v10144_v37 = vunpack.i.l.bf16 %v10143_v1  ;;  %v13867_v41 = vadd.s32 928, %v18033_v47 }
 0x268   : > { %4345 = vmatmul.mubr.f32.gmra.mxu1 %v18362_v26  ;;  %8963 = vmatprep.subr.mxu1 %v18364_v4  ;;  %v8291_v43 = vadd.f32 %v8290_v18, %v8289_v3  ;;  %v4449_v15 = vsub.f32 %v13831_v38, %v17230_v25  ;;  %v13878_v3 = vsub.f32 %v10142_v17, %v13840_v10  ;;  %v18370_v1 = vand.u32 4294901760, %v13825_v36 }
 0x269   : > { %18363 = vst [vmem:[#allocation75_spill] sm:$0xff] %v13852_v22  ;;  %4127 = vmatprep.mubr.f32.mxu0 %v18347_v44  ;;  %8964 = vmatpush3.msra.mxu1 %v18365_v20  ;;  %v8292_v46 = vpop.f32.mrf.mxu0  ;;  %v13864_v16 = vsub.f32 %v10139_v45, %v13852_v22  ;;  %v18367_v44 = vand.u32 4294901760, %v13730_v0  ;;  %v8491_v20 = vpop.f32.mrf.mxu1  ;;  %v13875_v4 = vand.u32 4294901760, %v10147_v48  ;;  %v13881_v45 = vadd.f32 %v13735_v7, %v2422_v19 }
 0x26a   : > { %8883 = vmatprep.subr.mxu0 %v13592_v62  ;;  %4912 = vmatprep.mubr.f32.mxu1 %v13797_v33  ;;  %18369 = vst [vmem:[#allocation80_spill] sm:$0xff] %v13878_v3  ;;  %v4455_v0 = vsub.f32 %v13825_v36, %v18370_v1  ;;  %v18371_v18 = vand.u32 4294901760, %v13758_v9  ;;  %v2429_v24 = vadd.f32 %v8291_v43, %v13281_v11  ;;  %v13894_v17 = vand.u32 4294901760, %v10144_v37  ;;  %v18376_v43 = vld [vmem:[#allocation85_spill] sm:$0xff] }
 0x26b   : > { %18366 = vst [vmem:[#allocation76_spill] sm:$0xff] %v13864_v16  ;;  %8965 = vmatprep.subr.mxu1 %v18367_v44  ;;  %18368 = vst [vmem:[#allocation78_spill] sm:$0xff] %v13875_v4  ;;  %4129 = vmatmul.mubr.f32.gmra.mxu0 %v18354_v31  ;;  %v13889_v44 = vpop.trf.xlu0  ;;  %v8293_v25 = vpop.f32.mrf.mxu0  ;;  %v13892_v33 = vadd.f32 %v8491_v20, %v8490_v52  ;;  %v17238_v52 = vand.u32 4294901760, %v13864_v16  ;;  %v4450_v1 = vand.u32 4294901760, %v4449_v15 }
 0x26c   : > { %8966 = vmatpush3.msra.mxu1 %v18371_v18  ;;  %18372 = vst [vmem:[#allocation81_spill] sm:$0xff] %v13894_v17  ;;  %8884 = vmatpush3.msra.mxu0 %v13594_v54  ;;  %v10149_v9 = vunpack.i.l.bf16 %v13889_v44  ;;  %v8493_v19 = vpop.f32.mrf.mxu1  ;;  %v8294_v31 = vadd.f32 %v8293_v25, %v8292_v46  ;;  %v13905_v20 = vsub.f32 %v10144_v37, %v13894_v17  ;;  %v4456_v21 = vand.u32 4294901760, %v4455_v0 }
 0x26d   : > { %4914 = vmatmul.mubr.f32.vlgmr.msra.gmra.mxu1 %v13792_v35  ;;  %4134 = vmatprep.mubr.f32.mxu0 %v18359_v49  ;;  %v8407_v11 = vpop.f32.mrf.mxu0  ;;  %v13912_v49 = vsub.f32 %v10147_v48, %v13875_v4  ;;  %v13915_v25 = vadd.f32 %v13767_v61, %v2429_v24  ;;  %v4464_v15 = vsub.f32 %v13864_v16, %v17238_v52  ;;  %v18379_v52 = vand.u32 4294901760, %v13878_v3 }
 0x26e   : > { %8885 = vmatprep.subr.mxu0 %v13596_v55  ;;  %18373 = vst [vmem:[#allocation83_spill] sm:$0xff] %v13905_v20  ;;  %4919 = vmatprep.mubr.f32.mxu1 %v13852_v22  ;;  %v8494_v18 = vpop.f32.mrf.mxu1  ;;  %v13909_v7 = vand.u32 4294901760, %v10149_v9  ;;  %v13919_v37 = vadd.f32 %v8294_v31, %v13317_v42  ;;  %v18378_v42 = vld [vmem:[#allocation14_spill] sm:$0xff] }
 0x26f   : > { %8886 = vmatpush3.msra.mxu0 %v13639_v27  ;;  %18375 = vst [vmem:[#allocation45_spill] sm:$0xff] %v13912_v49  ;;  %v10153_v46 = vpop.trf.xlu0  ;;  %v8408_v22 = vpop.f32.mrf.mxu0  ;;  %v13925_v35 = vadd.f32 %v8494_v18, %v8493_v19  ;;  %9095 = vmatprep.subr.mxu1 %v18378_v42  ;;  %v4470_v19 = vsub.f32 %v13878_v3, %v18379_v52  ;;  %v18380_v18 = vunpack.i.h.bf16 %v13889_v44  ;;  %v4465_v52 = vand.u32 4294901760, %v4464_v15  ;;  %v18387_v42 = vld [vmem:[#allocation23_spill] sm:$0xff] }
 0x270   : > { %18374 = vst [vmem:[#allocation60_spill] sm:$0xff] %v13909_v7  ;;  %4136 = vmatmul.mubr.f32.gmra.mxu0 %v18362_v26  ;;  %9015 = vmatprep.subr.mxu0 %v18376_v43  ;;  %v10157_v61 = vunpack.i.h.bf16 %v10153_v46  ;;  %v10154_v26 = vunpack.i.l.bf16 %v10153_v46  ;;  %v8496_v24 = vpop.f32.mrf.mxu1  ;;  %v8409_v31 = vadd.f32 %v8408_v22, %v8407_v11  ;;  %v13945_v22 = vsub.f32 %v10149_v9, %v13909_v7 }
 0x271   : > { %18377 = vst [vmem:[#allocation87_spill] sm:$0xff] %v13925_v35  ;;  %4921 = vmatmul.mubr.f32.gmra.mxu1 %v13840_v10  ;;  %4451 = vmatprep.mubr.f32.mxu0 %v4450_v1  ;;  %v8410_v43 = vpop.f32.mrf.mxu0  ;;  %v13936_v48 = vand.u32 4294901760, %v18380_v18  ;;  %v18382_v10 = vld [vmem:[#allocation79_spill] sm:$0xff]  ;;  %v18386_v11 = vpack.i.bf16 %v13763_v13, %v13772_v12  ;;  %v18388_v3 = vand.u32 4294901760, %v13905_v20  ;;  %v18391_v13 = vld [vmem:[#allocation22_spill] sm:$0xff] }
 0x272   : > { %4926 = vmatprep.mubr.f32.mxu1 %v13894_v17  ;;  %9096 = vmatpush3.msra.mxu1 %v18382_v10  ;;  %v8497_v1 = vpop.f32.mrf.mxu1  ;;  %v13939_v46 = vand.u32 4294901760, %v10154_v26  ;;  %v13942_v17 = vand.u32 4294901760, %v10157_v61  ;;  %18385 = vst [vmem:[#allocation93_spill] sm:$0xff] %v13945_v22  ;;  %v13953_v10 = vadd.f32 %v8409_v31, %v18387_v42 }
 0x273   : > { %18381 = vst [vmem:[#allocation90_spill] sm:$0xff] %v13936_v48  ;;  %10216 = vxpose.xlu1.b32.cont [2/16] %v18386_v11, 128  ;;  %v13950_v18 = vpop.trf.xlu0  ;;  %v4479_v0 = vsub.f32 %v13905_v20, %v18388_v3  ;;  %9097 = vmatprep.subr.mxu1 %v18389_v34  ;;  %v8411_v16 = vpop.f32.mrf.mxu0  ;;  %v13959_v9 = vadd.f32 %v8497_v1, %v8496_v24  ;;  %v18392_v3 = vand.u32 4294901760, %v13912_v49  ;;  %v18393_v1 = vunpack.i.h.bf16 %v13889_v44 }
 0x274   : > { %18383 = vst [vmem:[#allocation91_spill] sm:$0xff] %v13939_v46  ;;  %18384 = vst [vmem:[#allocation64_spill] sm:$0xff] %v13942_v17  ;;  %4457 = vmatmul.mubr.f32.vlgmr.msra.gmra.mxu0 %v4456_v21  ;;  %v10159_v12 = vunpack.i.l.bf16 %v13950_v18  ;;  %v4471_v21 = vand.u32 4294901760, %v4470_v19  ;;  %v8499_v15 = vpop.f32.mrf.mxu1  ;;  %v8412_v42 = vadd.f32 %v8411_v16, %v8410_v43  ;;  %v18395_v19 = vld [vmem:[#allocation82_spill] sm:$0xff]  ;;  %v13980_v43 = vsub.f32 %v10154_v26, %v13939_v46 }
 0x275   : > { %18390 = vst [vmem:[#allocation52_spill] sm:$0xff] %v13959_v9  ;;  %4928 = vmatmul.mubr.f32.gmra.mxu1 %v13875_v4  ;;  %9016 = vmatpush3.msra.mxu0 %v18391_v13  ;;  %v8413_v31 = vpop.f32.mrf.mxu0  ;;  %v4485_v11 = vsub.f32 %v13912_v49, %v18392_v3  ;;  %v13972_v4 = vsub.f32 %v18393_v1, %v13936_v48  ;;  %v10162_v13 = vunpack.i.h.bf16 %v13950_v18  ;;  %v4480_v24 = vand.u32 4294901760, %v4479_v0  ;;  %v18400_v1 = vld [vmem:[#allocation29_spill] sm:$0xff]  ;;  %v18417_v9 = vld [vmem:[#allocation88_spill] sm:$0xff] }
 0x276   : > { %4466 = vmatprep.mubr.f32.mxu0 %v4465_v52  ;;  %4933 = vmatprep.mubr.f32.mxu1 %v13909_v7  ;;  %v18396_v52 = vld [vmem:[#allocation25_spill] sm:$0xff]  ;;  %v8500_v7 = vpop.f32.mrf.mxu1  ;;  %v13977_v16 = vand.u32 4294901760, %v10159_v12  ;;  %18398 = vst [vmem:[#allocation101_spill] sm:$0xff] %v13980_v43  ;;  %v13983_v3 = vsub.f32 %v10157_v61, %v13942_v17  ;;  %v13988_v49 = vadd.f32 %v8412_v42, %v18400_v1  ;;  %v18401_v18 = vand.u32 4294901760, %v13945_v22 }
 0x277   : > { %18394 = vst [vmem:[#allocation53_spill] sm:$0xff] %v13972_v4  ;;  %9017 = vmatprep.subr.mxu0 %v18395_v19  ;;  %9098 = vmatpush3.msra.mxu1 %v18396_v52  ;;  %v13985_v44 = vpop.trf.xlu0  ;;  %v18402_v52 = vld [vmem:[#allocation84_spill] sm:$0xff]  ;;  %v8414_v34 = vpop.f32.mrf.mxu0  ;;  %v13994_v20 = vadd.f32 %v8500_v7, %v8499_v15  ;;  %v18404_v61 = vld [vmem:[#allocation89_spill] sm:$0xff]  ;;  %v4486_v42 = vand.u32 4294901760, %v4485_v11  ;;  %v17265_v7 = vand.u32 4294901760, %v13980_v43  ;;  %v18405_v15 = vld [vmem:[#allocation71_spill] sm:$0xff] }
 0x278   : > { %18397 = vst [vmem:[#allocation98_spill] sm:$0xff] %v13977_v16  ;;  %18399 = vst [vmem:[#allocation15_spill] sm:$0xff] %v13983_v3  ;;  %4472 = vmatmul.mubr.f32.gmra.mxu0 %v4471_v21  ;;  %v4494_v19 = vsub.f32 %v13945_v22, %v18401_v18  ;;  %9099 = vmatprep.subr.mxu1 %v18402_v52  ;;  %v10164_v0 = vunpack.i.l.bf16 %v13985_v44  ;;  %v8502_v21 = vpop.f32.mrf.mxu1  ;;  %v8415_v1 = vadd.f32 %v8414_v34, %v8413_v31  ;;  %v18406_v22 = vld [vmem:[#allocation16_spill] sm:$0xff] }
 0x279   : > { %18403 = vst [vmem:[#allocation105_spill] sm:$0xff] %v13994_v20  ;;  %4935 = vmatmul.mubr.f32.gmra.mxu1 %v13936_v48  ;;  %9018 = vmatpush3.msra.mxu0 %v18404_v61  ;;  %v8416_v18 = vpop.f32.mrf.mxu0  ;;  %v17264_v52 = vand.u32 4294901760, %v13972_v4  ;;  %v14005_v61 = vand.u32 4294901760, %v10162_v13  ;;  %v18409_v31 = vld [vmem:[#allocation24_spill] sm:$0xff]  ;;  %v18416_v20 = vld [vmem:[#allocation97_spill] sm:$0xff] }
 0x27a   : > { %4481 = vmatprep.mubr.f32.mxu0 %v4480_v24  ;;  %4940 = vmatprep.mubr.f32.mxu1 %v13939_v46  ;;  %v4495_v48 = vand.u32 4294901760, %v4494_v19  ;;  %v8503_v26 = vpop.f32.mrf.mxu1  ;;  %v14009_v24 = vsub.f32 %v10159_v12, %v13977_v16  ;;  %v14014_v11 = vadd.f32 %v8415_v1, %v18409_v31  ;;  %v4509_v46 = vsub.f32 %v13980_v43, %v17265_v7  ;;  %v18412_v12 = vld [vmem:[#allocation86_spill] sm:$0xff] }
 0x27b   : > { %9019 = vmatprep.subr.mxu0 %v18405_v15  ;;  %9100 = vmatpush3.msra.mxu1 %v18406_v22  ;;  %18407 = vst [vmem:[#allocation18_spill] sm:$0xff] %v14005_v61  ;;  %v14011_v34 = vpop.trf.xlu0  ;;  %v4500_v19 = vsub.f32 %v13972_v4, %v17264_v52  ;;  %v18410_v22 = vld [vmem:[#allocation66_spill] sm:$0xff]  ;;  %v8417_v36 = vpop.f32.mrf.mxu0  ;;  %v14023_v15 = vand.u32 4294901760, %v10164_v0  ;;  %v18413_v1 = vunpack.i.h.bf16 %v13985_v44  ;;  %v14032_v52 = vadd.s32 808, %v18033_v47 }
 0x27c   : > { %18408 = vst [vmem:[#allocation108_spill] sm:$0xff] %v14009_v24  ;;  %4487 = vmatmul.mubr.f32.gmra.mxu0 %v4486_v42  ;;  %9101 = vmatprep.subr.mxu1 %v18410_v22  ;;  %v8505_v42 = vpop.f32.mrf.mxu1  ;;  %v8418_v43 = vadd.f32 %v8417_v36, %v8416_v18  ;;  %v14036_v4 = vadd.f32 %v8503_v26, %v8502_v21  ;;  %v4510_v36 = vand.u32 4294901760, %v4509_v46  ;;  %v18420_v21 = vld [vmem:[#allocation43_spill] sm:$0xff]  ;;  %v18430_v46 = vunpack.i.h.bf16 %v14011_v34 }
 0x27d   : > { %18411 = vst [vmem:[#allocation109_spill] sm:$0xff] %v14023_v15  ;;  %4942 = vmatmul.mubr.f32.gmra.mxu1 %v13942_v17  ;;  %9020 = vmatpush3.msra.mxu0 %v18412_v12  ;;  %v14029_v31 = vand.u32 4294901760, %v18413_v1  ;;  %v4501_v22 = vand.u32 4294901760, %v4500_v19  ;;  %v8419_v17 = vpop.f32.mrf.mxu0  ;;  %v10169_v12 = vunpack.i.l.bf16 %v14011_v34  ;;  %v18418_v1 = vand.u32 4294901760, %v13983_v3  ;;  %v18422_v19 = vld [vmem:[#allocation72_spill] sm:$0xff] }
 0x27e   : > { %4496 = vmatprep.mubr.f32.mxu0 %v4495_v48  ;;  %4947 = vmatprep.mubr.f32.mxu1 %v13977_v16  ;;  %18415 = vst [vmem:[#allocation33_spill] sm:$0xff] %v14036_v4  ;;  %v8506_v7 = vpop.f32.mrf.mxu1  ;;  %v14046_v16 = vsub.f32 %v10162_v13, %v14005_v61  ;;  %v14051_v18 = vadd.f32 %v8418_v43, %v18420_v21  ;;  %v18425_v48 = vld [vmem:[#allocation17_spill] sm:$0xff]  ;;  %v18426_v21 = vand.u32 4294901760, %v14009_v24  ;;  %v18448_v4 = vunpack.i.h.bf16 %v14011_v34 }
 0x27f   : > { %18414 = vst [vmem:[#allocation111_spill] sm:$0xff] %v14029_v31  ;;  %9021 = vmatprep.subr.mxu0 %v18416_v20  ;;  %9102 = vmatpush3.msra.mxu1 %v18417_v9  ;;  %v4515_v35 = vsub.f32 %v13983_v3, %v18418_v1  ;;  %v14048_v26 = vpop.trf.xlu0  ;;  %v8420_v9 = vpop.f32.mrf.mxu0  ;;  %v14054_v20 = vadd.f32 %v8506_v7, %v8505_v42  ;;  %v18437_v3 = vld [vmem:[#allocation92_spill] sm:$0xff] }
 0x280   : > { %18419 = vst [vmem:[#allocation113_spill] sm:$0xff] %v14046_v16  ;;  %4502 = vmatmul.mubr.f32.gmra.mxu0 %v4501_v22  ;;  %18421 = vst [vmem:[#allocation114_spill] sm:$0xff] %v14051_v18  ;;  %9103 = vmatprep.subr.mxu1 %v18422_v19  ;;  %v14057_v1 = vsub.f32 %v10164_v0, %v14023_v15  ;;  %v8508_v13 = vpop.f32.mrf.mxu1  ;;  %v4524_v7 = vsub.f32 %v14009_v24, %v18426_v21  ;;  %v14070_v22 = vand.u32 4294901760, %v10169_v12 }
 0x281   : > { %18423 = vst [vmem:[#allocation115_spill] sm:$0xff] %v14054_v20  ;;  %4949 = vmatmul.mubr.f32.gmra.mxu1 %v14005_v61  ;;  %9022 = vmatpush3.msra.mxu0 %v18425_v48  ;;  %v4516_v43 = vand.u32 4294901760, %v4515_v35  ;;  %v8421_v42 = vadd.f32 %v8420_v9, %v8419_v17  ;;  %v8422_v0 = vpop.f32.mrf.mxu0  ;;  %v18427_v61 = vld [vmem:[#allocation28_spill] sm:$0xff]  ;;  %v18428_v48 = vld [vmem:[#allocation19_spill] sm:$0xff]  ;;  %v18432_v21 = vunpack.i.h.bf16 %v13985_v44  ;;  %v18436_v24 = vand.u32 4294901760, %v14046_v16  ;;  %v18439_v44 = vld [vmem:[#allocation77_spill] sm:$0xff] }
 0x282   : > { %18424 = vst [vmem:[#allocation116_spill] sm:$0xff] %v14057_v1  ;;  %4511 = vmatprep.mubr.f32.mxu0 %v4510_v36  ;;  %4954 = vmatprep.mubr.f32.mxu1 %v14023_v15  ;;  %18429 = vst [vmem:[#allocation23_spill] sm:$0xff] %v14070_v22  ;;  %v14074_v36 = vand.u32 4294901760, %v18430_v46  ;;  %v8509_v15 = vpop.f32.mrf.mxu1  ;;  %v4525_v9 = vand.u32 4294901760, %v4524_v7 }
 0x283   : > { %9023 = vmatprep.subr.mxu0 %v18427_v61  ;;  %9104 = vmatpush3.msra.mxu1 %v18428_v48  ;;  %v14080_v17 = vsub.f32 %v18432_v21, %v14029_v31  ;;  %v14082_v19 = vpop.trf.xlu0  ;;  %v18434_v61 = vld [vmem:[#allocation37_spill] sm:$0xff]  ;;  %v4530_v46 = vsub.f32 %v14046_v16, %v18436_v24  ;;  %v8423_v35 = vpop.f32.mrf.mxu0  ;;  %v14091_v20 = vadd.f32 %v8509_v15, %v8508_v13  ;;  %v18444_v15 = vand.u32 4294901760, %v14057_v1 }
 0x284   : > { %18431 = vst [vmem:[#allocation29_spill] sm:$0xff] %v14074_v36  ;;  %4517 = vmatmul.mubr.f32.gmra.mxu0 %v4516_v43  ;;  %v14085_v48 = vadd.f32 %v8421_v42, %v18434_v61  ;;  %9105 = vmatprep.subr.mxu1 %v18437_v3  ;;  %v18440_v43 = vunpack.i.l.bf16 %v14048_v26  ;;  %v8511_v21 = vpop.f32.mrf.mxu1  ;;  %v18442_v61 = vunpack.i.h.bf16 %v14048_v26  ;;  %v10179_v16 = vunpack.i.l.bf16 %v14082_v19 }
 0x285   : > { %18433 = vst [vmem:[#allocation24_spill] sm:$0xff] %v14080_v17  ;;  %18438 = vst [vmem:[#allocation37_spill] sm:$0xff] %v14091_v20  ;;  %4956 = vmatmul.mubr.f32.gmra.mxu1 %v14029_v31  ;;  %9024 = vmatpush3.msra.mxu0 %v18439_v44  ;;  %v4531_v24 = vand.u32 4294901760, %v4530_v46  ;;  %v4539_v13 = vsub.f32 %v14057_v1, %v18444_v15  ;;  %v8424_v31 = vadd.f32 %v8423_v35, %v8422_v0  ;;  %v8425_v3 = vpop.f32.mrf.mxu0  ;;  %v18445_v20 = vld [vmem:[#allocation94_spill] sm:$0xff] }
 0x286   : > { %18435 = vst [vmem:[#allocation43_spill] sm:$0xff] %v14085_v48  ;;  %v14097_v7 = vand.u32 4294901760, %v18440_v43  ;;  %v14101_v42 = vand.u32 4294901760, %v18442_v61  ;;  %4526 = vmatprep.mubr.f32.mxu0 %v4525_v9  ;;  %4961 = vmatprep.mubr.f32.mxu1 %v14070_v22  ;;  %v18446_v61 = vld [vmem:[#allocation100_spill] sm:$0xff]  ;;  %v14113_v9 = vsub.f32 %v10169_v12, %v14070_v22  ;;  %v8512_v46 = vpop.f32.mrf.mxu1  ;;  %v14118_v15 = vsub.f32 %v18448_v4, %v14074_v36  ;;  %v18453_v1 = vld [vmem:[#allocation26_spill] sm:$0xff]  ;;  %v18455_v4 = vld [vmem:[#allocation103_spill] sm:$0xff] }
 0x287   : > { %9025 = vmatprep.subr.mxu0 %v18445_v20  ;;  %9106 = vmatpush3.msra.mxu1 %v18446_v61  ;;  %v4540_v0 = vand.u32 4294901760, %v4539_v13  ;;  %v14120_v35 = vpop.trf.xlu0  ;;  %v18450_v43 = vld [vmem:[#allocation48_spill] sm:$0xff]  ;;  %v18452_v20 = vand.u32 4294901760, %v14080_v17  ;;  %v8426_v12 = vpop.f32.mrf.mxu0  ;;  %v14129_v22 = vadd.f32 %v8512_v46, %v8511_v21  ;;  %v18456_v46 = vld [vmem:[#allocation95_spill] sm:$0xff]  ;;  %v18459_v34 = vunpack.i.h.bf16 %v14082_v19 }
 0x288   : > { %18441 = vst [vmem:[#allocation117_spill] sm:$0xff] %v14097_v7  ;;  %18443 = vst [vmem:[#allocation118_spill] sm:$0xff] %v14101_v42  ;;  %4532 = vmatmul.mubr.f32.gmra.mxu0 %v4531_v24  ;;  %v14123_v44 = vadd.f32 %v8424_v31, %v18450_v43  ;;  %9107 = vmatprep.subr.mxu1 %v18453_v1  ;;  %v8514_v13 = vpop.f32.mrf.mxu1  ;;  %v8427_v43 = vadd.f32 %v8426_v12, %v8425_v3  ;;  %v18463_v3 = vunpack.i.h.bf16 %v14048_v26 }
 0x289   : > { %18447 = vst [vmem:[#allocation119_spill] sm:$0xff] %v14113_v9  ;;  %18449 = vst [vmem:[#allocation120_spill] sm:$0xff] %v14118_v15  ;;  %v4545_v61 = vsub.f32 %v14080_v17, %v18452_v20  ;;  %4963 = vmatmul.mubr.f32.gmra.mxu1 %v14074_v36  ;;  %9026 = vmatpush3.msra.mxu0 %v18455_v4  ;;  %v8428_v1 = vpop.f32.mrf.mxu0  ;;  %v18457_v36 = vld [vmem:[#allocation27_spill] sm:$0xff]  ;;  %v14140_v4 = vand.u32 4294901760, %v10179_v16  ;;  %v14144_v24 = vand.u32 4294901760, %v18459_v34  ;;  %v18465_v21 = vand.u32 4294901760, %v14113_v9 }
 0x28a   : > { %18451 = vst [vmem:[#allocation48_spill] sm:$0xff] %v14123_v44  ;;  %18454 = vst [vmem:[#allocation121_spill] sm:$0xff] %v14129_v22  ;;  %4541 = vmatprep.mubr.f32.mxu0 %v4540_v0  ;;  %4968 = vmatprep.mubr.f32.mxu1 %v14097_v7  ;;  %v18461_v0 = vunpack.i.l.bf16 %v14048_v26  ;;  %v8515_v20 = vpop.f32.mrf.mxu1  ;;  %v14154_v12 = vsub.f32 %v18463_v3, %v14101_v42  ;;  %v18466_v34 = vld [vmem:[#allocation51_spill] sm:$0xff]  ;;  %v18468_v22 = vand.u32 4294901760, %v14118_v15  ;;  %v18470_v26 = vunpack.i.l.bf16 %v14120_v35 }
 0x28b   : > { %v4546_v31 = vand.u32 4294901760, %v4545_v61  ;;  %9027 = vmatprep.subr.mxu0 %v18456_v46  ;;  %9108 = vmatpush3.msra.mxu1 %v18457_v36  ;;  %18458 = vst [vmem:[#allocation122_spill] sm:$0xff] %v14140_v4  ;;  %18460 = vst [vmem:[#allocation123_spill] sm:$0xff] %v14144_v24  ;;  %v4554_v36 = vsub.f32 %v14113_v9, %v18465_v21  ;;  %v14159_v46 = vpop.trf.xlu0  ;;  %v14162_v17 = vadd.f32 %v8427_v43, %v18466_v34  ;;  %v8429_v44 = vpop.f32.mrf.mxu0  ;;  %v18477_v43 = vld [vmem:[#allocation21_spill] sm:$0xff] }
 0x28c   : > { %v14149_v61 = vsub.f32 %v18461_v0, %v14097_v7  ;;  %18464 = vst [vmem:[#allocation125_spill] sm:$0xff] %v14154_v12  ;;  %v4560_v0 = vsub.f32 %v14118_v15, %v18468_v22  ;;  %v18469_v7 = vld [vmem:[#allocation32_spill] sm:$0xff]  ;;  %v14170_v3 = vand.u32 4294901760, %v18470_v26  ;;  %v8517_v34 = vpop.f32.mrf.mxu1  ;;  %v18473_v22 = vld [vmem:[#allocation41_spill] sm:$0xff]  ;;  %v8430_v15 = vadd.f32 %v8429_v44, %v8428_v1 }
 0x28d   : > { %4547 = vmatmul.mubr.f32.gmra.mxu0 %v4546_v31  ;;  %18467 = vst [vmem:[#allocation51_spill] sm:$0xff] %v14162_v17  ;;  %9109 = vmatprep.subr.mxu1 %v18469_v7  ;;  %v18472_v31 = vld [vmem:[#allocation96_spill] sm:$0xff]  ;;  %v4555_v9 = vand.u32 4294901760, %v4554_v36  ;;  %v8431_v17 = vpop.f32.mrf.mxu0  ;;  %v18474_v26 = vunpack.i.h.bf16 %v14120_v35  ;;  %v14184_v21 = vadd.f32 %v8515_v20, %v8514_v13  ;;  %v14189_v18 = vsub.f32 %v10179_v16, %v14140_v4 }
 0x28e   : > { %18462 = vst [vmem:[#allocation124_spill] sm:$0xff] %v14149_v61  ;;  %18471 = vst [vmem:[#allocation126_spill] sm:$0xff] %v14170_v3  ;;  %4970 = vmatmul.mubr.f32.gmra.mxu1 %v14101_v42  ;;  %9028 = vmatpush3.msra.mxu0 %v18472_v31  ;;  %v17302_v7 = vand.u32 4294901760, %v14149_v61  ;;  %v4561_v42 = vand.u32 4294901760, %v4560_v0  ;;  %v18476_v31 = vld [vmem:[#allocation12_spill] sm:$0xff]  ;;  %v14197_v0 = vadd.f32 %v8430_v15, %v13627_v5  ;;  %v18480_v36 = vunpack.i.l.bf16 %v14159_v46 }
 0x28f   : > { %4975 = vmatprep.mubr.f32.mxu1 %v14140_v4  ;;  %9029 = vmatprep.subr.mxu0 %v18473_v22  ;;  %v14181_v48 = vand.u32 4294901760, %v18474_v26  ;;  %18478 = vst [vmem:[#allocation128_spill] sm:$0xff] %v14189_v18  ;;  %v8518_v22 = vpop.f32.mrf.mxu1  ;;  %v14194_v44 = vpop.trf.xlu0  ;;  %v18479_v13 = vld [vmem:[#allocation112_spill] sm:$0xff]  ;;  %v18482_v4 = vunpack.i.h.bf16 %v14159_v46  ;;  %v18484_v15 = vand.u32 4294901760, %v14154_v12 }
 0x290   : > { %9030 = vmatpush3.msra.mxu0 %v18476_v31  ;;  %9110 = vmatpush3.msra.mxu1 %v18477_v43  ;;  %v4569_v1 = vsub.f32 %v14149_v61, %v17302_v7  ;;  %v8432_v20 = vpop.f32.mrf.mxu0  ;;  %v14200_v26 = vadd.f32 %v8518_v22, %v8517_v34  ;;  %v14204_v16 = vand.u32 4294901760, %v18480_v36  ;;  %v18485_v22 = vld [vmem:[#allocation30_spill] sm:$0xff] }
 0x291   : > { %18475 = vst [vmem:[#allocation127_spill] sm:$0xff] %v14181_v48  ;;  %4556 = vmatprep.mubr.f32.mxu0 %v4555_v9  ;;  %9031 = vmatprep.subr.mxu0 %v18479_v13  ;;  %v8520_v7 = vpop.f32.mrf.mxu1  ;;  %v14210_v43 = vand.u32 4294901760, %v18482_v4  ;;  %v4575_v34 = vsub.f32 %v14154_v12, %v18484_v15  ;;  %v8433_v36 = vadd.f32 %v8432_v20, %v8431_v17  ;;  %v18486_v31 = vld [vmem:[#allocation102_spill] sm:$0xff]  ;;  %v18487_v4 = vunpack.i.h.bf16 %v14082_v19 }
 0x292   : > { %18481 = vst [vmem:[#allocation129_spill] sm:$0xff] %v14204_v16  ;;  %4562 = vmatmul.mubr.f32.gmra.mxu0 %v4561_v42  ;;  %4977 = vmatmul.mubr.f32.gmra.mxu1 %v14144_v24  ;;  %v4570_v5 = vand.u32 4294901760, %v4569_v1  ;;  %v17309_v42 = vand.u32 4294901760, %v14189_v18  ;;  %v8434_v13 = vpop.f32.mrf.mxu0  ;;  %v18489_v15 = vunpack.i.l.bf16 %v14120_v35  ;;  %v18491_v17 = vunpack.i.h.bf16 %v14120_v35 }
 0x293   : > { %18483 = vst [vmem:[#allocation130_spill] sm:$0xff] %v14210_v43  ;;  %4982 = vmatprep.mubr.f32.mxu1 %v14170_v3  ;;  %9032 = vmatpush3.msra.mxu0 %v18485_v22  ;;  %v14224_v1 = vsub.f32 %v18487_v4, %v14144_v24  ;;  %v8521_v22 = vpop.f32.mrf.mxu1  ;;  %v4576_v9 = vand.u32 4294901760, %v4575_v34  ;;  %v14239_v19 = vpop.trf.xlu0  ;;  %v14242_v4 = vadd.f32 %v8433_v36, %v13676_v58  ;;  %v18492_v34 = vld [vmem:[#allocation104_spill] sm:$0xff]  ;;  %v18497_v58 = vunpack.i.l.bf16 %v14159_v46 }
 0x294   : > { %9111 = vmatprep.subr.mxu1 %v13398_v32  ;;  %9033 = vmatprep.subr.mxu0 %v18486_v31  ;;  %v14229_v12 = vsub.f32 %v18489_v15, %v14170_v3  ;;  %v14234_v20 = vsub.f32 %v18491_v17, %v14181_v48  ;;  %v4584_v31 = vsub.f32 %v14189_v18, %v17309_v42  ;;  %v8435_v15 = vpop.f32.mrf.mxu0 }
 0x295   : > { %18488 = vst [vmem:[#allocation131_spill] sm:$0xff] %v14224_v1  ;;  %4571 = vmatprep.mubr.f32.mxu0 %v4570_v5  ;;  %9112 = vmatpush3.msra.mxu1 %v13400_v60  ;;  %v14245_v3 = vadd.f32 %v8521_v22, %v8520_v7  ;;  %v8523_v17 = vpop.f32.mrf.mxu1  ;;  %v8436_v24 = vadd.f32 %v8435_v15, %v8434_v13  ;;  %v18493_v22 = vunpack.i.l.bf16 %v14194_v44  ;;  %v18498_v15 = vand.u32 4294901760, %v14224_v1 }
 0x296   : > { %18490 = vst [vmem:[#allocation132_spill] sm:$0xff] %v14229_v12  ;;  %4984 = vmatmul.mubr.f32.gmra.mxu1 %v14181_v48  ;;  %9034 = vmatpush3.msra.mxu0 %v18492_v34  ;;  %v4585_v42 = vand.u32 4294901760, %v4584_v31  ;;  %v8437_v7 = vpop.f32.mrf.mxu0  ;;  %v18495_v31 = vunpack.i.h.bf16 %v14194_v44  ;;  %v14268_v36 = vsub.f32 %v18497_v58, %v14204_v16  ;;  %v18499_v48 = vand.u32 4294901760, %v14229_v12 }
 0x297   : > { %4577 = vmatmul.mubr.f32.gmra.mxu0 %v4576_v9  ;;  %4989 = vmatprep.mubr.f32.mxu1 %v14204_v16  ;;  %v14257_v35 = vand.u32 4294901760, %v18493_v22  ;;  %v8524_v13 = vpop.f32.mrf.mxu1  ;;  %v4590_v22 = vsub.f32 %v14224_v1, %v18498_v15  ;;  %v14276_v5 = vpop.trf.xlu0  ;;  %v18500_v58 = vunpack.i.l.bf16 %v14239_v19  ;;  %v18502_v15 = vld [vmem:[#allocation106_spill] sm:$0xff] }
 0x298   : > { %9113 = vmatprep.subr.mxu1 %v13409_v2  ;;  %9035 = vmatprep.subr.mxu0 %v13538_v39  ;;  %v14263_v9 = vand.u32 4294901760, %v18495_v31  ;;  %v4599_v39 = vsub.f32 %v14229_v12, %v18499_v48  ;;  %v14279_v31 = vadd.f32 %v8436_v24, %v13714_v30  ;;  %v8438_v2 = vpop.f32.mrf.mxu0  ;;  %v18503_v48 = vunpack.i.h.bf16 %v14239_v19 }
 0x299   : > { %18494 = vst [vmem:[#allocation133_spill] sm:$0xff] %v14257_v35  ;;  %4586 = vmatprep.mubr.f32.mxu0 %v4585_v42  ;;  %9114 = vmatpush3.msra.mxu1 %v13444_v14  ;;  %v14284_v16 = vand.u32 4294901760, %v18500_v58  ;;  %v8526_v34 = vpop.f32.mrf.mxu1  ;;  %v4591_v30 = vand.u32 4294901760, %v4590_v22  ;;  %v18505_v58 = vand.u32 4294901760, %v14234_v20  ;;  %v17331_v32 = vand.u32 4294901760, %v14268_v36  ;;  %v18507_v22 = vld [vmem:[#allocation110_spill] sm:$0xff] }
 0x29a   : > { %18496 = vst [vmem:[#allocation134_spill] sm:$0xff] %v14263_v9  ;;  %4991 = vmatmul.mubr.f32.gmra.mxu1 %v14210_v43  ;;  %9036 = vmatpush3.msra.mxu0 %v18502_v15  ;;  %v14291_v60 = vand.u32 4294901760, %v18503_v48  ;;  %v8440_v42 = vpop.f32.mrf.mxu0  ;;  %v4600_v15 = vand.u32 4294901760, %v4599_v39  ;;  %v8439_v12 = vadd.f32 %v8438_v2, %v8437_v7  ;;  %v14300_v1 = vadd.f32 %v8524_v13, %v8523_v17  ;;  %v18506_v48 = vld [vmem:[#allocation38_spill] sm:$0xff] }
 0x29b   : > { %18501 = vst [vmem:[#allocation135_spill] sm:$0xff] %v14284_v16  ;;  %4996 = vmatprep.mubr.f32.mxu1 %v14257_v35  ;;  %v4605_v14 = vsub.f32 %v14234_v20, %v18505_v58  ;;  %9115 = vmatprep.subr.mxu1 %v13495_v8  ;;  %v18508_v24 = vunpack.i.h.bf16 %v14159_v46  ;;  %v8527_v61 = vpop.f32.mrf.mxu1  ;;  %v14310_v58 = vld [vmem:[%s10586_s8] ss:$0 sm:$0xff]  ;;  %v4614_v2 = vsub.f32 %v14268_v36, %v17331_v32  ;;  %v10208_v17 = vpop.trf.xlu0  ;;  %v18510_v7 = vunpack.i.l.bf16 %v14194_v44 }
 0x29c   : > { %18504 = vst [vmem:[#allocation136_spill] sm:$0xff] %v14291_v60  ;;  %9116 = vmatpush3.msra.mxu1 %v18506_v48  ;;  %9037 = vmatprep.subr.mxu0 %v18507_v22  ;;  %vm406_vm8 = vcmp.eq.s32.totalorder %v13845_v63, %v14310_v58  ;;  %v8441_v46 = vpop.f32.mrf.mxu0  ;;  %v14327_v32 = vadd.f32 %v8439_v12, %v13750_v53  ;;  %v18516_v53 = vunpack.i.h.bf16 %v14194_v44  ;;  %v18520_v44 = vunpack.i.l.bf16 %v14239_v19 }
 0x29d   : > { %v14307_v18 = vsub.f32 %v18508_v24, %v14210_v43  ;;  %4592 = vmatmul.mubr.f32.gmra.mxu0 %v4591_v30  ;;  %v4606_v39 = vand.u32 4294901760, %v4605_v14  ;;  %v14320_v13 = vsub.f32 %v18510_v7, %v14257_v35  ;;  %9117 = vmatprep.subr.mxu1 %v13532_v23  ;;  %v14323_v24 = vadd.f32 %v8527_v61, %v8526_v34  ;;  %v8529_v43 = vpop.f32.mrf.mxu1  ;;  %v18512_v35 = vld [vmem:[#allocation49_spill] sm:$0xff] }
 0x29e   : > { %4601 = vmatprep.mubr.f32.mxu0 %v4600_v15  ;;  %4998 = vmatmul.mubr.f32.gmra.mxu1 %v14263_v9  ;;  %v10212_v30 = vunpack.i.h.bf16 %v10208_v17  ;;  %v10209_v14 = vunpack.i.l.bf16 %v10208_v17  ;;  %v4615_v22 = vand.u32 4294901760, %v4614_v2  ;;  %v8443_v61 = vpop.f32.mrf.mxu0  ;;  %v8442_v48 = vadd.f32 %v8441_v46, %v8440_v42  ;;  %v18515_v2 = vld [vmem:[#allocation11_spill] sm:$0xff] }
 0x29f   : > { %18509 = vst [vmem:[#allocation137_spill] sm:$0xff] %v14307_v18  ;;  %18511 = vst [vmem:[#allocation138_spill] sm:$0xff] %v14320_v13  ;;  %5003 = vmatprep.mubr.f32.mxu1 %v14284_v16  ;;  %v17338_v7 = vand.u32 4294901760, %v14307_v18  ;;  %9038 = vmatpush3.msra.mxu0 %v18512_v35  ;;  %v14342_v12 = vsub.f32 %v18516_v53, %v14263_v9  ;;  %v8530_v17 = vpop.f32.mrf.mxu1  ;;  %v18517_v35 = vand.u32 4294901760, %v14320_v13  ;;  %v18518_v42 = vunpack.i.l.bf16 %v14276_v5 }
 0x2a0   : > { %v14333_v34 = vand.u32 4294901760, %v10212_v30  ;;  %v14335_v15 = vand.u32 4294901760, %v10209_v14  ;;  %9118 = vmatpush3.msra.mxu1 %v13540_v40  ;;  %9039 = vmatprep.subr.mxu0 %v18515_v2  ;;  %v14358_v53 = vsub.f32 %v18520_v44, %v14284_v16  ;;  %vm422_vm9 = vcmp.eq.s32.totalorder %v13867_v41, %v14310_v58  ;;  %v18524_v44 = vld [vmem:[#allocation44_spill] sm:$0xff]  ;;  %v18546_v41 = vld [vmem:[#allocation51_spill] sm:$0xff] }
 0x2a1   : > { %4607 = vmatmul.mubr.f32.gmra.mxu0 %v4606_v39  ;;  %v4620_v23 = vsub.f32 %v14307_v18, %v17338_v7  ;;  %v4629_v8 = vsub.f32 %v14320_v13, %v18517_v35  ;;  %v14352_v46 = vand.u32 4294901760, %v18518_v42  ;;  %9119 = vmatprep.subr.mxu1 %v13542_v29  ;;  %v8444_v39 = vpop.f32.mrf.mxu0  ;;  %v14365_v35 = vadd.f32 %v8442_v48, %v13788_v59  ;;  %v8532_v2 = vpop.f32.mrf.mxu1 }
 0x2a2   : > { %18513 = vst [vmem:[#allocation139_spill] sm:$0xff] %v14333_v34  ;;  %18514 = vst [vmem:[#allocation140_spill] sm:$0xff] %v14335_v15  ;;  %4616 = vmatprep.mubr.f32.mxu0 %v4615_v22  ;;  %v14361_v9 = vsub.f32 %v10209_v14, %v14335_v15  ;;  %5005 = vmatmul.mubr.f32.gmra.mxu1 %v14291_v60  ;;  %v18521_v7 = vunpack.i.h.bf16 %v14276_v5  ;;  %v14375_v22 = vsub.f32 %v10212_v30, %v14333_v34  ;;  %v18526_v30 = vld [vmem:[#allocation56_spill] sm:$0xff] }
 0x2a3   : > { %18519 = vst [vmem:[#allocation141_spill] sm:$0xff] %v14352_v46  ;;  %v4621_v14 = vand.u32 4294901760, %v4620_v23  ;;  %5010 = vmatprep.mubr.f32.mxu1 %v14352_v46  ;;  %9040 = vmatpush3.msra.mxu0 %v18524_v44  ;;  %v17347_v59 = vand.u32 4294901760, %v14358_v53  ;;  %v8445_v48 = vadd.f32 %v8444_v39, %v8443_v61  ;;  %v8446_v42 = vpop.f32.mrf.mxu0  ;;  %v4630_v16 = vand.u32 4294901760, %v4629_v8  ;;  %v8533_v44 = vpop.f32.mrf.mxu1 }
 0x2a4   : > { %v14370_v29 = vand.u32 4294901760, %v18521_v7  ;;  %18523 = vst [vmem:[#allocation143_spill] sm:$0xff] %v14375_v22  ;;  %v18525_v7 = vand.u32 4294901760, %v14342_v12  ;;  %9120 = vmatpush3.msra.mxu1 %v13547_v28  ;;  %v14384_v13 = vadd.f32 %v8530_v17, %v8529_v43  ;;  %9041 = vmatprep.subr.mxu0 %v18526_v30  ;;  %v18527_v23 = vunpack.i.h.bf16 %v14239_v19 }
 0x2a5   : > { %4622 = vmatmul.mubr.f32.gmra.mxu0 %v4621_v14  ;;  %v4644_v8 = vsub.f32 %v14358_v53, %v17347_v59  ;;  %v14396_v61 = vadd.f32 %v8445_v48, %v13834_v6  ;;  %9121 = vmatprep.subr.mxu1 %v13578_v50  ;;  %v18528_v43 = vunpack.i.l.bf16 %v14276_v5  ;;  %v8447_v39 = vpop.f32.mrf.mxu0  ;;  %v14405_v19 = vadd.s32 936, %v18033_v47  ;;  %v8647_v6 = vpop.f32.mrf.mxu1 }
 0x2a6   : > { %18522 = vst [vmem:[#allocation142_spill] sm:$0xff] %v14370_v29  ;;  %v4635_v40 = vsub.f32 %v14342_v12, %v18525_v7  ;;  %v14390_v18 = vsub.f32 %v18527_v23, %v14291_v60  ;;  %4631 = vmatprep.mubr.f32.mxu0 %v4630_v16  ;;  %5012 = vmatmul.mubr.f32.gmra.mxu1 %v14370_v29  ;;  %v17360_v48 = vand.u32 4294901760, %v14361_v9  ;;  %v18529_v16 = vunpack.i.h.bf16 %v14276_v5 }
 0x2a7   : > { %v14402_v17 = vsub.f32 %v18528_v43, %v14352_v46  ;;  %v8448_v7 = vadd.f32 %v8447_v39, %v8446_v42  ;;  %v14409_v23 = vadd.f32 %v8533_v44, %v8532_v2  ;;  %5017 = vmatprep.mubr.f32.mxu1 %v14335_v15  ;;  %9122 = vmatpush3.msra.mxu1 %v13585_v56  ;;  %v8449_v46 = vpop.f32.mrf.mxu0  ;;  %v14424_v2 = vsel %vm406_vm8, 1.0, %v18053_v51  ;;  %v18530_v44 = vld [vmem:[#allocation57_spill] sm:$0xff]  ;;  %v8648_v5 = vpop.f32.mrf.mxu1  ;;  %v18531_v15 = vld [vmem:[#allocation68_spill] sm:$0xff] }
 0x2a8   : > { %v17352_v14 = vand.u32 4294901760, %v14390_v18  ;;  %v4636_v59 = vand.u32 4294901760, %v4635_v40  ;;  %v14418_v60 = vsub.f32 %v18529_v16, %v14370_v29  ;;  %v4645_v42 = vand.u32 4294901760, %v4644_v8  ;;  %9042 = vmatpush3.msra.mxu0 %v18530_v44  ;;  %9123 = vmatprep.subr.mxu1 %v13592_v62 }
 0x2a9   : > { %v17353_v43 = vand.u32 4294901760, %v14402_v17  ;;  %v14432_v39 = vadd.f32 %v8448_v7, %v13881_v45  ;;  %vm407_vm10 = vcmp.eq.s32.totalorder %v14032_v52, %v14310_v58  ;;  %9124 = vmatpush3.msra.mxu1 %v13594_v54  ;;  %v8450_v16 = vpop.f32.mrf.mxu0  ;;  %vm423_vm11 = vcmp.eq.s32.totalorder %v14405_v19, %v14310_v58  ;;  %v8650_v7 = vpop.f32.mrf.mxu1 }
 0x2aa   : > { %v4650_v40 = vsub.f32 %v14390_v18, %v17352_v14  ;;  %4637 = vmatmul.mubr.f32.gmra.mxu0 %v4636_v59  ;;  %v14441_v14 = vadd.f32 %v8648_v5, %v8647_v6  ;;  %5019 = vmatmul.mubr.f32.gmra.mxu1 %v14333_v34  ;;  %v4674_v45 = vsub.f32 %v14361_v9, %v17360_v48  ;;  %v18532_v6 = vand.u32 4294901760, %v13831_v38 }
 0x2ab   : > { %v4659_v63 = vsub.f32 %v14402_v17, %v17353_v43  ;;  %4646 = vmatprep.mubr.f32.mxu0 %v4645_v42  ;;  %v8451_v59 = vadd.f32 %v8450_v16, %v8449_v46  ;;  %v2645_v8 = vadd.f32 %v18531_v15, %v13919_v37  ;;  %9125 = vmatprep.subr.mxu1 %v13596_v55  ;;  %v18533_v42 = vand.u32 4294901760, %v14418_v60  ;;  %v8452_v34 = vpop.f32.mrf.mxu0  ;;  %v18534_v37 = vld [vmem:[#allocation54_spill] sm:$0xff]  ;;  %v18537_v55 = vld [vmem:[#allocation52_spill] sm:$0xff] }
 0x2ac   : > { %v4651_v29 = vand.u32 4294901760, %v4650_v40  ;;  %5396 = vmatprep.mubr.f32.mxu1 %v18532_v6  ;;  %v3214_v46 = vadd.f32 %v13850_v57, %v13953_v10  ;;  %v14462_v16 = vadd.f32 %v13892_v33, %v13988_v49  ;;  %9043 = vmatprep.subr.mxu0 %v18534_v37  ;;  %v8651_v40 = vpop.f32.mrf.mxu1  ;;  %v18535_v6 = vld [vmem:[#allocation87_spill] sm:$0xff]  ;;  %v18553_v37 = vld [vmem:[#allocation121_spill] sm:$0xff] }
 0x2ad   : > { %v4665_v5 = vsub.f32 %v14418_v60, %v18533_v42  ;;  %v4660_v48 = vand.u32 4294901760, %v4659_v63  ;;  %9126 = vmatpush3.msra.mxu1 %v13639_v27  ;;  %v2967_v15 = vadd.f32 %v8451_v59, %v13915_v25  ;;  %v14469_v43 = vadd.f32 %v18535_v6, %v14014_v11  ;;  %v18536_v42 = vld [vmem:[#allocation114_spill] sm:$0xff]  ;;  %v18538_v10 = vld [vmem:[#allocation67_spill] sm:$0xff]  ;;  %v8453_v49 = vpop.f32.mrf.mxu0  ;;  %v18542_v11 = vld [vmem:[#allocation105_spill] sm:$0xff] }
 0x2ae   : > { %v14473_v54 = vadd.f32 %v18537_v55, %v18536_v42  ;;  %4652 = vmatmul.mubr.f32.gmra.mxu0 %v4651_v29  ;;  %v18539_v33 = vld [vmem:[#allocation63_spill] sm:$0xff]  ;;  %v14478_v63 = vadd.f32 %v8651_v40, %v8650_v7  ;;  %v550_v25 = vsel %vm422_vm9, 1.0, %v18053_v51  ;;  %v18543_v27 = vld [vmem:[#allocation48_spill] sm:$0xff]  ;;  %v18544_v55 = vld [vmem:[#allocation33_spill] sm:$0xff]  ;;  %v535_v7 = vsel %vm407_vm10, 1.0, %v18053_v51 }
 0x2af   : > { %v18540_v57 = vpack.i.bf16 %v18538_v10, %v18539_v33  ;;  %v18541_v59 = vld [vmem:[#allocation43_spill] sm:$0xff]  ;;  %v14490_v42 = vadd.f32 %v18544_v55, %v18543_v27  ;;  %4661 = vmatprep.mubr.f32.mxu0 %v4660_v48  ;;  %v8454_v10 = vadd.f32 %v8453_v49, %v8452_v34  ;;  %v8653_v33 = vpop.f32.mrf.mxu1  ;;  %v4666_v27 = vand.u32 4294901760, %v4665_v5  ;;  %v18549_v55 = vld [vmem:[#allocation73_spill] sm:$0xff]  ;;  %v8567_v52 = vpop.f32.mrf.mxu0  ;;  %v18554_v5 = vld [vmem:[#allocation76_spill] sm:$0xff] }
 0x2b0   : > { %v14486_v6 = vadd.f32 %v18542_v11, %v18541_v59  ;;  %v18545_v29 = vld [vmem:[#allocation55_spill] sm:$0xff]  ;;  %v18548_v59 = vld [vmem:[#allocation37_spill] sm:$0xff]  ;;  %v18550_v48 = vand.u32 4294901760, %v18549_v55  ;;  %v18552_v34 = vand.u32 4294901760, %v14375_v22  ;;  %v14513_v62 = vadd.f32 %v18553_v37, %v14242_v4 }
 0x2b1   : > { %10218 = vxpose.xlu1.b32.cont [3/16] %v18540_v57, 128  ;;  %9044 = vmatpush3.msra.mxu0 %v18545_v29  ;;  %v18547_v40 = vld [vmem:[#allocation115_spill] sm:$0xff]  ;;  %v14503_v11 = vadd.f32 %v18548_v59, %v14197_v0  ;;  %v4675_v0 = vand.u32 4294901760, %v4674_v45  ;;  %v18556_v59 = vld [vmem:[#allocation65_spill] sm:$0xff]  ;;  %v14528_v4 = vadd.f32 %v14200_v26, %v14327_v32  ;;  %v10221_v37 = vpack.i.bf16 %v14424_v2, %v550_v25 }
 0x2b2   : > { %v14499_v57 = vadd.f32 %v18547_v40, %v18546_v41  ;;  %5400 = vmatmul.mubr.f32.vlgmr.msra.gmra.mxu1 %v18550_v48  ;;  %v18551_v29 = vld [vmem:[#allocation59_spill] sm:$0xff]  ;;  %v4680_v49 = vsub.f32 %v14375_v22, %v18552_v34  ;;  %v14517_v41 = vadd.f32 %v14184_v21, %v14279_v31  ;;  %v18555_v40 = vand.u32 4294901760, %v18554_v5  ;;  %4667 = vmatmul.mubr.f32.gmra.mxu0 %v4666_v27  ;;  %v18557_v21 = vld [vmem:[#allocation69_spill] sm:$0xff]  ;;  %v18558_v31 = vld [vmem:[#allocation70_spill] sm:$0xff] }
 0x2b3   : > { %9045 = vmatprep.subr.mxu0 %v18551_v29  ;;  %v2982_v48 = vadd.f32 %v8454_v10, %v2645_v8  ;;  %v8654_v29 = vpop.f32.mrf.mxu1  ;;  %v551_v34 = vsel %vm423_vm11, 1.0, %v18053_v51  ;;  %v18559_v45 = vpack.i.bf16 %v18557_v21, %v18558_v31  ;;  %v276_v8 = vadd.s32 816, %v18033_v47  ;;  %4676 = vmatprep.mubr.f32.mxu0 %v4675_v0  ;;  %v18560_v10 = vld [vmem:[#allocation85_spill] sm:$0xff]  ;;  %v18562_v27 = vld [vmem:[#allocation80_spill] sm:$0xff]  ;;  %v18564_v21 = vld [vmem:[#allocation14_spill] sm:$0xff] }
 0x2b4   : > { %5407 = vmatprep.mubr.f32.mxu1 %v18555_v40  ;;  %9046 = vmatpush3.msra.mxu0 %v18556_v59  ;;  %v8568_v40 = vpop.f32.mrf.mxu0  ;;  %v14534_v59 = vadd.f32 %v8654_v29, %v8653_v33  ;;  %v18561_v19 = vand.u32 4294901760, %v18560_v10  ;;  %v292_v32 = vadd.s32 944, %v18033_v47  ;;  %v4681_v26 = vand.u32 4294901760, %v4680_v49  ;;  %v18567_v49 = vld [vmem:[#allocation79_spill] sm:$0xff] }
 0x2b5   : > { %10220 = vxpose.xlu1.b32.cont [4/16] %v18559_v45, 128  ;;  %v8569_v44 = vadd.f32 %v8568_v40, %v8567_v52  ;;  %v8656_v22 = vpop.f32.mrf.mxu1  ;;  %v18563_v56 = vand.u32 4294901760, %v18562_v27  ;;  %9255 = vmatprep.subr.mxu1 %v18564_v21  ;;  %v10223_v25 = vpack.i.bf16 %v535_v7, %v551_v34  ;;  %v14545_v29 = vadd.f32 %v14245_v3, %v14365_v35  ;;  %v18565_v52 = vld [vmem:[#allocation83_spill] sm:$0xff] }
 0x2b6   : > { %9175 = vmatprep.subr.mxu0 %v18561_v19  ;;  %v8570_v2 = vpop.f32.mrf.mxu0  ;;  %v14549_v33 = vadd.f32 %v14300_v1, %v14396_v61  ;;  %v18566_v0 = vand.u32 4294901760, %v18565_v52  ;;  %9256 = vmatpush3.msra.mxu1 %v18567_v49  ;;  %v14559_v7 = vadd.f32 %v14384_v13, %v2967_v15  ;;  %vm408_vm12 = vcmp.eq.s32.totalorder %v276_v8, %v14310_v58  ;;  %v18568_v61 = vld [vmem:[#allocation13_spill] sm:$0xff] }
 0x2b7   : > { %5411 = vmatmul.mubr.f32.gmra.mxu1 %v18563_v56  ;;  %v3457_v31 = vadd.f32 %v8569_v44, %v3214_v46  ;;  %v8657_v45 = vpop.f32.mrf.mxu1  ;;  %v14556_v56 = vadd.f32 %v14323_v24, %v14432_v39  ;;  %4682 = vmatmul.mubr.f32.gmra.mxu0 %v4681_v26  ;;  %v14565_v1 = vadd.f32 %v14409_v23, %v2982_v48  ;;  %v18569_v39 = vld [vmem:[#allocation45_spill] sm:$0xff]  ;;  %v277_v15 = vadd.s32 824, %v18033_v47  ;;  %v18574_v26 = vld [vmem:[#allocation22_spill] sm:$0xff] }
 0x2b8   : > { %5418 = vmatprep.mubr.f32.mxu1 %v18566_v0  ;;  %v8571_v3 = vpop.f32.mrf.mxu0  ;;  %v14561_v35 = vadd.f32 %v8657_v45, %v8656_v22  ;;  %5154 = vmatprep.mubr.f32.mxu0 %v13831_v38  ;;  %vm424_vm13 = vcmp.eq.s32.totalorder %v292_v32, %v14310_v58  ;;  %v18570_v46 = vand.u32 4294901760, %v18569_v39  ;;  %v293_v23 = vadd.s32 952, %v18033_v47  ;;  %v18571_v48 = vld [vmem:[#allocation93_spill] sm:$0xff] }
 0x2b9   : > { %10222 = vxpose.xlu1.b32.cont [5/16] %v10221_v37, 128  ;;  %9257 = vmatprep.subr.mxu1 %v18568_v61  ;;  %v8572_v44 = vadd.f32 %v8571_v3, %v8570_v2  ;;  %v8659_v24 = vpop.f32.mrf.mxu1  ;;  %v14571_v13 = vadd.f32 %v14441_v14, %v3457_v31  ;;  %v18572_v34 = vand.u32 4294901760, %v18571_v48  ;;  %v18573_v37 = vld [vmem:[#allocation25_spill] sm:$0xff]  ;;  %v536_v14 = vsel %vm408_vm12, 1.0, %v18053_v51 }
 0x2ba   : > { %v8573_v22 = vpop.f32.mrf.mxu0  ;;  %9258 = vmatpush3.msra.mxu1 %v18573_v37  ;;  %v552_v10 = vsel %vm424_vm13, 1.0, %v18053_v51  ;;  %v18575_v21 = vand.u32 4294901760, %v18574_v26  ;;  %v18578_v8 = vld [vmem:[#allocation53_spill] sm:$0xff]  ;;  %vm409_vm14 = vcmp.eq.s32.totalorder %v277_v15, %v14310_v58  ;;  %vm425_vm15 = vcmp.eq.s32.totalorder %v293_v23, %v14310_v58  ;;  %v18586_v37 = vld [vmem:[#allocation86_spill] sm:$0xff] }
 0x2bb   : > { %5422 = vmatmul.mubr.f32.gmra.mxu1 %v18570_v46  ;;  %v3466_v38 = vadd.f32 %v8572_v44, %v14462_v16  ;;  %v8660_v40 = vpop.f32.mrf.mxu1  ;;  %5157 = vmatmul.mubr.f32.vlgmr.msra.gmra.mxu0 %v18549_v55  ;;  %v18576_v55 = vld [vmem:[#allocation82_spill] sm:$0xff]  ;;  %v18579_v31 = vand.u32 4294901760, %v18578_v8  ;;  %v18580_v45 = vld [vmem:[#allocation89_spill] sm:$0xff]  ;;  %v10225_v44 = vpack.i.bf16 %v536_v14, %v552_v10  ;;  %v278_v46 = vadd.s32 832, %v18033_v47 }
 0x2bc   : > { %5429 = vmatprep.mubr.f32.mxu1 %v18572_v34  ;;  %v8574_v19 = vpop.f32.mrf.mxu0  ;;  %v14586_v32 = vadd.f32 %v8660_v40, %v8659_v24  ;;  %9176 = vmatpush3.msra.mxu0 %v18575_v21  ;;  %v18581_v3 = vand.u32 4294901760, %v18580_v45  ;;  %v18584_v34 = vld [vmem:[#allocation71_spill] sm:$0xff]  ;;  %v18587_v40 = vand.u32 4294901760, %v18586_v37  ;;  %v553_v14 = vsel %vm425_vm15, 1.0, %v18053_v51  ;;  %v18590_v21 = vld [vmem:[#allocation84_spill] sm:$0xff] }
 0x2bd   : > { %10224 = vxpose.xlu1.b32.cont [6/16] %v10223_v25, 128  ;;  %5163 = vmatprep.mubr.f32.mxu0 %v18554_v5  ;;  %v8575_v16 = vadd.f32 %v8574_v19, %v8573_v22  ;;  %v8662_v2 = vpop.f32.mrf.mxu1  ;;  %v14592_v0 = vadd.f32 %v14478_v63, %v3466_v38  ;;  %v18577_v25 = vand.u32 4294901760, %v18576_v55  ;;  %v18582_v5 = vld [vmem:[#allocation101_spill] sm:$0xff]  ;;  %v294_v22 = vadd.s32 960, %v18033_v47  ;;  %v18591_v55 = vld [vmem:[#allocation108_spill] sm:$0xff] }
 0x2be   : > { %v8576_v49 = vpop.f32.mrf.mxu0  ;;  %v18583_v61 = vand.u32 4294901760, %v18582_v5  ;;  %v18585_v15 = vand.u32 4294901760, %v18584_v34  ;;  %9259 = vmatprep.subr.mxu1 %v18590_v21  ;;  %vm410_vm0 = vcmp.eq.s32.totalorder %v278_v46, %v14310_v58 }
 0x2bf   : > { %9177 = vmatprep.subr.mxu0 %v18577_v25  ;;  %5433 = vmatmul.mubr.f32.gmra.mxu1 %v18579_v31  ;;  %v3475_v63 = vadd.f32 %v8575_v16, %v14469_v43  ;;  %v8663_v24 = vpop.f32.mrf.mxu1  ;;  %v537_v43 = vsel %vm409_vm14, 1.0, %v18053_v51  ;;  %vm426_vm1 = vcmp.eq.s32.totalorder %v294_v22, %v14310_v58  ;;  %v280_v22 = vadd.s32 848, %v18033_v47 }
 0x2c0   : > { %9178 = vmatpush3.msra.mxu0 %v18581_v3  ;;  %5440 = vmatprep.mubr.f32.mxu1 %v18583_v61  ;;  %v8577_v23 = vpop.f32.mrf.mxu0  ;;  %v14610_v38 = vadd.f32 %v8663_v24, %v8662_v2  ;;  %v10227_v31 = vpack.i.bf16 %v537_v43, %v553_v14  ;;  %v279_v3 = vadd.s32 840, %v18033_v47  ;;  %v295_v61 = vadd.s32 968, %v18033_v47  ;;  %v18600_v14 = vld [vmem:[#allocation116_spill] sm:$0xff] }
 0x2c1   : > { %5166 = vmatmul.mubr.f32.gmra.mxu0 %v18562_v27  ;;  %9179 = vmatprep.subr.mxu0 %v18585_v15  ;;  %v8578_v10 = vadd.f32 %v8577_v23, %v8576_v49  ;;  %v14618_v19 = vadd.f32 %v14534_v59, %v3475_v63  ;;  %v18588_v27 = vld [vmem:[#allocation15_spill] sm:$0xff]  ;;  %v8665_v2 = vpop.f32.mrf.mxu1  ;;  %v18593_v59 = vld [vmem:[#allocation16_spill] sm:$0xff]  ;;  %v18598_v23 = vld [vmem:[#allocation17_spill] sm:$0xff]  ;;  %vm412_vm4 = vcmp.eq.s32.totalorder %v280_v22, %v14310_v58 }
 0x2c2   : > { %5172 = vmatprep.mubr.f32.mxu0 %v18565_v52  ;;  %9180 = vmatpush3.msra.mxu0 %v18587_v40  ;;  %v18589_v26 = vand.u32 4294901760, %v18588_v27  ;;  %v8579_v16 = vpop.f32.mrf.mxu0  ;;  %v18592_v52 = vand.u32 4294901760, %v18591_v55  ;;  %v18599_v37 = vand.u32 4294901760, %v18598_v23  ;;  %v538_v40 = vsel %vm410_vm0, 1.0, %v18053_v51 }
 0x2c3   : > { %10226 = vxpose.xlu1.b32.cont [7/16] %v10225_v44, 128  ;;  %v3484_v25 = vadd.f32 %v8578_v10, %v14473_v54  ;;  %9260 = vmatpush3.msra.mxu1 %v18593_v59  ;;  %v8666_v45 = vpop.f32.mrf.mxu1  ;;  %v18594_v44 = vld [vmem:[#allocation97_spill] sm:$0xff]  ;;  %v18601_v10 = vand.u32 4294901760, %v18600_v14  ;;  %vm411_vm2 = vcmp.eq.s32.totalorder %v279_v3, %v14310_v58  ;;  %vm427_vm3 = vcmp.eq.s32.totalorder %v295_v61, %v14310_v58 }
 0x2c4   : > { %5444 = vmatmul.mubr.f32.gmra.mxu1 %v18589_v26  ;;  %v8580_v49 = vpop.f32.mrf.mxu0  ;;  %v18595_v63 = vand.u32 4294901760, %v18594_v44  ;;  %v14635_v24 = vadd.f32 %v8666_v45, %v8665_v2  ;;  %v18603_v2 = vld [vmem:[#allocation88_spill] sm:$0xff]  ;;  %v539_v23 = vsel %vm411_vm2, 1.0, %v18053_v51  ;;  %v281_v61 = vadd.s32 856, %v18033_v47 }
 0x2c5   : > { %5451 = vmatprep.mubr.f32.mxu1 %v18592_v52  ;;  %5175 = vmatmul.mubr.f32.gmra.mxu0 %v18569_v39  ;;  %v8581_v54 = vadd.f32 %v8580_v49, %v8579_v16  ;;  %v14638_v34 = vadd.f32 %v14561_v35, %v3484_v25  ;;  %v18596_v39 = vld [vmem:[#allocation113_spill] sm:$0xff]  ;;  %v18602_v35 = vld [vmem:[#allocation66_spill] sm:$0xff]  ;;  %v8668_v21 = vpop.f32.mrf.mxu1  ;;  %v296_v16 = vadd.s32 976, %v18033_v47  ;;  %v18606_v49 = vld [vmem:[#allocation24_spill] sm:$0xff] }
 0x2c6   : > { %5181 = vmatprep.mubr.f32.mxu0 %v18571_v48  ;;  %9181 = vmatprep.subr.mxu0 %v18595_v63  ;;  %v18597_v15 = vand.u32 4294901760, %v18596_v39  ;;  %v554_v48 = vsel %vm426_vm1, 1.0, %v18053_v51  ;;  %v8582_v43 = vpop.f32.mrf.mxu0  ;;  %v18607_v45 = vand.u32 4294901760, %v18606_v49  ;;  %v18608_v63 = vld [vmem:[#allocation77_spill] sm:$0xff]  ;;  %vm413_vm6 = vcmp.eq.s32.totalorder %v281_v61, %v14310_v58 }
 0x2c7   : > { %9182 = vmatpush3.msra.mxu0 %v18599_v37  ;;  %9261 = vmatprep.subr.mxu1 %v18602_v35  ;;  %v3493_v26 = vadd.f32 %v8581_v54, %v14486_v6  ;;  %v10229_v52 = vpack.i.bf16 %v538_v40, %v554_v48  ;;  %v8669_v6 = vpop.f32.mrf.mxu1  ;;  %v18609_v54 = vand.u32 4294901760, %v18608_v63  ;;  %vm428_vm5 = vcmp.eq.s32.totalorder %v296_v16, %v14310_v58  ;;  %v18620_v63 = vld [vmem:[#allocation124_spill] sm:$0xff] }
 0x2c8   : > { %5455 = vmatmul.mubr.f32.gmra.mxu1 %v18597_v15  ;;  %10228 = vxpose.xlu1.b32.cont [8/16] %v10227_v31, 128  ;;  %v8583_v46 = vpop.f32.mrf.mxu0  ;;  %v14668_v44 = vadd.f32 %v8669_v6, %v8668_v21  ;;  %v297_v35 = vadd.s32 984, %v18033_v47  ;;  %v18618_v6 = vld [vmem:[#allocation103_spill] sm:$0xff]  ;;  %v282_v16 = vadd.s32 864, %v18033_v47 }
 0x2c9   : > { %5462 = vmatprep.mubr.f32.mxu1 %v18601_v10  ;;  %5184 = vmatmul.mubr.f32.gmra.mxu0 %v18578_v8  ;;  %v8584_v25 = vadd.f32 %v8583_v46, %v8582_v43  ;;  %v14662_v59 = vadd.f32 %v14586_v32, %v3493_v26  ;;  %v18604_v8 = vld [vmem:[#allocation28_spill] sm:$0xff]  ;;  %v555_v32 = vsel %vm427_vm3, 1.0, %v18053_v51  ;;  %v8671_v48 = vpop.f32.mrf.mxu1  ;;  %v18613_v26 = vld [vmem:[#allocation19_spill] sm:$0xff] }
 0x2ca   : > { %5190 = vmatprep.mubr.f32.mxu0 %v18582_v5  ;;  %9262 = vmatpush3.msra.mxu1 %v18603_v2  ;;  %v18605_v31 = vand.u32 4294901760, %v18604_v8  ;;  %v18610_v5 = vld [vmem:[#allocation119_spill] sm:$0xff]  ;;  %v8585_v40 = vpop.f32.mrf.mxu0  ;;  %v18612_v43 = vld [vmem:[#allocation72_spill] sm:$0xff]  ;;  %v10231_v46 = vpack.i.bf16 %v539_v23, %v555_v32  ;;  %v18619_v8 = vand.u32 4294901760, %v18618_v6  ;;  %vm429_vm7 = vcmp.eq.s32.totalorder %v297_v35, %v14310_v58 }
 0x2cb   : > { %v18611_v15 = vand.u32 4294901760, %v18610_v5  ;;  %v3502_v37 = vadd.f32 %v8584_v25, %v14490_v42  ;;  %9263 = vmatprep.subr.mxu1 %v18612_v43  ;;  %v8672_v10 = vpop.f32.mrf.mxu1  ;;  %v18622_v32 = vld [vmem:[#allocation92_spill] sm:$0xff]  ;;  %vm414_vm8 = vcmp.eq.s32.totalorder %v282_v16, %v14310_v58  ;;  %v283_v35 = vadd.s32 872, %v18033_v47 }
 0x2cc   : > { %9183 = vmatprep.subr.mxu0 %v18605_v31  ;;  %5466 = vmatmul.mubr.f32.gmra.mxu1 %v18607_v45  ;;  %v8586_v3 = vpop.f32.mrf.mxu0  ;;  %v14694_v25 = vadd.f32 %v8672_v10, %v8671_v48  ;;  %v556_v31 = vsel %vm428_vm5, 1.0, %v18053_v51  ;;  %v18626_v10 = vld [vmem:[#allocation125_spill] sm:$0xff] }
 0x2cd   : > { %9184 = vmatpush3.msra.mxu0 %v18609_v54  ;;  %5473 = vmatprep.mubr.f32.mxu1 %v18611_v15  ;;  %v14689_v42 = vadd.f32 %v14610_v38, %v3502_v37  ;;  %v8587_v2 = vadd.f32 %v8586_v3, %v8585_v40  ;;  %v540_v38 = vsel %vm412_vm4, 1.0, %v18053_v51  ;;  %v18621_v54 = vand.u32 4294901760, %v18620_v63  ;;  %v8674_v23 = vpop.f32.mrf.mxu1 }
 0x2ce   : > { %5193 = vmatmul.mubr.f32.gmra.mxu0 %v18588_v27  ;;  %10230 = vxpose.xlu1.b32.cont [9/16] %v10229_v52, 128  ;;  %v18614_v27 = vld [vmem:[#allocation94_spill] sm:$0xff]  ;;  %v8588_v45 = vpop.f32.mrf.mxu0  ;;  %v298_v37 = vadd.s32 992, %v18033_v47  ;;  %v10233_v40 = vpack.i.bf16 %v540_v38, %v556_v31  ;;  %v18630_v38 = vld [vmem:[#allocation96_spill] sm:$0xff]  ;;  %vm415_vm10 = vcmp.eq.s32.totalorder %v283_v35, %v14310_v58 }
 0x2cf   : > { %5199 = vmatprep.mubr.f32.mxu0 %v18591_v55  ;;  %9264 = vmatpush3.msra.mxu1 %v18613_v26  ;;  %v18615_v21 = vand.u32 4294901760, %v18614_v27  ;;  %v18616_v55 = vld [vmem:[#allocation120_spill] sm:$0xff]  ;;  %v3511_v15 = vadd.f32 %v8587_v2, %v14499_v57  ;;  %v8675_v57 = vpop.f32.mrf.mxu1  ;;  %v18627_v26 = vand.u32 4294901760, %v18626_v10  ;;  %v541_v2 = vsel %vm413_vm6, 1.0, %v18053_v51 }
 0x2d0   : > { %v18617_v52 = vand.u32 4294901760, %v18616_v55  ;;  %9265 = vmatprep.subr.mxu1 %v18622_v32  ;;  %v8589_v22 = vpop.f32.mrf.mxu0  ;;  %v14724_v27 = vadd.f32 %v8675_v57, %v8674_v23  ;;  %v18631_v31 = vand.u32 4294901760, %v18630_v38  ;;  %vm430_vm9 = vcmp.eq.s32.totalorder %v298_v37, %v14310_v58  ;;  %v18634_v23 = vld [vmem:[#allocation41_spill] sm:$0xff] }
 0x2d1   : > { %9185 = vmatprep.subr.mxu0 %v18615_v21  ;;  %v8590_v48 = vadd.f32 %v8589_v22, %v8588_v45  ;;  %v14718_v43 = vadd.f32 %v14635_v24, %v3511_v15  ;;  %v18628_v21 = vld [vmem:[#allocation128_spill] sm:$0xff]  ;;  %v557_v24 = vsel %vm429_vm7, 1.0, %v18053_v51  ;;  %v18633_v15 = vld [vmem:[#allocation27_spill] sm:$0xff]  ;;  %v542_v57 = vsel %vm414_vm8, 1.0, %v18053_v51 }
 0x2d2   : > { %5477 = vmatmul.mubr.f32.gmra.mxu1 %v18617_v52  ;;  %9186 = vmatpush3.msra.mxu0 %v18619_v8  ;;  %v8591_v6 = vpop.f32.mrf.mxu0  ;;  %v8677_v8 = vpop.f32.mrf.mxu1  ;;  %v10235_v32 = vpack.i.bf16 %v541_v2, %v557_v24  ;;  %v18640_v2 = vld [vmem:[#allocation132_spill] sm:$0xff]  ;;  %v284_v37 = vadd.s32 880, %v18033_v47 }
 0x2d3   : > { %5202 = vmatmul.mubr.f32.gmra.mxu0 %v18596_v39  ;;  %5484 = vmatprep.mubr.f32.mxu1 %v18621_v54  ;;  %v18623_v39 = vld [vmem:[#allocation100_spill] sm:$0xff]  ;;  %v3520_v52 = vadd.f32 %v8590_v48, %v14503_v11  ;;  %v299_v11 = vadd.s32 1000, %v18033_v47  ;;  %v18641_v24 = vand.u32 4294901760, %v18640_v2 }
 0x2d4   : > { %5208 = vmatprep.mubr.f32.mxu0 %v18600_v14  ;;  %10232 = vxpose.xlu1.b32.cont [10/16] %v10231_v46, 128  ;;  %v18624_v14 = vld [vmem:[#allocation95_spill] sm:$0xff]  ;;  %v18629_v46 = vand.u32 4294901760, %v18628_v21  ;;  %v8592_v61 = vpop.f32.mrf.mxu0  ;;  %v8678_v45 = vpop.f32.mrf.mxu1  ;;  %vm416_vm12 = vcmp.eq.s32.totalorder %v284_v37, %v14310_v58 }
 0x2d5   : > { %9266 = vmatpush3.msra.mxu1 %v18623_v39  ;;  %v18625_v3 = vand.u32 4294901760, %v18624_v14  ;;  %v14745_v54 = vadd.f32 %v14668_v44, %v3520_v52  ;;  %v8593_v22 = vadd.f32 %v8592_v61, %v8591_v6  ;;  %v14750_v39 = vadd.f32 %v8678_v45, %v8677_v8  ;;  %v18642_v52 = vld [vmem:[#allocation32_spill] sm:$0xff]  ;;  %v18643_v8 = vld [vmem:[#allocation21_spill] sm:$0xff] }
 0x2d6   : > { %5488 = vmatmul.mubr.f32.gmra.mxu1 %v18627_v26  ;;  %v558_v44 = vsel %vm430_vm9, 1.0, %v18053_v51  ;;  %v8594_v14 = vpop.f32.mrf.mxu0  ;;  %vm431_vm11 = vcmp.eq.s32.totalorder %v299_v11, %v14310_v58  ;;  %v300_v6 = vadd.s32 1008, %v18033_v47  ;;  %v285_v11 = vadd.s32 888, %v18033_v47 }
 0x2d7   : > { %9187 = vmatprep.subr.mxu0 %v18625_v3  ;;  %5211 = vmatmul.mubr.f32.gmra.mxu0 %v18606_v49  ;;  %v18632_v49 = vld [vmem:[#allocation26_spill] sm:$0xff]  ;;  %v18638_v3 = vld [vmem:[#allocation12_spill] sm:$0xff] }
 0x2d8   : > { %5495 = vmatprep.mubr.f32.mxu1 %v18629_v46  ;;  %9188 = vmatpush3.msra.mxu0 %v18631_v31  ;;  %v18639_v26 = vand.u32 4294901760, %v18638_v3  ;;  %v3529_v46 = vadd.f32 %v8593_v22, %v14513_v62  ;;  %v8595_v16 = vpop.f32.mrf.mxu0  ;;  %vm432_vm13 = vcmp.eq.s32.totalorder %v300_v6, %v14310_v58  ;;  %vm417_vm14 = vcmp.eq.s32.totalorder %v285_v11, %v14310_v58  ;;  %v18661_v6 = vld [vmem:[#allocation35_spill] sm:$0xff] }
 0x2d9   : > { %5217 = vmatprep.mubr.f32.mxu0 %v18610_v5  ;;  %9267 = vmatprep.subr.mxu1 %v18632_v49  ;;  %v18635_v5 = vand.u32 4294901760, %v18634_v23  ;;  %v8596_v62 = vadd.f32 %v8595_v16, %v8594_v14  ;;  %v18644_v49 = vld [vmem:[#allocation112_spill] sm:$0xff]  ;;  %v18647_v23 = vld [vmem:[#allocation30_spill] sm:$0xff]  ;;  %v18654_v16 = vld [vmem:[#allocation137_spill] sm:$0xff] }
 0x2da   : > { %10234 = vxpose.xlu1.b32.cont [11/16] %v10233_v40, 128  ;;  %9268 = vmatpush3.msra.mxu1 %v18633_v15  ;;  %v18636_v40 = vld [vmem:[#allocation131_spill] sm:$0xff]  ;;  %v14774_v31 = vadd.f32 %v14694_v25, %v3529_v46  ;;  %v18645_v61 = vand.u32 4294901760, %v18644_v49  ;;  %v18646_v15 = vand.u32 4294901760, %v14234_v20  ;;  %v559_v25 = vsel %vm431_vm11, 1.0, %v18053_v51 }
 0x2db   : > { %9189 = vmatprep.subr.mxu0 %v18635_v5  ;;  %5220 = vmatmul.mubr.f32.gmra.mxu0 %v18616_v55  ;;  %v18637_v48 = vand.u32 4294901760, %v18636_v40  ;;  %v8680_v55 = vpop.f32.mrf.mxu1  ;;  %v18648_v5 = vand.u32 4294901760, %v18647_v23  ;;  %v3538_v22 = vadd.f32 %v8596_v62, %v14517_v41  ;;  %v301_v41 = vadd.s32 1016, %v18033_v47  ;;  %v18656_v62 = vld [vmem:[#allocation104_spill] sm:$0xff]  ;;  %v18660_v23 = vld [vmem:[#allocation99_spill] sm:$0xff] }
 0x2dc   : > { %9190 = vmatpush3.msra.mxu0 %v18639_v26  ;;  %5226 = vmatprep.mubr.f32.mxu0 %v18620_v63  ;;  %v10237_v63 = vpack.i.bf16 %v542_v57, %v558_v44  ;;  %v18649_v57 = vand.u32 4294901760, %v14268_v36  ;;  %v18650_v44 = vld [vmem:[#allocation31_spill] sm:$0xff]  ;;  %v18652_v26 = vld [vmem:[#allocation102_spill] sm:$0xff]  ;;  %v544_v47 = vsel %vm416_vm12, 1.0, %v18053_v51 }
 0x2dd   : > { %5499 = vmatmul.mubr.f32.gmra.mxu1 %v18637_v48  ;;  %9269 = vmatprep.subr.mxu1 %v18642_v52  ;;  %v8681_v38 = vpop.f32.mrf.mxu1  ;;  %v8597_v48 = vpop.f32.mrf.mxu0  ;;  %v14801_v3 = vadd.f32 %v14724_v27, %v3538_v22  ;;  %v18653_v46 = vand.u32 4294901760, %v18652_v26  ;;  %v560_v27 = vsel %vm432_vm13, 1.0, %v18053_v51  ;;  %vm433_vm15 = vcmp.eq.s32.totalorder %v301_v41, %v14310_v58  ;;  %v18662_v22 = vld [vmem:[#allocation20_spill] sm:$0xff]  ;;  %v18671_v58 = vld [vmem:[#allocation38_spill] sm:$0xff] }
 0x2de   : > { %5506 = vmatprep.mubr.f32.mxu1 %v18641_v24  ;;  %10236 = vxpose.xlu1.b32.cont [12/16] %v10235_v32, 128  ;;  %v14779_v45 = vadd.f32 %v8681_v38, %v8680_v55  ;;  %v543_v32 = vsel %vm415_vm10, 1.0, %v18053_v51  ;;  %v18657_v38 = vand.u32 4294901760, %v18656_v62 }
 0x2df   : > { %9270 = vmatpush3.msra.mxu1 %v18643_v8  ;;  %9191 = vmatprep.subr.mxu0 %v18645_v61  ;;  %v8598_v35 = vpop.f32.mrf.mxu0  ;;  %v10239_v55 = vpack.i.bf16 %v543_v32, %v559_v25  ;;  %v18655_v8 = vand.u32 4294901760, %v18654_v16  ;;  %v18658_v61 = vld [vmem:[#allocation138_spill] sm:$0xff] }
 0x2e0   : > { %5229 = vmatmul.mubr.f32.gmra.mxu0 %v18626_v10  ;;  %v8683_v10 = vpop.f32.mrf.mxu1  ;;  %9271 = vmatprep.subr.mxu1 %v18650_v44  ;;  %v8599_v24 = vadd.f32 %v8598_v35, %v8597_v48  ;;  %v18663_v48 = vand.u32 4294901760, %v18662_v22  ;;  %v18664_v44 = vand.u32 4294901760, %v14342_v12  ;;  %v18665_v35 = vld [vmem:[#allocation106_spill] sm:$0xff] }
 0x2e1   : > { %5510 = vmatmul.mubr.f32.gmra.mxu1 %v18646_v15  ;;  %9192 = vmatpush3.msra.mxu0 %v18648_v5  ;;  %v18659_v15 = vand.u32 4294901760, %v18658_v61  ;;  %v10241_v5 = vpack.i.bf16 %v544_v47, %v560_v27  ;;  %v18669_v47 = vld [vmem:[#allocation34_spill] sm:$0xff] }
 0x2e2   : > { %5235 = vmatprep.mubr.f32.mxu0 %v18628_v21  ;;  %5517 = vmatprep.mubr.f32.mxu1 %v18649_v57  ;;  %v8684_v14 = vpop.f32.mrf.mxu1  ;;  %v18651_v21 = vld [vmem:[#allocation107_spill] sm:$0xff]  ;;  %v3547_v49 = vadd.f32 %v8599_v24, %v14528_v4  ;;  %v673_v57 = vld [vmem:[#allocation5 + $0x378] sm:$0xff] }
 0x2e3   : > { %10238 = vxpose.xlu1.b32.cont [13/16] %v10237_v63, 128  ;;  %9272 = vmatpush3.msra.mxu1 %v18651_v21  ;;  %v14806_v52 = vadd.f32 %v8684_v14, %v8683_v10  ;;  %v8600_v63 = vpop.f32.mrf.mxu0  ;;  %v18666_v14 = vand.u32 4294901760, %v18665_v35  ;;  %v545_v21 = vsel %vm417_vm14, 1.0, %v18053_v51 }
 0x2e4   : > { %9193 = vmatprep.subr.mxu0 %v18653_v46  ;;  %5238 = vmatmul.mubr.f32.gmra.mxu0 %v18636_v40  ;;  %v8686_v40 = vpop.f32.mrf.mxu1  ;;  %v14828_v4 = vadd.f32 %v14750_v39, %v3547_v49  ;;  %v561_v39 = vsel %vm433_vm15, 1.0, %v18053_v51  ;;  %v672_v49 = vld [vmem:[#allocation5 + $0x370] sm:$0xff] }
 0x2e5   : > { %5521 = vmatmul.mubr.f32.gmra.mxu1 %v18655_v8  ;;  %9194 = vmatpush3.msra.mxu0 %v18657_v38  ;;  %v8601_v37 = vpop.f32.mrf.mxu0  ;;  %v688_v8 = vld [vmem:[#allocation5 + $0x3f0] sm:$0xff]  ;;  %v10243_v41 = vpack.i.bf16 %v545_v21, %v561_v39  ;;  %v14880_v35 = vand.u32 4294901760, %v672_v49  ;;  %v18684_v21 = vld [vmem:[#allocation11_spill] sm:$0xff] }
 0x2e6   : > { %5244 = vmatprep.mubr.f32.mxu0 %v18640_v2  ;;  %5528 = vmatprep.mubr.f32.mxu1 %v18659_v15  ;;  %v8602_v32 = vadd.f32 %v8601_v37, %v8600_v63  ;;  %v8687_v25 = vpop.f32.mrf.mxu1  ;;  %v689_v2 = vld [vmem:[#allocation5 + $0x3f8] sm:$0xff]  ;;  %v14852_v63 = vand.u32 4294901760, %v673_v57  ;;  %v18685_v39 = vand.u32 4294901760, %v18684_v21 }
 0x2e7   : > { %9273 = vmatprep.subr.mxu1 %v18660_v23  ;;  %10240 = vxpose.xlu1.b32.cont [14/16] %v10239_v55, 128  ;;  %v14833_v10 = vadd.f32 %v8687_v25, %v8686_v40  ;;  %v18667_v55 = vand.u32 4294901760, %v14358_v53  ;;  %v14849_v24 = vand.u32 4294901760, %v689_v2  ;;  %v18674_v40 = vand.u32 4294901760, %v14390_v18  ;;  %18682 = vst [vmem:[#allocation67_spill] sm:$0xff] %v14880_v35 }
 0x2e8   : > { %9274 = vmatpush3.msra.mxu1 %v18661_v6  ;;  %9195 = vmatprep.subr.mxu0 %v18663_v48  ;;  %v3556_v26 = vadd.f32 %v8602_v32, %v14545_v29  ;;  %v8689_v46 = vpop.f32.mrf.mxu1  ;;  %18670 = vst [vmem:[#allocation68_spill] sm:$0xff] %v14852_v63  ;;  %v18672_v29 = vld [vmem:[#allocation110_spill] sm:$0xff]  ;;  %v14865_v23 = vand.u32 4294901760, %v688_v8  ;;  %v687_v32 = vld [vmem:[#allocation5 + $0x3e8] sm:$0xff]  ;;  %v18679_v25 = vand.u32 4294901760, %v14402_v17 }
 0x2e9   : > { %5247 = vmatmul.mubr.f32.gmra.mxu0 %v14234_v20  ;;  %5532 = vmatmul.mubr.f32.gmra.mxu1 %v18664_v44  ;;  %v8603_v20 = vpop.f32.mrf.mxu0  ;;  %18668 = vst [vmem:[#allocation56_spill] sm:$0xff] %v14849_v24  ;;  %v14878_v44 = vsub.f32 %v673_v57, %v14852_v63  ;;  %v14892_v57 = vand.u32 4294901760, %v687_v32 }
 0x2ea   : > { %9196 = vmatpush3.msra.mxu0 %v18666_v14  ;;  %5253 = vmatprep.mubr.f32.mxu0 %v14268_v36  ;;  %v8690_v27 = vpop.f32.mrf.mxu1  ;;  %v14855_v51 = vadd.f32 %v14779_v45, %v3556_v26  ;;  %v18673_v36 = vand.u32 4294901760, %v18672_v29  ;;  %18675 = vst [vmem:[#allocation87_spill] sm:$0xff] %v14865_v23  ;;  %v18676_v45 = vld [vmem:[#allocation49_spill] sm:$0xff]  ;;  %v671_v14 = vld [vmem:[#allocation5 + $0x368] sm:$0xff] }
 0x2eb   : > { %5539 = vmatprep.mubr.f32.mxu1 %v18667_v55  ;;  %9275 = vmatprep.subr.mxu1 %v18669_v47  ;;  %v8604_v11 = vpop.f32.mrf.mxu0  ;;  %v14860_v38 = vadd.f32 %v8690_v27, %v8689_v46  ;;  %v18677_v37 = vand.u32 4294901760, %v18676_v45  ;;  %18681 = vst [vmem:[#allocation52_spill] sm:$0xff] %v14878_v44  ;;  %18687 = vst [vmem:[#allocation43_spill] sm:$0xff] %v14892_v57  ;;  %v670_v46 = vld [vmem:[#allocation5 + $0x360] sm:$0xff]  ;;  %v18688_v55 = vand.u32 4294901760, %v14418_v60  ;;  %v18689_v47 = vld [vmem:[#allocation44_spill] sm:$0xff] }
 0x2ec   : > { %10242 = vxpose.xlu1.b32.cont [15/16] %v10241_v5, 128  ;;  %9276 = vmatpush3.msra.mxu1 %v18671_v58  ;;  %v8605_v62 = vadd.f32 %v8604_v11, %v8603_v20  ;;  %v14872_v5 = vsub.f32 %v689_v2, %v14849_v24  ;;  %v8692_v22 = vpop.f32.mrf.mxu1  ;;  %v14890_v20 = vsub.f32 %v688_v8, %v14865_v23  ;;  %v18690_v11 = vand.u32 4294901760, %v18689_v47  ;;  %v18691_v29 = vld [vmem:[#allocation36_spill] sm:$0xff]  ;;  %v18705_v47 = vld [vmem:[#allocation50_spill] sm:$0xff] }
 0x2ed   : > { %9197 = vmatprep.subr.mxu0 %v18673_v36  ;;  %5256 = vmatmul.mubr.f32.gmra.mxu0 %v18654_v16  ;;  %v8606_v15 = vpop.f32.mrf.mxu0  ;;  %v18680_v16 = vld [vmem:[#allocation39_spill] sm:$0xff] }
 0x2ee   : > { %5543 = vmatmul.mubr.f32.gmra.mxu1 %v18674_v40  ;;  %9198 = vmatpush3.msra.mxu0 %v18677_v37  ;;  %v3565_v6 = vadd.f32 %v8605_v62, %v14549_v33  ;;  %18678 = vst [vmem:[#allocation114_spill] sm:$0xff] %v14872_v5  ;;  %v8693_v26 = vpop.f32.mrf.mxu1  ;;  %18686 = vst [vmem:[#allocation63_spill] sm:$0xff] %v14890_v20  ;;  %v17370_v58 = vand.u32 4294901760, %v14872_v5  ;;  %v14906_v62 = vsub.f32 %v672_v49, %v14880_v35 }
 0x2ef   : > { %5262 = vmatprep.mubr.f32.mxu0 %v18658_v61  ;;  %5550 = vmatprep.mubr.f32.mxu1 %v18679_v25  ;;  %v8607_v48 = vpop.f32.mrf.mxu0  ;;  %v18683_v61 = vld [vmem:[#allocation42_spill] sm:$0xff]  ;;  %v14899_v27 = vadd.f32 %v8693_v26, %v8692_v22  ;;  %v14908_v40 = vand.u32 4294901760, %v671_v14  ;;  %v14923_v25 = vsub.f32 %v687_v32, %v14892_v57 }
 0x2f0   : > { %9277 = vmatprep.subr.mxu1 %v18680_v16  ;;  %10244 = vxpose.xlu1.b32.end [16/16] %v10243_v41, 128  ;;  %v8608_v33 = vadd.f32 %v8607_v48, %v8606_v15  ;;  %v14884_v2 = vadd.f32 %v14806_v52, %v3565_v6  ;;  %v8807_v36 = vpop.f32.mrf.mxu1  ;;  %v17369_v41 = vand.u32 4294901760, %v14878_v44  ;;  %18692 = vst [vmem:[#allocation105_spill] sm:$0xff] %v14906_v62  ;;  %v14913_v15 = vand.u32 4294901760, %v670_v46  ;;  %v18700_v48 = vld [vmem:[#allocation143_spill] sm:$0xff] }
 0x2f1   : > { %9278 = vmatpush3.msra.mxu1 %v18683_v61  ;;  %9199 = vmatprep.subr.mxu0 %v18685_v39  ;;  %v8609_v8 = vpop.f32.mrf.mxu0  ;;  %18693 = vst [vmem:[#allocation48_spill] sm:$0xff] %v14908_v40  ;;  %v17368_v6 = vand.u32 4294901760, %v14890_v20  ;;  %18697 = vst [vmem:[#allocation51_spill] sm:$0xff] %v14923_v25  ;;  %v18701_v61 = vand.u32 4294901760, %v18700_v48  ;;  %v17371_v26 = vand.u32 4294901760, %v14906_v62 }
 0x2f2   : > { %5265 = vmatmul.mubr.f32.gmra.mxu0 %v14342_v12  ;;  %5554 = vmatmul.mubr.f32.gmra.mxu1 %v18688_v55  ;;  %v3574_v52 = vadd.f32 %v8608_v33, %v14556_v56  ;;  %v686_v12 = vld [vmem:[#allocation5 + $0x3e0] sm:$0xff]  ;;  %v18694_v56 = vand.u32 4294901760, %v14361_v9  ;;  %18695 = vst [vmem:[#allocation33_spill] sm:$0xff] %v14913_v15  ;;  %v8808_v49 = vpop.f32.mrf.mxu1  ;;  %v18702_v33 = vld [vmem:[#allocation57_spill] sm:$0xff]  ;;  %v14943_v55 = vsub.f32 %v671_v14, %v14908_v40 }
 0x2f3   : > { %9200 = vmatpush3.msra.mxu0 %v18690_v11  ;;  %9279 = vmatprep.subr.mxu1 %v18691_v29  ;;  %v8610_v37 = vpop.f32.mrf.mxu0  ;;  %v14925_v16 = vand.u32 4294901760, %v686_v12  ;;  %v14929_v22 = vadd.f32 %v8808_v49, %v8807_v36  ;;  %v18703_v32 = vand.u32 4294901760, %v18702_v33  ;;  %v669_v29 = vld [vmem:[#allocation5 + $0x358] sm:$0xff]  ;;  %v6512_v14 = vsub.f32 %v14890_v20, %v17368_v6  ;;  %v18711_v49 = vld [vmem:[#allocation47_spill] sm:$0xff] }
 0x2f4   : > { %5271 = vmatprep.mubr.f32.mxu0 %v14358_v53  ;;  %5561 = vmatprep.mubr.f32.mxu1 %v18694_v56  ;;  %v14916_v45 = vadd.f32 %v14833_v10, %v3574_v52  ;;  %v18696_v53 = vand.u32 4294901760, %v18526_v30  ;;  %v8611_v10 = vadd.f32 %v8610_v37, %v8609_v8  ;;  %v685_v30 = vld [vmem:[#allocation5 + $0x3d8] sm:$0xff]  ;;  %v8810_v39 = vpop.f32.mrf.mxu1  ;;  %18704 = vst [vmem:[#allocation37_spill] sm:$0xff] %v14943_v55  ;;  %v17376_v37 = vand.u32 4294901760, %v14923_v25 }
 0x2f5   : > { %9280 = vmatpush3.msra.mxu1 %v13547_v28  ;;  %18698 = vst [vmem:[#allocation115_spill] sm:$0xff] %v14925_v16  ;;  %v18699_v28 = vld [vmem:[#allocation40_spill] sm:$0xff]  ;;  %v8612_v21 = vpop.f32.mrf.mxu0  ;;  %v14949_v52 = vsub.f32 %v670_v46, %v14913_v15  ;;  %v18707_v8 = vld [vmem:[#allocation46_spill] sm:$0xff]  ;;  %v668_v46 = vld [vmem:[#allocation5 + $0x350] sm:$0xff] }
 0x2f6   : > { %9281 = vmatprep.subr.mxu1 %v13578_v50  ;;  %9201 = vmatprep.subr.mxu0 %v18696_v53  ;;  %v6505_v50 = vsub.f32 %v14872_v5, %v17370_v58  ;;  %v3583_v11 = vadd.f32 %v8611_v10, %v14559_v7  ;;  %v18708_v36 = vld [vmem:[#allocation62_spill] sm:$0xff]  ;;  %v8811_v53 = vpop.f32.mrf.mxu1  ;;  %v14960_v7 = vand.u32 4294901760, %v685_v30 }
 0x2f7   : > { %9282 = vmatpush3.msra.mxu1 %v18699_v28  ;;  %5274 = vmatmul.mubr.f32.gmra.mxu0 %v14390_v18  ;;  %v6393_v18 = vsub.f32 %v14878_v44, %v17369_v41  ;;  %18706 = vst [vmem:[#allocation73_spill] sm:$0xff] %v14949_v52  ;;  %v8613_v56 = vpop.f32.mrf.mxu0  ;;  %v18712_v28 = vld [vmem:[#allocation54_spill] sm:$0xff]  ;;  %v14965_v33 = vadd.f32 %v8811_v53, %v8810_v39  ;;  %v14976_v39 = vand.u32 4294901760, %v669_v29 }
 0x2f8   : > { %5565 = vmatmul.mubr.f32.gmra.mxu1 %v18701_v61  ;;  %9202 = vmatpush3.msra.mxu0 %v18703_v32  ;;  %18710 = vst [vmem:[#allocation76_spill] sm:$0xff] %v14960_v7  ;;  %v18713_v10 = vand.u32 4294901760, %v18712_v28  ;;  %v8614_v61 = vadd.f32 %v8613_v56, %v8612_v21  ;;  %v6506_v32 = vand.u32 4294901760, %v6505_v50  ;;  %v18714_v6 = vld [vmem:[#allocation58_spill] sm:$0xff]  ;;  %v8813_v41 = vpop.f32.mrf.mxu1  ;;  %v18716_v50 = vld [vmem:[#allocation55_spill] sm:$0xff]  ;;  %v6519_v28 = vsub.f32 %v14923_v25, %v17376_v37 }
 0x2f9   : > { %9283 = vmatprep.subr.mxu1 %v18705_v47  ;;  %5280 = vmatprep.mubr.f32.mxu0 %v14402_v17  ;;  %v14958_v17 = vsub.f32 %v686_v12, %v14925_v16  ;;  %v684_v47 = vld [vmem:[#allocation5 + $0x3d0] sm:$0xff]  ;;  %v8727_v12 = vpop.f32.mrf.mxu0  ;;  %v6394_v58 = vand.u32 4294901760, %v6393_v18  ;;  %18715 = vst [vmem:[#allocation69_spill] sm:$0xff] %v14976_v39  ;;  %v18717_v56 = vand.u32 4294901760, %v18716_v50  ;;  %v14991_v50 = vsub.f32 %v685_v30, %v14960_v7 }
 0x2fa   : > { %9284 = vmatpush3.msra.mxu1 %v18707_v8  ;;  %5940 = vmatprep.mubr.f32.mxu1 %v18708_v36  ;;  %v14968_v8 = vadd.f32 %v14860_v38, %v3583_v11  ;;  %v18718_v38 = vld [vmem:[#allocation61_spill] sm:$0xff]  ;;  %v14982_v11 = vand.u32 4294901760, %v668_v46  ;;  %v8814_v53 = vpop.f32.mrf.mxu1  ;;  %v6513_v21 = vand.u32 4294901760, %v6512_v14  ;;  %v18725_v25 = vand.u32 4294901760, %v14943_v55 }
 0x2fb   : > { %18709 = vst [vmem:[#allocation121_spill] sm:$0xff] %v14958_v17  ;;  %9285 = vmatprep.subr.mxu1 %v18711_v49  ;;  %9203 = vmatprep.subr.mxu0 %v18713_v10  ;;  %v6400_v49 = vsub.f32 %v14906_v62, %v17371_v26  ;;  %v8728_v18 = vpop.f32.mrf.mxu0  ;;  %18721 = vst [vmem:[#allocation85_spill] sm:$0xff] %v14991_v50  ;;  %v14997_v26 = vadd.f32 %v8814_v53, %v8813_v41  ;;  %v683_v62 = vld [vmem:[#allocation5 + $0x3c8] sm:$0xff]  ;;  %v18727_v14 = vld [vmem:[#allocation65_spill] sm:$0xff] }
 0x2fc   : > { %9286 = vmatpush3.msra.mxu1 %v18714_v6  ;;  %5283 = vmatmul.mubr.f32.gmra.mxu0 %v14418_v60  ;;  %v3592_v6 = vadd.f32 %v8614_v61, %v14565_v1  ;;  %18719 = vst [vmem:[#allocation70_spill] sm:$0xff] %v14982_v11  ;;  %v18720_v60 = vld [vmem:[#allocation75_spill] sm:$0xff]  ;;  %v8816_v30 = vpop.f32.mrf.mxu1  ;;  %v15008_v41 = vsub.f32 %v669_v29, %v14976_v39  ;;  %v18732_v29 = vand.u32 4294901760, %v14958_v17 }
 0x2fd   : > { %9204 = vmatpush3.msra.mxu0 %v18717_v56  ;;  %5942 = vmatmul.mubr.f32.vlgmr.msra.gmra.mxu1 %v18718_v38  ;;  %v14993_v56 = vand.u32 4294901760, %v684_v47  ;;  %v18723_v1 = vld [vmem:[#allocation59_spill] sm:$0xff]  ;;  %v8730_v37 = vpop.f32.mrf.mxu0  ;;  %v6401_v10 = vand.u32 4294901760, %v6400_v49  ;;  %v667_v49 = vld [vmem:[#allocation5 + $0x348] sm:$0xff] }
 0x2fe   : > { %5289 = vmatprep.mubr.f32.mxu0 %v14361_v9  ;;  %5947 = vmatprep.mubr.f32.mxu1 %v18720_v60  ;;  %v18724_v61 = vand.u32 4294901760, %v18723_v1  ;;  %v8729_v9 = vadd.f32 %v8728_v18, %v8727_v12  ;;  %v15000_v20 = vadd.f32 %v14899_v27, %v3592_v6  ;;  %v6407_v1 = vsub.f32 %v14943_v55, %v18725_v25  ;;  %v18729_v27 = vld [vmem:[#allocation74_spill] sm:$0xff]  ;;  %v18731_v6 = vld [vmem:[#allocation81_spill] sm:$0xff]  ;;  %v8817_v18 = vpop.f32.mrf.mxu1 }
 0x2ff   : > { %18722 = vst [vmem:[#allocation80_spill] sm:$0xff] %v14993_v56  ;;  %9415 = vmatprep.subr.mxu1 %v6506_v32  ;;  %18726 = vst [vmem:[#allocation14_spill] sm:$0xff] %v15008_v41  ;;  %v18728_v12 = vand.u32 4294901760, %v18727_v14  ;;  %v8731_v25 = vpop.f32.mrf.mxu0  ;;  %v6526_v53 = vsub.f32 %v14958_v17, %v18732_v29  ;;  %v15024_v14 = vsub.f32 %v684_v47, %v14993_v56  ;;  %v18735_v17 = vand.u32 4294901760, %v14949_v52 }
 0x300   : > { %9205 = vmatprep.subr.mxu0 %v18724_v61  ;;  %5292 = vmatmul.mubr.f32.gmra.mxu0 %v18700_v48  ;;  %v4033_v48 = vadd.f32 %v8729_v9, %v14571_v13  ;;  %v15026_v13 = vand.u32 4294901760, %v683_v62  ;;  %v6520_v9 = vand.u32 4294901760, %v6519_v28  ;;  %v8819_v61 = vpop.f32.mrf.mxu1  ;;  %v6408_v47 = vand.u32 4294901760, %v6407_v1  ;;  %v666_v28 = vld [vmem:[#allocation5 + $0x340] sm:$0xff] }
 0x301   : > { %9416 = vmatpush3.msra.mxu1 %v6394_v58  ;;  %9206 = vmatpush3.msra.mxu0 %v18728_v12  ;;  %v15015_v58 = vsub.f32 %v668_v46, %v14982_v11  ;;  %18733 = vst [vmem:[#allocation79_spill] sm:$0xff] %v15024_v14  ;;  %v8732_v46 = vadd.f32 %v8731_v25, %v8730_v37  ;;  %v682_v12 = vld [vmem:[#allocation5 + $0x3c0] sm:$0xff]  ;;  %v8733_v29 = vpop.f32.mrf.mxu0  ;;  %v15039_v37 = vand.u32 4294901760, %v667_v49 }
 0x302   : > { %5949 = vmatmul.mubr.f32.gmra.mxu1 %v18729_v27  ;;  %5731 = vmatprep.mubr.f32.mxu0 %v18708_v36  ;;  %18734 = vst [vmem:[#allocation13_spill] sm:$0xff] %v15026_v13  ;;  %v15029_v36 = vadd.f32 %v8817_v18, %v8816_v30  ;;  %v15032_v32 = vadd.f32 %v14929_v22, %v4033_v48  ;;  %v18737_v30 = vld [vmem:[#allocation78_spill] sm:$0xff]  ;;  %v8820_v48 = vpop.f32.mrf.mxu1 }
 0x303   : > { %18730 = vst [vmem:[#allocation83_spill] sm:$0xff] %v15015_v58  ;;  %5954 = vmatprep.mubr.f32.mxu1 %v18731_v6  ;;  %9335 = vmatprep.subr.mxu0 %v14849_v24  ;;  %v6414_v55 = vsub.f32 %v14949_v52, %v18735_v17  ;;  %18736 = vst [vmem:[#allocation45_spill] sm:$0xff] %v15039_v37  ;;  %v4040_v22 = vadd.f32 %v8732_v46, %v14592_v0  ;;  %v8734_v1 = vpop.f32.mrf.mxu0  ;;  %v18739_v17 = vand.u32 4294901760, %v14991_v50 }
 0x304   : > { %9417 = vmatprep.subr.mxu1 %v6513_v21  ;;  %5733 = vmatmul.mubr.f32.vlgmr.msra.gmra.mxu0 %v18718_v38  ;;  %v15052_v21 = vsub.f32 %v683_v62, %v15026_v13  ;;  %v15054_v52 = vand.u32 4294901760, %v682_v12  ;;  %v8735_v0 = vadd.f32 %v8734_v1, %v8733_v29  ;;  %v6527_v46 = vand.u32 4294901760, %v6526_v53  ;;  %v681_v38 = vld [vmem:[#allocation5 + $0x3b8] sm:$0xff]  ;;  %v8822_v18 = vpop.f32.mrf.mxu1 }
 0x305   : > { %9418 = vmatpush3.msra.mxu1 %v6401_v10  ;;  %9336 = vmatpush3.msra.mxu0 %v14852_v63  ;;  %v18738_v10 = vld [vmem:[#allocation60_spill] sm:$0xff]  ;;  %v6533_v25 = vsub.f32 %v14991_v50, %v18739_v17  ;;  %v15060_v44 = vadd.f32 %v14965_v33, %v4040_v22  ;;  %v8736_v17 = vpop.f32.mrf.mxu0  ;;  %v6415_v62 = vand.u32 4294901760, %v6414_v55  ;;  %v18743_v50 = vand.u32 4294901760, %v15008_v41  ;;  %v18746_v53 = vld [vmem:[#allocation90_spill] sm:$0xff] }
 0x306   : > { %5956 = vmatmul.mubr.f32.gmra.mxu1 %v18737_v30  ;;  %5738 = vmatprep.mubr.f32.mxu0 %v18720_v60  ;;  %18740 = vst [vmem:[#allocation93_spill] sm:$0xff] %v15052_v21  ;;  %18741 = vst [vmem:[#allocation25_spill] sm:$0xff] %v15054_v52  ;;  %v15057_v60 = vadd.f32 %v8820_v48, %v8819_v61  ;;  %v15069_v61 = vand.u32 4294901760, %v666_v28  ;;  %v4047_v33 = vadd.f32 %v8735_v0, %v14618_v19  ;;  %v665_v55 = vld [vmem:[#allocation5 + $0x338] sm:$0xff] }
 0x307   : > { %5961 = vmatprep.mubr.f32.mxu1 %v18738_v10  ;;  %9337 = vmatprep.subr.mxu0 %v14865_v23  ;;  %18742 = vst [vmem:[#allocation22_spill] sm:$0xff] %v15060_v44  ;;  %v6421_v63 = vsub.f32 %v15008_v41, %v18743_v50  ;;  %v18748_v50 = vld [vmem:[#allocation91_spill] sm:$0xff]  ;;  %v18749_v22 = vand.u32 4294901760, %v15024_v14  ;;  %v15086_v19 = vsub.f32 %v682_v12, %v15054_v52  ;;  %v15088_v0 = vand.u32 4294901760, %v681_v38  ;;  %v680_v41 = vld [vmem:[#allocation5 + $0x3b0] sm:$0xff] }
 0x308   : > { %9419 = vmatprep.subr.mxu1 %v6520_v9  ;;  %5740 = vmatmul.mubr.f32.gmra.mxu0 %v18729_v27  ;;  %v15067_v9 = vsub.f32 %v667_v49, %v15039_v37  ;;  %18745 = vst [vmem:[#allocation53_spill] sm:$0xff] %v15069_v61  ;;  %v18747_v27 = vand.u32 4294901760, %v15015_v58  ;;  %v8737_v49 = vpop.f32.mrf.mxu0  ;;  %v15099_v44 = vsub.f32 %v666_v28, %v15069_v61  ;;  %v18757_v28 = vand.u32 4294901760, %v15052_v21 }
 0x309   : > { %9420 = vmatpush3.msra.mxu1 %v6408_v47  ;;  %9338 = vmatpush3.msra.mxu0 %v14880_v35  ;;  %v8823_v47 = vpop.f32.mrf.mxu1  ;;  %v6540_v1 = vsub.f32 %v15024_v14, %v18749_v22  ;;  %18750 = vst [vmem:[#allocation89_spill] sm:$0xff] %v15086_v19  ;;  %18751 = vst [vmem:[#allocation101_spill] sm:$0xff] %v15088_v0  ;;  %v15094_v35 = vadd.f32 %v14997_v26, %v4047_v33  ;;  %v6422_v12 = vand.u32 4294901760, %v6421_v63 }
 0x30a   : > { %18744 = vst [vmem:[#allocation82_spill] sm:$0xff] %v15067_v9  ;;  %5963 = vmatmul.mubr.f32.gmra.mxu1 %v18746_v53  ;;  %v15077_v29 = vsub.f32 %v15015_v58, %v18747_v27  ;;  %5745 = vmatprep.mubr.f32.mxu0 %v18731_v6  ;;  %v8738_v27 = vadd.f32 %v8737_v49, %v8736_v17  ;;  %v6534_v58 = vand.u32 4294901760, %v6533_v25  ;;  %v8739_v22 = vpop.f32.mrf.mxu0  ;;  %18753 = vst [vmem:[#allocation86_spill] sm:$0xff] %v15099_v44  ;;  %v18756_v17 = vld [vmem:[#allocation98_spill] sm:$0xff] }
 0x30b   : > { %5968 = vmatprep.mubr.f32.mxu1 %v18748_v50  ;;  %9339 = vmatprep.subr.mxu0 %v14892_v57  ;;  %v15091_v6 = vadd.f32 %v8823_v47, %v8822_v18  ;;  %18752 = vst [vmem:[#allocation71_spill] sm:$0xff] %v15094_v35  ;;  %v8825_v48 = vpop.f32.mrf.mxu1  ;;  %v18755_v18 = vld [vmem:[#allocation64_spill] sm:$0xff]  ;;  %v6547_v33 = vsub.f32 %v15052_v21, %v18757_v28  ;;  %v15116_v14 = vand.u32 4294901760, %v680_v41  ;;  %v18761_v49 = vand.u32 4294901760, %v15067_v9 }
 0x30c   : > { %9421 = vmatprep.subr.mxu1 %v6527_v46  ;;  %5747 = vmatmul.mubr.f32.gmra.mxu0 %v18737_v30  ;;  %v15101_v46 = vand.u32 4294901760, %v665_v55  ;;  %v4054_v26 = vadd.f32 %v8738_v27, %v14638_v34  ;;  %v6429_v25 = vand.u32 4294901760, %v15077_v29  ;;  %v664_v30 = vld [vmem:[#allocation5 + $0x330] sm:$0xff]  ;;  %v8740_v63 = vpop.f32.mrf.mxu0  ;;  %v15114_v47 = vsub.f32 %v681_v38, %v15088_v0  ;;  %v679_v34 = vld [vmem:[#allocation5 + $0x3a8] sm:$0xff] }
 0x30d   : > { %9422 = vmatpush3.msra.mxu1 %v6415_v62  ;;  %9340 = vmatpush3.msra.mxu0 %v14908_v40  ;;  %v8826_v62 = vpop.f32.mrf.mxu1  ;;  %18759 = vst [vmem:[#allocation108_spill] sm:$0xff] %v15116_v14  ;;  %v6541_v27 = vand.u32 4294901760, %v6540_v1  ;;  %v663_v40 = vld [vmem:[#allocation5 + $0x328] sm:$0xff]  ;;  %v6435_v21 = vsub.f32 %v15067_v9, %v18761_v49  ;;  %v18764_v1 = vld [vmem:[#allocation18_spill] sm:$0xff]  ;;  %v15146_v49 = vsub.f32 %v680_v41, %v15116_v14  ;;  %v678_v9 = vld [vmem:[#allocation5 + $0x3a0] sm:$0xff] }
 0x30e   : > { %18754 = vst [vmem:[#allocation15_spill] sm:$0xff] %v15101_v46  ;;  %5970 = vmatmul.mubr.f32.gmra.mxu1 %v18755_v18  ;;  %5752 = vmatprep.mubr.f32.mxu0 %v18738_v10  ;;  %18758 = vst [vmem:[#allocation84_spill] sm:$0xff] %v15114_v47  ;;  %v8741_v10 = vadd.f32 %v8740_v63, %v8739_v22  ;;  %v15119_v29 = vadd.f32 %v8826_v62, %v8825_v48  ;;  %v8742_v28 = vpop.f32.mrf.mxu0  ;;  %v15132_v48 = vand.u32 4294901760, %v664_v30  ;;  %v18766_v22 = vld [vmem:[#allocation109_spill] sm:$0xff] }
 0x30f   : > { %5975 = vmatprep.mubr.f32.mxu1 %v18756_v17  ;;  %9341 = vmatprep.subr.mxu0 %v14925_v16  ;;  %v15122_v35 = vadd.f32 %v15029_v36, %v4054_v26  ;;  %v8828_v38 = vpop.f32.mrf.mxu1  ;;  %v18767_v63 = vand.u32 4294901760, %v15086_v19  ;;  %18768 = vst [vmem:[#allocation116_spill] sm:$0xff] %v15146_v49  ;;  %v15148_v16 = vand.u32 4294901760, %v663_v40  ;;  %v6436_v41 = vand.u32 4294901760, %v6435_v21  ;;  %v18774_v21 = vld [vmem:[#allocation23_spill] sm:$0xff] }
 0x310   : > { %9423 = vmatprep.subr.mxu1 %v6534_v58  ;;  %5754 = vmatmul.mubr.f32.gmra.mxu0 %v18746_v53  ;;  %v15130_v58 = vsub.f32 %v665_v55, %v15101_v46  ;;  %18763 = vst [vmem:[#allocation113_spill] sm:$0xff] %v15132_v48  ;;  %v4061_v36 = vadd.f32 %v8741_v10, %v14662_v59  ;;  %v15137_v53 = vand.u32 4294901760, %v679_v34  ;;  %v6548_v10 = vand.u32 4294901760, %v6547_v33  ;;  %v18772_v33 = vld [vmem:[#allocation111_spill] sm:$0xff] }
 0x311   : > { %18760 = vst [vmem:[#allocation16_spill] sm:$0xff] %v15122_v35  ;;  %9424 = vmatpush3.msra.mxu1 %v6422_v12  ;;  %9342 = vmatpush3.msra.mxu0 %v14913_v15  ;;  %v8743_v12 = vpop.f32.mrf.mxu0  ;;  %v8829_v26 = vpop.f32.mrf.mxu1  ;;  %v6554_v55 = vsub.f32 %v15086_v19, %v18767_v63  ;;  %18769 = vst [vmem:[#allocation66_spill] sm:$0xff] %v15148_v16  ;;  %v18770_v19 = vand.u32 4294901760, %v15099_v44 }
 0x312   : > { %18762 = vst [vmem:[#allocation97_spill] sm:$0xff] %v15130_v58  ;;  %5977 = vmatmul.mubr.f32.gmra.mxu1 %v18764_v1  ;;  %18765 = vst [vmem:[#allocation17_spill] sm:$0xff] %v15137_v53  ;;  %5759 = vmatprep.mubr.f32.mxu0 %v18748_v50  ;;  %v8744_v59 = vadd.f32 %v8743_v12, %v8742_v28  ;;  %v15151_v50 = vadd.f32 %v8829_v26, %v8828_v38 }
 0x313   : > { %5982 = vmatprep.mubr.f32.mxu1 %v18766_v22  ;;  %9343 = vmatprep.subr.mxu0 %v14960_v7  ;;  %v15154_v15 = vadd.f32 %v15057_v60, %v4061_v36  ;;  %v8745_v63 = vpop.f32.mrf.mxu0  ;;  %v8831_v62 = vpop.f32.mrf.mxu1  ;;  %v6442_v35 = vsub.f32 %v15099_v44, %v18770_v19  ;;  %v15162_v28 = vsub.f32 %v664_v30, %v15132_v48  ;;  %v18775_v36 = vand.u32 4294901760, %v15114_v47 }
 0x314   : > { %9425 = vmatprep.subr.mxu1 %v6541_v27  ;;  %5761 = vmatmul.mubr.f32.gmra.mxu0 %v18755_v18  ;;  %v4068_v60 = vadd.f32 %v8744_v59, %v14689_v42  ;;  %v15168_v18 = vsub.f32 %v679_v34, %v15137_v53  ;;  %v15177_v26 = vsub.f32 %v663_v40, %v15148_v16  ;;  %v15179_v42 = vand.u32 4294901760, %v678_v9  ;;  %v677_v27 = vld [vmem:[#allocation5 + $0x398] sm:$0xff] }
 0x315   : > { %9426 = vmatpush3.msra.mxu1 %v6429_v25  ;;  %18771 = vst [vmem:[#allocation88_spill] sm:$0xff] %v15162_v28  ;;  %9344 = vmatpush3.msra.mxu0 %v14976_v39  ;;  %v662_v25 = vld [vmem:[#allocation5 + $0x320] sm:$0xff]  ;;  %v8746_v19 = vpop.f32.mrf.mxu0  ;;  %v8832_v38 = vpop.f32.mrf.mxu1  ;;  %v6561_v30 = vsub.f32 %v15114_v47, %v18775_v36  ;;  %v6555_v59 = vand.u32 4294901760, %v6554_v55  ;;  %v6443_v40 = vand.u32 4294901760, %v6442_v35  ;;  %v18779_v47 = vand.u32 4294901760, %v15130_v58  ;;  %v661_v55 = vld [vmem:[#allocation5 + $0x318] sm:$0xff] }
 0x316   : > { %5984 = vmatmul.mubr.f32.gmra.mxu1 %v18772_v33  ;;  %18773 = vst [vmem:[#allocation28_spill] sm:$0xff] %v15168_v18  ;;  %5766 = vmatprep.mubr.f32.mxu0 %v18756_v17  ;;  %18776 = vst [vmem:[#allocation24_spill] sm:$0xff] %v15177_v26  ;;  %v8747_v34 = vadd.f32 %v8746_v19, %v8745_v63  ;;  %v15182_v17 = vadd.f32 %v8832_v38, %v8831_v62  ;;  %v15192_v63 = vand.u32 4294901760, %v662_v25  ;;  %v18781_v62 = vld [vmem:[#allocation29_spill] sm:$0xff] }
 0x317   : > { %5989 = vmatprep.mubr.f32.mxu1 %v18774_v21  ;;  %18777 = vst [vmem:[#allocation77_spill] sm:$0xff] %v15179_v42  ;;  %9345 = vmatprep.subr.mxu0 %v14993_v56  ;;  %v15185_v44 = vadd.f32 %v15091_v6, %v4068_v60  ;;  %v8748_v36 = vpop.f32.mrf.mxu0  ;;  %v8834_v12 = vpop.f32.mrf.mxu1  ;;  %v6449_v39 = vsub.f32 %v15130_v58, %v18779_v47  ;;  %v18782_v35 = vld [vmem:[#allocation117_spill] sm:$0xff]  ;;  %v18783_v47 = vand.u32 4294901760, %v15146_v49 }
 0x318   : > { %9427 = vmatprep.subr.mxu1 %v6548_v10  ;;  %5768 = vmatmul.mubr.f32.gmra.mxu0 %v18764_v1  ;;  %18780 = vst [vmem:[#allocation72_spill] sm:$0xff] %v15192_v63  ;;  %v4075_v6 = vadd.f32 %v8747_v34, %v14718_v43  ;;  %v15207_v10 = vsub.f32 %v678_v9, %v15179_v42  ;;  %v15209_v43 = vand.u32 4294901760, %v677_v27  ;;  %v6562_v1 = vand.u32 4294901760, %v6561_v30  ;;  %v676_v58 = vld [vmem:[#allocation5 + $0x390] sm:$0xff]  ;;  %v18787_v30 = vld [vmem:[#allocation118_spill] sm:$0xff] }
 0x319   : > { %18778 = vst [vmem:[#allocation119_spill] sm:$0xff] %v15185_v44  ;;  %9428 = vmatpush3.msra.mxu1 %v6436_v41  ;;  %9346 = vmatpush3.msra.mxu0 %v14982_v11  ;;  %v8749_v41 = vpop.f32.mrf.mxu0  ;;  %v8835_v60 = vpop.f32.mrf.mxu1  ;;  %v15203_v19 = vsub.f32 %v15146_v49, %v18783_v47  ;;  %v6450_v9 = vand.u32 4294901760, %v6449_v39  ;;  %v18785_v49 = vand.u32 4294901760, %v15162_v28  ;;  %v660_v39 = vld [vmem:[#allocation5 + $0x310] sm:$0xff] }
 0x31a   : > { %5991 = vmatmul.mubr.f32.gmra.mxu1 %v18781_v62  ;;  %5773 = vmatprep.mubr.f32.mxu0 %v18766_v22  ;;  %18784 = vst [vmem:[#allocation19_spill] sm:$0xff] %v15207_v10  ;;  %v8750_v22 = vadd.f32 %v8749_v41, %v8748_v36  ;;  %v15212_v34 = vadd.f32 %v8835_v60, %v8834_v12  ;;  %v15224_v12 = vand.u32 4294901760, %v661_v55 }
 0x31b   : > { %5996 = vmatprep.mubr.f32.mxu1 %v18782_v35  ;;  %9347 = vmatprep.subr.mxu0 %v15026_v13  ;;  %v15215_v11 = vadd.f32 %v15119_v29, %v4075_v6  ;;  %v8751_v47 = vpop.f32.mrf.mxu0  ;;  %v8837_v38 = vpop.f32.mrf.mxu1  ;;  %v6456_v44 = vsub.f32 %v15162_v28, %v18785_v49  ;;  %v18789_v49 = vld [vmem:[#allocation122_spill] sm:$0xff]  ;;  %v18790_v6 = vand.u32 4294901760, %v15177_v26  ;;  %v675_v28 = vld [vmem:[#allocation5 + $0x388] sm:$0xff] }
 0x31c   : > { %9429 = vmatprep.subr.mxu1 %v6555_v59  ;;  %5775 = vmatmul.mubr.f32.gmra.mxu0 %v18772_v33  ;;  %v15222_v59 = vsub.f32 %v662_v25, %v15192_v63  ;;  %v4082_v29 = vadd.f32 %v8750_v22, %v14745_v54  ;;  %v18788_v33 = vand.u32 4294901760, %v15168_v18  ;;  %v15243_v54 = vsub.f32 %v677_v27, %v15209_v43 }
 0x31d   : > { %9430 = vmatpush3.msra.mxu1 %v6443_v40  ;;  %9348 = vmatpush3.msra.mxu0 %v15039_v37  ;;  %v8752_v25 = vpop.f32.mrf.mxu0  ;;  %v8838_v40 = vpop.f32.mrf.mxu1  ;;  %v15239_v41 = vsub.f32 %v15177_v26, %v18790_v6  ;;  %v15245_v22 = vand.u32 4294901760, %v676_v58  ;;  %v6457_v60 = vand.u32 4294901760, %v6456_v44  ;;  %v15274_v26 = vand.u32 4294901760, %v675_v28 }
 0x31e   : > { %18786 = vst [vmem:[#allocation94_spill] sm:$0xff] %v15222_v59  ;;  %5998 = vmatmul.mubr.f32.gmra.mxu1 %v18787_v30  ;;  %v15232_v36 = vsub.f32 %v15168_v18, %v18788_v33  ;;  %5780 = vmatprep.mubr.f32.mxu0 %v18774_v21  ;;  %18791 = vst [vmem:[#allocation120_spill] sm:$0xff] %v15243_v54  ;;  %v8753_v21 = vadd.f32 %v8752_v25, %v8751_v47  ;;  %v6569_v18 = vand.u32 4294901760, %v15203_v19  ;;  %v18795_v47 = vld [vmem:[#allocation126_spill] sm:$0xff] }
 0x31f   : > { %6003 = vmatprep.mubr.f32.mxu1 %v18789_v49  ;;  %9349 = vmatprep.subr.mxu0 %v15054_v52  ;;  %v15248_v33 = vadd.f32 %v8838_v40, %v8837_v38  ;;  %v15252_v37 = vadd.f32 %v15151_v50, %v4082_v29  ;;  %v8754_v6 = vpop.f32.mrf.mxu0  ;;  %v8840_v27 = vpop.f32.mrf.mxu1  ;;  %v15257_v52 = vsub.f32 %v661_v55, %v15224_v12  ;;  %v18794_v38 = vld [vmem:[#allocation123_spill] sm:$0xff]  ;;  %v18796_v55 = vand.u32 4294901760, %v15207_v10 }
 0x320   : > { %9431 = vmatprep.subr.mxu1 %v6562_v1  ;;  %5782 = vmatmul.mubr.f32.gmra.mxu0 %v18781_v62  ;;  %v15259_v1 = vand.u32 4294901760, %v660_v39  ;;  %v4089_v50 = vadd.f32 %v8753_v21, %v14774_v31  ;;  %v6576_v19 = vand.u32 4294901760, %v15232_v36  ;;  %v659_v62 = vld [vmem:[#allocation5 + $0x308] sm:$0xff]  ;;  %v15272_v40 = vsub.f32 %v676_v58, %v15245_v22  ;;  %v674_v31 = vld [vmem:[#allocation5 + $0x380] sm:$0xff] }
 0x321   : > { %18792 = vst [vmem:[#allocation103_spill] sm:$0xff] %v15252_v37  ;;  %9432 = vmatpush3.msra.mxu1 %v6450_v9  ;;  %18793 = vst [vmem:[#allocation124_spill] sm:$0xff] %v15257_v52  ;;  %9350 = vmatpush3.msra.mxu0 %v15069_v61  ;;  %v8755_v44 = vpop.f32.mrf.mxu0  ;;  %v8841_v9 = vpop.f32.mrf.mxu1  ;;  %v6582_v29 = vsub.f32 %v15207_v10, %v18796_v55  ;;  %v658_v36 = vld [vmem:[#allocation5 + $0x300] sm:$0xff]  ;;  %v6464_v61 = vand.u32 4294901760, %v15239_v41  ;;  %v18797_v25 = vand.u32 4294901760, %v15222_v59 }
 0x322   : > { %6005 = vmatmul.mubr.f32.gmra.mxu1 %v18794_v38  ;;  %5787 = vmatprep.mubr.f32.mxu0 %v18782_v35  ;;  %v8756_v35 = vadd.f32 %v8755_v44, %v8754_v6  ;;  %v15277_v21 = vadd.f32 %v8841_v9, %v8840_v27  ;;  %v15281_v37 = vadd.f32 %v15182_v17, %v4089_v50  ;;  %v15291_v6 = vand.u32 4294901760, %v659_v62  ;;  %v18798_v41 = vld [vmem:[#allocation127_spill] sm:$0xff]  ;;  %v18800_v27 = vld [vmem:[#allocation129_spill] sm:$0xff] }
 0x323   : > { %6010 = vmatprep.mubr.f32.mxu1 %v18795_v47  ;;  %9351 = vmatprep.subr.mxu0 %v15088_v0  ;;  %v8757_v58 = vpop.f32.mrf.mxu0  ;;  %v8843_v55 = vpop.f32.mrf.mxu1  ;;  %v6470_v10 = vsub.f32 %v15222_v59, %v18797_v25  ;;  %v15307_v0 = vsub.f32 %v675_v28, %v15274_v26  ;;  %v18802_v25 = vand.u32 4294901760, %v15257_v52 }
 0x324   : > { %9433 = vmatprep.subr.mxu1 %v6569_v18  ;;  %5789 = vmatmul.mubr.f32.gmra.mxu0 %v18787_v30  ;;  %v15289_v18 = vsub.f32 %v660_v39, %v15259_v1  ;;  %v4096_v17 = vadd.f32 %v8756_v35, %v14801_v3  ;;  %v15296_v30 = vand.u32 4294901760, %v674_v31  ;;  %v18801_v39 = vand.u32 4294901760, %v15243_v54 }
 0x325   : > { %9434 = vmatpush3.msra.mxu1 %v6457_v60  ;;  %9352 = vmatpush3.msra.mxu0 %v15101_v46  ;;  %v15298_v60 = vand.u32 4294901760, %v658_v36  ;;  %v8758_v50 = vpop.f32.mrf.mxu0  ;;  %v8844_v44 = vpop.f32.mrf.mxu1  ;;  %v6477_v28 = vsub.f32 %v15257_v52, %v18802_v25 }
 0x326   : > { %6012 = vmatmul.mubr.f32.gmra.mxu1 %v18798_v41  ;;  %5794 = vmatprep.mubr.f32.mxu0 %v18789_v49  ;;  %v6589_v9 = vsub.f32 %v15243_v54, %v18801_v39  ;;  %v8759_v3 = vadd.f32 %v8758_v50, %v8757_v58  ;;  %v15310_v35 = vadd.f32 %v8844_v44, %v8843_v55  ;;  %v6583_v49 = vand.u32 4294901760, %v6582_v29  ;;  %v18804_v58 = vld [vmem:[#allocation130_spill] sm:$0xff] }
 0x327   : > { %18799 = vst [vmem:[#allocation92_spill] sm:$0xff] %v15298_v60  ;;  %6017 = vmatprep.mubr.f32.mxu1 %v18800_v27  ;;  %9353 = vmatprep.subr.mxu0 %v15116_v14  ;;  %v15313_v59 = vadd.f32 %v15212_v34, %v4096_v17  ;;  %v8760_v46 = vpop.f32.mrf.mxu0  ;;  %v8846_v39 = vpop.f32.mrf.mxu1  ;;  %v6471_v54 = vand.u32 4294901760, %v6470_v10  ;;  %v17447_v14 = vand.u32 4294901760, %v15289_v18  ;;  %v15330_v10 = vsub.f32 %v658_v36, %v15298_v60 }
 0x328   : > { %9435 = vmatprep.subr.mxu1 %v6576_v19  ;;  %5796 = vmatmul.mubr.f32.gmra.mxu0 %v18794_v38  ;;  %v15321_v19 = vsub.f32 %v659_v62, %v15291_v6  ;;  %v4103_v34 = vadd.f32 %v8759_v3, %v14828_v4  ;;  %v18807_v38 = vld [vmem:[#allocation133_spill] sm:$0xff]  ;;  %v18808_v62 = vand.u32 4294901760, %v15272_v40  ;;  %v6590_v36 = vand.u32 4294901760, %v6589_v9 }
 0x329   : > { %9436 = vmatpush3.msra.mxu1 %v6464_v61  ;;  %9354 = vmatpush3.msra.mxu0 %v15132_v48  ;;  %v15327_v61 = vsub.f32 %v674_v31, %v15296_v30  ;;  %18806 = vst [vmem:[#allocation125_spill] sm:$0xff] %v15330_v10  ;;  %v8761_v29 = vpop.f32.mrf.mxu0  ;;  %v8847_v55 = vpop.f32.mrf.mxu1  ;;  %v6478_v3 = vand.u32 4294901760, %v6477_v28  ;;  %v18811_v28 = vand.u32 4294901760, %v15307_v0 }
 0x32a   : > { %18803 = vst [vmem:[#allocation100_spill] sm:$0xff] %v15321_v19  ;;  %6019 = vmatmul.mubr.f32.gmra.mxu1 %v18804_v58  ;;  %5801 = vmatprep.mubr.f32.mxu0 %v18795_v47  ;;  %v6596_v17 = vsub.f32 %v15272_v40, %v18808_v62  ;;  %v8762_v4 = vadd.f32 %v8761_v29, %v8760_v46  ;;  %v17448_v50 = vand.u32 4294901760, %v15321_v19 }
 0x32b   : > { %18805 = vst [vmem:[#allocation95_spill] sm:$0xff] %v15327_v61  ;;  %6024 = vmatprep.mubr.f32.mxu1 %v18807_v38  ;;  %9355 = vmatprep.subr.mxu0 %v15137_v53  ;;  %v15339_v31 = vadd.f32 %v8847_v55, %v8846_v39  ;;  %v15342_v44 = vadd.f32 %v15248_v33, %v4103_v34  ;;  %v8763_v47 = vpop.f32.mrf.mxu0  ;;  %v8849_v25 = vpop.f32.mrf.mxu1  ;;  %v18812_v33 = vld [vmem:[#allocation136_spill] sm:$0xff] }
 0x32c   : > { %9437 = vmatprep.subr.mxu1 %v6583_v49  ;;  %5803 = vmatmul.mubr.f32.gmra.mxu0 %v18798_v41  ;;  %v6484_v62 = vsub.f32 %v15289_v18, %v17447_v14  ;;  %v18809_v49 = vld [vmem:[#allocation134_spill] sm:$0xff]  ;;  %v4110_v46 = vadd.f32 %v8762_v4, %v14855_v51  ;;  %v6603_v34 = vsub.f32 %v15307_v0, %v18811_v28  ;;  %v6597_v51 = vand.u32 4294901760, %v6596_v17 }
 0x32d   : > { %9438 = vmatpush3.msra.mxu1 %v6471_v54  ;;  %9356 = vmatpush3.msra.mxu0 %v15148_v16  ;;  %v18810_v54 = vld [vmem:[#allocation135_spill] sm:$0xff]  ;;  %v8764_v9 = vpop.f32.mrf.mxu0  ;;  %v8850_v39 = vpop.f32.mrf.mxu1  ;;  %v6491_v28 = vsub.f32 %v15321_v19, %v17448_v50 }
 0x32e   : > { %6026 = vmatmul.mubr.f32.gmra.mxu1 %v18809_v49  ;;  %5808 = vmatprep.mubr.f32.mxu0 %v18800_v27  ;;  %v8765_v29 = vadd.f32 %v8764_v9, %v8763_v47  ;;  %v15360_v55 = vadd.f32 %v8850_v39, %v8849_v25  ;;  %v15363_v4 = vadd.f32 %v15277_v21, %v4110_v46  ;;  %v6485_v27 = vand.u32 4294901760, %v6484_v62 }
 0x32f   : > { %6031 = vmatprep.mubr.f32.mxu1 %v18810_v54  ;;  %9357 = vmatprep.subr.mxu0 %v15179_v42  ;;  %v8766_v14 = vpop.f32.mrf.mxu0  ;;  %v8852_v41 = vpop.f32.mrf.mxu1  ;;  %v18813_v21 = vand.u32 4294901760, %v15327_v61 }
 0x330   : > { %9439 = vmatprep.subr.mxu1 %v6590_v36  ;;  %5810 = vmatmul.mubr.f32.gmra.mxu0 %v18804_v58  ;;  %v10245_v36 = vpop.trf.xlu1  ;;  %v4117_v17 = vadd.f32 %v8765_v29, %v14884_v2  ;;  %v18814_v58 = vand.u32 4294901760, %v15330_v10  ;;  %v6604_v2 = vand.u32 4294901760, %v6603_v34 }
 0x331   : > { %9440 = vmatpush3.msra.mxu1 %v6478_v3  ;;  %9358 = vmatpush3.msra.mxu0 %v15192_v63  ;;  %v6610_v47 = vsub.f32 %v15327_v61, %v18813_v21  ;;  %v18815_v3 = vld [vmem:[#allocation141_spill] sm:$0xff]  ;;  %v10249_v62 = vunpack.i.h.bf16 %v10245_v36  ;;  %v10246_v46 = vunpack.i.l.bf16 %v10245_v36  ;;  %v8767_v9 = vpop.f32.mrf.mxu0  ;;  %v8853_v39 = vpop.f32.mrf.mxu1 }
 0x332   : > { %6033 = vmatmul.mubr.f32.gmra.mxu1 %v18812_v33  ;;  %v6498_v25 = vsub.f32 %v15330_v10, %v18814_v58  ;;  %5815 = vmatprep.mubr.f32.mxu0 %v18807_v38  ;;  %v8768_v29 = vadd.f32 %v8767_v9, %v8766_v14  ;;  %v15381_v50 = vadd.f32 %v8853_v39, %v8852_v41  ;;  %v6492_v38 = vand.u32 4294901760, %v6491_v28  ;;  %v18818_v10 = vld [vmem:[#allocation142_spill] sm:$0xff] }
 0x333   : > { %6038 = vmatprep.mubr.f32.mxu1 %v18815_v3  ;;  %9359 = vmatprep.subr.mxu0 %v15209_v43  ;;  %v15384_v21 = vadd.f32 %v15310_v35, %v4117_v17  ;;  %v15386_v61 = vand.u32 4294901760, %v10249_v62  ;;  %v15389_v58 = vand.u32 4294901760, %v10246_v46  ;;  %v8769_v36 = vpop.f32.mrf.mxu0  ;;  %v6611_v41 = vand.u32 4294901760, %v6610_v47  ;;  %v8967_v35 = vpop.f32.mrf.mxu1 }
 0x334   : > { %9441 = vmatprep.subr.mxu1 %v6597_v51  ;;  %5817 = vmatmul.mubr.f32.gmra.mxu0 %v18809_v49  ;;  %v10250_v34 = vpop.trf.xlu1  ;;  %v4124_v14 = vadd.f32 %v8768_v29, %v14916_v45  ;;  %v6499_v51 = vand.u32 4294901760, %v6498_v25  ;;  %v18820_v49 = vld [vmem:[#allocation140_spill] sm:$0xff] }
 0x335   : > { %18816 = vst [vmem:[#allocation128_spill] sm:$0xff] %v15386_v61  ;;  %9442 = vmatpush3.msra.mxu1 %v6485_v27  ;;  %18817 = vst [vmem:[#allocation96_spill] sm:$0xff] %v15389_v58  ;;  %9360 = vmatpush3.msra.mxu0 %v15224_v12  ;;  %v15395_v17 = vsub.f32 %v10249_v62, %v15386_v61  ;;  %v10254_v27 = vunpack.i.h.bf16 %v10250_v34  ;;  %v8770_v28 = vpop.f32.mrf.mxu0  ;;  %v10251_v9 = vunpack.i.l.bf16 %v10250_v34  ;;  %v8968_v19 = vpop.f32.mrf.mxu1  ;;  %v18822_v34 = vld [vmem:[#allocation139_spill] sm:$0xff] }
 0x336   : > { %6040 = vmatmul.mubr.f32.gmra.mxu1 %v18818_v10  ;;  %5822 = vmatprep.mubr.f32.mxu0 %v18810_v54  ;;  %v8771_v39 = vadd.f32 %v8770_v28, %v8769_v36  ;;  %v15401_v45 = vsub.f32 %v10246_v46, %v15389_v58  ;;  %v15404_v47 = vadd.f32 %v15339_v31, %v4124_v14 }
 0x337   : > { %18819 = vst [vmem:[#allocation26_spill] sm:$0xff] %v15395_v17  ;;  %6045 = vmatprep.mubr.f32.mxu1 %v18820_v49  ;;  %9361 = vmatprep.subr.mxu0 %v15245_v22  ;;  %v17456_v25 = vand.u32 4294901760, %v15395_v17  ;;  %v15408_v54 = vadd.f32 %v8968_v19, %v8967_v35  ;;  %v8772_v62 = vpop.f32.mrf.mxu0  ;;  %v15410_v29 = vand.u32 4294901760, %v10254_v27  ;;  %v15417_v31 = vand.u32 4294901760, %v10251_v9  ;;  %v8970_v36 = vpop.f32.mrf.mxu1 }
 0x338   : > { %9443 = vmatprep.subr.mxu1 %v6604_v2  ;;  %5824 = vmatmul.mubr.f32.gmra.mxu0 %v18812_v33  ;;  %v10255_v2 = vpop.trf.xlu1  ;;  %v15415_v46 = vadd.f32 %v8771_v39, %v14968_v8  ;;  %v17455_v14 = vand.u32 4294901760, %v15401_v45 }
 0x339   : > { %9444 = vmatpush3.msra.mxu1 %v6492_v38  ;;  %18821 = vst [vmem:[#allocation27_spill] sm:$0xff] %v15410_v29  ;;  %9362 = vmatpush3.msra.mxu0 %v15259_v1  ;;  %18823 = vst [vmem:[#allocation41_spill] sm:$0xff] %v15417_v31  ;;  %v10259_v19 = vunpack.i.h.bf16 %v10255_v2  ;;  %v8773_v33 = vpop.f32.mrf.mxu0  ;;  %v10256_v38 = vunpack.i.l.bf16 %v10255_v2  ;;  %v8971_v28 = vpop.f32.mrf.mxu1  ;;  %v15426_v39 = vsub.f32 %v10251_v9, %v15417_v31 }
 0x33a   : > { %6047 = vmatmul.mubr.f32.gmra.mxu1 %v18822_v34  ;;  %5829 = vmatprep.mubr.f32.mxu0 %v18815_v3  ;;  %v6151_v35 = vsub.f32 %v15401_v45, %v17455_v14  ;;  %v8774_v8 = vadd.f32 %v8773_v33, %v8772_v62  ;;  %v6157_v3 = vsub.f32 %v15395_v17, %v17456_v25 }
 0x33b   : > { %9445 = vmatprep.subr.mxu1 %v6611_v41  ;;  %9363 = vmatprep.subr.mxu0 %v15274_v26  ;;  %18824 = vst [vmem:[#allocation131_spill] sm:$0xff] %v15426_v39  ;;  %v15433_v41 = vadd.f32 %v8971_v28, %v8970_v36  ;;  %v15435_v2 = vand.u32 4294901760, %v10259_v19  ;;  %v15438_v14 = vsub.f32 %v10254_v27, %v15410_v29  ;;  %v15445_v25 = vand.u32 4294901760, %v10256_v38 }
 0x33c   : > { %9446 = vmatpush3.msra.mxu1 %v6499_v51  ;;  %6614 = vmatprep.mubr.f32.mxu1 %v15389_v58  ;;  %v8887_v51 = vpop.f32.mrf.mxu0  ;;  %v10260_v9 = vpop.trf.xlu1  ;;  %v6152_v62 = vand.u32 4294901760, %v6151_v35  ;;  %v15443_v33 = vadd.f32 %v8774_v8, %v15000_v20  ;;  %v17465_v36 = vand.u32 4294901760, %v15426_v39 }
 0x33d   : > { %5831 = vmatmul.mubr.f32.gmra.mxu0 %v18818_v10  ;;  %18825 = vst [vmem:[#allocation12_spill] sm:$0xff] %v15433_v41  ;;  %18826 = vst [vmem:[#allocation132_spill] sm:$0xff] %v15435_v2  ;;  %v8973_v10 = vpop.f32.mrf.mxu1  ;;  %v10264_v28 = vunpack.i.h.bf16 %v10260_v9  ;;  %v10261_v58 = vunpack.i.l.bf16 %v10260_v9  ;;  %v15457_v17 = vsub.f32 %v10256_v38, %v15445_v25  ;;  %v15466_v41 = vsub.f32 %v10259_v19, %v15435_v2 }
 0x33e   : > { %18827 = vst [vmem:[#allocation32_spill] sm:$0xff] %v15438_v14  ;;  %9364 = vmatpush3.msra.mxu0 %v15291_v6  ;;  %6616 = vmatmul.mubr.f32.vlgmr.msra.gmra.mxu1 %v15386_v61  ;;  %18828 = vst [vmem:[#allocation21_spill] sm:$0xff] %v15445_v25  ;;  %v8888_v27 = vpop.f32.mrf.mxu0  ;;  %v6166_v20 = vsub.f32 %v15426_v39, %v17465_v36  ;;  %v17471_v61 = vand.u32 4294901760, %v15438_v14  ;;  %v6158_v36 = vand.u32 4294901760, %v6157_v3 }
 0x33f   : > { %5836 = vmatprep.mubr.f32.mxu0 %v18820_v49  ;;  %9365 = vmatprep.subr.mxu0 %v15296_v30  ;;  %v8889_v35 = vadd.f32 %v8888_v27, %v8887_v51  ;;  %v8974_v8 = vpop.f32.mrf.mxu1  ;;  %18829 = vst [vmem:[#allocation112_spill] sm:$0xff] %v15457_v17  ;;  %v15463_v9 = vand.u32 4294901760, %v10261_v58  ;;  %18831 = vst [vmem:[#allocation31_spill] sm:$0xff] %v15466_v41 }
 0x340   : > { %6621 = vmatprep.mubr.f32.mxu1 %v15417_v31  ;;  %9366 = vmatpush3.msra.mxu0 %v15298_v60  ;;  %v15461_v49 = vadd.f32 %v8974_v8, %v8973_v10  ;;  %v8890_v31 = vpop.f32.mrf.mxu0  ;;  %v15469_v51 = vpop.trf.xlu1  ;;  %v15477_v10 = vand.u32 4294901760, %v10264_v28  ;;  %v17477_v8 = vand.u32 4294901760, %v15457_v17 }
 0x341   : > { %5838 = vmatmul.mubr.f32.gmra.mxu0 %v18822_v34  ;;  %9495 = vmatprep.subr.mxu0 %v14872_v5  ;;  %18830 = vst [vmem:[#allocation30_spill] sm:$0xff] %v15463_v9  ;;  %v15472_v38 = vadd.f32 %v8889_v35, %v15032_v32  ;;  %v8976_v27 = vpop.f32.mrf.mxu1  ;;  %v6172_v34 = vsub.f32 %v15438_v14, %v17471_v61  ;;  %v10266_v19 = vunpack.i.l.bf16 %v15469_v51  ;;  %v6167_v35 = vand.u32 4294901760, %v6166_v20  ;;  %v18838_v32 = vld [vmem:[#allocation22_spill] sm:$0xff] }
 0x342   : > { %6623 = vmatmul.mubr.f32.gmra.mxu1 %v15410_v29  ;;  %6153 = vmatprep.mubr.f32.mxu0 %v6152_v62  ;;  %18832 = vst [vmem:[#allocation107_spill] sm:$0xff] %v15477_v10  ;;  %v8891_v62 = vpop.f32.mrf.mxu0  ;;  %v18833_v29 = vld [vmem:[#allocation68_spill] sm:$0xff]  ;;  %v6181_v3 = vsub.f32 %v15457_v17, %v17477_v8  ;;  %v15495_v20 = vsub.f32 %v10261_v58, %v15463_v9  ;;  %v18840_v58 = vand.u32 4294901760, %v15466_v41 }
 0x343   : > { %6628 = vmatprep.mubr.f32.mxu1 %v15445_v25  ;;  %9575 = vmatprep.subr.mxu1 %v14849_v24  ;;  %v8892_v5 = vadd.f32 %v8891_v62, %v8890_v31  ;;  %v8977_v39 = vpop.f32.mrf.mxu1  ;;  %v15492_v14 = vand.u32 4294901760, %v10266_v19  ;;  %v18837_v31 = vld [vmem:[#allocation52_spill] sm:$0xff] }
 0x344   : > { %9576 = vmatpush3.msra.mxu1 %v18833_v29  ;;  %v15490_v25 = vadd.f32 %v8977_v39, %v8976_v27  ;;  %v8893_v24 = vpop.f32.mrf.mxu0  ;;  %18836 = vst [vmem:[#allocation104_spill] sm:$0xff] %v15495_v20  ;;  %v15499_v62 = vpop.trf.xlu1  ;;  %v15505_v39 = vsub.f32 %v10264_v28, %v15477_v10  ;;  %v6182_v29 = vand.u32 4294901760, %v6181_v3 }
 0x345   : > { %6159 = vmatmul.mubr.f32.vlgmr.msra.gmra.mxu0 %v6158_v36  ;;  %9577 = vmatprep.subr.mxu1 %v14865_v23  ;;  %18835 = vst [vmem:[#allocation137_spill] sm:$0xff] %v15492_v14  ;;  %v6173_v36 = vand.u32 4294901760, %v6172_v34  ;;  %v15502_v61 = vadd.f32 %v8892_v5, %v18838_v32  ;;  %v8979_v8 = vpop.f32.mrf.mxu1  ;;  %v10271_v27 = vunpack.i.l.bf16 %v15499_v62  ;;  %v18841_v34 = vld [vmem:[#allocation63_spill] sm:$0xff]  ;;  %v17490_v32 = vand.u32 4294901760, %v15495_v20 }
 0x346   : > { %18834 = vst [vmem:[#allocation102_spill] sm:$0xff] %v15490_v25  ;;  %6630 = vmatmul.mubr.f32.gmra.mxu1 %v15435_v2  ;;  %9496 = vmatpush3.msra.mxu0 %v18837_v31  ;;  %18839 = vst [vmem:[#allocation138_spill] sm:$0xff] %v15505_v39  ;;  %v6187_v2 = vsub.f32 %v15466_v41, %v18840_v58  ;;  %v8894_v31 = vpop.f32.mrf.mxu0  ;;  %v18842_v5 = vld [vmem:[#allocation67_spill] sm:$0xff] }
 0x347   : > { %6168 = vmatprep.mubr.f32.mxu0 %v6167_v35  ;;  %6635 = vmatprep.mubr.f32.mxu1 %v15463_v9  ;;  %v8895_v28 = vadd.f32 %v8894_v31, %v8893_v24  ;;  %v8980_v23 = vpop.f32.mrf.mxu1  ;;  %v18843_v9 = vunpack.i.h.bf16 %v15469_v51  ;;  %v18847_v24 = vld [vmem:[#allocation105_spill] sm:$0xff]  ;;  %v6196_v3 = vsub.f32 %v15495_v20, %v17490_v32  ;;  %v15537_v35 = vand.u32 4294901760, %v10271_v27  ;;  %v18852_v32 = vld [vmem:[#allocation48_spill] sm:$0xff] }
 0x348   : > { %9497 = vmatprep.subr.mxu0 %v18841_v34  ;;  %9578 = vmatpush3.msra.mxu1 %v18842_v5  ;;  %v15522_v58 = vadd.f32 %v8980_v23, %v8979_v8  ;;  %v8896_v17 = vpop.f32.mrf.mxu0  ;;  %v15525_v34 = vsub.f32 %v10266_v19, %v15492_v14  ;;  %v15529_v31 = vpop.trf.xlu1  ;;  %v18850_v8 = vand.u32 4294901760, %v15505_v39 }
 0x349   : > { %6174 = vmatmul.mubr.f32.gmra.mxu0 %v6173_v36  ;;  %v15519_v25 = vand.u32 4294901760, %v18843_v9  ;;  %9579 = vmatprep.subr.mxu1 %v14892_v57  ;;  %v18848_v9 = vld [vmem:[#allocation71_spill] sm:$0xff]  ;;  %18849 = vst [vmem:[#allocation106_spill] sm:$0xff] %v15537_v35  ;;  %v8982_v23 = vpop.f32.mrf.mxu1  ;;  %v10276_v41 = vunpack.i.l.bf16 %v15529_v31 }
 0x34a   : > { %18845 = vst [vmem:[#allocation35_spill] sm:$0xff] %v15522_v58  ;;  %18846 = vst [vmem:[#allocation20_spill] sm:$0xff] %v15525_v34  ;;  %6637 = vmatmul.mubr.f32.gmra.mxu1 %v15477_v10  ;;  %9498 = vmatpush3.msra.mxu0 %v18847_v24  ;;  %v15535_v36 = vadd.f32 %v8895_v28, %v18848_v9  ;;  %v6202_v19 = vsub.f32 %v15505_v39, %v18850_v8  ;;  %v6188_v10 = vand.u32 4294901760, %v6187_v2  ;;  %v8897_v24 = vpop.f32.mrf.mxu0  ;;  %v18851_v57 = vld [vmem:[#allocation51_spill] sm:$0xff] }
 0x34b   : > { %18844 = vst [vmem:[#allocation99_spill] sm:$0xff] %v15519_v25  ;;  %6183 = vmatprep.mubr.f32.mxu0 %v6182_v29  ;;  %6642 = vmatprep.mubr.f32.mxu1 %v15492_v14  ;;  %v18853_v28 = vunpack.i.h.bf16 %v15499_v62  ;;  %v17499_v20 = vand.u32 4294901760, %v15525_v34  ;;  %v8898_v5 = vadd.f32 %v8897_v24, %v8896_v17  ;;  %v8983_v58 = vpop.f32.mrf.mxu1  ;;  %v10279_v29 = vunpack.i.h.bf16 %v15529_v31  ;;  %v18855_v2 = vld [vmem:[#allocation115_spill] sm:$0xff]  ;;  %v18860_v31 = vld [vmem:[#allocation16_spill] sm:$0xff] }
 0x34c   : > { %9499 = vmatprep.subr.mxu0 %v18851_v57  ;;  %9580 = vmatpush3.msra.mxu1 %v18852_v32  ;;  %v6197_v8 = vand.u32 4294901760, %v6196_v3  ;;  %v15553_v14 = vadd.f32 %v8983_v58, %v8982_v23  ;;  %v8899_v39 = vpop.f32.mrf.mxu0  ;;  %v18857_v57 = vunpack.i.h.bf16 %v15469_v51  ;;  %v15562_v17 = vpop.trf.xlu1  ;;  %v6203_v24 = vand.u32 4294901760, %v6202_v19  ;;  %v18862_v19 = vld [vmem:[#allocation121_spill] sm:$0xff] }
 0x34d   : > { %v15548_v9 = vand.u32 4294901760, %v18853_v28  ;;  %6189 = vmatmul.mubr.f32.gmra.mxu0 %v6188_v10  ;;  %9581 = vmatprep.subr.mxu1 %v18855_v2  ;;  %v18859_v28 = vld [vmem:[#allocation37_spill] sm:$0xff]  ;;  %v6211_v10 = vsub.f32 %v15525_v34, %v17499_v20  ;;  %v15568_v58 = vadd.f32 %v8898_v5, %v18860_v31  ;;  %v8985_v3 = vpop.f32.mrf.mxu1  ;;  %v15571_v23 = vsub.f32 %v10271_v27, %v15537_v35 }
 0x34e   : > { %18856 = vst [vmem:[#allocation38_spill] sm:$0xff] %v15553_v14  ;;  %v15558_v32 = vsub.f32 %v18857_v57, %v15519_v25  ;;  %6644 = vmatmul.mubr.f32.gmra.mxu1 %v15519_v25  ;;  %9500 = vmatpush3.msra.mxu0 %v18859_v28  ;;  %v10281_v51 = vunpack.i.l.bf16 %v15562_v17  ;;  %v8900_v25 = vpop.f32.mrf.mxu0  ;;  %v18863_v28 = vld [vmem:[#allocation33_spill] sm:$0xff]  ;;  %v15578_v20 = vand.u32 4294901760, %v10276_v41  ;;  %v15582_v57 = vand.u32 4294901760, %v10279_v29 }
 0x34f   : > { %18854 = vst [vmem:[#allocation34_spill] sm:$0xff] %v15548_v9  ;;  %18861 = vst [vmem:[#allocation49_spill] sm:$0xff] %v15571_v23  ;;  %6198 = vmatprep.mubr.f32.mxu0 %v6197_v8  ;;  %6649 = vmatprep.mubr.f32.mxu1 %v15537_v35  ;;  %v17509_v31 = vand.u32 4294901760, %v15571_v23  ;;  %v8901_v27 = vadd.f32 %v8900_v25, %v8899_v39  ;;  %v8986_v34 = vpop.f32.mrf.mxu1  ;;  %v6212_v8 = vand.u32 4294901760, %v6211_v10  ;;  %v18869_v5 = vld [vmem:[#allocation73_spill] sm:$0xff] }
 0x350   : > { %18858 = vst [vmem:[#allocation110_spill] sm:$0xff] %v15558_v32  ;;  %9501 = vmatprep.subr.mxu0 %v18862_v19  ;;  %9582 = vmatpush3.msra.mxu1 %v18863_v28  ;;  %18864 = vst [vmem:[#allocation39_spill] sm:$0xff] %v15578_v20  ;;  %v15585_v35 = vadd.f32 %v8986_v34, %v8985_v3  ;;  %v8902_v2 = vpop.f32.mrf.mxu0  ;;  %v18867_v19 = vunpack.i.h.bf16 %v15499_v62  ;;  %v15594_v25 = vpop.trf.xlu1  ;;  %v18870_v39 = vand.u32 4294901760, %v15558_v32  ;;  %v15605_v62 = vand.u32 4294901760, %v10281_v51 }
 0x351   : > { %6204 = vmatmul.mubr.f32.gmra.mxu0 %v6203_v24  ;;  %18865 = vst [vmem:[#allocation42_spill] sm:$0xff] %v15582_v57  ;;  %9583 = vmatprep.subr.mxu1 %v14960_v7  ;;  %v6226_v34 = vsub.f32 %v15571_v23, %v17509_v31  ;;  %v15603_v10 = vadd.f32 %v8901_v27, %v15154_v15  ;;  %v8988_v3 = vpop.f32.mrf.mxu1  ;;  %v18874_v7 = vld [vmem:[#allocation85_spill] sm:$0xff]  ;;  %v18877_v23 = vld [vmem:[#allocation14_spill] sm:$0xff] }
 0x352   : > { %18866 = vst [vmem:[#allocation11_spill] sm:$0xff] %v15585_v35  ;;  %v15590_v28 = vsub.f32 %v18867_v19, %v15548_v9  ;;  %6651 = vmatmul.mubr.f32.gmra.mxu1 %v15548_v9  ;;  %9502 = vmatpush3.msra.mxu0 %v18869_v5  ;;  %v6217_v24 = vsub.f32 %v15558_v32, %v18870_v39  ;;  %18871 = vst [vmem:[#allocation36_spill] sm:$0xff] %v15605_v62  ;;  %v18872_v9 = vunpack.i.h.bf16 %v15562_v17  ;;  %v8903_v39 = vpop.f32.mrf.mxu0  ;;  %v18875_v15 = vld [vmem:[#allocation69_spill] sm:$0xff] }
 0x353   : > { %6213 = vmatprep.mubr.f32.mxu0 %v6212_v8  ;;  %6656 = vmatprep.mubr.f32.mxu1 %v15578_v20  ;;  %v15618_v8 = vsub.f32 %v10276_v41, %v15578_v20  ;;  %v8989_v19 = vpop.f32.mrf.mxu1  ;;  %v6227_v35 = vand.u32 4294901760, %v6226_v34  ;;  %v18880_v20 = vunpack.i.l.bf16 %v15594_v25 }
 0x354   : > { %18868 = vst [vmem:[#allocation44_spill] sm:$0xff] %v15590_v28  ;;  %v15611_v5 = vand.u32 4294901760, %v18872_v9  ;;  %9503 = vmatprep.subr.mxu0 %v18874_v7  ;;  %v6218_v31 = vand.u32 4294901760, %v6217_v24  ;;  %9584 = vmatpush3.msra.mxu1 %v18875_v15  ;;  %v17516_v27 = vand.u32 4294901760, %v15590_v28  ;;  %v8904_v9 = vadd.f32 %v8903_v39, %v8902_v2  ;;  %v8905_v32 = vpop.f32.mrf.mxu0  ;;  %v15628_v24 = vpop.trf.xlu1 }
 0x355   : > { %18876 = vst [vmem:[#allocation143_spill] sm:$0xff] %v15618_v8  ;;  %9504 = vmatpush3.msra.mxu0 %v18877_v23  ;;  %9585 = vmatprep.subr.mxu1 %v14993_v56  ;;  %v15622_v14 = vadd.f32 %v8989_v19, %v8988_v3  ;;  %v15625_v7 = vsub.f32 %v10279_v29, %v15582_v57  ;;  %v17522_v34 = vand.u32 4294901760, %v15618_v8  ;;  %v15636_v2 = vand.u32 4294901760, %v18880_v20  ;;  %v8991_v3 = vpop.f32.mrf.mxu1  ;;  %v18884_v56 = vld [vmem:[#allocation119_spill] sm:$0xff] }
 0x356   : > { %18873 = vst [vmem:[#allocation40_spill] sm:$0xff] %v15611_v5  ;;  %6219 = vmatmul.mubr.f32.gmra.mxu0 %v6218_v31  ;;  %6658 = vmatmul.mubr.f32.gmra.mxu1 %v15582_v57  ;;  %v6232_v41 = vsub.f32 %v15590_v28, %v17516_v27  ;;  %v15639_v19 = vsub.f32 %v10281_v51, %v15605_v62  ;;  %v8906_v39 = vpop.f32.mrf.mxu0  ;;  %v18883_v57 = vld [vmem:[#allocation79_spill] sm:$0xff]  ;;  %v18885_v51 = vld [vmem:[#allocation70_spill] sm:$0xff]  ;;  %v18887_v31 = vunpack.i.h.bf16 %v15594_v25 }
 0x357   : > { %18878 = vst [vmem:[#allocation57_spill] sm:$0xff] %v15622_v14  ;;  %18879 = vst [vmem:[#allocation50_spill] sm:$0xff] %v15625_v7  ;;  %6228 = vmatprep.mubr.f32.mxu0 %v6227_v35  ;;  %6663 = vmatprep.mubr.f32.mxu1 %v15605_v62  ;;  %v6241_v20 = vsub.f32 %v15618_v8, %v17522_v34  ;;  %v15649_v15 = vadd.f32 %v8904_v9, %v18884_v56  ;;  %v17523_v35 = vand.u32 4294901760, %v15625_v7  ;;  %v8992_v29 = vpop.f32.mrf.mxu1  ;;  %v18886_v28 = vld [vmem:[#allocation83_spill] sm:$0xff]  ;;  %v18899_v8 = vld [vmem:[#allocation45_spill] sm:$0xff] }
 0x358   : > { %18881 = vst [vmem:[#allocation46_spill] sm:$0xff] %v15636_v2  ;;  %18882 = vst [vmem:[#allocation62_spill] sm:$0xff] %v15639_v19  ;;  %9505 = vmatprep.subr.mxu0 %v18883_v57  ;;  %v6233_v27 = vand.u32 4294901760, %v6232_v41  ;;  %9586 = vmatpush3.msra.mxu1 %v18885_v51  ;;  %v15656_v62 = vand.u32 4294901760, %v18887_v31  ;;  %v8907_v57 = vadd.f32 %v8906_v39, %v8905_v32  ;;  %v15663_v9 = vpop.trf.xlu1  ;;  %v18890_v31 = vunpack.i.l.bf16 %v15628_v24  ;;  %v8908_v41 = vpop.f32.mrf.mxu0 }
 0x359   : > { %9506 = vmatpush3.msra.mxu0 %v18886_v28  ;;  %9587 = vmatprep.subr.mxu1 %v15026_v13  ;;  %v15660_v34 = vadd.f32 %v8992_v29, %v8991_v3  ;;  %v6242_v56 = vand.u32 4294901760, %v6241_v20  ;;  %v6247_v51 = vsub.f32 %v15625_v7, %v17523_v35  ;;  %v18892_v32 = vunpack.i.h.bf16 %v15562_v17  ;;  %v18894_v29 = vld [vmem:[#allocation93_spill] sm:$0xff]  ;;  %v8994_v39 = vpop.f32.mrf.mxu1  ;;  %v18897_v13 = vld [vmem:[#allocation82_spill] sm:$0xff] }
 0x35a   : > { %18888 = vst [vmem:[#allocation47_spill] sm:$0xff] %v15656_v62  ;;  %6234 = vmatmul.mubr.f32.gmra.mxu0 %v6233_v27  ;;  %6665 = vmatmul.mubr.f32.gmra.mxu1 %v15611_v5  ;;  %v15670_v28 = vand.u32 4294901760, %v18890_v31  ;;  %v18895_v20 = vunpack.i.h.bf16 %v15628_v24  ;;  %v18898_v7 = vand.u32 4294901760, %v15639_v19 }
 0x35b   : > { %18889 = vst [vmem:[#allocation54_spill] sm:$0xff] %v15660_v34  ;;  %v15675_v3 = vsub.f32 %v18892_v32, %v15611_v5  ;;  %6670 = vmatprep.mubr.f32.mxu1 %v15636_v2  ;;  %9507 = vmatprep.subr.mxu0 %v18894_v29  ;;  %v6248_v31 = vand.u32 4294901760, %v6247_v51  ;;  %v15689_v32 = vadd.f32 %v8907_v57, %v15215_v11  ;;  %v8909_v5 = vpop.f32.mrf.mxu0  ;;  %v18901_v51 = vunpack.i.l.bf16 %v15594_v25  ;;  %v8995_v23 = vpop.f32.mrf.mxu1 }
 0x35c   : > { %18891 = vst [vmem:[#allocation58_spill] sm:$0xff] %v15670_v28  ;;  %v15682_v35 = vand.u32 4294901760, %v18895_v20  ;;  %6243 = vmatprep.mubr.f32.mxu0 %v6242_v56  ;;  %9508 = vmatpush3.msra.mxu0 %v18897_v13  ;;  %v6256_v17 = vsub.f32 %v15639_v19, %v18898_v7  ;;  %v18900_v20 = vld [vmem:[#allocation89_spill] sm:$0xff]  ;;  %v8910_v13 = vadd.f32 %v8909_v5, %v8908_v41  ;;  %v18903_v7 = vunpack.i.h.bf16 %v15594_v25  ;;  %v15706_v29 = vpop.trf.xlu1 }
 0x35d   : > { %18893 = vst [vmem:[#allocation55_spill] sm:$0xff] %v15675_v3  ;;  %v17533_v27 = vand.u32 4294901760, %v15675_v3  ;;  %9588 = vmatpush3.msra.mxu1 %v18899_v8  ;;  %9509 = vmatprep.subr.mxu0 %v18900_v20  ;;  %v15698_v56 = vsub.f32 %v18901_v51, %v15636_v2  ;;  %v15711_v20 = vadd.f32 %v8995_v23, %v8994_v39  ;;  %v18906_v5 = vunpack.i.l.bf16 %v15663_v9  ;;  %v18909_v23 = vld [vmem:[#allocation25_spill] sm:$0xff]  ;;  %v18910_v39 = vld [vmem:[#allocation103_spill] sm:$0xff]  ;;  %v18913_v51 = vld [vmem:[#allocation84_spill] sm:$0xff] }
 0x35e   : > { %18896 = vst [vmem:[#allocation61_spill] sm:$0xff] %v15682_v35  ;;  %v15703_v11 = vsub.f32 %v18903_v7, %v15656_v62  ;;  %6249 = vmatmul.mubr.f32.gmra.mxu0 %v6248_v31  ;;  %6672 = vmatmul.mubr.f32.gmra.mxu1 %v15656_v62  ;;  %v6257_v57 = vand.u32 4294901760, %v6256_v17  ;;  %v18908_v31 = vld [vmem:[#allocation86_spill] sm:$0xff]  ;;  %v8911_v17 = vpop.f32.mrf.mxu0  ;;  %v8997_v7 = vpop.f32.mrf.mxu1  ;;  %v15724_v2 = vadd.f32 %v8910_v13, %v18910_v39  ;;  %v18912_v25 = vld [vmem:[#allocation53_spill] sm:$0xff]  ;;  %v18918_v13 = vunpack.i.l.bf16 %v15706_v29 }
 0x35f   : > { %18902 = vst [vmem:[#allocation75_spill] sm:$0xff] %v15698_v56  ;;  %v6262_v8 = vsub.f32 %v15675_v3, %v17533_v27  ;;  %18905 = vst [vmem:[#allocation65_spill] sm:$0xff] %v15711_v20  ;;  %v15715_v41 = vand.u32 4294901760, %v18906_v5  ;;  %6677 = vmatprep.mubr.f32.mxu1 %v15670_v28  ;;  %9510 = vmatpush3.msra.mxu0 %v18908_v31  ;;  %v18914_v3 = vunpack.i.h.bf16 %v15663_v9  ;;  %v18920_v5 = vunpack.i.h.bf16 %v15628_v24 }
 0x360   : > { %18904 = vst [vmem:[#allocation59_spill] sm:$0xff] %v15703_v11  ;;  %6258 = vmatprep.mubr.f32.mxu0 %v6257_v57  ;;  %9589 = vmatprep.subr.mxu1 %v18909_v23  ;;  %18911 = vst [vmem:[#allocation81_spill] sm:$0xff] %v15724_v2  ;;  %v8912_v27 = vpop.f32.mrf.mxu0  ;;  %v8998_v23 = vpop.f32.mrf.mxu1  ;;  %v15740_v39 = vand.u32 4294901760, %v18918_v13  ;;  %v18924_v20 = vunpack.i.h.bf16 %v15706_v29  ;;  %v18927_v2 = vld [vmem:[#allocation101_spill] sm:$0xff] }
 0x361   : > { %18907 = vst [vmem:[#allocation74_spill] sm:$0xff] %v15715_v41  ;;  %v6263_v62 = vand.u32 4294901760, %v6262_v8  ;;  %9590 = vmatpush3.msra.mxu1 %v18912_v25  ;;  %9511 = vmatprep.subr.mxu0 %v18913_v51  ;;  %v15731_v31 = vand.u32 4294901760, %v18914_v3  ;;  %v18916_v8 = vunpack.i.l.bf16 %v15628_v24  ;;  %v15745_v25 = vsub.f32 %v18920_v5, %v15682_v35  ;;  %v18926_v5 = vld [vmem:[#allocation97_spill] sm:$0xff] }
 0x362   : > { %18919 = vst [vmem:[#allocation90_spill] sm:$0xff] %v15740_v39  ;;  %6679 = vmatmul.mubr.f32.gmra.mxu1 %v15682_v35  ;;  %v18922_v3 = vand.u32 4294901760, %v15698_v56  ;;  %v8913_v13 = vadd.f32 %v8912_v27, %v8911_v17  ;;  %v15758_v34 = vand.u32 4294901760, %v18924_v20  ;;  %9512 = vmatpush3.msra.mxu0 %v18926_v5  ;;  %v18928_v27 = vld [vmem:[#allocation116_spill] sm:$0xff]  ;;  %v15770_v20 = vadd.f32 %v8998_v23, %v8997_v7  ;;  %v18929_v17 = vld [vmem:[#allocation15_spill] sm:$0xff]  ;;  %v8914_v24 = vpop.f32.mrf.mxu0 }
 0x363   : > { %18915 = vst [vmem:[#allocation78_spill] sm:$0xff] %v15731_v31  ;;  %v15736_v57 = vsub.f32 %v18916_v8, %v15670_v28  ;;  %18921 = vst [vmem:[#allocation91_spill] sm:$0xff] %v15745_v25  ;;  %6264 = vmatmul.mubr.f32.gmra.mxu0 %v6263_v62  ;;  %v15751_v8 = vpop.trf.xlu1  ;;  %v18923_v28 = vand.u32 4294901760, %v15703_v11  ;;  %6684 = vmatprep.mubr.f32.mxu1 %v15715_v41  ;;  %v18930_v5 = vld [vmem:[#allocation88_spill] sm:$0xff] }
 0x364   : > { %v6271_v51 = vsub.f32 %v15698_v56, %v18922_v3  ;;  %18925 = vst [vmem:[#allocation64_spill] sm:$0xff] %v15758_v34  ;;  %v9000_v3 = vpop.f32.mrf.mxu1  ;;  %9591 = vmatprep.subr.mxu1 %v18927_v2  ;;  %9513 = vmatprep.subr.mxu0 %v18928_v27  ;;  %v18942_v27 = vld [vmem:[#allocation24_spill] sm:$0xff] }
 0x365   : > { %18917 = vst [vmem:[#allocation60_spill] sm:$0xff] %v15736_v57  ;;  %v6277_v19 = vsub.f32 %v15703_v11, %v18923_v28  ;;  %v15767_v28 = vadd.f32 %v8913_v13, %v15281_v37  ;;  %9592 = vmatpush3.msra.mxu1 %v18929_v17  ;;  %9514 = vmatpush3.msra.mxu0 %v18930_v5  ;;  %v18932_v37 = vunpack.i.l.bf16 %v15751_v8  ;;  %v18934_v7 = vand.u32 4294901760, %v15736_v57 }
 0x366   : > { %v6272_v35 = vand.u32 4294901760, %v6271_v51  ;;  %v9001_v14 = vpop.f32.mrf.mxu1  ;;  %6686 = vmatmul.mubr.f32.gmra.mxu1 %v15731_v31  ;;  %v18937_v17 = vunpack.i.h.bf16 %v15751_v8 }
 0x367   : > { %v6278_v56 = vand.u32 4294901760, %v6277_v19  ;;  %v18931_v19 = vunpack.i.l.bf16 %v15663_v9  ;;  %v15782_v13 = vand.u32 4294901760, %v18932_v37  ;;  %v6286_v23 = vsub.f32 %v15736_v57, %v18934_v7  ;;  %v15788_v62 = vpop.trf.xlu1  ;;  %6691 = vmatprep.mubr.f32.mxu1 %v15740_v39  ;;  %v8915_v7 = vpop.f32.mrf.mxu0  ;;  %v18941_v57 = vld [vmem:[#allocation28_spill] sm:$0xff] }
 0x368   : > { %6273 = vmatprep.mubr.f32.mxu0 %v6272_v35  ;;  %v15790_v5 = vadd.f32 %v9001_v14, %v9000_v3  ;;  %v15799_v37 = vand.u32 4294901760, %v18937_v17  ;;  %v9003_v2 = vpop.f32.mrf.mxu1  ;;  %v18939_v3 = vand.u32 4294901760, %v15745_v25  ;;  %v8916_v17 = vadd.f32 %v8915_v7, %v8914_v24  ;;  %9515 = vmatprep.subr.mxu0 %v18941_v57 }
 0x369   : > { %v15778_v51 = vsub.f32 %v18931_v19, %v15715_v41  ;;  %18933 = vst [vmem:[#allocation98_spill] sm:$0xff] %v15782_v13  ;;  %v18935_v19 = vunpack.i.h.bf16 %v15663_v9  ;;  %6279 = vmatmul.mubr.f32.gmra.mxu0 %v6278_v56  ;;  %v6287_v14 = vand.u32 4294901760, %v6286_v23  ;;  %v8917_v56 = vpop.f32.mrf.mxu0  ;;  %v18943_v23 = vunpack.i.l.bf16 %v15706_v29 }
 0x36a   : > { %18938 = vst [vmem:[#allocation109_spill] sm:$0xff] %v15799_v37  ;;  %v6292_v9 = vsub.f32 %v15745_v25, %v18939_v3  ;;  %9516 = vmatpush3.msra.mxu0 %v18942_v27  ;;  %v9004_v3 = vpop.f32.mrf.mxu1  ;;  %v18947_v24 = vunpack.i.h.bf16 %v15706_v29  ;;  %6693 = vmatmul.mubr.f32.gmra.mxu1 %v15758_v34  ;;  %v18951_v29 = vunpack.i.h.bf16 %v15788_v62 }
 0x36b   : > { %v15795_v41 = vsub.f32 %v18935_v19, %v15731_v31  ;;  %v18940_v31 = vld [vmem:[#allocation108_spill] sm:$0xff]  ;;  %v15816_v11 = vsub.f32 %v18943_v23, %v15740_v39  ;;  %v18945_v19 = vunpack.i.l.bf16 %v15788_v62  ;;  %6288 = vmatprep.mubr.f32.mxu0 %v6287_v14  ;;  %v18948_v35 = vand.u32 4294901760, %v15778_v51  ;;  %v15831_v23 = vpop.trf.xlu1  ;;  %6698 = vmatprep.mubr.f32.mxu1 %v15782_v13  ;;  %v8918_v14 = vpop.f32.mrf.mxu0 }
 0x36c   : > { %9593 = vmatprep.subr.mxu1 %v18940_v31  ;;  %v15825_v7 = vsub.f32 %v18947_v24, %v15758_v34  ;;  %v15834_v39 = vadd.f32 %v8916_v17, %v15313_v59  ;;  %v18950_v17 = vld [vmem:[#allocation19_spill] sm:$0xff] }
 0x36d   : > { %18936 = vst [vmem:[#allocation18_spill] sm:$0xff] %v15795_v41  ;;  %9594 = vmatpush3.msra.mxu1 %v15132_v48  ;;  %18944 = vst [vmem:[#allocation111_spill] sm:$0xff] %v15816_v11  ;;  %v15820_v25 = vand.u32 4294901760, %v18945_v19  ;;  %v6293_v48 = vand.u32 4294901760, %v6292_v9  ;;  %v6301_v27 = vsub.f32 %v15778_v51, %v18948_v35  ;;  %v15836_v19 = vadd.f32 %v9004_v3, %v9003_v2  ;;  %v9006_v9 = vpop.f32.mrf.mxu1  ;;  %v8920_v3 = vpop.f32.mrf.mxu0 }
 0x36e   : > { %9595 = vmatprep.subr.mxu1 %v15137_v53  ;;  %v18949_v35 = vand.u32 4294901760, %v15795_v41  ;;  %v8919_v2 = vadd.f32 %v8918_v14, %v8917_v56  ;;  %9517 = vmatprep.subr.mxu0 %v18950_v17  ;;  %v15851_v53 = vand.u32 4294901760, %v18951_v29  ;;  %v18954_v56 = vunpack.i.l.bf16 %v15831_v23 }
 0x36f   : > { %18946 = vst [vmem:[#allocation23_spill] sm:$0xff] %v15820_v25  ;;  %6294 = vmatmul.mubr.f32.gmra.mxu0 %v6293_v48  ;;  %v6302_v24 = vand.u32 4294901760, %v6301_v27  ;;  %9596 = vmatpush3.msra.mxu1 %v15148_v16  ;;  %v18953_v48 = vunpack.i.l.bf16 %v15751_v8  ;;  %v18956_v57 = vand.u32 4294901760, %v15816_v11  ;;  %v10320_v16 = vpop.trf.xlu1  ;;  %v18958_v31 = vand.u32 4294901760, %v15825_v7 }
 0x370   : > { %v6307_v34 = vsub.f32 %v15795_v41, %v18949_v35  ;;  %18952 = vst [vmem:[#allocation29_spill] sm:$0xff] %v15851_v53  ;;  %9597 = vmatprep.subr.mxu1 %v15179_v42  ;;  %v9007_v35 = vpop.f32.mrf.mxu1  ;;  %v15861_v14 = vand.u32 4294901760, %v18954_v56  ;;  %6700 = vmatmul.mubr.f32.gmra.mxu1 %v15799_v37  ;;  %v15868_v17 = vadd.f32 %v8919_v2, %v15342_v44  ;;  %v10321_v42 = vunpack.i.l.bf16 %v10320_v16  ;;  %v18957_v56 = vld [vmem:[#allocation94_spill] sm:$0xff]  ;;  %v18961_v2 = vld [vmem:[#allocation120_spill] sm:$0xff] }
 0x371   : > { %v15856_v27 = vsub.f32 %v18953_v48, %v15782_v13  ;;  %6303 = vmatprep.mubr.f32.mxu0 %v6302_v24  ;;  %v6316_v29 = vsub.f32 %v15816_v11, %v18956_v57  ;;  %v15870_v48 = vadd.f32 %v9007_v35, %v9006_v9  ;;  %v10324_v13 = vunpack.i.h.bf16 %v10320_v16  ;;  %6705 = vmatprep.mubr.f32.mxu1 %v15820_v25  ;;  %v8921_v24 = vpop.f32.mrf.mxu0 }
 0x372   : > { %18955 = vst [vmem:[#allocation117_spill] sm:$0xff] %v15861_v14  ;;  %v6308_v59 = vand.u32 4294901760, %v6307_v34  ;;  %9518 = vmatpush3.msra.mxu0 %v18957_v56  ;;  %v9009_v34 = vpop.f32.mrf.mxu1  ;;  %v6322_v57 = vsub.f32 %v15825_v7, %v18958_v31  ;;  %v8922_v44 = vadd.f32 %v8921_v24, %v8920_v3  ;;  %9598 = vmatpush3.msra.mxu1 %v15192_v63  ;;  %v15881_v16 = vand.u32 4294901760, %v10321_v42 }
 0x373   : > { %v6317_v41 = vand.u32 4294901760, %v6316_v29  ;;  %v17571_v11 = vand.u32 4294901760, %v15856_v27  ;;  %v15879_v9 = vand.u32 4294901760, %v10324_v13  ;;  %9519 = vmatprep.subr.mxu0 %v18961_v2  ;;  %v8923_v35 = vpop.f32.mrf.mxu0  ;;  %v18963_v56 = vunpack.i.h.bf16 %v15831_v23  ;;  %9599 = vmatprep.subr.mxu1 %v15209_v43 }
 0x374   : > { %6309 = vmatmul.mubr.f32.gmra.mxu0 %v6308_v59  ;;  %18960 = vst [vmem:[#allocation122_spill] sm:$0xff] %v15881_v16  ;;  %v18962_v59 = vunpack.i.h.bf16 %v15751_v8  ;;  %v9010_v3 = vpop.f32.mrf.mxu1  ;;  %v6323_v24 = vand.u32 4294901760, %v6322_v57  ;;  %6707 = vmatmul.mubr.f32.gmra.mxu1 %v15851_v53  ;;  %v15899_v2 = vadd.f32 %v8922_v44, %v15363_v4  ;;  %v18965_v8 = vunpack.i.l.bf16 %v15788_v62 }
 0x375   : > { %18959 = vst [vmem:[#allocation118_spill] sm:$0xff] %v15879_v9  ;;  %v15891_v31 = vand.u32 4294901760, %v18963_v56  ;;  %6318 = vmatprep.mubr.f32.mxu0 %v6317_v41  ;;  %v6331_v63 = vsub.f32 %v15856_v27, %v17571_v11  ;;  %v15907_v56 = vsub.f32 %v10324_v13, %v15879_v9  ;;  %v15910_v41 = vsub.f32 %v10321_v42, %v15881_v16  ;;  %v8924_v11 = vpop.f32.mrf.mxu0 }
 0x376   : > { %v15887_v29 = vsub.f32 %v18962_v59, %v15799_v37  ;;  %v15904_v59 = vsub.f32 %v18965_v8, %v15820_v25  ;;  %6712 = vmatprep.mubr.f32.mxu1 %v15861_v14  ;;  %9520 = vmatpush3.msra.mxu0 %v15257_v52  ;;  %v15915_v4 = vadd.f32 %v9010_v3, %v9009_v34  ;;  %v9012_v44 = vpop.f32.mrf.mxu1  ;;  %v18966_v42 = vunpack.i.h.bf16 %v15788_v62 }
 0x377   : > { %18964 = vst [vmem:[#allocation123_spill] sm:$0xff] %v15891_v31  ;;  %v6332_v37 = vand.u32 4294901760, %v6331_v63  ;;  %9600 = vmatpush3.msra.mxu1 %v15224_v12  ;;  %v8925_v13 = vadd.f32 %v8924_v11, %v8923_v35  ;;  %9521 = vmatprep.subr.mxu0 %v15272_v40  ;;  %v8926_v34 = vpop.f32.mrf.mxu0  ;;  %v18967_v63 = vunpack.i.l.bf16 %v15831_v23  ;;  %v18968_v62 = vunpack.i.h.bf16 %v15831_v23 }
 0x378   : > { %v17577_v57 = vand.u32 4294901760, %v15887_v29  ;;  %6324 = vmatmul.mubr.f32.gmra.mxu0 %v6323_v24  ;;  %v17585_v8 = vand.u32 4294901760, %v15904_v59  ;;  %v15922_v25 = vsub.f32 %v18966_v42, %v15851_v53  ;;  %9601 = vmatprep.subr.mxu1 %v15245_v22  ;;  %v9013_v11 = vpop.f32.mrf.mxu1 }
 0x379   : > { %v15932_v3 = vsub.f32 %v18967_v63, %v15861_v14  ;;  %v15937_v35 = vsub.f32 %v18968_v62, %v15891_v31  ;;  %6333 = vmatprep.mubr.f32.mxu0 %v6332_v37  ;;  %6714 = vmatmul.mubr.f32.gmra.mxu1 %v15891_v31  ;;  %v15948_v14 = vadd.f32 %v9013_v11, %v9012_v44  ;;  %v8927_v23 = vpop.f32.mrf.mxu0 }
 0x37a   : > { %v6337_v52 = vsub.f32 %v15887_v29, %v17577_v57  ;;  %v6346_v42 = vsub.f32 %v15904_v59, %v17585_v8  ;;  %v15945_v57 = vadd.f32 %v8925_v13, %v15384_v21  ;;  %v17584_v63 = vand.u32 4294901760, %v15922_v25  ;;  %6719 = vmatprep.mubr.f32.mxu1 %v15881_v16  ;;  %9602 = vmatpush3.msra.mxu1 %v15259_v1  ;;  %v9127_v62 = vpop.f32.mrf.mxu1 }
 0x37b   : > { %v17586_v37 = vand.u32 4294901760, %v15932_v3  ;;  %9522 = vmatpush3.msra.mxu0 %v15289_v18  ;;  %9603 = vmatprep.subr.mxu1 %v15274_v26  ;;  %v4340_v44 = vadd.f32 %v15360_v55, %v15415_v46  ;;  %v8929_v11 = vpop.f32.mrf.mxu0  ;;  %v4347_v46 = vadd.f32 %v15381_v50, %v15443_v33 }
 0x37c   : > { %v6338_v53 = vand.u32 4294901760, %v6337_v52  ;;  %v6347_v31 = vand.u32 4294901760, %v6346_v42  ;;  %v6352_v21 = vsub.f32 %v15922_v25, %v17584_v63  ;;  %v8928_v52 = vadd.f32 %v8927_v23, %v8926_v34  ;;  %9604 = vmatpush3.msra.mxu1 %v15291_v6  ;;  %v9128_v8 = vpop.f32.mrf.mxu1  ;;  %9523 = vmatprep.subr.mxu0 %v15307_v0 }
 0x37d   : > { %v6361_v13 = vsub.f32 %v15932_v3, %v17586_v37  ;;  %v18969_v42 = vand.u32 4294901760, %v15910_v41  ;;  %6721 = vmatmul.mubr.f32.gmra.mxu1 %v15879_v9  ;;  %v18970_v23 = vand.u32 4294901760, %v15401_v45  ;;  %9605 = vmatprep.subr.mxu1 %v15296_v30  ;;  %v18972_v9 = vand.u32 4294901760, %v15907_v56 }
 0x37e   : > { %6339 = vmatmul.mubr.f32.gmra.mxu0 %v6338_v53  ;;  %v4654_v55 = vadd.f32 %v8928_v52, %v15404_v47  ;;  %v15971_v53 = vadd.f32 %v9128_v8, %v9127_v62  ;;  %v6353_v34 = vand.u32 4294901760, %v6352_v21  ;;  %v9130_v24 = vpop.f32.mrf.mxu1  ;;  %v4916_v8 = vadd.f32 %v15408_v54, %v15472_v38  ;;  %9606 = vmatpush3.msra.mxu1 %v15298_v60  ;;  %v18973_v62 = vld [vmem:[#allocation12_spill] sm:$0xff]  ;;  %v18975_v54 = vld [vmem:[#allocation102_spill] sm:$0xff] }
 0x37f   : > { %v6376_v63 = vsub.f32 %v15910_v41, %v18969_v42  ;;  %6348 = vmatprep.mubr.f32.mxu0 %v6347_v31  ;;  %7098 = vmatprep.mubr.f32.mxu1 %v18970_v23  ;;  %v18971_v42 = vand.u32 4294901760, %v15937_v35  ;;  %v8930_v31 = vpop.f32.mrf.mxu0  ;;  %v6382_v47 = vsub.f32 %v15907_v56, %v18972_v9  ;;  %v6362_v50 = vand.u32 4294901760, %v6361_v13  ;;  %v18976_v13 = vld [vmem:[#allocation35_spill] sm:$0xff] }
 0x380   : > { %v8931_v33 = vadd.f32 %v8930_v31, %v8929_v11  ;;  %v15990_v21 = vadd.f32 %v18973_v62, %v15502_v61  ;;  %v15994_v52 = vadd.f32 %v15461_v49, %v15535_v36  ;;  %v9131_v9 = vpop.f32.mrf.mxu1  ;;  %v15999_v38 = vadd.f32 %v18975_v54, %v15568_v58  ;;  %v18977_v61 = vld [vmem:[#allocation38_spill] sm:$0xff]  ;;  %v18978_v49 = vld [vmem:[#allocation100_spill] sm:$0xff]  ;;  %v18979_v62 = vld [vmem:[#allocation11_spill] sm:$0xff] }
 0x381   : > { %v6367_v37 = vsub.f32 %v15937_v35, %v18971_v42  ;;  %v8932_v23 = vpop.f32.mrf.mxu0  ;;  %v18974_v42 = vld [vmem:[#allocation56_spill] sm:$0xff]  ;;  %v16003_v11 = vadd.f32 %v18976_v13, %v15603_v10  ;;  %v16007_v31 = vadd.f32 %v18977_v61, %v15649_v15  ;;  %9524 = vmatpush3.msra.mxu0 %v18978_v49  ;;  %v18980_v54 = vld [vmem:[#allocation26_spill] sm:$0xff]  ;;  %v18982_v10 = vld [vmem:[#allocation95_spill] sm:$0xff]  ;;  %v16036_v49 = vadd.f32 %v15770_v20, %v15868_v17 }
 0x382   : > { %6354 = vmatmul.mubr.f32.gmra.mxu0 %v6353_v34  ;;  %9735 = vmatprep.subr.mxu1 %v18974_v42  ;;  %v4669_v36 = vadd.f32 %v8931_v33, %v4340_v44  ;;  %v16010_v34 = vadd.f32 %v9131_v9, %v9130_v24  ;;  %v16014_v42 = vadd.f32 %v18979_v62, %v15689_v32  ;;  %v18981_v16 = vand.u32 4294901760, %v18980_v54  ;;  %v9133_v60 = vpop.f32.mrf.mxu1  ;;  %v18983_v15 = vld [vmem:[#allocation81_spill] sm:$0xff]  ;;  %v18985_v44 = vld [vmem:[#allocation54_spill] sm:$0xff]  ;;  %v18987_v9 = vld [vmem:[#allocation131_spill] sm:$0xff] }
 0x383   : > { %6363 = vmatprep.mubr.f32.mxu0 %v6362_v50  ;;  %v6368_v58 = vand.u32 4294901760, %v6367_v37  ;;  %9525 = vmatprep.subr.mxu0 %v18982_v10  ;;  %v8933_v13 = vpop.f32.mrf.mxu0  ;;  %v18984_v61 = vld [vmem:[#allocation57_spill] sm:$0xff]  ;;  %v16025_v24 = vadd.f32 %v18985_v44, %v15767_v28  ;;  %v6377_v37 = vand.u32 4294901760, %v6376_v63  ;;  %v18988_v62 = vand.u32 4294901760, %v18987_v9  ;;  %v18990_v28 = vld [vmem:[#allocation114_spill] sm:$0xff] }
 0x384   : > { %7102 = vmatmul.mubr.f32.vlgmr.msra.gmra.mxu1 %v18981_v16  ;;  %v16021_v50 = vadd.f32 %v18984_v61, %v18983_v15  ;;  %v18986_v33 = vld [vmem:[#allocation65_spill] sm:$0xff]  ;;  %v8934_v10 = vadd.f32 %v8933_v13, %v8932_v23  ;;  %v16040_v15 = vadd.f32 %v15790_v5, %v15899_v2  ;;  %v18991_v61 = vand.u32 4294901760, %v18990_v28  ;;  %v9134_v63 = vpop.f32.mrf.mxu1  ;;  %v18992_v2 = vld [vmem:[#allocation68_spill] sm:$0xff] }
 0x385   : > { %v16029_v32 = vadd.f32 %v18986_v33, %v15834_v39  ;;  %7109 = vmatprep.mubr.f32.mxu1 %v18988_v62  ;;  %v18989_v16 = vld [vmem:[#allocation125_spill] sm:$0xff]  ;;  %v9047_v39 = vpop.f32.mrf.mxu0  ;;  %v16046_v44 = vadd.f32 %v15836_v19, %v15945_v57  ;;  %v16049_v23 = vadd.f32 %v15870_v48, %v4654_v55  ;;  %v16052_v20 = vadd.f32 %v15915_v4, %v4669_v36  ;;  %v18993_v13 = vld [vmem:[#allocation32_spill] sm:$0xff]  ;;  %v18998_v55 = vld [vmem:[#allocation67_spill] sm:$0xff] }
 0x386   : > { %9526 = vmatpush3.msra.mxu0 %v18989_v16  ;;  %v4684_v17 = vadd.f32 %v8934_v10, %v4347_v46  ;;  %v9135_v5 = vadd.f32 %v9134_v63, %v9133_v60  ;;  %9736 = vmatpush3.msra.mxu1 %v18992_v2  ;;  %v18994_v33 = vand.u32 4294901760, %v18993_v13  ;;  %v9136_v28 = vpop.f32.mrf.mxu1  ;;  %v18996_v19 = vld [vmem:[#allocation112_spill] sm:$0xff]  ;;  %v19001_v63 = vld [vmem:[#allocation31_spill] sm:$0xff] }
 0x387   : > { %6369 = vmatmul.mubr.f32.gmra.mxu0 %v6368_v58  ;;  %9655 = vmatprep.subr.mxu0 %v18991_v61  ;;  %v6383_v58 = vand.u32 4294901760, %v6382_v47  ;;  %v9048_v62 = vpop.f32.mrf.mxu0  ;;  %v18995_v61 = vld [vmem:[#allocation87_spill] sm:$0xff]  ;;  %v18997_v57 = vand.u32 4294901760, %v18996_v19  ;;  %v19002_v2 = vand.u32 4294901760, %v19001_v63 }
 0x388   : > { %6378 = vmatprep.mubr.f32.mxu0 %v6377_v37  ;;  %7113 = vmatmul.mubr.f32.gmra.mxu1 %v18994_v33  ;;  %v9049_v48 = vadd.f32 %v9048_v62, %v9047_v39  ;;  %v16062_v4 = vadd.f32 %v15948_v14, %v4684_v17  ;;  %v9137_v46 = vpop.f32.mrf.mxu1  ;;  %v18999_v47 = vld [vmem:[#allocation43_spill] sm:$0xff]  ;;  %v19000_v37 = vld [vmem:[#allocation48_spill] sm:$0xff] }
 0x389   : > { %9737 = vmatprep.subr.mxu1 %v18995_v61  ;;  %7120 = vmatprep.mubr.f32.mxu1 %v18997_v57  ;;  %v9050_v60 = vpop.f32.mrf.mxu0  ;;  %v9138_v10 = vadd.f32 %v9137_v46, %v9136_v28  ;;  %v19003_v62 = vld [vmem:[#allocation115_spill] sm:$0xff]  ;;  %v19004_v14 = vld [vmem:[#allocation104_spill] sm:$0xff]  ;;  %v19006_v61 = vld [vmem:[#allocation33_spill] sm:$0xff] }
 0x38a   : > { %9738 = vmatpush3.msra.mxu1 %v18998_v55  ;;  %v5159_v36 = vadd.f32 %v9049_v48, %v4916_v8  ;;  %v9139_v33 = vpop.f32.mrf.mxu1  ;;  %v19005_v17 = vand.u32 4294901760, %v19004_v14  ;;  %v19007_v28 = vld [vmem:[#allocation76_spill] sm:$0xff] }
 0x38b   : > { %6384 = vmatmul.mubr.f32.gmra.mxu0 %v6383_v58  ;;  %9739 = vmatprep.subr.mxu1 %v18999_v47  ;;  %v9051_v39 = vpop.f32.mrf.mxu0  ;;  %v19008_v48 = vld [vmem:[#allocation52_spill] sm:$0xff] }
 0x38c   : > { %6856 = vmatprep.mubr.f32.mxu0 %v15401_v45  ;;  %9740 = vmatpush3.msra.mxu1 %v19000_v37  ;;  %v9052_v58 = vadd.f32 %v9051_v39, %v9050_v60  ;;  %v16074_v57 = vadd.f32 %v15971_v53, %v5159_v36  ;;  %v9140_v8 = vpop.f32.mrf.mxu1  ;;  %v19009_v55 = vand.u32 4294901760, %v19008_v48  ;;  %v19010_v60 = vld [vmem:[#allocation63_spill] sm:$0xff]  ;;  %v19014_v39 = vld [vmem:[#allocation105_spill] sm:$0xff] }
 0x38d   : > { %7124 = vmatmul.mubr.f32.gmra.mxu1 %v19002_v2  ;;  %9741 = vmatprep.subr.mxu1 %v19003_v62  ;;  %v9053_v45 = vpop.f32.mrf.mxu0  ;;  %v9141_v47 = vadd.f32 %v9140_v8, %v9139_v33  ;;  %v19011_v37 = vand.u32 4294901760, %v19010_v60  ;;  %v19012_v2 = vld [vmem:[#allocation138_spill] sm:$0xff]  ;;  %v19015_v62 = vand.u32 4294901760, %v19014_v39  ;;  %v19020_v48 = vld [vmem:[#allocation37_spill] sm:$0xff] }
 0x38e   : > { %7131 = vmatprep.mubr.f32.mxu1 %v19005_v17  ;;  %9742 = vmatpush3.msra.mxu1 %v19006_v61  ;;  %v5168_v46 = vadd.f32 %v9052_v58, %v15990_v21  ;;  %v19013_v53 = vand.u32 4294901760, %v19012_v2  ;;  %v19016_v17 = vld [vmem:[#allocation20_spill] sm:$0xff]  ;;  %v19018_v21 = vld [vmem:[#allocation51_spill] sm:$0xff]  ;;  %v19026_v39 = vld [vmem:[#allocation49_spill] sm:$0xff] }
 0x38f   : > { %6859 = vmatmul.mubr.f32.vlgmr.msra.gmra.mxu0 %v18980_v54  ;;  %9743 = vmatprep.subr.mxu1 %v19007_v28  ;;  %v9054_v36 = vpop.f32.mrf.mxu0  ;;  %v9142_v54 = vpop.f32.mrf.mxu1  ;;  %v19017_v61 = vand.u32 4294901760, %v19016_v17  ;;  %v19019_v33 = vand.u32 4294901760, %v19018_v21 }
 0x390   : > { %9656 = vmatpush3.msra.mxu0 %v19009_v55  ;;  %6865 = vmatprep.mubr.f32.mxu0 %v18987_v9  ;;  %v9055_v28 = vadd.f32 %v9054_v36, %v9053_v45  ;;  %v16091_v9 = vadd.f32 %v16010_v34, %v5168_v46  ;;  %v19021_v55 = vand.u32 4294901760, %v19020_v48  ;;  %v19024_v34 = vld [vmem:[#allocation121_spill] sm:$0xff] }
 0x391   : > { %9657 = vmatprep.subr.mxu0 %v19011_v37  ;;  %7135 = vmatmul.mubr.f32.gmra.mxu1 %v19013_v53  ;;  %v9056_v58 = vpop.f32.mrf.mxu0  ;;  %v9143_v8 = vpop.f32.mrf.mxu1  ;;  %v19022_v53 = vld [vmem:[#allocation110_spill] sm:$0xff]  ;;  %v19025_v46 = vand.u32 4294901760, %v19024_v34 }
 0x392   : > { %9658 = vmatpush3.msra.mxu0 %v19015_v62  ;;  %7142 = vmatprep.mubr.f32.mxu1 %v19017_v61  ;;  %v5177_v60 = vadd.f32 %v9055_v28, %v15994_v52  ;;  %v9144_v37 = vadd.f32 %v9143_v8, %v9142_v54  ;;  %v19023_v45 = vand.u32 4294901760, %v19022_v53  ;;  %v19027_v62 = vand.u32 4294901760, %v19026_v39  ;;  %v19028_v61 = vld [vmem:[#allocation73_spill] sm:$0xff] }
 0x393   : > { %6868 = vmatmul.mubr.f32.gmra.mxu0 %v18993_v13  ;;  %9659 = vmatprep.subr.mxu0 %v19019_v33  ;;  %v9057_v13 = vpop.f32.mrf.mxu0  ;;  %v9145_v36 = vpop.f32.mrf.mxu1  ;;  %v19029_v21 = vand.u32 4294901760, %v19028_v61  ;;  %v19030_v52 = vld [vmem:[#allocation85_spill] sm:$0xff] }
 0x394   : > { %6874 = vmatprep.mubr.f32.mxu0 %v18996_v19  ;;  %9660 = vmatpush3.msra.mxu0 %v19021_v55  ;;  %v9058_v19 = vadd.f32 %v9057_v13, %v9056_v58  ;;  %v16108_v33 = vadd.f32 %v9135_v5, %v5177_v60  ;;  %v19031_v54 = vand.u32 4294901760, %v19030_v52  ;;  %v19032_v55 = vld [vmem:[#allocation14_spill] sm:$0xff]  ;;  %v19036_v58 = vld [vmem:[#allocation79_spill] sm:$0xff] }
 0x395   : > { %7146 = vmatmul.mubr.f32.gmra.mxu1 %v19023_v45  ;;  %9661 = vmatprep.subr.mxu0 %v19025_v46  ;;  %v9059_v28 = vpop.f32.mrf.mxu0  ;;  %v9146_v8 = vpop.f32.mrf.mxu1  ;;  %v19033_v45 = vand.u32 4294901760, %v19032_v55  ;;  %v19034_v46 = vld [vmem:[#allocation44_spill] sm:$0xff]  ;;  %v19037_v60 = vand.u32 4294901760, %v19036_v58 }
 0x396   : > { %7153 = vmatprep.mubr.f32.mxu1 %v19027_v62  ;;  %9662 = vmatpush3.msra.mxu0 %v19029_v21  ;;  %v5186_v48 = vadd.f32 %v9058_v19, %v15999_v38  ;;  %v9147_v34 = vadd.f32 %v9146_v8, %v9145_v36  ;;  %v19035_v62 = vand.u32 4294901760, %v19034_v46  ;;  %v19040_v21 = vld [vmem:[#allocation69_spill] sm:$0xff]  ;;  %v19041_v36 = vld [vmem:[#allocation80_spill] sm:$0xff] }
 0x397   : > { %6877 = vmatmul.mubr.f32.gmra.mxu0 %v19001_v63  ;;  %9663 = vmatprep.subr.mxu0 %v19031_v54  ;;  %v9060_v5 = vpop.f32.mrf.mxu0  ;;  %v19038_v63 = vld [vmem:[#allocation143_spill] sm:$0xff] }
 0x398   : > { %6883 = vmatprep.mubr.f32.mxu0 %v19004_v14  ;;  %9664 = vmatpush3.msra.mxu0 %v19033_v45  ;;  %v19039_v13 = vand.u32 4294901760, %v19038_v63  ;;  %v9061_v61 = vadd.f32 %v9060_v5, %v9059_v28  ;;  %v9148_v14 = vpop.f32.mrf.mxu1  ;;  %v16124_v52 = vadd.f32 %v9138_v10, %v5186_v48  ;;  %v19042_v54 = vld [vmem:[#allocation83_spill] sm:$0xff]  ;;  %v19044_v45 = vld [vmem:[#allocation50_spill] sm:$0xff]  ;;  %v19046_v10 = vld [vmem:[#allocation93_spill] sm:$0xff] }
 0x399   : > { %7157 = vmatmul.mubr.f32.gmra.mxu1 %v19035_v62  ;;  %9665 = vmatprep.subr.mxu0 %v19037_v60  ;;  %v9062_v38 = vpop.f32.mrf.mxu0  ;;  %v19043_v8 = vand.u32 4294901760, %v19042_v54  ;;  %v19045_v28 = vand.u32 4294901760, %v19044_v45  ;;  %v19047_v48 = vand.u32 4294901760, %v19046_v10 }
 0x39a   : > { %7164 = vmatprep.mubr.f32.mxu1 %v19039_v13  ;;  %9744 = vmatpush3.msra.mxu1 %v19040_v21  ;;  %v5195_v19 = vadd.f32 %v9061_v61, %v16003_v11  ;;  %v9149_v55 = vpop.f32.mrf.mxu1  ;;  %v19050_v13 = vld [vmem:[#allocation70_spill] sm:$0xff]  ;;  %v19051_v21 = vld [vmem:[#allocation13_spill] sm:$0xff] }
 0x39b   : > { %6886 = vmatmul.mubr.f32.gmra.mxu0 %v19012_v2  ;;  %9745 = vmatprep.subr.mxu1 %v19041_v36  ;;  %v9063_v62 = vpop.f32.mrf.mxu0  ;;  %v9150_v5 = vadd.f32 %v9149_v55, %v9148_v14  ;;  %v19048_v2 = vld [vmem:[#allocation62_spill] sm:$0xff]  ;;  %v19054_v55 = vld [vmem:[#allocation55_spill] sm:$0xff] }
 0x39c   : > { %6892 = vmatprep.mubr.f32.mxu0 %v19016_v17  ;;  %9666 = vmatpush3.msra.mxu0 %v19043_v8  ;;  %v19049_v58 = vand.u32 4294901760, %v19048_v2  ;;  %v9064_v60 = vadd.f32 %v9063_v62, %v9062_v38  ;;  %v9151_v17 = vpop.f32.mrf.mxu1  ;;  %v16139_v11 = vadd.f32 %v9141_v47, %v5195_v19  ;;  %v19052_v36 = vld [vmem:[#allocation82_spill] sm:$0xff]  ;;  %v19055_v38 = vand.u32 4294901760, %v19054_v55  ;;  %v19056_v47 = vld [vmem:[#allocation89_spill] sm:$0xff] }
 0x39d   : > { %7168 = vmatmul.mubr.f32.gmra.mxu1 %v19045_v28  ;;  %9667 = vmatprep.subr.mxu0 %v19047_v48  ;;  %v9065_v61 = vpop.f32.mrf.mxu0  ;;  %v19053_v54 = vand.u32 4294901760, %v19052_v36  ;;  %v19057_v19 = vand.u32 4294901760, %v19056_v47 }
 0x39e   : > { %7175 = vmatprep.mubr.f32.mxu1 %v19049_v58  ;;  %9746 = vmatpush3.msra.mxu1 %v19050_v13  ;;  %v5204_v14 = vadd.f32 %v9064_v60, %v16007_v31  ;;  %v9152_v8 = vpop.f32.mrf.mxu1  ;;  %v19060_v58 = vld [vmem:[#allocation45_spill] sm:$0xff] }
 0x39f   : > { %6895 = vmatmul.mubr.f32.gmra.mxu0 %v19022_v53  ;;  %9747 = vmatprep.subr.mxu1 %v19051_v21  ;;  %v9066_v28 = vpop.f32.mrf.mxu0  ;;  %v9153_v62 = vadd.f32 %v9152_v8, %v9151_v17  ;;  %v19058_v53 = vld [vmem:[#allocation75_spill] sm:$0xff]  ;;  %v19061_v13 = vld [vmem:[#allocation25_spill] sm:$0xff]  ;;  %v19062_v21 = vld [vmem:[#allocation86_spill] sm:$0xff] }
 0x3a0   : > { %6901 = vmatprep.mubr.f32.mxu0 %v19026_v39  ;;  %9668 = vmatpush3.msra.mxu0 %v19053_v54  ;;  %v19059_v10 = vand.u32 4294901760, %v19058_v53  ;;  %v9067_v48 = vadd.f32 %v9066_v28, %v9065_v61  ;;  %v16154_v39 = vadd.f32 %v9144_v37, %v5204_v14  ;;  %v9154_v60 = vpop.f32.mrf.mxu1  ;;  %v19063_v36 = vand.u32 4294901760, %v19062_v21  ;;  %v19064_v54 = vld [vmem:[#allocation59_spill] sm:$0xff]  ;;  %v19066_v37 = vld [vmem:[#allocation84_spill] sm:$0xff]  ;;  %v19072_v21 = vld [vmem:[#allocation97_spill] sm:$0xff] }
 0x3a1   : > { %7179 = vmatmul.mubr.f32.gmra.mxu1 %v19055_v38  ;;  %9669 = vmatprep.subr.mxu0 %v19057_v19  ;;  %v9068_v31 = vpop.f32.mrf.mxu0  ;;  %v19065_v8 = vand.u32 4294901760, %v19064_v54  ;;  %v19067_v14 = vand.u32 4294901760, %v19066_v37  ;;  %v19079_v37 = vld [vmem:[#allocation15_spill] sm:$0xff] }
 0x3a2   : > { %7186 = vmatprep.mubr.f32.mxu1 %v19059_v10  ;;  %9748 = vmatpush3.msra.mxu1 %v19060_v58  ;;  %v5213_v17 = vadd.f32 %v9067_v48, %v16014_v42  ;;  %v9155_v38 = vpop.f32.mrf.mxu1  ;;  %v19070_v10 = vld [vmem:[#allocation53_spill] sm:$0xff] }
 0x3a3   : > { %6904 = vmatmul.mubr.f32.gmra.mxu0 %v19034_v46  ;;  %9749 = vmatprep.subr.mxu1 %v19061_v13  ;;  %v9069_v61 = vpop.f32.mrf.mxu0  ;;  %v19068_v46 = vld [vmem:[#allocation60_spill] sm:$0xff]  ;;  %v9156_v19 = vadd.f32 %v9155_v38, %v9154_v60  ;;  %v19071_v48 = vld [vmem:[#allocation101_spill] sm:$0xff] }
 0x3a4   : > { %6910 = vmatprep.mubr.f32.mxu0 %v19038_v63  ;;  %9670 = vmatpush3.msra.mxu0 %v19063_v36  ;;  %v19069_v28 = vand.u32 4294901760, %v19068_v46  ;;  %v9070_v47 = vadd.f32 %v9069_v61, %v9068_v31  ;;  %v16169_v63 = vadd.f32 %v9147_v34, %v5213_v17  ;;  %v9157_v13 = vpop.f32.mrf.mxu1  ;;  %v19073_v36 = vand.u32 4294901760, %v19072_v21  ;;  %v19076_v61 = vld [vmem:[#allocation116_spill] sm:$0xff] }
 0x3a5   : > { %7190 = vmatmul.mubr.f32.gmra.mxu1 %v19065_v8  ;;  %9671 = vmatprep.subr.mxu0 %v19067_v14  ;;  %v9071_v42 = vpop.f32.mrf.mxu0  ;;  %v19074_v8 = vld [vmem:[#allocation91_spill] sm:$0xff]  ;;  %v19077_v34 = vand.u32 4294901760, %v19076_v61  ;;  %v19080_v14 = vld [vmem:[#allocation108_spill] sm:$0xff]  ;;  %v19089_v61 = vld [vmem:[#allocation113_spill] sm:$0xff] }
 0x3a6   : > { %7197 = vmatprep.mubr.f32.mxu1 %v19069_v28  ;;  %9750 = vmatpush3.msra.mxu1 %v19070_v10  ;;  %v5222_v58 = vadd.f32 %v9070_v47, %v16021_v50  ;;  %v19075_v31 = vand.u32 4294901760, %v19074_v8  ;;  %v9158_v38 = vpop.f32.mrf.mxu1 }
 0x3a7   : > { %6913 = vmatmul.mubr.f32.gmra.mxu0 %v19044_v45  ;;  %9751 = vmatprep.subr.mxu1 %v19071_v48  ;;  %v9072_v60 = vpop.f32.mrf.mxu0  ;;  %v19078_v45 = vand.u32 4294901760, %v15778_v51  ;;  %v9159_v50 = vadd.f32 %v9158_v38, %v9157_v13  ;;  %v19081_v48 = vld [vmem:[#allocation88_spill] sm:$0xff] }
 0x3a8   : > { %6919 = vmatprep.mubr.f32.mxu0 %v19048_v2  ;;  %9672 = vmatpush3.msra.mxu0 %v19073_v36  ;;  %v9073_v17 = vadd.f32 %v9072_v60, %v9071_v42  ;;  %v16184_v2 = vadd.f32 %v9150_v5, %v5222_v58  ;;  %v9160_v10 = vpop.f32.mrf.mxu1  ;;  %v19082_v21 = vand.u32 4294901760, %v19081_v48  ;;  %v19083_v42 = vld [vmem:[#allocation18_spill] sm:$0xff]  ;;  %v19087_v58 = vld [vmem:[#allocation111_spill] sm:$0xff]  ;;  %v19091_v38 = vld [vmem:[#allocation24_spill] sm:$0xff] }
 0x3a9   : > { %7201 = vmatmul.mubr.f32.gmra.mxu1 %v19075_v31  ;;  %9673 = vmatprep.subr.mxu0 %v19077_v34  ;;  %v9074_v47 = vpop.f32.mrf.mxu0  ;;  %v19084_v36 = vand.u32 4294901760, %v19083_v42  ;;  %v19085_v31 = vld [vmem:[#allocation28_spill] sm:$0xff] }
 0x3aa   : > { %7208 = vmatprep.mubr.f32.mxu1 %v19078_v45  ;;  %9752 = vmatpush3.msra.mxu1 %v19079_v37  ;;  %v5231_v28 = vadd.f32 %v9073_v17, %v16025_v24  ;;  %v19086_v5 = vand.u32 4294901760, %v19085_v31  ;;  %v9161_v60 = vpop.f32.mrf.mxu1  ;;  %v19090_v45 = vld [vmem:[#allocation17_spill] sm:$0xff]  ;;  %v19092_v37 = vand.u32 4294901760, %v19091_v38  ;;  %v19104_v38 = vand.u32 4294901760, %v15904_v59 }
 0x3ab   : > { %6922 = vmatmul.mubr.f32.gmra.mxu0 %v19054_v55  ;;  %9753 = vmatprep.subr.mxu1 %v19080_v14  ;;  %v19088_v55 = vand.u32 4294901760, %v19087_v58  ;;  %v9075_v13 = vpop.f32.mrf.mxu0  ;;  %v9162_v34 = vadd.f32 %v9161_v60, %v9160_v10  ;;  %v19093_v14 = vand.u32 4294901760, %v15825_v7  ;;  %v19097_v10 = vld [vmem:[#allocation66_spill] sm:$0xff]  ;;  %v19098_v31 = vld [vmem:[#allocation77_spill] sm:$0xff]  ;;  %v19101_v60 = vand.u32 4294901760, %v15887_v29 }
 0x3ac   : > { %6928 = vmatprep.mubr.f32.mxu0 %v19058_v53  ;;  %9674 = vmatpush3.msra.mxu0 %v19082_v21  ;;  %v16199_v53 = vadd.f32 %v9153_v62, %v5231_v28  ;;  %v9076_v24 = vadd.f32 %v9075_v13, %v9074_v47  ;;  %v9163_v21 = vpop.f32.mrf.mxu1  ;;  %v19094_v62 = vld [vmem:[#allocation19_spill] sm:$0xff] }
 0x3ad   : > { %7212 = vmatmul.mubr.f32.gmra.mxu1 %v19084_v36  ;;  %9675 = vmatprep.subr.mxu0 %v19086_v5  ;;  %v9077_v17 = vpop.f32.mrf.mxu0  ;;  %v19095_v28 = vand.u32 4294901760, %v19094_v62 }
 0x3ae   : > { %7219 = vmatprep.mubr.f32.mxu1 %v19088_v55  ;;  %9754 = vmatpush3.msra.mxu1 %v19089_v61  ;;  %v5240_v48 = vadd.f32 %v9076_v24, %v16029_v32  ;;  %v9164_v36 = vpop.f32.mrf.mxu1  ;;  %v19099_v55 = vld [vmem:[#allocation94_spill] sm:$0xff] }
 0x3af   : > { %6931 = vmatmul.mubr.f32.gmra.mxu0 %v19064_v54  ;;  %9755 = vmatprep.subr.mxu1 %v19090_v45  ;;  %v19096_v54 = vand.u32 4294901760, %v15856_v27  ;;  %v9078_v47 = vpop.f32.mrf.mxu0  ;;  %v9165_v32 = vadd.f32 %v9164_v36, %v9163_v21  ;;  %v19100_v13 = vand.u32 4294901760, %v19099_v55  ;;  %v19106_v21 = vld [vmem:[#allocation124_spill] sm:$0xff]  ;;  %v19111_v36 = vand.u32 4294901760, %v15937_v35 }
 0x3b0   : > { %6937 = vmatprep.mubr.f32.mxu0 %v19068_v46  ;;  %9676 = vmatpush3.msra.mxu0 %v19092_v37  ;;  %v9079_v46 = vadd.f32 %v9078_v47, %v9077_v17  ;;  %v16216_v5 = vadd.f32 %v9156_v19, %v5240_v48  ;;  %v9166_v45 = vpop.f32.mrf.mxu1  ;;  %v19105_v19 = vld [vmem:[#allocation72_spill] sm:$0xff]  ;;  %v19107_v62 = vand.u32 4294901760, %v19106_v21  ;;  %v19109_v47 = vand.u32 4294901760, %v15272_v40  ;;  %v19125_v21 = vld [vmem:[#allocation27_spill] sm:$0xff] }
 0x3b1   : > { %7223 = vmatmul.mubr.f32.gmra.mxu1 %v19093_v14  ;;  %9677 = vmatprep.subr.mxu0 %v19095_v28  ;;  %v9080_v24 = vpop.f32.mrf.mxu0  ;;  %v19108_v28 = vand.u32 4294901760, %v15922_v25 }
 0x3b2   : > { %7230 = vmatprep.mubr.f32.mxu1 %v19096_v54  ;;  %9756 = vmatpush3.msra.mxu1 %v19097_v10  ;;  %v5249_v61 = vadd.f32 %v9079_v46, %v16036_v49  ;;  %v9167_v37 = vpop.f32.mrf.mxu1 }
 0x3b3   : > { %6940 = vmatmul.mubr.f32.gmra.mxu0 %v19074_v8  ;;  %9757 = vmatprep.subr.mxu1 %v19098_v31  ;;  %v19102_v8 = vld [vmem:[#allocation120_spill] sm:$0xff]  ;;  %v9168_v48 = vadd.f32 %v9167_v37, %v9166_v45  ;;  %v19112_v31 = vand.u32 4294901760, %v15289_v18  ;;  %v19121_v45 = vld [vmem:[#allocation95_spill] sm:$0xff] }
 0x3b4   : > { %6946 = vmatprep.mubr.f32.mxu0 %v15778_v51  ;;  %9678 = vmatpush3.msra.mxu0 %v19100_v13  ;;  %v19103_v17 = vand.u32 4294901760, %v19102_v8  ;;  %v9081_v51 = vpop.f32.mrf.mxu0  ;;  %v16231_v14 = vadd.f32 %v9159_v50, %v5249_v61  ;;  %v9169_v50 = vpop.f32.mrf.mxu1  ;;  %v19115_v13 = vand.u32 4294901760, %v15307_v0  ;;  %v19122_v8 = vand.u32 4294901760, %v19121_v45  ;;  %v19134_v45 = vld [vmem:[#allocation39_spill] sm:$0xff] }
 0x3b5   : > { %7234 = vmatmul.mubr.f32.gmra.mxu1 %v19101_v60  ;;  %v9082_v49 = vadd.f32 %v9081_v51, %v9080_v24  ;;  %v19117_v60 = vld [vmem:[#allocation92_spill] sm:$0xff] }
 0x3b6   : > { %9679 = vmatprep.subr.mxu0 %v19103_v17  ;;  %7241 = vmatprep.mubr.f32.mxu1 %v19104_v38  ;;  %v9083_v54 = vpop.f32.mrf.mxu0  ;;  %v9170_v46 = vpop.f32.mrf.mxu1  ;;  %v19120_v24 = vld [vmem:[#allocation128_spill] sm:$0xff]  ;;  %v19123_v38 = vld [vmem:[#allocation41_spill] sm:$0xff] }
 0x3b7   : > { %9758 = vmatpush3.msra.mxu1 %v19105_v19  ;;  %6949 = vmatmul.mubr.f32.gmra.mxu0 %v19083_v42  ;;  %v19110_v42 = vand.u32 4294901760, %v15932_v3 }
 0x3b8   : > { %9759 = vmatprep.subr.mxu1 %v15209_v43  ;;  %6955 = vmatprep.mubr.f32.mxu0 %v19087_v58  ;;  %v5258_v43 = vadd.f32 %v9082_v49, %v16040_v15  ;;  %v9084_v58 = vpop.f32.mrf.mxu0  ;;  %v9171_v15 = vadd.f32 %v9170_v46, %v9169_v50  ;;  %v19128_v50 = vld [vmem:[#allocation30_spill] sm:$0xff] }
 0x3b9   : > { %9680 = vmatpush3.msra.mxu0 %v19107_v62  ;;  %7245 = vmatmul.mubr.f32.gmra.mxu1 %v19108_v28  ;;  %v9085_v10 = vadd.f32 %v9084_v58, %v9083_v54  ;;  %v19126_v62 = vld [vmem:[#allocation21_spill] sm:$0xff] }
 0x3ba   : > { %9681 = vmatprep.subr.mxu0 %v19109_v47  ;;  %7252 = vmatprep.mubr.f32.mxu1 %v19110_v42  ;;  %v16248_v40 = vadd.f32 %v9162_v34, %v5258_v43  ;;  %v19114_v34 = vand.u32 4294901760, %v15907_v56 }
 0x3bb   : > { %9760 = vmatpush3.msra.mxu1 %v15224_v12  ;;  %6958 = vmatmul.mubr.f32.gmra.mxu0 %v15825_v7  ;;  %v19113_v12 = vand.u32 4294901760, %v15910_v41  ;;  %v9086_v7 = vpop.f32.mrf.mxu0 }
 0x3bc   : > { %9761 = vmatprep.subr.mxu1 %v15245_v22  ;;  %6964 = vmatprep.mubr.f32.mxu0 %v15856_v27  ;;  %v5267_v22 = vadd.f32 %v9085_v10, %v16046_v44 }
 0x3bd   : > { %9762 = vmatpush3.msra.mxu1 %v15259_v1  ;;  %9682 = vmatpush3.msra.mxu0 %v19112_v31  ;;  %v9172_v1 = vpop.f32.mrf.mxu1  ;;  %v9087_v27 = vpop.f32.mrf.mxu0 }
 0x3be   : > { %7256 = vmatmul.mubr.f32.gmra.mxu1 %v19111_v36  ;;  %9763 = vmatprep.subr.mxu1 %v15274_v26  ;;  %v16262_v18 = vadd.f32 %v9165_v32, %v5267_v22  ;;  %v9088_v55 = vadd.f32 %v9087_v27, %v9086_v7  ;;  %v19116_v26 = vld [vmem:[#allocation96_spill] sm:$0xff]  ;;  %v19130_v22 = vld [vmem:[#allocation137_spill] sm:$0xff] }
 0x3bf   : > { %7263 = vmatprep.mubr.f32.mxu1 %v19113_v12  ;;  %6967 = vmatmul.mubr.f32.gmra.mxu0 %v15887_v29  ;;  %v9173_v44 = vpop.f32.mrf.mxu1  ;;  %v19118_v32 = vld [vmem:[#allocation100_spill] sm:$0xff] }
 0x3c0   : > { %9764 = vmatpush3.msra.mxu1 %v15291_v6  ;;  %6973 = vmatprep.mubr.f32.mxu0 %v15904_v59  ;;  %v9174_v29 = vadd.f32 %v9173_v44, %v9172_v1  ;;  %v5276_v6 = vadd.f32 %v9088_v55, %v16049_v23  ;;  %v19119_v61 = vand.u32 4294901760, %v19118_v32  ;;  %v19124_v23 = vand.u32 4294901760, %v18989_v16 }
 0x3c1   : > { %9765 = vmatprep.subr.mxu1 %v15296_v30  ;;  %9683 = vmatprep.subr.mxu0 %v19115_v13  ;;  %v9089_v30 = vpop.f32.mrf.mxu0  ;;  %v9287_v59 = vpop.f32.mrf.mxu1 }
 0x3c2   : > { %7267 = vmatmul.mubr.f32.gmra.mxu1 %v19114_v34  ;;  %9684 = vmatpush3.msra.mxu0 %v19119_v61  ;;  %v16278_v17 = vadd.f32 %v9168_v48, %v5276_v6 }
 0x3c3   : > { %7642 = vmatprep.mubr.f32.mxu1 %v19116_v26  ;;  %9766 = vmatpush3.msra.mxu1 %v19117_v60  ;;  %v9090_v0 = vpop.f32.mrf.mxu0  ;;  %v9288_v19 = vpop.f32.mrf.mxu1 }
 0x3c4   : > { %6976 = vmatmul.mubr.f32.gmra.mxu0 %v15922_v25  ;;  %9685 = vmatprep.subr.mxu0 %v19122_v8  ;;  %v9091_v25 = vadd.f32 %v9090_v0, %v9089_v30 }
 0x3c5   : > { %6982 = vmatprep.mubr.f32.mxu0 %v15932_v3  ;;  %9686 = vmatpush3.msra.mxu0 %v19124_v23  ;;  %v9289_v3 = vadd.f32 %v9288_v19, %v9287_v59  ;;  %v9092_v51 = vpop.f32.mrf.mxu0  ;;  %v9290_v49 = vpop.f32.mrf.mxu1 }
 0x3c6   : > { %7644 = vmatmul.mubr.f32.vlgmr.msra.gmra.mxu1 %v19120_v24  ;;  %v5285_v37 = vadd.f32 %v9091_v25, %v16052_v20  ;;  %v19127_v20 = vld [vmem:[#allocation132_spill] sm:$0xff] }
 0x3c7   : > { %7649 = vmatprep.mubr.f32.mxu1 %v19123_v38  ;;  %v9093_v48 = vpop.f32.mrf.mxu0  ;;  %v9291_v54 = vpop.f32.mrf.mxu1 }
 0x3c8   : > { %6985 = vmatmul.mubr.f32.gmra.mxu0 %v15937_v35  ;;  %v9094_v28 = vadd.f32 %v9093_v48, %v9092_v51  ;;  %v16288_v47 = vadd.f32 %v9171_v15, %v5285_v37  ;;  %v9292_v16 = vadd.f32 %v9291_v54, %v9290_v49  ;;  %v19136_v49 = vld [vmem:[#allocation36_spill] sm:$0xff] }
 0x3c9   : > { %6991 = vmatprep.mubr.f32.mxu0 %v15910_v41  ;;  %v9207_v35 = vpop.f32.mrf.mxu0  ;;  %v9293_v42 = vpop.f32.mrf.mxu1 }
 0x3ca   : > { %7651 = vmatmul.mubr.f32.gmra.mxu1 %v19125_v21  ;;  %v5294_v41 = vadd.f32 %v9094_v28, %v16062_v4  ;;  %v19129_v4 = vld [vmem:[#allocation107_spill] sm:$0xff] }
 0x3cb   : > { %7656 = vmatprep.mubr.f32.mxu1 %v19126_v62  ;;  %v9208_v43 = vpop.f32.mrf.mxu0  ;;  %v9294_v10 = vpop.f32.mrf.mxu1 }
 0x3cc   : > { %6994 = vmatmul.mubr.f32.gmra.mxu0 %v15907_v56  ;;  %v9209_v58 = vadd.f32 %v9208_v43, %v9207_v35  ;;  %v16295_v46 = vadd.f32 %v9174_v29, %v5294_v41  ;;  %v9295_v36 = vadd.f32 %v9294_v10, %v9293_v42  ;;  %v19132_v29 = vld [vmem:[#allocation106_spill] sm:$0xff] }
 0x3cd   : > { %7433 = vmatprep.mubr.f32.mxu0 %v19116_v26  ;;  %v9210_v56 = vpop.f32.mrf.mxu0  ;;  %v9296_v31 = vpop.f32.mrf.mxu1  ;;  %v19138_v42 = vld [vmem:[#allocation46_spill] sm:$0xff] }
 0x3ce   : > { %7658 = vmatmul.mubr.f32.gmra.mxu1 %v19127_v20  ;;  %v5735_v15 = vadd.f32 %v9209_v58, %v16074_v57  ;;  %v19131_v57 = vld [vmem:[#allocation99_spill] sm:$0xff] }
 0x3cf   : > { %7663 = vmatprep.mubr.f32.mxu1 %v19128_v50  ;;  %v9211_v12 = vpop.f32.mrf.mxu0  ;;  %v9297_v1 = vpop.f32.mrf.mxu1 }
 0x3d0   : > { %7435 = vmatmul.mubr.f32.vlgmr.msra.gmra.mxu0 %v19120_v24  ;;  %v9212_v7 = vadd.f32 %v9211_v12, %v9210_v56  ;;  %v16302_v27 = vadd.f32 %v9289_v3, %v5735_v15  ;;  %v9298_v34 = vadd.f32 %v9297_v1, %v9296_v31  ;;  %v19140_v31 = vld [vmem:[#allocation58_spill] sm:$0xff] }
 0x3d1   : > { %7440 = vmatprep.mubr.f32.mxu0 %v19123_v38  ;;  %v9213_v55 = vpop.f32.mrf.mxu0  ;;  %v9299_v13 = vpop.f32.mrf.mxu1 }
 0x3d2   : > { %7665 = vmatmul.mubr.f32.gmra.mxu1 %v19129_v4  ;;  %v5742_v44 = vadd.f32 %v9212_v7, %v16091_v9  ;;  %v19133_v9 = vld [vmem:[#allocation34_spill] sm:$0xff] }
 0x3d3   : > { %7670 = vmatprep.mubr.f32.mxu1 %v19130_v22  ;;  %v9214_v26 = vpop.f32.mrf.mxu0  ;;  %v9300_v6 = vpop.f32.mrf.mxu1 }
 0x3d4   : > { %7442 = vmatmul.mubr.f32.gmra.mxu0 %v19125_v21  ;;  %v9215_v60 = vadd.f32 %v9214_v26, %v9213_v55  ;;  %v16309_v30 = vadd.f32 %v9292_v16, %v5742_v44  ;;  %v9301_v59 = vadd.f32 %v9300_v6, %v9299_v13  ;;  %v19142_v13 = vld [vmem:[#allocation74_spill] sm:$0xff] }
 0x3d5   : > { %7447 = vmatprep.mubr.f32.mxu0 %v19126_v62  ;;  %v9216_v32 = vpop.f32.mrf.mxu0  ;;  %v9302_v24 = vpop.f32.mrf.mxu1 }
 0x3d6   : > { %7672 = vmatmul.mubr.f32.gmra.mxu1 %v19131_v57  ;;  %v5749_v61 = vadd.f32 %v9215_v60, %v16108_v33  ;;  %v19135_v33 = vld [vmem:[#allocation42_spill] sm:$0xff] }
 0x3d7   : > { %7677 = vmatprep.mubr.f32.mxu1 %v19132_v29  ;;  %v9217_v0 = vpop.f32.mrf.mxu0  ;;  %v9303_v38 = vpop.f32.mrf.mxu1 }
 0x3d8   : > { %7449 = vmatmul.mubr.f32.gmra.mxu0 %v19127_v20  ;;  %v9218_v8 = vadd.f32 %v9217_v0, %v9216_v32  ;;  %v16316_v25 = vadd.f32 %v9295_v36, %v5749_v61  ;;  %v9304_v19 = vadd.f32 %v9303_v38, %v9302_v24  ;;  %v19144_v24 = vld [vmem:[#allocation90_spill] sm:$0xff] }
 0x3d9   : > { %7454 = vmatprep.mubr.f32.mxu0 %v19128_v50  ;;  %v9219_v23 = vpop.f32.mrf.mxu0  ;;  %v9305_v51 = vpop.f32.mrf.mxu1 }
 0x3da   : > { %7679 = vmatmul.mubr.f32.gmra.mxu1 %v19133_v9  ;;  %v5756_v3 = vadd.f32 %v9218_v8, %v16124_v52  ;;  %v19137_v52 = vld [vmem:[#allocation40_spill] sm:$0xff] }
 0x3db   : > { %7684 = vmatprep.mubr.f32.mxu1 %v19134_v45  ;;  %v9220_v37 = vpop.f32.mrf.mxu0  ;;  %v9306_v48 = vpop.f32.mrf.mxu1 }
 0x3dc   : > { %7456 = vmatmul.mubr.f32.gmra.mxu0 %v19129_v4  ;;  %v9221_v21 = vadd.f32 %v9220_v37, %v9219_v23  ;;  %v16323_v62 = vadd.f32 %v9298_v34, %v5756_v3  ;;  %v9307_v28 = vadd.f32 %v9306_v48, %v9305_v51  ;;  %v19146_v51 = vld [vmem:[#allocation98_spill] sm:$0xff] }
 0x3dd   : > { %7461 = vmatprep.mubr.f32.mxu0 %v19130_v22  ;;  %v9222_v54 = vpop.f32.mrf.mxu0  ;;  %v9308_v35 = vpop.f32.mrf.mxu1 }
 0x3de   : > { %7686 = vmatmul.mubr.f32.gmra.mxu1 %v19135_v33  ;;  %v5763_v16 = vadd.f32 %v9221_v21, %v16139_v11  ;;  %v19139_v11 = vld [vmem:[#allocation47_spill] sm:$0xff] }
 0x3df   : > { %7691 = vmatprep.mubr.f32.mxu1 %v19136_v49  ;;  %v9223_v41 = vpop.f32.mrf.mxu0  ;;  %v9309_v43 = vpop.f32.mrf.mxu1 }
 0x3e0   : > { %7463 = vmatmul.mubr.f32.gmra.mxu0 %v19131_v57  ;;  %v9224_v20 = vadd.f32 %v9223_v41, %v9222_v54  ;;  %v16330_v50 = vadd.f32 %v9301_v59, %v5763_v16  ;;  %v9310_v58 = vadd.f32 %v9309_v43, %v9308_v35  ;;  %v19148_v35 = vld [vmem:[#allocation23_spill] sm:$0xff] }
 0x3e1   : > { %7468 = vmatprep.mubr.f32.mxu0 %v19132_v29  ;;  %v9225_v10 = vpop.f32.mrf.mxu0  ;;  %v9311_v56 = vpop.f32.mrf.mxu1 }
 0x3e2   : > { %7693 = vmatmul.mubr.f32.gmra.mxu1 %v19137_v52  ;;  %v5770_v36 = vadd.f32 %v9224_v20, %v16154_v39  ;;  %v19141_v39 = vld [vmem:[#allocation61_spill] sm:$0xff] }
 0x3e3   : > { %7698 = vmatprep.mubr.f32.mxu1 %v19138_v42  ;;  %v9226_v15 = vpop.f32.mrf.mxu0  ;;  %v9312_v12 = vpop.f32.mrf.mxu1 }
 0x3e4   : > { %7470 = vmatmul.mubr.f32.gmra.mxu0 %v19133_v9  ;;  %v9227_v4 = vadd.f32 %v9226_v15, %v9225_v10  ;;  %v16337_v22 = vadd.f32 %v9304_v19, %v5770_v36  ;;  %v9313_v7 = vadd.f32 %v9312_v12, %v9311_v56  ;;  %v19150_v56 = vld [vmem:[#allocation117_spill] sm:$0xff] }
 0x3e5   : > { %7475 = vmatprep.mubr.f32.mxu0 %v19134_v45  ;;  %v9228_v1 = vpop.f32.mrf.mxu0  ;;  %v9314_v55 = vpop.f32.mrf.mxu1 }
 0x3e6   : > { %7700 = vmatmul.mubr.f32.gmra.mxu1 %v19139_v11  ;;  %v5777_v34 = vadd.f32 %v9227_v4, %v16169_v63  ;;  %v19143_v63 = vld [vmem:[#allocation78_spill] sm:$0xff] }
 0x3e7   : > { %7705 = vmatprep.mubr.f32.mxu1 %v19140_v31  ;;  %v9229_v44 = vpop.f32.mrf.mxu0  ;;  %v9315_v26 = vpop.f32.mrf.mxu1 }
 0x3e8   : > { %7477 = vmatmul.mubr.f32.gmra.mxu0 %v19135_v33  ;;  %v9230_v57 = vadd.f32 %v9229_v44, %v9228_v1  ;;  %v16344_v29 = vadd.f32 %v9307_v28, %v5777_v34  ;;  %v9316_v60 = vadd.f32 %v9315_v26, %v9314_v55  ;;  %v19152_v55 = vld [vmem:[#allocation122_spill] sm:$0xff] }
 0x3e9   : > { %7482 = vmatprep.mubr.f32.mxu0 %v19136_v49  ;;  %v9231_v6 = vpop.f32.mrf.mxu0  ;;  %v9317_v32 = vpop.f32.mrf.mxu1 }
 0x3ea   : > { %7707 = vmatmul.mubr.f32.gmra.mxu1 %v19141_v39  ;;  %v5784_v59 = vadd.f32 %v9230_v57, %v16184_v2  ;;  %v19145_v2 = vld [vmem:[#allocation64_spill] sm:$0xff] }
 0x3eb   : > { %7712 = vmatprep.mubr.f32.mxu1 %v19142_v13  ;;  %v9232_v61 = vpop.f32.mrf.mxu0  ;;  %v9318_v0 = vpop.f32.mrf.mxu1 }
 0x3ec   : > { %7484 = vmatmul.mubr.f32.gmra.mxu0 %v19137_v52  ;;  %v9233_v9 = vadd.f32 %v9232_v61, %v9231_v6  ;;  %v16351_v45 = vadd.f32 %v9310_v58, %v5784_v59  ;;  %v9319_v8 = vadd.f32 %v9318_v0, %v9317_v32 }
 0x3ed   : > { %7489 = vmatprep.mubr.f32.mxu0 %v19138_v42  ;;  %v9234_v38 = vpop.f32.mrf.mxu0  ;;  %v9320_v23 = vpop.f32.mrf.mxu1 }
 0x3ee   : > { %7714 = vmatmul.mubr.f32.gmra.mxu1 %v19143_v63  ;;  %v5791_v19 = vadd.f32 %v9233_v9, %v16199_v53  ;;  %v19147_v53 = vld [vmem:[#allocation109_spill] sm:$0xff] }
 0x3ef   : > { %7719 = vmatprep.mubr.f32.mxu1 %v19144_v24  ;;  %v9235_v3 = vpop.f32.mrf.mxu0  ;;  %v9321_v37 = vpop.f32.mrf.mxu1 }
 0x3f0   : > { %7491 = vmatmul.mubr.f32.gmra.mxu0 %v19139_v11  ;;  %v9236_v33 = vadd.f32 %v9235_v3, %v9234_v38  ;;  %v16358_v49 = vadd.f32 %v9313_v7, %v5791_v19  ;;  %v9322_v21 = vadd.f32 %v9321_v37, %v9320_v23 }
 0x3f1   : > { %7496 = vmatprep.mubr.f32.mxu0 %v19140_v31  ;;  %v9237_v48 = vpop.f32.mrf.mxu0  ;;  %v9323_v54 = vpop.f32.mrf.mxu1 }
 0x3f2   : > { %7721 = vmatmul.mubr.f32.gmra.mxu1 %v19145_v2  ;;  %v5798_v28 = vadd.f32 %v9236_v33, %v16216_v5  ;;  %v19149_v5 = vld [vmem:[#allocation29_spill] sm:$0xff] }
 0x3f3   : > { %7726 = vmatprep.mubr.f32.mxu1 %v19146_v51  ;;  %v9238_v16 = vpop.f32.mrf.mxu0  ;;  %v9324_v41 = vpop.f32.mrf.mxu1 }
 0x3f4   : > { %7498 = vmatmul.mubr.f32.gmra.mxu0 %v19141_v39  ;;  %v9239_v52 = vadd.f32 %v9238_v16, %v9237_v48  ;;  %v16365_v42 = vadd.f32 %v9316_v60, %v5798_v28  ;;  %v9325_v20 = vadd.f32 %v9324_v41, %v9323_v54 }
 0x3f5   : > { %7503 = vmatprep.mubr.f32.mxu0 %v19142_v13  ;;  %v9240_v43 = vpop.f32.mrf.mxu0  ;;  %v9326_v10 = vpop.f32.mrf.mxu1 }
 0x3f6   : > { %7728 = vmatmul.mubr.f32.gmra.mxu1 %v19147_v53  ;;  %v5805_v58 = vadd.f32 %v9239_v52, %v16231_v14  ;;  %v19151_v14 = vld [vmem:[#allocation123_spill] sm:$0xff] }
 0x3f7   : > { %7733 = vmatprep.mubr.f32.mxu1 %v19148_v35  ;;  %v9241_v36 = vpop.f32.mrf.mxu0  ;;  %v9327_v15 = vpop.f32.mrf.mxu1 }
 0x3f8   : > { %7505 = vmatmul.mubr.f32.gmra.mxu0 %v19143_v63  ;;  %v9242_v11 = vadd.f32 %v9241_v36, %v9240_v43  ;;  %v16372_v31 = vadd.f32 %v9319_v8, %v5805_v58  ;;  %v9328_v4 = vadd.f32 %v9327_v15, %v9326_v10 }
 0x3f9   : > { %7510 = vmatprep.mubr.f32.mxu0 %v19144_v24  ;;  %v9243_v12 = vpop.f32.mrf.mxu0  ;;  %v9329_v1 = vpop.f32.mrf.mxu1 }
 0x3fa   : > { %7735 = vmatmul.mubr.f32.gmra.mxu1 %v19149_v5  ;;  %v5812_v7 = vadd.f32 %v9242_v11, %v16248_v40  ;;  %v19153_v40 = vld [vmem:[#allocation118_spill] sm:$0xff] }
 0x3fb   : > { %7740 = vmatprep.mubr.f32.mxu1 %v19150_v56  ;;  %v9244_v34 = vpop.f32.mrf.mxu0  ;;  %v9330_v44 = vpop.f32.mrf.mxu1 }
 0x3fc   : > { %7512 = vmatmul.mubr.f32.gmra.mxu0 %v19145_v2  ;;  %v9245_v39 = vadd.f32 %v9244_v34, %v9243_v12  ;;  %v16379_v13 = vadd.f32 %v9322_v21, %v5812_v7  ;;  %v9331_v57 = vadd.f32 %v9330_v44, %v9329_v1 }
 0x3fd   : > { %7517 = vmatprep.mubr.f32.mxu0 %v19146_v51  ;;  %v9246_v26 = vpop.f32.mrf.mxu0  ;;  %v9332_v6 = vpop.f32.mrf.mxu1 }
 0x3fe   : > { %7742 = vmatmul.mubr.f32.gmra.mxu1 %v19151_v14  ;;  %v5819_v60 = vadd.f32 %v9245_v39, %v16262_v18 }
 0x3ff   : > { %7747 = vmatprep.mubr.f32.mxu1 %v19152_v55  ;;  %v9247_v59 = vpop.f32.mrf.mxu0  ;;  %v9333_v63 = vpop.f32.mrf.mxu1 }
 0x400   : > { %7519 = vmatmul.mubr.f32.gmra.mxu0 %v19147_v53  ;;  %v9248_v32 = vadd.f32 %v9247_v59, %v9246_v26  ;;  %v16385_v61 = vadd.f32 %v9325_v20, %v5819_v60  ;;  %v9334_v24 = vadd.f32 %v9333_v63, %v9332_v6 }
 0x401   : > { %7524 = vmatprep.mubr.f32.mxu0 %v19148_v35  ;;  %v9249_v9 = vpop.f32.mrf.mxu0  ;;  %v9447_v8 = vpop.f32.mrf.mxu1 }
 0x402   : > { %7749 = vmatmul.mubr.f32.gmra.mxu1 %v19153_v40  ;;  %v5826_v0 = vadd.f32 %v9248_v32, %v16278_v17 }
 0x403   : > { %v9250_v38 = vpop.f32.mrf.mxu0  ;;  %v9448_v18 = vpop.f32.mrf.mxu1 }
 0x404   : > { %7526 = vmatmul.mubr.f32.gmra.mxu0 %v19149_v5  ;;  %v9251_v19 = vadd.f32 %v9250_v38, %v9249_v9  ;;  %v16390_v23 = vadd.f32 %v9328_v4, %v5826_v0  ;;  %v9449_v2 = vadd.f32 %v9448_v18, %v9447_v8 }
 0x405   : > { %7531 = vmatprep.mubr.f32.mxu0 %v19150_v56  ;;  %v9252_v3 = vpop.f32.mrf.mxu0  ;;  %v9450_v33 = vpop.f32.mrf.mxu1 }
 0x406   : > { %v5833_v51 = vadd.f32 %v9251_v19, %v16288_v47 }
 0x407   : > { %v9253_v37 = vpop.f32.mrf.mxu0  ;;  %v9451_v48 = vpop.f32.mrf.mxu1 }
 0x408   : > { %7533 = vmatmul.mubr.f32.gmra.mxu0 %v19151_v14  ;;  %v9254_v21 = vadd.f32 %v9253_v37, %v9252_v3  ;;  %v16395_v28 = vadd.f32 %v9331_v57, %v5833_v51  ;;  %v9452_v17 = vadd.f32 %v9451_v48, %v9450_v33 }
 0x409   : > { %7538 = vmatprep.mubr.f32.mxu0 %v19152_v55  ;;  %v9367_v54 = vpop.f32.mrf.mxu0  ;;  %v9453_v16 = vpop.f32.mrf.mxu1 }
 0x40a   : > { %v5840_v53 = vadd.f32 %v9254_v21, %v16295_v46 }
 0x40b   : > { %v9368_v35 = vpop.f32.mrf.mxu0  ;;  %v9454_v41 = vpop.f32.mrf.mxu1 }
 0x40c   : > { %7540 = vmatmul.mubr.f32.gmra.mxu0 %v19153_v40  ;;  %v9369_v52 = vadd.f32 %v9368_v35, %v9367_v54  ;;  %v16399_v20 = vadd.f32 %v9334_v24, %v5840_v53  ;;  %v9455_v43 = vadd.f32 %v9454_v41, %v9453_v16 }
 0x40d   : > { %v9370_v47 = vpop.f32.mrf.mxu0  ;;  %v9456_v10 = vpop.f32.mrf.mxu1 }
 0x40e   : > { %v6161_v58 = vadd.f32 %v9369_v52, %v16302_v27 }
 0x40f   : > { %v9371_v5 = vpop.f32.mrf.mxu0  ;;  %v9457_v56 = vpop.f32.mrf.mxu1 }
 0x410   : > { %v9372_v36 = vadd.f32 %v9371_v5, %v9370_v47  ;;  %v16402_v11 = vadd.f32 %v9449_v2, %v6161_v58  ;;  %v9458_v15 = vadd.f32 %v9457_v56, %v9456_v10 }
 0x411   : > { %v9373_v4 = vpop.f32.mrf.mxu0  ;;  %v9459_v12 = vpop.f32.mrf.mxu1 }
 0x412   : > { %v6176_v46 = vadd.f32 %v9372_v36, %v16309_v30 }
 0x413   : > { %v9374_v7 = vpop.f32.mrf.mxu0  ;;  %v9460_v14 = vpop.f32.mrf.mxu1 }
 0x414   : > { %v9375_v1 = vadd.f32 %v9374_v7, %v9373_v4  ;;  %v16405_v34 = vadd.f32 %v9452_v17, %v6176_v46  ;;  %v9461_v55 = vadd.f32 %v9460_v14, %v9459_v12 }
 0x415   : > { %v9376_v39 = vpop.f32.mrf.mxu0  ;;  %v9462_v44 = vpop.f32.mrf.mxu1 }
 0x416   : > { %v6191_v27 = vadd.f32 %v9375_v1, %v16316_v25 }
 0x417   : > { %v9377_v57 = vpop.f32.mrf.mxu0  ;;  %v9463_v60 = vpop.f32.mrf.mxu1 }
 0x418   : > { %v9378_v26 = vadd.f32 %v9377_v57, %v9376_v39  ;;  %v16408_v6 = vadd.f32 %v9455_v43, %v6191_v27  ;;  %v9464_v40 = vadd.f32 %v9463_v60, %v9462_v44 }
 0x419   : > { %v9379_v30 = vpop.f32.mrf.mxu0  ;;  %v9465_v32 = vpop.f32.mrf.mxu1 }
 0x41a   : > { %v6206_v59 = vadd.f32 %v9378_v26, %v16323_v62 }
 0x41b   : > { %v9380_v63 = vpop.f32.mrf.mxu0  ;;  %v9466_v24 = vpop.f32.mrf.mxu1 }
 0x41c   : > { %v16411_v9 = vadd.f32 %v9458_v15, %v6206_v59  ;;  %v9381_v0 = vadd.f32 %v9380_v63, %v9379_v30  ;;  %v9467_v8 = vadd.f32 %v9466_v24, %v9465_v32 }
 0x41d   : > { %v9382_v38 = vpop.f32.mrf.mxu0  ;;  %v9468_v19 = vpop.f32.mrf.mxu1 }
 0x41e   : > { %v6221_v25 = vadd.f32 %v9381_v0, %v16330_v50 }
 0x41f   : > { %v9383_v18 = vpop.f32.mrf.mxu0  ;;  %v9469_v2 = vpop.f32.mrf.mxu1 }
 0x420   : > { %v9384_v3 = vadd.f32 %v9383_v18, %v9382_v38  ;;  %v9470_v51 = vadd.f32 %v9469_v2, %v9468_v19  ;;  %v16414_v33 = vadd.f32 %v9461_v55, %v6221_v25 }
 0x421   : > { %v9385_v37 = vpop.f32.mrf.mxu0  ;;  %v9471_v62 = vpop.f32.mrf.mxu1 }
 0x422   : > { %v6236_v21 = vadd.f32 %v9384_v3, %v16337_v22 }
 0x423   : > { %v9386_v48 = vpop.f32.mrf.mxu0  ;;  %v9472_v17 = vpop.f32.mrf.mxu1 }
 0x424   : > { %v9387_v54 = vadd.f32 %v9386_v48, %v9385_v37  ;;  %v9473_v53 = vadd.f32 %v9472_v17, %v9471_v62  ;;  %v16417_v16 = vadd.f32 %v9464_v40, %v6236_v21 }
 0x425   : > { %v9388_v35 = vpop.f32.mrf.mxu0  ;;  %v9474_v52 = vpop.f32.mrf.mxu1 }
 0x426   : > { %v6251_v50 = vadd.f32 %v9387_v54, %v16344_v29 }
 0x427   : > { %v9389_v41 = vpop.f32.mrf.mxu0  ;;  %v9475_v43 = vpop.f32.mrf.mxu1 }
 0x428   : > { %v9390_v47 = vadd.f32 %v9389_v41, %v9388_v35  ;;  %v9476_v58 = vadd.f32 %v9475_v43, %v9474_v52  ;;  %v16420_v10 = vadd.f32 %v9467_v8, %v6251_v50 }
 0x429   : > { %v9477_v5 = vpop.f32.mrf.mxu1  ;;  %v9391_v22 = vpop.f32.mrf.mxu0 }
 0x42a   : > { %v6266_v36 = vadd.f32 %v9390_v47, %v16351_v45 }
 0x42b   : > { %v9478_v56 = vpop.f32.mrf.mxu1  ;;  %v9392_v15 = vpop.f32.mrf.mxu0 }
 0x42c   : > { %v9479_v4 = vadd.f32 %v9478_v56, %v9477_v5  ;;  %v16423_v46 = vadd.f32 %v9470_v51, %v6266_v36  ;;  %v9393_v12 = vadd.f32 %v9392_v15, %v9391_v22 }
 0x42d   : > { %v9480_v7 = vpop.f32.mrf.mxu1 }
 0x42e   : > { %v6281_v1 = vadd.f32 %v9393_v12, %v16358_v49 }
 0x42f   : > { %v9394_v29 = vpop.f32.mrf.mxu0  ;;  %v9481_v14 = vpop.f32.mrf.mxu1 }
 0x430   : > { %v9482_v55 = vadd.f32 %v9481_v14, %v9480_v7  ;;  %v16426_v44 = vadd.f32 %v9473_v53, %v6281_v1 }
 0x431   : > { %v9395_v39 = vpop.f32.mrf.mxu0  ;;  %v9483_v27 = vpop.f32.mrf.mxu1 }
 0x432   : > { %v9396_v57 = vadd.f32 %v9395_v39, %v9394_v29 }
 0x433   : > { %v9484_v45 = vpop.f32.mrf.mxu1 }
 0x434   : > { %v9397_v26 = vpop.f32.mrf.mxu0  ;;  %v6296_v60 = vadd.f32 %v9396_v57, %v16365_v42  ;;  %v9485_v40 = vadd.f32 %v9484_v45, %v9483_v27 }
 0x435   : > { %v9486_v30 = vpop.f32.mrf.mxu1 }
 0x436   : > { %v9398_v59 = vpop.f32.mrf.mxu0  ;;  %v16429_v63 = vadd.f32 %v9476_v58, %v6296_v60 }
 0x437   : > { %v9399_v32 = vadd.f32 %v9398_v59, %v9397_v26  ;;  %v9487_v49 = vpop.f32.mrf.mxu1 }
 0x438   : > { %19154 = vst [vmem:[#allocation126_spill] sm:$0xff] %v16429_v63  ;;  %v9400_v24 = vpop.f32.mrf.mxu0  ;;  %v9488_v8 = vadd.f32 %v9487_v49, %v9486_v30 }
 0x439   : > { %v6311_v0 = vadd.f32 %v9399_v32, %v16372_v31  ;;  %v9489_v19 = vpop.f32.mrf.mxu1 }
 0x43a   : > { %v9401_v38 = vpop.f32.mrf.mxu0 }
 0x43b   : > { %v9402_v25 = vadd.f32 %v9401_v38, %v9400_v24  ;;  %v16432_v18 = vadd.f32 %v9479_v4, %v6311_v0  ;;  %v9490_v2 = vpop.f32.mrf.mxu1 }
 0x43c   : > { %v9491_v51 = vadd.f32 %v9490_v2, %v9489_v19 }
 0x43d   : > { %19155 = vst [vmem:[#allocation127_spill] sm:$0xff] %v16432_v18  ;;  %v6326_v3 = vadd.f32 %v9402_v25, %v16379_v13  ;;  %v9492_v37 = vpop.f32.mrf.mxu1 }
 0x43e   : > { %v9403_v42 = vpop.f32.mrf.mxu0 }
 0x43f   : > { %v16435_v21 = vadd.f32 %v9482_v55, %v6326_v3  ;;  %v9493_v17 = vpop.f32.mrf.mxu1 }
 0x440   : > { %v9404_v62 = vpop.f32.mrf.mxu0  ;;  %v9494_v53 = vadd.f32 %v9493_v17, %v9492_v37 }
 0x441   : > { %19156 = vst [vmem:[#allocation129_spill] sm:$0xff] %v16435_v21  ;;  %v9405_v48 = vadd.f32 %v9404_v62, %v9403_v42 }
 0x442   : > { %v9406_v54 = vpop.f32.mrf.mxu0 }
 0x443   : > { %v6341_v31 = vadd.f32 %v9405_v48, %v16385_v61 }
 0x444   : > { %v9407_v35 = vpop.f32.mrf.mxu0  ;;  %v16438_v52 = vpop.f32.mrf.mxu1 }
 0x445   : > { %v9408_v50 = vadd.f32 %v9407_v35, %v9406_v54  ;;  %v16440_v41 = vadd.f32 %v9485_v40, %v6341_v31 }
 0x446   : > { %v16442_v13 = vpop.f32.mrf.mxu1 }
 0x447   : > { %19157 = vst [vmem:[#allocation130_spill] sm:$0xff] %v16440_v41  ;;  %v9409_v43 = vpop.f32.mrf.mxu0  ;;  %v6356_v47 = vadd.f32 %v9408_v50, %v16390_v23 }
 0x448   : > { %v16445_v5 = vpop.f32.mrf.mxu1 }
 0x449   : > { %v9410_v58 = vpop.f32.mrf.mxu0  ;;  %v16447_v22 = vadd.f32 %v9488_v8, %v6356_v47 }
 0x44a   : > { %v9411_v36 = vadd.f32 %v9410_v58, %v9409_v43  ;;  %v16449_v15 = vpop.f32.mrf.mxu1 }
 0x44b   : > { %19158 = vst [vmem:[#allocation133_spill] sm:$0xff] %v16447_v22  ;;  %v9412_v56 = vpop.f32.mrf.mxu0 }
 0x44c   : > { %v6371_v61 = vadd.f32 %v9411_v36, %v16395_v28 }
 0x44d   : > { %v9413_v4 = vpop.f32.mrf.mxu0  ;;  %v16452_v12 = vpop.f32.mrf.mxu1 }
 0x44e   : > { %v9414_v7 = vadd.f32 %v9413_v4, %v9412_v56  ;;  %v16454_v1 = vadd.f32 %v9491_v51, %v6371_v61 }
 0x44f   : > { %v9527_v29 = vpop.f32.mrf.mxu0  ;;  %v16456_v14 = vpop.f32.mrf.mxu1 }
 0x450   : > { %19159 = vst [vmem:[#allocation134_spill] sm:$0xff] %v16454_v1  ;;  %v6386_v23 = vadd.f32 %v9414_v7, %v16399_v20 }
 0x451   : > { %v9528_v55 = vpop.f32.mrf.mxu0  ;;  %v16459_v39 = vpop.f32.mrf.mxu1 }
 0x452   : > { %v16461_v27 = vadd.f32 %v9494_v53, %v6386_v23 }
 0x453   : > { %v9530_v57 = vpop.f32.mrf.mxu0  ;;  %v16463_v26 = vpop.f32.mrf.mxu1 }
 0x454   : > { %19160 = vst [vmem:[#allocation135_spill] sm:$0xff] %v16461_v27 }
 0x455   : > { %v9531_v28 = vpop.f32.mrf.mxu0  ;;  %v16465_v45 = vpop.f32.mrf.mxu1 }
 0x457   : > { %v16467_v60 = vpop.f32.mrf.mxu0  ;;  %v16469_v40 = vpop.f32.mrf.mxu1 }
 0x459   : > { %v16471_v59 = vpop.f32.mrf.mxu0  ;;  %v16473_v30 = vpop.f32.mrf.mxu1 }
 0x45b   : > { %v16475_v20 = vpop.f32.mrf.mxu0  ;;  %v16477_v32 = vpop.f32.mrf.mxu1 }
 0x45d   : > { %v16479_v24 = vpop.f32.mrf.mxu0  ;;  %v16481_v49 = vpop.f32.mrf.mxu1 }
 0x45f   : > { %v16483_v0 = vpop.f32.mrf.mxu0  ;;  %v16485_v8 = vpop.f32.mrf.mxu1 }
 0x461   : > { %v16487_v38 = vpop.f32.mrf.mxu0  ;;  %v16489_v19 = vpop.f32.mrf.mxu1 }
 0x463   : > { %v16491_v25 = vpop.f32.mrf.mxu0  ;;  %v16493_v2 = vpop.f32.mrf.mxu1 }
 0x465   : > { %v16495_v3 = vpop.f32.mrf.mxu0  ;;  %v16497_v42 = vpop.f32.mrf.mxu1 }
 0x467   : > { %v16499_v51 = vpop.f32.mrf.mxu0  ;;  %v16501_v37 = vpop.f32.mrf.mxu1 }
 0x468   : > { %19161 = vst [vmem:[#allocation136_spill] sm:$0xff] %v16501_v37 }
 0x469   : > { %v16503_v62 = vpop.f32.mrf.mxu0  ;;  %v16505_v48 = vpop.f32.mrf.mxu1 }
 0x46a   : > { %19162 = vst [vmem:[#allocation141_spill] sm:$0xff] %v16505_v48 }
 0x46b   : > { %v16507_v17 = vpop.f32.mrf.mxu0  ;;  %v16509_v54 = vpop.f32.mrf.mxu1 }
 0x46c   : > { %19163 = vst [vmem:[#allocation142_spill] sm:$0xff] %v16509_v54 }
 0x46d   : > { %v16511_v53 = vpop.f32.mrf.mxu0  ;;  %v16513_v31 = vpop.f32.mrf.mxu1 }
 0x46e   : > { %19164 = vst [vmem:[#allocation140_spill] sm:$0xff] %v16513_v31 }
 0x46f   : > { %v16515_v35 = vpop.f32.mrf.mxu0  ;;  %v16517_v50 = vpop.f32.mrf.mxu1 }
 0x470   : > { %19165 = vst [vmem:[#allocation139_spill] sm:$0xff] %v16517_v50 }
 0x471   : > { %v16519_v43 = vpop.f32.mrf.mxu0  ;;  %v16521_v47 = vpop.f32.mrf.mxu1 }
 0x472   : > { %19166 = vst [vmem:[#allocation22_spill] sm:$0xff] %v16521_v47 }
 0x473   : > { %v16523_v58 = vpop.f32.mrf.mxu0  ;;  %v16525_v36 = vpop.f32.mrf.mxu1 }
 0x474   : > { %19167 = vst [vmem:[#allocation71_spill] sm:$0xff] %v16525_v36 }
 0x475   : > { %v16527_v56 = vpop.f32.mrf.mxu0  ;;  %v16529_v61 = vpop.f32.mrf.mxu1 }
 0x476   : > { %19168 = vst [vmem:[#allocation16_spill] sm:$0xff] %v16529_v61 }
 0x477   : > { %v16531_v4 = vpop.f32.mrf.mxu0  ;;  %v16533_v7 = vpop.f32.mrf.mxu1 }
 0x478   : > { %19169 = vst [vmem:[#allocation119_spill] sm:$0xff] %v16531_v4  ;;  %19170 = vst [vmem:[#allocation103_spill] sm:$0xff] %v16533_v7 }
 0x479   : > { %v16535_v23 = vpop.f32.mrf.mxu0  ;;  %v16537_v27 = vpop.f32.mrf.mxu1 }
 0x47a   : > { %19171 = vst [vmem:[#allocation12_spill] sm:$0xff] %v16535_v23  ;;  %19172 = vst [vmem:[#allocation56_spill] sm:$0xff] %v16537_v27 }
 0x47b   : > { %v16539_v1 = vpop.f32.mrf.mxu0  ;;  %v16541_v22 = vpop.f32.mrf.mxu1 }
 0x47c   : > { %19173 = vst [vmem:[#allocation102_spill] sm:$0xff] %v16539_v1  ;;  %19174 = vst [vmem:[#allocation35_spill] sm:$0xff] %v16541_v22 }
 0x47d   : > { %v16543_v41 = vpop.f32.mrf.mxu0 }
 0x47e   : > { %19175 = vst [vmem:[#allocation38_spill] sm:$0xff] %v16543_v41  ;;  %v16545_v47 = vpop.f32.mrf.mxu1 }
 0x47f   : > { %19176 = vst [vmem:[#allocation11_spill] sm:$0xff] %v16545_v47  ;;  %v16547_v36 = vpop.f32.mrf.mxu0 }
 0x480   : > { %19177 = vst [vmem:[#allocation26_spill] sm:$0xff] %v16547_v36  ;;  %v16549_v21 = vpop.f32.mrf.mxu1  ;;  %v9529_v36 = vadd.f32 %v9528_v55, %v9527_v29  ;;  %v9535_v29 = vadd.f32 %v16471_v59, %v16467_v60 }
 0x481   : > { %19178 = vst [vmem:[#allocation81_spill] sm:$0xff] %v16549_v21  ;;  %v16551_v61 = vpop.f32.mrf.mxu0 }
 0x482   : > { %19179 = vst [vmem:[#allocation57_spill] sm:$0xff] %v16551_v61  ;;  %v16553_v50 = vpop.f32.mrf.mxu1  ;;  %v9532_v61 = vadd.f32 %v9531_v28, %v9530_v57  ;;  %v9612_v28 = vadd.f32 %v16449_v15, %v16445_v5  ;;  %v9615_v5 = vadd.f32 %v16456_v14, %v16452_v12 }
 0x483   : > { %19180 = vst [vmem:[#allocation54_spill] sm:$0xff] %v16553_v50 }
 0x484   : > { %v16555_v7 = vpop.f32.mrf.mxu0  ;;  %v16557_v31 = vpop.f32.mrf.mxu1  ;;  %v6870_v63 = vadd.f32 %v9532_v61, %v16405_v34  ;;  %v6879_v34 = vadd.f32 %v9535_v29, %v16408_v6 }
 0x485   : > { %19181 = vst [vmem:[#allocation65_spill] sm:$0xff] %v16555_v7  ;;  %19182 = vst [vmem:[#allocation131_spill] sm:$0xff] %v16557_v31  ;;  %v6861_v31 = vadd.f32 %v9529_v36, %v16402_v11 }
 0x486   : > { %v16559_v27 = vpop.f32.mrf.mxu0  ;;  %v9767_v1 = vpop.f32.mrf.mxu1  ;;  %v7115_v4 = vadd.f32 %v9612_v28, %v6870_v63  ;;  %v9541_v63 = vadd.f32 %v16487_v38, %v16483_v0  ;;  %v9621_v28 = vadd.f32 %v16469_v40, %v16465_v45  ;;  %v9624_v45 = vadd.f32 %v16477_v32, %v16473_v30 }
 0x487   : > { %19183 = vst [vmem:[#allocation125_spill] sm:$0xff] %v16559_v27  ;;  %v9627_v30 = vadd.f32 %v16485_v8, %v16481_v49 }
 0x488   : > { %v16561_v22 = vpop.f32.mrf.mxu0  ;;  %v9768_v41 = vpop.f32.mrf.mxu1  ;;  %v6897_v38 = vadd.f32 %v9541_v63, %v16414_v33 }
 0x489   : > { %19184 = vst [vmem:[#allocation114_spill] sm:$0xff] %v16561_v22  ;;  %v9609_v22 = vadd.f32 %v16442_v13, %v16438_v52  ;;  %v9769_v11 = vadd.f32 %v9768_v41, %v9767_v1  ;;  %v9538_v13 = vadd.f32 %v16479_v24, %v16475_v20  ;;  %v7126_v24 = vadd.f32 %v9615_v5, %v6879_v34 }
 0x48a   : > { %v16563_v18 = vpop.f32.mrf.mxu0  ;;  %v9770_v47 = vpop.f32.mrf.mxu1  ;;  %v9550_v5 = vadd.f32 %v16511_v53, %v16507_v17 }
 0x48b   : > { %19185 = vst [vmem:[#allocation68_spill] sm:$0xff] %v16563_v18  ;;  %v7104_v55 = vadd.f32 %v9609_v22, %v6861_v31  ;;  %v6888_v6 = vadd.f32 %v9538_v13, %v16411_v9 }
 0x48c   : > { %v16565_v54 = vpop.f32.mrf.mxu0  ;;  %v9771_v21 = vpop.f32.mrf.mxu1 }
 0x48d   : > { %19186 = vst [vmem:[#allocation32_spill] sm:$0xff] %v16565_v54  ;;  %v9772_v15 = vadd.f32 %v9771_v21, %v9770_v47  ;;  %v9618_v21 = vadd.f32 %v16463_v26, %v16459_v39 }
 0x48e   : > { %v16567_v48 = vpop.f32.mrf.mxu0  ;;  %v9773_v50 = vpop.f32.mrf.mxu1 }
 0x48f   : > { %19187 = vst [vmem:[#allocation87_spill] sm:$0xff] %v16567_v48 }
 0x490   : > { %v9687_v7 = vpop.f32.mrf.mxu0  ;;  %v9774_v27 = vpop.f32.mrf.mxu1 }
 0x491   : > { %v9775_v14 = vadd.f32 %v9774_v27, %v9773_v50 }
 0x492   : > { %v9688_v18 = vpop.f32.mrf.mxu0  ;;  %v9776_v23 = vpop.f32.mrf.mxu1 }
 0x493   : > { %v9689_v57 = vadd.f32 %v9688_v18, %v9687_v7  ;;  %v9544_v7 = vadd.f32 %v16495_v3, %v16491_v25  ;;  %v9547_v25 = vadd.f32 %v16503_v62, %v16499_v51 }
 0x494   : > { %v9690_v48 = vpop.f32.mrf.mxu0  ;;  %v9777_v54 = vpop.f32.mrf.mxu1 }
 0x495   : > { %v7437_v36 = vadd.f32 %v9689_v57, %v7104_v55  ;;  %v7137_v55 = vadd.f32 %v9618_v21, %v6888_v6  ;;  %v9778_v27 = vadd.f32 %v9777_v54, %v9776_v23  ;;  %v6906_v13 = vadd.f32 %v9544_v7, %v16417_v16 }
 0x496   : > { %v9691_v37 = vpop.f32.mrf.mxu0  ;;  %v9779_v52 = vpop.f32.mrf.mxu1  ;;  %v6915_v16 = vadd.f32 %v9547_v25, %v16420_v10  ;;  %v6924_v6 = vadd.f32 %v9550_v5, %v16423_v46  ;;  %v19193_v25 = vld [vmem:[#allocation142_spill] sm:$0xff] }
 0x497   : > { %v7646_v61 = vadd.f32 %v9769_v11, %v7437_v36  ;;  %v9692_v60 = vadd.f32 %v9691_v37, %v9690_v48  ;;  %v7148_v36 = vadd.f32 %v9621_v28, %v6897_v38  ;;  %v7159_v62 = vadd.f32 %v9624_v45, %v6906_v13  ;;  %v19190_v28 = vld [vmem:[#allocation12_spill] sm:$0xff]  ;;  %v19192_v13 = vld [vmem:[#allocation141_spill] sm:$0xff] }
 0x498   : > { %v9693_v22 = vpop.f32.mrf.mxu0  ;;  %v9780_v18 = vpop.f32.mrf.mxu1 }
 0x499   : > { %v7754_v59 = vmul.f32 11.313708, %v7646_v61  ;;  %v7444_v41 = vadd.f32 %v9692_v60, %v7115_v4  ;;  %v9781_v40 = vadd.f32 %v9780_v18, %v9779_v52 }
 0x49a   : > { %v9694_v1 = vpop.f32.mrf.mxu0  ;;  %v9782_v31 = vpop.f32.mrf.mxu1 }
 0x49b   : > { %7770 = vst [vmem:[%s16586_s17] sm:$0xff] %v7754_v59  ;;  %v7653_v20 = vadd.f32 %v9772_v15, %v7444_v41  ;;  %v9695_v37 = vadd.f32 %v9694_v1, %v9693_v22 }
 0x49c   : > { %v9696_v48 = vpop.f32.mrf.mxu0  ;;  %v9783_v12 = vpop.f32.mrf.mxu1 }
 0x49d   : > { %v7755_v47 = vmul.f32 11.313708, %v7653_v20  ;;  %v7451_v0 = vadd.f32 %v9695_v37, %v7126_v24  ;;  %v9784_v32 = vadd.f32 %v9783_v12, %v9782_v31  ;;  %v9553_v20 = vadd.f32 %v16519_v43, %v16515_v35 }
 0x49e   : > { %v9697_v4 = vpop.f32.mrf.mxu0  ;;  %v9785_v9 = vpop.f32.mrf.mxu1  ;;  %v7170_v24 = vadd.f32 %v9627_v30, %v6915_v16  ;;  %v9556_v35 = vadd.f32 %v16527_v56, %v16523_v58 }
 0x49f   : > { %7771 = vst [vmem:[%s16586_s17 + $0x8] sm:$0xff] %v7755_v47  ;;  %v7660_v29 = vadd.f32 %v9775_v14, %v7451_v0  ;;  %v9698_v57 = vadd.f32 %v9697_v4, %v9696_v48  ;;  %v9630_v48 = vadd.f32 %v16493_v2, %v16489_v19  ;;  %v6933_v0 = vadd.f32 %v9553_v20, %v16426_v44  ;;  %v19188_v19 = vld [vmem:[#allocation136_spill] sm:$0xff]  ;;  %v19191_v44 = vld [vmem:[#allocation126_spill] sm:$0xff]  ;;  %v19199_v20 = vld [vmem:[#allocation129_spill] sm:$0xff] }
 0x4a0   : > { %v9699_v11 = vpop.f32.mrf.mxu0  ;;  %v9786_v39 = vpop.f32.mrf.mxu1  ;;  %v9633_v2 = vadd.f32 %v19188_v19, %v16497_v42  ;;  %v9636_v42 = vadd.f32 %v19193_v25, %v19192_v13  ;;  %v19210_v13 = vld [vmem:[#allocation114_spill] sm:$0xff]  ;;  %v19211_v25 = vld [vmem:[#allocation68_spill] sm:$0xff] }
 0x4a1   : > { %v7756_v26 = vmul.f32 11.313708, %v7660_v29  ;;  %v7458_v50 = vadd.f32 %v9698_v57, %v7137_v55  ;;  %v9787_v8 = vadd.f32 %v9786_v39, %v9785_v9  ;;  %v7181_v14 = vadd.f32 %v9630_v48, %v6924_v6  ;;  %v19189_v57 = vld [vmem:[#allocation119_spill] sm:$0xff] }
 0x4a2   : > { %v9700_v33 = vpop.f32.mrf.mxu0  ;;  %v9788_v34 = vpop.f32.mrf.mxu1  ;;  %v7192_v56 = vadd.f32 %v9633_v2, %v6933_v0  ;;  %v19206_v2 = vld [vmem:[#allocation130_spill] sm:$0xff] }
 0x4a3   : > { %7772 = vst [vmem:[%s16586_s17 + $0x10] sm:$0xff] %v7756_v26  ;;  %v7667_v3 = vadd.f32 %v9778_v27, %v7458_v50  ;;  %v9701_v61 = vadd.f32 %v9700_v33, %v9699_v11  ;;  %v9559_v11 = vadd.f32 %v19190_v28, %v19189_v57  ;;  %v6942_v26 = vadd.f32 %v9556_v35, %v19191_v44  ;;  %v19204_v35 = vld [vmem:[#allocation65_spill] sm:$0xff] }
 0x4a4   : > { %v9702_v60 = vpop.f32.mrf.mxu0  ;;  %v9789_v22 = vpop.f32.mrf.mxu1 }
 0x4a5   : > { %v7757_v54 = vmul.f32 11.313708, %v7667_v3  ;;  %v7465_v23 = vadd.f32 %v9701_v61, %v7148_v36  ;;  %v9790_v9 = vadd.f32 %v9789_v22, %v9788_v34  ;;  %v7203_v16 = vadd.f32 %v9636_v42, %v6942_v26 }
 0x4a6   : > { %v9703_v15 = vpop.f32.mrf.mxu0  ;;  %v9791_v59 = vpop.f32.mrf.mxu1  ;;  %v9571_v42 = vadd.f32 %v19211_v25, %v19210_v13 }
 0x4a7   : > { %7773 = vst [vmem:[%s16586_s17 + $0x18] sm:$0xff] %v7757_v54  ;;  %v7674_v51 = vadd.f32 %v9781_v40, %v7465_v23  ;;  %v9704_v41 = vadd.f32 %v9703_v15, %v9702_v60  ;;  %v19194_v60 = vld [vmem:[#allocation127_spill] sm:$0xff]  ;;  %v19195_v54 = vld [vmem:[#allocation102_spill] sm:$0xff] }
 0x4a8   : > { %v9705_v63 = vpop.f32.mrf.mxu0  ;;  %v9792_v1 = vpop.f32.mrf.mxu1  ;;  %v6951_v22 = vadd.f32 %v9559_v11, %v19194_v60  ;;  %v19196_v23 = vld [vmem:[#allocation38_spill] sm:$0xff]  ;;  %v19207_v11 = vld [vmem:[#allocation16_spill] sm:$0xff] }
 0x4a9   : > { %v7758_v52 = vmul.f32 11.313708, %v7674_v51  ;;  %v7472_v18 = vadd.f32 %v9704_v41, %v7159_v62  ;;  %v9793_v34 = vadd.f32 %v9792_v1, %v9791_v59  ;;  %v9562_v5 = vadd.f32 %v19196_v23, %v19195_v54  ;;  %v19197_v62 = vld [vmem:[#allocation140_spill] sm:$0xff]  ;;  %v19198_v41 = vld [vmem:[#allocation139_spill] sm:$0xff] }
 0x4aa   : > { %v9706_v17 = vpop.f32.mrf.mxu0  ;;  %v9794_v53 = vpop.f32.mrf.mxu1  ;;  %v19212_v60 = vld [vmem:[#allocation56_spill] sm:$0xff] }
 0x4ab   : > { %7774 = vst [vmem:[%s16586_s17 + $0x20] sm:$0xff] %v7758_v52  ;;  %v7681_v10 = vadd.f32 %v9784_v32, %v7472_v18  ;;  %v9707_v37 = vadd.f32 %v9706_v17, %v9705_v63  ;;  %v9639_v63 = vadd.f32 %v19198_v41, %v19197_v62  ;;  %v19215_v41 = vld [vmem:[#allocation32_spill] sm:$0xff] }
 0x4ac   : > { %v9708_v21 = vpop.f32.mrf.mxu0  ;;  %v9795_v49 = vpop.f32.mrf.mxu1 }
 0x4ad   : > { %v7759_v31 = vmul.f32 11.313708, %v7681_v10  ;;  %v7479_v12 = vadd.f32 %v9707_v37, %v7170_v24  ;;  %v9796_v59 = vadd.f32 %v9795_v49, %v9794_v53  ;;  %v7214_v18 = vadd.f32 %v9639_v63, %v6951_v22  ;;  %v19200_v24 = vld [vmem:[#allocation26_spill] sm:$0xff]  ;;  %v19201_v37 = vld [vmem:[#allocation57_spill] sm:$0xff]  ;;  %v19213_v22 = vld [vmem:[#allocation35_spill] sm:$0xff] }
 0x4ae   : > { %v9709_v46 = vpop.f32.mrf.mxu0  ;;  %v9797_v47 = vpop.f32.mrf.mxu1  ;;  %v6960_v10 = vadd.f32 %v9562_v5, %v19199_v20  ;;  %v9565_v48 = vadd.f32 %v19201_v37, %v19200_v24  ;;  %v19216_v63 = vld [vmem:[#allocation87_spill] sm:$0xff] }
 0x4af   : > { %7775 = vst [vmem:[%s16586_s17 + $0x28] sm:$0xff] %v7759_v31  ;;  %v7688_v43 = vadd.f32 %v9787_v8, %v7479_v12  ;;  %v9710_v38 = vadd.f32 %v9709_v46, %v9708_v21  ;;  %v19202_v12 = vld [vmem:[#allocation22_spill] sm:$0xff] }
 0x4b0   : > { %v9711_v4 = vpop.f32.mrf.mxu0  ;;  %v9798_v7 = vpop.f32.mrf.mxu1 }
 0x4b1   : > { %v7760_v29 = vmul.f32 11.313708, %v7688_v43  ;;  %v7486_v55 = vadd.f32 %v9710_v38, %v7181_v14  ;;  %v19203_v14 = vld [vmem:[#allocation71_spill] sm:$0xff]  ;;  %v9799_v0 = vadd.f32 %v9798_v7, %v9797_v47  ;;  %v19205_v43 = vld [vmem:[#allocation125_spill] sm:$0xff] }
 0x4b2   : > { %v9712_v39 = vpop.f32.mrf.mxu0  ;;  %v9800_v27 = vpop.f32.mrf.mxu1  ;;  %v9642_v46 = vadd.f32 %v19203_v14, %v19202_v12  ;;  %v9568_v38 = vadd.f32 %v19205_v43, %v19204_v35 }
 0x4b3   : > { %7776 = vst [vmem:[%s16586_s17 + $0x30] sm:$0xff] %v7760_v29  ;;  %v7695_v58 = vadd.f32 %v9790_v9, %v7486_v55  ;;  %v9713_v50 = vadd.f32 %v9712_v39, %v9711_v4  ;;  %v6969_v9 = vadd.f32 %v9565_v48, %v19206_v2  ;;  %v19208_v39 = vld [vmem:[#allocation103_spill] sm:$0xff] }
 0x4b4   : > { %v9714_v36 = vpop.f32.mrf.mxu0  ;;  %v9801_v33 = vpop.f32.mrf.mxu1  ;;  %v7225_v55 = vadd.f32 %v9642_v46, %v6960_v10  ;;  %v9645_v44 = vadd.f32 %v19208_v39, %v19207_v11  ;;  %v19219_v48 = vld [vmem:[#allocation135_spill] sm:$0xff]  ;;  %v19220_v46 = vld [vmem:[#allocation54_spill] sm:$0xff] }
 0x4b5   : > { %v7761_v3 = vmul.f32 11.313708, %v7695_v58  ;;  %v7493_v61 = vadd.f32 %v9713_v50, %v7192_v56  ;;  %v9802_v26 = vadd.f32 %v9801_v33, %v9800_v27  ;;  %v19209_v58 = vld [vmem:[#allocation133_spill] sm:$0xff] }
 0x4b6   : > { %v9715_v45 = vpop.f32.mrf.mxu0  ;;  %v9803_v40 = vpop.f32.mrf.mxu1  ;;  %v6978_v56 = vadd.f32 %v9568_v38, %v19209_v58 }
 0x4b7   : > { %7777 = vst [vmem:[%s16586_s17 + $0x38] sm:$0xff] %v7761_v3  ;;  %v7702_v15 = vadd.f32 %v9793_v34, %v7493_v61  ;;  %v9716_v51 = vadd.f32 %v9715_v45, %v9714_v36  ;;  %v7236_v3 = vadd.f32 %v9645_v44, %v6969_v9  ;;  %v9648_v45 = vadd.f32 %v19213_v22, %v19212_v60 }
 0x4b8   : > { %v9717_v30 = vpop.f32.mrf.mxu0  ;;  %v9804_v32 = vpop.f32.mrf.mxu1 }
 0x4b9   : > { %v7762_v1 = vmul.f32 11.313708, %v7702_v15  ;;  %v7500_v52 = vadd.f32 %v9716_v51, %v7203_v16  ;;  %v9805_v23 = vadd.f32 %v9804_v32, %v9803_v40  ;;  %v7247_v15 = vadd.f32 %v9648_v45, %v6978_v56  ;;  %v19214_v51 = vld [vmem:[#allocation134_spill] sm:$0xff] }
 0x4ba   : > { %v9718_v6 = vpop.f32.mrf.mxu0  ;;  %v9806_v17 = vpop.f32.mrf.mxu1  ;;  %v6987_v62 = vadd.f32 %v9571_v42, %v19214_v51 }
 0x4bb   : > { %7778 = vst [vmem:[%s16586_s17 + $0x40] sm:$0xff] %v7762_v1  ;;  %v7709_v21 = vadd.f32 %v9796_v59, %v7500_v52  ;;  %v9719_v8 = vadd.f32 %v9718_v6, %v9717_v30  ;;  %v9574_v30 = vadd.f32 %v19216_v63, %v19215_v41  ;;  %v19218_v6 = vld [vmem:[#allocation81_spill] sm:$0xff] }
 0x4bc   : > { %v9720_v31 = vpop.f32.mrf.mxu0  ;;  %v9807_v19 = vpop.f32.mrf.mxu1 }
 0x4bd   : > { %v7763_v53 = vmul.f32 11.313708, %v7709_v21  ;;  %v7507_v49 = vadd.f32 %v9719_v8, %v7214_v18  ;;  %v19217_v18 = vld [vmem:[#allocation11_spill] sm:$0xff]  ;;  %v9808_v10 = vadd.f32 %v9807_v19, %v9806_v17  ;;  %v6996_v21 = vadd.f32 %v9574_v30, %v19219_v48 }
 0x4be   : > { %v9721_v4 = vpop.f32.mrf.mxu0  ;;  %v9809_v50 = vpop.f32.mrf.mxu1  ;;  %v9651_v20 = vadd.f32 %v19218_v6, %v19217_v18 }
 0x4bf   : > { %7779 = vst [vmem:[%s16586_s17 + $0x48] sm:$0xff] %v7763_v53  ;;  %v7716_v29 = vadd.f32 %v9799_v0, %v7507_v49  ;;  %v9722_v57 = vadd.f32 %v9721_v4, %v9720_v31  ;;  %v19221_v0 = vld [vmem:[#allocation131_spill] sm:$0xff] }
 0x4c0   : > { %v9723_v28 = vpop.f32.mrf.mxu0  ;;  %v9810_v5 = vpop.f32.mrf.mxu1  ;;  %v7258_v31 = vadd.f32 %v9651_v20, %v6987_v62  ;;  %v9654_v53 = vadd.f32 %v19221_v0, %v19220_v46 }
 0x4c1   : > { %v7764_v47 = vmul.f32 11.313708, %v7716_v29  ;;  %v7514_v7 = vadd.f32 %v9722_v57, %v7225_v55  ;;  %v9811_v49 = vadd.f32 %v9810_v5, %v9809_v50 }
 0x4c2   : > { %v9724_v36 = vpop.f32.mrf.mxu0  ;;  %v9812_v24 = vpop.f32.mrf.mxu1  ;;  %v7269_v19 = vadd.f32 %v9654_v53, %v6996_v21 }
 0x4c3   : > { %7780 = vst [vmem:[%s16586_s17 + $0x50] sm:$0xff] %v7764_v47  ;;  %v7723_v34 = vadd.f32 %v9802_v26, %v7514_v7  ;;  %v9725_v61 = vadd.f32 %v9724_v36, %v9723_v28 }
 0x4c4   : > { %v9726_v54 = vpop.f32.mrf.mxu0  ;;  %v9813_v43 = vpop.f32.mrf.mxu1 }
 0x4c5   : > { %v7765_v27 = vmul.f32 11.313708, %v7723_v34  ;;  %v7521_v33 = vadd.f32 %v9725_v61, %v7236_v3  ;;  %v9814_v9 = vadd.f32 %v9813_v43, %v9812_v24 }
 0x4c6   : > { %v9727_v16 = vpop.f32.mrf.mxu0 }
 0x4c7   : > { %7781 = vst [vmem:[%s16586_s17 + $0x58] sm:$0xff] %v7765_v27  ;;  %v7730_v59 = vadd.f32 %v9805_v23, %v7521_v33  ;;  %v9728_v1 = vadd.f32 %v9727_v16, %v9726_v54 }
 0x4c8   : > { %v9729_v52 = vpop.f32.mrf.mxu0 }
 0x4c9   : > { %v7766_v40 = vmul.f32 11.313708, %v7730_v59  ;;  %v7528_v32 = vadd.f32 %v9728_v1, %v7247_v15 }
 0x4ca   : > { %v9730_v37 = vpop.f32.mrf.mxu0 }
 0x4cb   : > { %7782 = vst [vmem:[%s16586_s17 + $0x60] sm:$0xff] %v7766_v40  ;;  %v7737_v8 = vadd.f32 %v9808_v10, %v7528_v32  ;;  %v9731_v12 = vadd.f32 %v9730_v37, %v9729_v52 }
 0x4cc   : > { %v9732_v14 = vpop.f32.mrf.mxu0 }
 0x4cd   : > { %v7767_v17 = vmul.f32 11.313708, %v7737_v8  ;;  %v7535_v35 = vadd.f32 %v9731_v12, %v7258_v31 }
 0x4ce   : > { %v9733_v38 = vpop.f32.mrf.mxu0 }
 0x4cf   : > { %7783 = vst [vmem:[%s16586_s17 + $0x68] sm:$0xff] %v7767_v17  ;;  %v7744_v4 = vadd.f32 %v9811_v49, %v7535_v35  ;;  %v9734_v2 = vadd.f32 %v9733_v38, %v9732_v14 }
 0x4d1   : > { %v7768_v29 = vmul.f32 11.313708, %v7744_v4  ;;  %v7542_v55 = vadd.f32 %v9734_v2, %v7269_v19 }
 0x4d3   : > { %7784 = vst [vmem:[%s16586_s17 + $0x70] sm:$0xff] %v7768_v29  ;;  %v7751_v57 = vadd.f32 %v9814_v9, %v7542_v55 }
 0x4d5   : > { %v7769_v28 = vmul.f32 11.313708, %v7751_v57 }
 0x4d7   : > { %7785 = vst [vmem:[%s16586_s17 + $0x78] sm:$0xff] %v7769_v28 }
 0x4d8   : > { %10395 = shalt.err (!%p10392_p0)
}
 0x4d9   : > { %s10396_s26 = scalar_lea.hbm %s16668_s20, 2048  ;;  %s10400_s3 = scalar_lea.hbm %s16716_s2, 4096 }
 0x4da   : > { %p10397_p5 = scmp.ne.s32.totalorder %s16668_s20, %s10396_s26  ;;  %p10401_p1 = scmp.lt.s32.totalorder %s16668_s20, %s16716_s2 }
 0x4db   : > { %p10402_p4 = scmp.lt.s32.totalorder %s10400_s3, %s10396_s26 }
 0x4dc   : > { %p10398_p9 = pnand %p10397_p5, %p19222_p3 }
 0x4dd   : > { %p10403_p6 = por %p10402_p4, %p10401_p1 }
 0x4de   : > { %p10399_p12 = pneg %p10398_p9 }
 0x4e0   : > { %p10404_p8 = pnand %p10403_p6, %p10399_p12 }
 0x4e2   : > { %10407 = shalt.err (!%p10404_p8)
}
 0x4e3   : > { %s10458_s8 = smov 128   ;;  %s10459_s15 = smov 8  }
 0x4e4   : > { %9821 = dma.vmem_to_hbm [thread:$0]  (%p19222_p3), %s16670_s14, 2048, %s16668_s20, %s7787_s22, %s10458_s8, %s10458_s8, %s10459_s15  }
 0x4e5 PF: > { %s7815_s17 = sand.u32 1, %s10438_s9   ;;  %p19223_p11 = scmp.ne.s32.totalorder %s17593_s16, 0 }
 0x4e6   : > { %p19224_p7 = scmp.ge.s32.totalorder %s10450_s12, 2  ;;  %s7816_s7 = scalar_lea.sflag [#allocation4], %s7815_s17 }
 0x4e8   : > { %p9832_p10 = pnand %p19224_p7, %p19223_p11 }
 0x4ea   : > { %p9833_p2 = pneg %p9832_p10 }
 0x4ec   : > { %10433 = dma.done.wait (%p9833_p2), %s7816_s7, 2048  }
 0x4ed   : > { %10435 = vsyncadd (%p9833_p2), %s7816_s7, 4294965248  ;;  %p16_p13 = scmp.ge.s32.totalorder %s10529_s21, 4   ;;  %s19225_s9 = smov %s10442_s10 }
 0x4ee   : > { %s19226_s10 = smov %s10446_s11  ;;  %s19227_s11 = smov %s10546_s29 }
 0x4ef   : > { %s19228_s12 = smov %s10529_s21  ;;  %18 = sbr.rel (!%p16_p13) target bundleno = 6 (0x6), region = 77 }
 0x4f4   :  { %7821 = vsyncpa [#allocation3], 1 }
 0x4f5   :  { %7823 = vsyncpa [#allocation3 + $0x1], 1 }
 0x4f6   :  { %7824 = vsyncpa [#allocation6], 1 }
 0x4f7   :  { %7825 = vsyncpa [#allocation4], 1 }
 0x4f8   :  { %7827 = vsyncpa [#allocation4 + $0x1], 1 }

</bundles_post_ra>
